<compile_context>
chip_gen: v7x
topology: tpu7x:2x2x1
jax: 0.10.0
libtpu: 0.0.40
codegen_flags: <defaults>
</compile_context>

<pallas_src>
import functools

import jax
import jax.numpy as jnp
from jax.experimental import pallas as pl
from jax.experimental.pallas import tpu as pltpu


def _relu(x):
    return jnp.maximum(x, 0.0)


def _round_up(x, m):
    return ((x + m - 1) // m) * m


def _default_mxu_dtype():
    """bf16 MXU operands on every TPU generation (the v5e MXU natively takes
    bf16; f32 operands take the slow multi-pass path). Elementwise math stays
    f32 in the kernel. Non-TPU backends fall back to f32."""
    try:
        if jax.default_backend() == "tpu":
            return jnp.bfloat16
    except Exception:
        pass
    return jnp.float32


# ----------------------------------------------------------------------------
# Kernel (one program per 128-node block of graphs)
# ----------------------------------------------------------------------------
def mpnn_encoder_kernel(
    x_ref, adj_ref, readout_ref,
    w_in_ref, wm_ref, wu_ref, w_gi_ref, w_gh_ref,
    w_node_ref, w_g1_ref, w_g2_ref, bias_ref,
    node_out_ref, graph_out_ref,
    *, rounds: int, s_pad: int, z_pad: int, g_pad: int, mxu_dtype,
):
    Sp = s_pad
    f32 = jnp.float32

    def mm(a, w):
        # MXU matmul: operands already in mxu_dtype, accumulate in f32.
        return jnp.dot(a, w, preferred_element_type=f32)

    # Loop-invariant bias rows, loaded once (the rounds loop is unrolled, so
    # per-round slices below are static).
    b_in   = bias_ref[0:1, :Sp]
    b_gi   = bias_ref[2 * rounds + 1:2 * rounds + 2, :3 * Sp]
    b_gh   = bias_ref[2 * rounds + 2:2 * rounds + 3, :3 * Sp]
    b_node = bias_ref[2 * rounds + 3:2 * rounds + 4, :2 * z_pad]
    b_g1   = bias_ref[2 * rounds + 4:2 * rounds + 5, :2 * Sp]
    b_g2   = bias_ref[2 * rounds + 5:2 * rounds + 6, :2 * g_pad]

    x = x_ref[...]            # [Nb, Dp]  mxu_dtype
    adj = adj_ref[...]        # [Nb, Nb]  mxu_dtype, adj[dst, src] = multiplicity

    # input_net: Linear -> ReLU -> Dropout(eval = identity)
    h = _relu(mm(x, w_in_ref[...]) + b_in)            # [Nb, Sp] f32

    w_gi = w_gi_ref[...]                              # [Sp, 3*Sp]
    w_gh = w_gh_ref[...]                              # [Sp, 3*Sp]

    # Message-passing rounds (small static trip count -> unrolled).
    for r in range(rounds):
        h_mxu = h.astype(mxu_dtype)                   # cast ONCE per round
        # message_net[r]
        m = _relu(mm(h_mxu, wm_ref[r]) + bias_ref[1 + r:2 + r, :Sp])
        # edge scatter-add == dense per-block adjacency matmul
        agg = mm(adj, m.astype(mxu_dtype))
        # update_net[r]
        msg = _relu(mm(agg.astype(mxu_dtype), wu_ref[r])
                    + bias_ref[1 + rounds + r:2 + rounds + r, :Sp])
        # GRUCell(msg, h): two K=Sp matmuls with 3 column blocks [r | z | n]
        # (no concatenate, no structurally-zero 4th block).
        gi = mm(msg.astype(mxu_dtype), w_gi) + b_gi   # [Nb, 3*Sp]
        gh = mm(h_mxu, w_gh) + b_gh                   # [Nb, 3*Sp]
        rg = jax.nn.sigmoid(gi[:, 0 * Sp:1 * Sp] + gh[:, 0 * Sp:1 * Sp])
        zg = jax.nn.sigmoid(gi[:, 1 * Sp:2 * Sp] + gh[:, 1 * Sp:2 * Sp])
        ng = jnp.tanh(gi[:, 2 * Sp:3 * Sp] + rg * gh[:, 2 * Sp:3 * Sp])
        h = (1.0 - zg) * ng + zg * h

    # Node heads (mu | logvar fused; lane-dense store).
    node_out_ref[...] = mm(h.astype(mxu_dtype), w_node_ref[...]) + b_node

    # Graph readout: 0/1-indicator matmul (exact structure), then the exact
    # f32 reciprocal-of-count applied AFTER the matmul (1/n is not exactly
    # representable in bf16).
    nb = h.shape[0]
    ro = readout_ref[...]                             # [Gb, Nb + 128] f32
    g_sum = jnp.dot(ro[:, :nb], h, preferred_element_type=f32)    # [Gb, Sp]
    g = g_sum * ro[:, nb:nb + 1]                      # per-graph mean, f32
    hg = _relu(mm(g.astype(mxu_dtype), w_g1_ref[...]) + b_g1)     # [Gb, 2*Sp]
    graph_out_ref[...] = mm(hg.astype(mxu_dtype), w_g2_ref[...]) + b_g2


# ----------------------------------------------------------------------------
# Parameters
# ----------------------------------------------------------------------------
def init_params(key, in_dim, state_dim, z_dim, g_dim, rounds):
    """Deterministic synthetic parameters (all float32, PyTorch-equivalent)."""
    S, Z, G, R = state_dim, z_dim, g_dim, rounds
    keys = jax.random.split(key, 32)
    k = iter(keys)
    n = lambda shape: (0.1 * jax.random.normal(next(k), shape)).astype(jnp.float32)
    return dict(
        w_in=n((in_dim, S)), b_in=n((1, S)),
        wm=n((R, S, S)), bm=n((R, 1, S)),
        wu=n((R, S, S)), bu=n((R, 1, S)),
        # GRUCell weights stored pre-transposed: [input, 3*hidden], gate order r,z,n
        w_ih=n((S, 3 * S)), w_hh=n((S, 3 * S)),
        b_ih=n((1, 3 * S)), b_hh=n((1, 3 * S)),
        w_mun=n((S, Z)), b_mun=n((1, Z)),
        w_lvn=n((S, Z)), b_lvn=n((1, Z)),
        w_gm1=n((S, S)), b_gm1=n((1, S)),
        w_gm2=n((S, G)), b_gm2=n((1, G)),
        w_gl1=n((S, S)), b_gl1=n((1, S)),
        w_gl2=n((S, G)), b_gl2=n((1, G)),
    )


def _pad2(a, rows, cols):
    return jnp.zeros((rows, cols), a.dtype).at[: a.shape[0], : a.shape[1]].set(a)


def _pad3(a, rows, cols):
    return jnp.zeros((a.shape[0], rows, cols), a.dtype).at[
        :, : a.shape[1], : a.shape[2]].set(a)


# ----------------------------------------------------------------------------
# Wrapper
# ----------------------------------------------------------------------------
def mpnn_encoder_forward_batched(xs, edge_indices, params, *,
                                 mxu_dtype=None, node_block=128):
    """Run B graphs through one gridded kernel call. Returns a list of
    per-graph (mu_node, logvar_node, mu_g, logvar_g), matching the module."""
    if mxu_dtype is None:
        mxu_dtype = _default_mxu_dtype()

    in_dim, S = params["w_in"].shape
    Z = params["w_mun"].shape[1]
    G = params["w_gm2"].shape[1]
    R = params["wm"].shape[0]

    Dp = _round_up(in_dim, 128)
    Sp = _round_up(S, 128)
    Zp = _round_up(Z, 128)
    Gp = _round_up(G, 128)
    node_block = _round_up(node_block, 128)

    f32 = jnp.float32
    B = len(xs)
    sizes = [int(x.shape[0]) for x in xs]

    # --- pack graphs into independent node blocks (first-fit) ---------------
    blocks, cur, cur_n = [], [], 0
    for g, n in enumerate(sizes):
        if n > node_block:
            # TODO(synk): graphs bigger than a node block need the
            # scalar-prefetch edge-gather path instead of a dense block adj.
            raise ValueError(f"graph {g} has {n} nodes > node_block={node_block}")
        if cur_n + n > node_block:
            blocks.append(cur)
            cur, cur_n = [], 0
        cur.append(g)
        cur_n += n
    if cur:
        blocks.append(cur)
    NB = len(blocks)
    GBp = _round_up(max(8, max(len(blk) for blk in blocks)), 8)

    # --- per-block, lane-padded inputs ---------------------------------------
    x_blk = jnp.zeros((NB, node_block, Dp), f32)
    adj_blk = jnp.zeros((NB, node_block, node_block), f32)
    # readout: cols [:node_block] = 0/1 node indicators, col node_block = 1/n (f32)
    readout_blk = jnp.zeros((NB, GBp, node_block + 128), f32)
    placement = [None] * B        # graph -> (block, slot, node offset, num nodes)
    for bi, blk in enumerate(blocks):
        off = 0
        for slot, g in enumerate(blk):
            n = sizes[g]
            x_blk = x_blk.at[bi, off:off + n, :in_dim].set(xs[g].astype(f32))
            ei = edge_indices[g]
            adj_blk = adj_blk.at[bi, ei[1] + off, ei[0] + off].add(1.0)   # A[dst,src]+=1
            readout_blk = readout_blk.at[bi, slot, off:off + n].set(1.0)
            readout_blk = readout_blk.at[bi, slot, node_block].set(1.0 / n)
            placement[g] = (bi, slot, off, n)
            off += n

    # --- padded / fused weights ----------------------------------------------
    w_in = _pad2(params["w_in"], Dp, Sp)
    wm = _pad3(params["wm"], Sp, Sp)
    wu = _pad3(params["wu"], Sp, Sp)

    # GRU weights as two [Sp, 3*Sp] matrices, 128-aligned column blocks r|z|n.
    def gate_blocks(w):
        out = jnp.zeros((Sp, 3 * Sp), f32)
        for gidx in range(3):
            out = out.at[:S, gidx * Sp:gidx * Sp + S].set(w[:, gidx * S:(gidx + 1) * S])
        return out
    w_gi = gate_blocks(params["w_ih"])
    w_gh = gate_blocks(params["w_hh"])

    # Fused node heads [mu | logvar].
    w_node = jnp.zeros((Sp, 2 * Zp), f32)
    w_node = w_node.at[:S, :Z].set(params["w_mun"]).at[:S, Zp:Zp + Z].set(params["w_lvn"])
    # Fused graph heads: hidden layers side by side, output layers block-diag.
    w_g1 = jnp.zeros((Sp, 2 * Sp), f32)
    w_g1 = w_g1.at[:S, :S].set(params["w_gm1"]).at[:S, Sp:Sp + S].set(params["w_gl1"])
    w_g2 = jnp.zeros((2 * Sp, 2 * Gp), f32)
    w_g2 = w_g2.at[:S, :G].set(params["w_gm2"]).at[Sp:Sp + S, Gp:Gp + G].set(params["w_gl2"])

    # All biases consolidated into ONE f32 table (fewer DMA descriptors).
    # Row layout: [b_in | bm[0..R-1] | bu[0..R-1] | b_gi | b_gh | b_node | b_g1 | b_g2]
    Wb = max(3 * Sp, 2 * Zp, 2 * Gp)
    BRp = _round_up(2 * R + 6, 8)
    bias = jnp.zeros((BRp, Wb), f32)
    bias = bias.at[0, :S].set(params["b_in"][0])
    for r in range(R):
        bias = bias.at[1 + r, :S].set(params["bm"][r, 0])
        bias = bias.at[1 + R + r, :S].set(params["bu"][r, 0])
    b_ih, b_hh = params["b_ih"][0], params["b_hh"][0]
    row = 2 * R + 1            # gi bias: (b_ir + b_hr | b_iz + b_hz | b_in)
    bias = bias.at[row, 0:S].set(b_ih[0:S] + b_hh[0:S])
    bias = bias.at[row, Sp:Sp + S].set(b_ih[S:2 * S] + b_hh[S:2 * S])
    bias = bias.at[row, 2 * Sp:2 * Sp + S].set(b_ih[2 * S:3 * S])
    row = 2 * R + 2            # gh bias: (0 | 0 | b_hn)
    bias = bias.at[row, 2 * Sp:2 * Sp + S].set(b_hh[2 * S:3 * S])
    row = 2 * R + 3
    bias = bias.at[row, :Z].set(params["b_mun"][0])
    bias = bias.at[row, Zp:Zp + Z].set(params["b_lvn"][0])
    row = 2 * R + 4
    bias = bias.at[row, :S].set(params["b_gm1"][0])
    bias = bias.at[row, Sp:Sp + S].set(params["b_gl1"][0])
    row = 2 * R + 5
    bias = bias.at[row, :G].set(params["b_gm2"][0])
    bias = bias.at[row, Gp:Gp + G].set(params["b_gl2"][0])

    cast = lambda a: a.astype(mxu_dtype)
    inputs = [
        cast(x_blk), cast(adj_blk), readout_blk,   # readout stays f32 (exact 1/n)
        cast(w_in), cast(wm), cast(wu), cast(w_gi), cast(w_gh),
        cast(w_node), cast(w_g1), cast(w_g2), bias,
    ]

    # Per-block arrays are tiled over the grid (Pallas double-buffers them ->
    # HBM/compute overlap); weights/bias use constant index_maps so they stay
    # resident across grid steps.
    def per_block(shape):
        return pl.BlockSpec((None,) + shape, lambda b: (b,) + (0,) * len(shape))

    def const(shape):
        return pl.BlockSpec(shape, lambda b: (0,) * len(shape))

    in_specs = [
        per_block((node_block, Dp)),
        per_block((node_block, node_block)),
        per_block((GBp, node_block + 128)),
        const((Dp, Sp)),
        const((R, Sp, Sp)),
        const((R, Sp, Sp)),
        const((Sp, 3 * Sp)),
        const((Sp, 3 * Sp)),
        const((Sp, 2 * Zp)),
        const((Sp, 2 * Sp)),
        const((2 * Sp, 2 * Gp)),
        const((BRp, Wb)),
    ]
    out_specs = (
        per_block((node_block, 2 * Zp)),
        per_block((GBp, 2 * Gp)),
    )

    kernel = functools.partial(
        mpnn_encoder_kernel,
        rounds=R, s_pad=Sp, z_pad=Zp, g_pad=Gp, mxu_dtype=mxu_dtype)

    # NOTE: at node_block=128 everything fits well under the default scoped
    # VMEM limit on all generations; if node_block is raised, also pass
    # vmem_limit_bytes sized from the adj block (node_block^2 * 2B) + weights.
    node_out, graph_out = pl.pallas_call(
        kernel,
        grid=(NB,),
        in_specs=in_specs,
        out_specs=out_specs,
        out_shape=(
            jax.ShapeDtypeStruct((NB, node_block, 2 * Zp), f32),
            jax.ShapeDtypeStruct((NB, GBp, 2 * Gp), f32),
        ),
        compiler_params=pltpu.CompilerParams(
            dimension_semantics=("parallel",)),
    )(*inputs)

    # Slice padded, fused outputs back to per-graph module outputs.
    results = []
    for g in range(B):
        bi, slot, off, n = placement[g]
        mu_node = node_out[bi, off:off + n, :Z]
        logvar_node = node_out[bi, off:off + n, Zp:Zp + Z]
        mu_g = graph_out[bi, slot, :G]
        logvar_g = graph_out[bi, slot, Gp:Gp + G]
        results.append((mu_node, logvar_node, mu_g, logvar_g))
    return results


def mpnn_encoder_forward(x, edge_index, params, *, mxu_dtype=None):
    """Single-graph API matching the original module's forward()."""
    return mpnn_encoder_forward_batched([x], [edge_index], params,
                                        mxu_dtype=mxu_dtype)[0]


# ----------------------------------------------------------------------------
# Pure-JAX reference (mirrors the PyTorch forward, eval mode)
# ----------------------------------------------------------------------------
def mpnn_encoder_reference(x, edge_index, params):
    S = params["w_in"].shape[1]
    R = params["wm"].shape[0]
    h = _relu(x @ params["w_in"] + params["b_in"])
    for r in range(R):
        m = _relu(h @ params["wm"][r] + params["bm"][r])
        agg = jnp.zeros_like(h).at[edge_index[1]].add(m[edge_index[0]])
        msg = _relu(agg @ params["wu"][r] + params["bu"][r])
        gi = msg @ params["w_ih"] + params["b_ih"]
        gh = h @ params["w_hh"] + params["b_hh"]
        rg = jax.nn.sigmoid(gi[:, :S] + gh[:, :S])
        zg = jax.nn.sigmoid(gi[:, S:2 * S] + gh[:, S:2 * S])
        ng = jnp.tanh(gi[:, 2 * S:] + rg * gh[:, 2 * S:])
        h = (1.0 - zg) * ng + zg * h
    mu_node = h @ params["w_mun"] + params["b_mun"]
    logvar_node = h @ params["w_lvn"] + params["b_lvn"]
    g = h.mean(axis=0, keepdims=True)
    mu_g = (_relu(g @ params["w_gm1"] + params["b_gm1"]) @ params["w_gm2"] + params["b_gm2"])[0]
    logvar_g = (_relu(g @ params["w_gl1"] + params["b_gl1"]) @ params["w_gl2"] + params["b_gl2"])[0]
    return mu_node, logvar_node, mu_g, logvar_g


# ----------------------------------------------------------------------------
if __name__ == "__main__":
    # Module-default dims: state_dim=64, z_dim=32, g_dim=16, rounds=6.
    IN_DIM, STATE_DIM, Z_DIM, G_DIM, ROUNDS = 16, 64, 32, 16, 6
    B = 16                       # 16 graphs x 16 nodes -> 2 node blocks of 128
    N_PER_GRAPH = 16

    key = jax.random.PRNGKey(0)
    k_p, *k_xs = jax.random.split(key, B + 1)
    params = init_params(k_p, IN_DIM, STATE_DIM, Z_DIM, G_DIM, ROUNDS)

    # Deterministic small graph topology: ring + chords (src row 0, dst row 1).
    N = N_PER_GRAPH
    src = jnp.array(list(range(N)) + list(range(0, N, 2)), dtype=jnp.int32)
    dst = jnp.array([(i + 1) % N for i in range(N)]
                    + [(i + 5) % N for i in range(0, N, 2)], dtype=jnp.int32)
    edge_index = jnp.stack([src, dst])   # [2, 24]

    xs = [jax.random.normal(k, (N, IN_DIM), dtype=jnp.float32) for k in k_xs]
    edge_indices = [edge_index for _ in range(B)]

    mxu_dtype = _default_mxu_dtype()
    outs = mpnn_encoder_forward_batched(xs, edge_indices, params, mxu_dtype=mxu_dtype)
    outs = jax.block_until_ready(outs)

    # bf16 MXU operands lose ~3 decimal digits over 6 rounds; the f32 fallback
    # path stays within default-matmul-precision noise of the reference.
    tol = 5e-2 if mxu_dtype == jnp.bfloat16 else 1e-2
    for b in range(B):
        refs = mpnn_encoder_reference(xs[b], edge_indices[b], params)
        for o, r in zip(outs[b], refs):
            assert o.shape == r.shape, (o.shape, r.shape)
            assert jnp.allclose(o, r, atol=tol, rtol=tol), float(jnp.abs(o - r).max())

    print("KERNEL_OK")
</pallas_src>

<mosaic_0001>
module attributes {stable_mosaic.version = 11 : i64} {
  func.func @mpnn_encoder_kernel(%arg0: i32, %arg1: memref<1x128x128xf32, #tpu.memory_space<vmem>>, %arg2: memref<1x128x128xf32, #tpu.memory_space<vmem>>, %arg3: memref<1x8x256xf32, #tpu.memory_space<vmem>>, %arg4: memref<128x128xf32, #tpu.memory_space<vmem>>, %arg5: memref<6x128x128xf32, #tpu.memory_space<vmem>>, %arg6: memref<6x128x128xf32, #tpu.memory_space<vmem>>, %arg7: memref<128x384xf32, #tpu.memory_space<vmem>>, %arg8: memref<128x384xf32, #tpu.memory_space<vmem>>, %arg9: memref<128x256xf32, #tpu.memory_space<vmem>>, %arg10: memref<128x256xf32, #tpu.memory_space<vmem>>, %arg11: memref<256x256xf32, #tpu.memory_space<vmem>>, %arg12: memref<24x384xf32, #tpu.memory_space<vmem>>, %arg13: memref<1x128x256xf32, #tpu.memory_space<vmem>>, %arg14: memref<1x8x256xf32, #tpu.memory_space<vmem>>) attributes {dimension_semantics = [#tpu.dimension_semantics<parallel>], iteration_bounds = array<i64: 2>, scalar_prefetch = 0 : i64, scratch_operands = 0 : i64, tpu.core_type = #tpu.core_type<tc>, window_params = [{transform_indices = @transform_0, window_bounds = array<i64: 1, 128, 128>}, {transform_indices = @transform_1, window_bounds = array<i64: 1, 128, 128>}, {transform_indices = @transform_2, window_bounds = array<i64: 1, 8, 256>}, {pipeline_mode = #tpu.pipeline_mode<synchronous>, transform_indices = @transform_3, window_bounds = array<i64: 128, 128>}, {pipeline_mode = #tpu.pipeline_mode<synchronous>, transform_indices = @transform_4, window_bounds = array<i64: 6, 128, 128>}, {pipeline_mode = #tpu.pipeline_mode<synchronous>, transform_indices = @transform_5, window_bounds = array<i64: 6, 128, 128>}, {pipeline_mode = #tpu.pipeline_mode<synchronous>, transform_indices = @transform_6, window_bounds = array<i64: 128, 384>}, {pipeline_mode = #tpu.pipeline_mode<synchronous>, transform_indices = @transform_7, window_bounds = array<i64: 128, 384>}, {pipeline_mode = #tpu.pipeline_mode<synchronous>, transform_indices = @transform_8, window_bounds = array<i64: 128, 256>}, {pipeline_mode = #tpu.pipeline_mode<synchronous>, transform_indices = @transform_9, window_bounds = array<i64: 128, 256>}, {pipeline_mode = #tpu.pipeline_mode<synchronous>, transform_indices = @transform_10, window_bounds = array<i64: 256, 256>}, {pipeline_mode = #tpu.pipeline_mode<synchronous>, transform_indices = @transform_11, window_bounds = array<i64: 24, 384>}, {transform_indices = @transform_12, window_bounds = array<i64: 1, 128, 256>}, {transform_indices = @transform_13, window_bounds = array<i64: 1, 8, 256>}]} {
    %c0 = arith.constant 0 : index
    %c0_0 = arith.constant 0 : index
    %0 = vector.load %arg12[%c0, %c0_0] : memref<24x384xf32, #tpu.memory_space<vmem>>, vector<1x128xf32>
    %c13 = arith.constant 13 : index
    %c0_1 = arith.constant 0 : index
    %1 = vector.load %arg12[%c13, %c0_1] : memref<24x384xf32, #tpu.memory_space<vmem>>, vector<1x384xf32>
    %c14 = arith.constant 14 : index
    %c0_2 = arith.constant 0 : index
    %2 = vector.load %arg12[%c14, %c0_2] : memref<24x384xf32, #tpu.memory_space<vmem>>, vector<1x384xf32>
    %c15 = arith.constant 15 : index
    %c0_3 = arith.constant 0 : index
    %3 = vector.load %arg12[%c15, %c0_3] : memref<24x384xf32, #tpu.memory_space<vmem>>, vector<1x256xf32>
    %c16 = arith.constant 16 : index
    %c0_4 = arith.constant 0 : index
    %4 = vector.load %arg12[%c16, %c0_4] : memref<24x384xf32, #tpu.memory_space<vmem>>, vector<1x256xf32>
    %c17 = arith.constant 17 : index
    %c0_5 = arith.constant 0 : index
    %5 = vector.load %arg12[%c17, %c0_5] : memref<24x384xf32, #tpu.memory_space<vmem>>, vector<1x256xf32>
    %c0_6 = arith.constant 0 : index
    %c0_7 = arith.constant 0 : index
    %c0_8 = arith.constant 0 : index
    %6 = vector.load %arg1[%c0_6, %c0_7, %c0_8] : memref<1x128x128xf32, #tpu.memory_space<vmem>>, vector<1x128x128xf32>
    %7 = vector.shape_cast %6 : vector<1x128x128xf32> to vector<128x128xf32>
    %c0_9 = arith.constant 0 : index
    %c0_10 = arith.constant 0 : index
    %c0_11 = arith.constant 0 : index
    %8 = vector.load %arg2[%c0_9, %c0_10, %c0_11] : memref<1x128x128xf32, #tpu.memory_space<vmem>>, vector<1x128x128xf32>
    %9 = vector.shape_cast %8 : vector<1x128x128xf32> to vector<128x128xf32>
    %c0_12 = arith.constant 0 : index
    %c0_13 = arith.constant 0 : index
    %10 = vector.load %arg4[%c0_12, %c0_13] : memref<128x128xf32, #tpu.memory_space<vmem>>, vector<128x128xf32>
    %cst = arith.constant dense<0.000000e+00> : vector<128x128xf32>
    %11 = tpu.matmul %7, %10, %cst {dimension_numbers = #tpu.dot_dimension_numbers<[1], [0], [0], [1], [0, 0, 1, 1], [], []>} : vector<128x128xf32>, vector<128x128xf32>, vector<128x128xf32> -> vector<128x128xf32>
    %12 = vector.broadcast %0 : vector<1x128xf32> to vector<128x128xf32>
    %13 = arith.addf %11, %12 : vector<128x128xf32>
    %cst_14 = arith.constant 0.000000e+00 : f32
    %14 = vector.broadcast %cst_14 : f32 to vector<128x128xf32>
    %15 = arith.maximumf %13, %14 : vector<128x128xf32>
    %c0_15 = arith.constant 0 : index
    %c0_16 = arith.constant 0 : index
    %16 = vector.load %arg7[%c0_15, %c0_16] : memref<128x384xf32, #tpu.memory_space<vmem>>, vector<128x384xf32>
    %c0_17 = arith.constant 0 : index
    %c0_18 = arith.constant 0 : index
    %17 = vector.load %arg8[%c0_17, %c0_18] : memref<128x384xf32, #tpu.memory_space<vmem>>, vector<128x384xf32>
    %c0_19 = arith.constant 0 : index
    %c0_20 = arith.constant 0 : index
    %c0_21 = arith.constant 0 : index
    %18 = vector.load %arg5[%c0_19, %c0_20, %c0_21] : memref<6x128x128xf32, #tpu.memory_space<vmem>>, vector<1x128x128xf32>
    %19 = vector.shape_cast %18 : vector<1x128x128xf32> to vector<128x128xf32>
    %cst_22 = arith.constant dense<0.000000e+00> : vector<128x128xf32>
    %20 = tpu.matmul %15, %19, %cst_22 {dimension_numbers = #tpu.dot_dimension_numbers<[1], [0], [0], [1], [0, 0, 1, 1], [], []>} : vector<128x128xf32>, vector<128x128xf32>, vector<128x128xf32> -> vector<128x128xf32>
    %c1 = arith.constant 1 : index
    %c0_23 = arith.constant 0 : index
    %21 = vector.load %arg12[%c1, %c0_23] : memref<24x384xf32, #tpu.memory_space<vmem>>, vector<1x128xf32>
    %22 = vector.broadcast %21 : vector<1x128xf32> to vector<128x128xf32>
    %23 = arith.addf %20, %22 : vector<128x128xf32>
    %cst_24 = arith.constant 0.000000e+00 : f32
    %24 = vector.broadcast %cst_24 : f32 to vector<128x128xf32>
    %25 = arith.maximumf %23, %24 : vector<128x128xf32>
    %cst_25 = arith.constant dense<0.000000e+00> : vector<128x128xf32>
    %26 = tpu.matmul %9, %25, %cst_25 {dimension_numbers = #tpu.dot_dimension_numbers<[1], [0], [0], [1], [0, 0, 1, 1], [], []>} : vector<128x128xf32>, vector<128x128xf32>, vector<128x128xf32> -> vector<128x128xf32>
    %c0_26 = arith.constant 0 : index
    %c0_27 = arith.constant 0 : index
    %c0_28 = arith.constant 0 : index
    %27 = vector.load %arg6[%c0_26, %c0_27, %c0_28] : memref<6x128x128xf32, #tpu.memory_space<vmem>>, vector<1x128x128xf32>
    %28 = vector.shape_cast %27 : vector<1x128x128xf32> to vector<128x128xf32>
    %cst_29 = arith.constant dense<0.000000e+00> : vector<128x128xf32>
    %29 = tpu.matmul %26, %28, %cst_29 {dimension_numbers = #tpu.dot_dimension_numbers<[1], [0], [0], [1], [0, 0, 1, 1], [], []>} : vector<128x128xf32>, vector<128x128xf32>, vector<128x128xf32> -> vector<128x128xf32>
    %c7 = arith.constant 7 : index
    %c0_30 = arith.constant 0 : index
    %30 = vector.load %arg12[%c7, %c0_30] : memref<24x384xf32, #tpu.memory_space<vmem>>, vector<1x128xf32>
    %31 = vector.broadcast %30 : vector<1x128xf32> to vector<128x128xf32>
    %32 = arith.addf %29, %31 : vector<128x128xf32>
    %cst_31 = arith.constant 0.000000e+00 : f32
    %33 = vector.broadcast %cst_31 : f32 to vector<128x128xf32>
    %34 = arith.maximumf %32, %33 : vector<128x128xf32>
    %cst_32 = arith.constant dense<0.000000e+00> : vector<128x384xf32>
    %35 = tpu.matmul %34, %16, %cst_32 {dimension_numbers = #tpu.dot_dimension_numbers<[1], [0], [0], [1], [0, 0, 1, 1], [], []>} : vector<128x128xf32>, vector<128x384xf32>, vector<128x384xf32> -> vector<128x384xf32>
    %36 = vector.broadcast %1 : vector<1x384xf32> to vector<128x384xf32>
    %37 = arith.addf %35, %36 : vector<128x384xf32>
    %cst_33 = arith.constant dense<0.000000e+00> : vector<128x384xf32>
    %38 = tpu.matmul %15, %17, %cst_33 {dimension_numbers = #tpu.dot_dimension_numbers<[1], [0], [0], [1], [0, 0, 1, 1], [], []>} : vector<128x128xf32>, vector<128x384xf32>, vector<128x384xf32> -> vector<128x384xf32>
    %39 = vector.broadcast %2 : vector<1x384xf32> to vector<128x384xf32>
    %40 = arith.addf %38, %39 : vector<128x384xf32>
    %41 = vector.extract_strided_slice %37 {offsets = [0, 0], sizes = [128, 128], strides = [1, 1]} : vector<128x384xf32> to vector<128x128xf32>
    %42 = vector.extract_strided_slice %40 {offsets = [0, 0], sizes = [128, 128], strides = [1, 1]} : vector<128x384xf32> to vector<128x128xf32>
    %43 = arith.addf %41, %42 : vector<128x128xf32>
    %44 = arith.negf %43 : vector<128x128xf32>
    %45 = math.exp %44 : vector<128x128xf32>
    %cst_34 = arith.constant 1.000000e+00 : f32
    %46 = vector.broadcast %cst_34 : f32 to vector<128x128xf32>
    %47 = arith.addf %46, %45 : vector<128x128xf32>
    %48 = arith.divf %46, %47 : vector<128x128xf32>
    %49 = vector.extract_strided_slice %37 {offsets = [0, 128], sizes = [128, 128], strides = [1, 1]} : vector<128x384xf32> to vector<128x128xf32>
    %50 = vector.extract_strided_slice %40 {offsets = [0, 128], sizes = [128, 128], strides = [1, 1]} : vector<128x384xf32> to vector<128x128xf32>
    %51 = arith.addf %49, %50 : vector<128x128xf32>
    %52 = arith.negf %51 : vector<128x128xf32>
    %53 = math.exp %52 : vector<128x128xf32>
    %cst_35 = arith.constant 1.000000e+00 : f32
    %54 = vector.broadcast %cst_35 : f32 to vector<128x128xf32>
    %55 = arith.addf %54, %53 : vector<128x128xf32>
    %56 = arith.divf %54, %55 : vector<128x128xf32>
    %57 = vector.extract_strided_slice %37 {offsets = [0, 256], sizes = [128, 128], strides = [1, 1]} : vector<128x384xf32> to vector<128x128xf32>
    %58 = vector.extract_strided_slice %40 {offsets = [0, 256], sizes = [128, 128], strides = [1, 1]} : vector<128x384xf32> to vector<128x128xf32>
    %59 = arith.mulf %48, %58 : vector<128x128xf32>
    %60 = arith.addf %57, %59 : vector<128x128xf32>
    %61 = math.tanh %60 : vector<128x128xf32>
    %cst_36 = arith.constant 1.000000e+00 : f32
    %62 = vector.broadcast %cst_36 : f32 to vector<128x128xf32>
    %63 = arith.subf %62, %56 : vector<128x128xf32>
    %64 = arith.mulf %63, %61 : vector<128x128xf32>
    %65 = arith.mulf %56, %15 : vector<128x128xf32>
    %66 = arith.addf %64, %65 : vector<128x128xf32>
    %c1_37 = arith.constant 1 : index
    %c0_38 = arith.constant 0 : index
    %c0_39 = arith.constant 0 : index
    %67 = vector.load %arg5[%c1_37, %c0_38, %c0_39] : memref<6x128x128xf32, #tpu.memory_space<vmem>>, vector<1x128x128xf32>
    %68 = vector.shape_cast %67 : vector<1x128x128xf32> to vector<128x128xf32>
    %cst_40 = arith.constant dense<0.000000e+00> : vector<128x128xf32>
    %69 = tpu.matmul %66, %68, %cst_40 {dimension_numbers = #tpu.dot_dimension_numbers<[1], [0], [0], [1], [0, 0, 1, 1], [], []>} : vector<128x128xf32>, vector<128x128xf32>, vector<128x128xf32> -> vector<128x128xf32>
    %c2 = arith.constant 2 : index
    %c0_41 = arith.constant 0 : index
    %70 = vector.load %arg12[%c2, %c0_41] : memref<24x384xf32, #tpu.memory_space<vmem>>, vector<1x128xf32>
    %71 = vector.broadcast %70 : vector<1x128xf32> to vector<128x128xf32>
    %72 = arith.addf %69, %71 : vector<128x128xf32>
    %cst_42 = arith.constant 0.000000e+00 : f32
    %73 = vector.broadcast %cst_42 : f32 to vector<128x128xf32>
    %74 = arith.maximumf %72, %73 : vector<128x128xf32>
    %cst_43 = arith.constant dense<0.000000e+00> : vector<128x128xf32>
    %75 = tpu.matmul %9, %74, %cst_43 {dimension_numbers = #tpu.dot_dimension_numbers<[1], [0], [0], [1], [0, 0, 1, 1], [], []>} : vector<128x128xf32>, vector<128x128xf32>, vector<128x128xf32> -> vector<128x128xf32>
    %c1_44 = arith.constant 1 : index
    %c0_45 = arith.constant 0 : index
    %c0_46 = arith.constant 0 : index
    %76 = vector.load %arg6[%c1_44, %c0_45, %c0_46] : memref<6x128x128xf32, #tpu.memory_space<vmem>>, vector<1x128x128xf32>
    %77 = vector.shape_cast %76 : vector<1x128x128xf32> to vector<128x128xf32>
    %cst_47 = arith.constant dense<0.000000e+00> : vector<128x128xf32>
    %78 = tpu.matmul %75, %77, %cst_47 {dimension_numbers = #tpu.dot_dimension_numbers<[1], [0], [0], [1], [0, 0, 1, 1], [], []>} : vector<128x128xf32>, vector<128x128xf32>, vector<128x128xf32> -> vector<128x128xf32>
    %c8 = arith.constant 8 : index
    %c0_48 = arith.constant 0 : index
    %79 = vector.load %arg12[%c8, %c0_48] : memref<24x384xf32, #tpu.memory_space<vmem>>, vector<1x128xf32>
    %80 = vector.broadcast %79 : vector<1x128xf32> to vector<128x128xf32>
    %81 = arith.addf %78, %80 : vector<128x128xf32>
    %cst_49 = arith.constant 0.000000e+00 : f32
    %82 = vector.broadcast %cst_49 : f32 to vector<128x128xf32>
    %83 = arith.maximumf %81, %82 : vector<128x128xf32>
    %cst_50 = arith.constant dense<0.000000e+00> : vector<128x384xf32>
    %84 = tpu.matmul %83, %16, %cst_50 {dimension_numbers = #tpu.dot_dimension_numbers<[1], [0], [0], [1], [0, 0, 1, 1], [], []>} : vector<128x128xf32>, vector<128x384xf32>, vector<128x384xf32> -> vector<128x384xf32>
    %85 = vector.broadcast %1 : vector<1x384xf32> to vector<128x384xf32>
    %86 = arith.addf %84, %85 : vector<128x384xf32>
    %cst_51 = arith.constant dense<0.000000e+00> : vector<128x384xf32>
    %87 = tpu.matmul %66, %17, %cst_51 {dimension_numbers = #tpu.dot_dimension_numbers<[1], [0], [0], [1], [0, 0, 1, 1], [], []>} : vector<128x128xf32>, vector<128x384xf32>, vector<128x384xf32> -> vector<128x384xf32>
    %88 = vector.broadcast %2 : vector<1x384xf32> to vector<128x384xf32>
    %89 = arith.addf %87, %88 : vector<128x384xf32>
    %90 = vector.extract_strided_slice %86 {offsets = [0, 0], sizes = [128, 128], strides = [1, 1]} : vector<128x384xf32> to vector<128x128xf32>
    %91 = vector.extract_strided_slice %89 {offsets = [0, 0], sizes = [128, 128], strides = [1, 1]} : vector<128x384xf32> to vector<128x128xf32>
    %92 = arith.addf %90, %91 : vector<128x128xf32>
    %93 = arith.negf %92 : vector<128x128xf32>
    %94 = math.exp %93 : vector<128x128xf32>
    %cst_52 = arith.constant 1.000000e+00 : f32
    %95 = vector.broadcast %cst_52 : f32 to vector<128x128xf32>
    %96 = arith.addf %95, %94 : vector<128x128xf32>
    %97 = arith.divf %95, %96 : vector<128x128xf32>
    %98 = vector.extract_strided_slice %86 {offsets = [0, 128], sizes = [128, 128], strides = [1, 1]} : vector<128x384xf32> to vector<128x128xf32>
    %99 = vector.extract_strided_slice %89 {offsets = [0, 128], sizes = [128, 128], strides = [1, 1]} : vector<128x384xf32> to vector<128x128xf32>
    %100 = arith.addf %98, %99 : vector<128x128xf32>
    %101 = arith.negf %100 : vector<128x128xf32>
    %102 = math.exp %101 : vector<128x128xf32>
    %cst_53 = arith.constant 1.000000e+00 : f32
    %103 = vector.broadcast %cst_53 : f32 to vector<128x128xf32>
    %104 = arith.addf %103, %102 : vector<128x128xf32>
    %105 = arith.divf %103, %104 : vector<128x128xf32>
    %106 = vector.extract_strided_slice %86 {offsets = [0, 256], sizes = [128, 128], strides = [1, 1]} : vector<128x384xf32> to vector<128x128xf32>
    %107 = vector.extract_strided_slice %89 {offsets = [0, 256], sizes = [128, 128], strides = [1, 1]} : vector<128x384xf32> to vector<128x128xf32>
    %108 = arith.mulf %97, %107 : vector<128x128xf32>
    %109 = arith.addf %106, %108 : vector<128x128xf32>
    %110 = math.tanh %109 : vector<128x128xf32>
    %cst_54 = arith.constant 1.000000e+00 : f32
    %111 = vector.broadcast %cst_54 : f32 to vector<128x128xf32>
    %112 = arith.subf %111, %105 : vector<128x128xf32>
    %113 = arith.mulf %112, %110 : vector<128x128xf32>
    %114 = arith.mulf %105, %66 : vector<128x128xf32>
    %115 = arith.addf %113, %114 : vector<128x128xf32>
    %c2_55 = arith.constant 2 : index
    %c0_56 = arith.constant 0 : index
    %c0_57 = arith.constant 0 : index
    %116 = vector.load %arg5[%c2_55, %c0_56, %c0_57] : memref<6x128x128xf32, #tpu.memory_space<vmem>>, vector<1x128x128xf32>
    %117 = vector.shape_cast %116 : vector<1x128x128xf32> to vector<128x128xf32>
    %cst_58 = arith.constant dense<0.000000e+00> : vector<128x128xf32>
    %118 = tpu.matmul %115, %117, %cst_58 {dimension_numbers = #tpu.dot_dimension_numbers<[1], [0], [0], [1], [0, 0, 1, 1], [], []>} : vector<128x128xf32>, vector<128x128xf32>, vector<128x128xf32> -> vector<128x128xf32>
    %c3 = arith.constant 3 : index
    %c0_59 = arith.constant 0 : index
    %119 = vector.load %arg12[%c3, %c0_59] : memref<24x384xf32, #tpu.memory_space<vmem>>, vector<1x128xf32>
    %120 = vector.broadcast %119 : vector<1x128xf32> to vector<128x128xf32>
    %121 = arith.addf %118, %120 : vector<128x128xf32>
    %cst_60 = arith.constant 0.000000e+00 : f32
    %122 = vector.broadcast %cst_60 : f32 to vector<128x128xf32>
    %123 = arith.maximumf %121, %122 : vector<128x128xf32>
    %cst_61 = arith.constant dense<0.000000e+00> : vector<128x128xf32>
    %124 = tpu.matmul %9, %123, %cst_61 {dimension_numbers = #tpu.dot_dimension_numbers<[1], [0], [0], [1], [0, 0, 1, 1], [], []>} : vector<128x128xf32>, vector<128x128xf32>, vector<128x128xf32> -> vector<128x128xf32>
    %c2_62 = arith.constant 2 : index
    %c0_63 = arith.constant 0 : index
    %c0_64 = arith.constant 0 : index
    %125 = vector.load %arg6[%c2_62, %c0_63, %c0_64] : memref<6x128x128xf32, #tpu.memory_space<vmem>>, vector<1x128x128xf32>
    %126 = vector.shape_cast %125 : vector<1x128x128xf32> to vector<128x128xf32>
    %cst_65 = arith.constant dense<0.000000e+00> : vector<128x128xf32>
    %127 = tpu.matmul %124, %126, %cst_65 {dimension_numbers = #tpu.dot_dimension_numbers<[1], [0], [0], [1], [0, 0, 1, 1], [], []>} : vector<128x128xf32>, vector<128x128xf32>, vector<128x128xf32> -> vector<128x128xf32>
    %c9 = arith.constant 9 : index
    %c0_66 = arith.constant 0 : index
    %128 = vector.load %arg12[%c9, %c0_66] : memref<24x384xf32, #tpu.memory_space<vmem>>, vector<1x128xf32>
    %129 = vector.broadcast %128 : vector<1x128xf32> to vector<128x128xf32>
    %130 = arith.addf %127, %129 : vector<128x128xf32>
    %cst_67 = arith.constant 0.000000e+00 : f32
    %131 = vector.broadcast %cst_67 : f32 to vector<128x128xf32>
    %132 = arith.maximumf %130, %131 : vector<128x128xf32>
    %cst_68 = arith.constant dense<0.000000e+00> : vector<128x384xf32>
    %133 = tpu.matmul %132, %16, %cst_68 {dimension_numbers = #tpu.dot_dimension_numbers<[1], [0], [0], [1], [0, 0, 1, 1], [], []>} : vector<128x128xf32>, vector<128x384xf32>, vector<128x384xf32> -> vector<128x384xf32>
    %134 = vector.broadcast %1 : vector<1x384xf32> to vector<128x384xf32>
    %135 = arith.addf %133, %134 : vector<128x384xf32>
    %cst_69 = arith.constant dense<0.000000e+00> : vector<128x384xf32>
    %136 = tpu.matmul %115, %17, %cst_69 {dimension_numbers = #tpu.dot_dimension_numbers<[1], [0], [0], [1], [0, 0, 1, 1], [], []>} : vector<128x128xf32>, vector<128x384xf32>, vector<128x384xf32> -> vector<128x384xf32>
    %137 = vector.broadcast %2 : vector<1x384xf32> to vector<128x384xf32>
    %138 = arith.addf %136, %137 : vector<128x384xf32>
    %139 = vector.extract_strided_slice %135 {offsets = [0, 0], sizes = [128, 128], strides = [1, 1]} : vector<128x384xf32> to vector<128x128xf32>
    %140 = vector.extract_strided_slice %138 {offsets = [0, 0], sizes = [128, 128], strides = [1, 1]} : vector<128x384xf32> to vector<128x128xf32>
    %141 = arith.addf %139, %140 : vector<128x128xf32>
    %142 = arith.negf %141 : vector<128x128xf32>
    %143 = math.exp %142 : vector<128x128xf32>
    %cst_70 = arith.constant 1.000000e+00 : f32
    %144 = vector.broadcast %cst_70 : f32 to vector<128x128xf32>
    %145 = arith.addf %144, %143 : vector<128x128xf32>
    %146 = arith.divf %144, %145 : vector<128x128xf32>
    %147 = vector.extract_strided_slice %135 {offsets = [0, 128], sizes = [128, 128], strides = [1, 1]} : vector<128x384xf32> to vector<128x128xf32>
    %148 = vector.extract_strided_slice %138 {offsets = [0, 128], sizes = [128, 128], strides = [1, 1]} : vector<128x384xf32> to vector<128x128xf32>
    %149 = arith.addf %147, %148 : vector<128x128xf32>
    %150 = arith.negf %149 : vector<128x128xf32>
    %151 = math.exp %150 : vector<128x128xf32>
    %cst_71 = arith.constant 1.000000e+00 : f32
    %152 = vector.broadcast %cst_71 : f32 to vector<128x128xf32>
    %153 = arith.addf %152, %151 : vector<128x128xf32>
    %154 = arith.divf %152, %153 : vector<128x128xf32>
    %155 = vector.extract_strided_slice %135 {offsets = [0, 256], sizes = [128, 128], strides = [1, 1]} : vector<128x384xf32> to vector<128x128xf32>
    %156 = vector.extract_strided_slice %138 {offsets = [0, 256], sizes = [128, 128], strides = [1, 1]} : vector<128x384xf32> to vector<128x128xf32>
    %157 = arith.mulf %146, %156 : vector<128x128xf32>
    %158 = arith.addf %155, %157 : vector<128x128xf32>
    %159 = math.tanh %158 : vector<128x128xf32>
    %cst_72 = arith.constant 1.000000e+00 : f32
    %160 = vector.broadcast %cst_72 : f32 to vector<128x128xf32>
    %161 = arith.subf %160, %154 : vector<128x128xf32>
    %162 = arith.mulf %161, %159 : vector<128x128xf32>
    %163 = arith.mulf %154, %115 : vector<128x128xf32>
    %164 = arith.addf %162, %163 : vector<128x128xf32>
    %c3_73 = arith.constant 3 : index
    %c0_74 = arith.constant 0 : index
    %c0_75 = arith.constant 0 : index
    %165 = vector.load %arg5[%c3_73, %c0_74, %c0_75] : memref<6x128x128xf32, #tpu.memory_space<vmem>>, vector<1x128x128xf32>
    %166 = vector.shape_cast %165 : vector<1x128x128xf32> to vector<128x128xf32>
    %cst_76 = arith.constant dense<0.000000e+00> : vector<128x128xf32>
    %167 = tpu.matmul %164, %166, %cst_76 {dimension_numbers = #tpu.dot_dimension_numbers<[1], [0], [0], [1], [0, 0, 1, 1], [], []>} : vector<128x128xf32>, vector<128x128xf32>, vector<128x128xf32> -> vector<128x128xf32>
    %c4 = arith.constant 4 : index
    %c0_77 = arith.constant 0 : index
    %168 = vector.load %arg12[%c4, %c0_77] : memref<24x384xf32, #tpu.memory_space<vmem>>, vector<1x128xf32>
    %169 = vector.broadcast %168 : vector<1x128xf32> to vector<128x128xf32>
    %170 = arith.addf %167, %169 : vector<128x128xf32>
    %cst_78 = arith.constant 0.000000e+00 : f32
    %171 = vector.broadcast %cst_78 : f32 to vector<128x128xf32>
    %172 = arith.maximumf %170, %171 : vector<128x128xf32>
    %cst_79 = arith.constant dense<0.000000e+00> : vector<128x128xf32>
    %173 = tpu.matmul %9, %172, %cst_79 {dimension_numbers = #tpu.dot_dimension_numbers<[1], [0], [0], [1], [0, 0, 1, 1], [], []>} : vector<128x128xf32>, vector<128x128xf32>, vector<128x128xf32> -> vector<128x128xf32>
    %c3_80 = arith.constant 3 : index
    %c0_81 = arith.constant 0 : index
    %c0_82 = arith.constant 0 : index
    %174 = vector.load %arg6[%c3_80, %c0_81, %c0_82] : memref<6x128x128xf32, #tpu.memory_space<vmem>>, vector<1x128x128xf32>
    %175 = vector.shape_cast %174 : vector<1x128x128xf32> to vector<128x128xf32>
    %cst_83 = arith.constant dense<0.000000e+00> : vector<128x128xf32>
    %176 = tpu.matmul %173, %175, %cst_83 {dimension_numbers = #tpu.dot_dimension_numbers<[1], [0], [0], [1], [0, 0, 1, 1], [], []>} : vector<128x128xf32>, vector<128x128xf32>, vector<128x128xf32> -> vector<128x128xf32>
    %c10 = arith.constant 10 : index
    %c0_84 = arith.constant 0 : index
    %177 = vector.load %arg12[%c10, %c0_84] : memref<24x384xf32, #tpu.memory_space<vmem>>, vector<1x128xf32>
    %178 = vector.broadcast %177 : vector<1x128xf32> to vector<128x128xf32>
    %179 = arith.addf %176, %178 : vector<128x128xf32>
    %cst_85 = arith.constant 0.000000e+00 : f32
    %180 = vector.broadcast %cst_85 : f32 to vector<128x128xf32>
    %181 = arith.maximumf %179, %180 : vector<128x128xf32>
    %cst_86 = arith.constant dense<0.000000e+00> : vector<128x384xf32>
    %182 = tpu.matmul %181, %16, %cst_86 {dimension_numbers = #tpu.dot_dimension_numbers<[1], [0], [0], [1], [0, 0, 1, 1], [], []>} : vector<128x128xf32>, vector<128x384xf32>, vector<128x384xf32> -> vector<128x384xf32>
    %183 = vector.broadcast %1 : vector<1x384xf32> to vector<128x384xf32>
    %184 = arith.addf %182, %183 : vector<128x384xf32>
    %cst_87 = arith.constant dense<0.000000e+00> : vector<128x384xf32>
    %185 = tpu.matmul %164, %17, %cst_87 {dimension_numbers = #tpu.dot_dimension_numbers<[1], [0], [0], [1], [0, 0, 1, 1], [], []>} : vector<128x128xf32>, vector<128x384xf32>, vector<128x384xf32> -> vector<128x384xf32>
    %186 = vector.broadcast %2 : vector<1x384xf32> to vector<128x384xf32>
    %187 = arith.addf %185, %186 : vector<128x384xf32>
    %188 = vector.extract_strided_slice %184 {offsets = [0, 0], sizes = [128, 128], strides = [1, 1]} : vector<128x384xf32> to vector<128x128xf32>
    %189 = vector.extract_strided_slice %187 {offsets = [0, 0], sizes = [128, 128], strides = [1, 1]} : vector<128x384xf32> to vector<128x128xf32>
    %190 = arith.addf %188, %189 : vector<128x128xf32>
    %191 = arith.negf %190 : vector<128x128xf32>
    %192 = math.exp %191 : vector<128x128xf32>
    %cst_88 = arith.constant 1.000000e+00 : f32
    %193 = vector.broadcast %cst_88 : f32 to vector<128x128xf32>
    %194 = arith.addf %193, %192 : vector<128x128xf32>
    %195 = arith.divf %193, %194 : vector<128x128xf32>
    %196 = vector.extract_strided_slice %184 {offsets = [0, 128], sizes = [128, 128], strides = [1, 1]} : vector<128x384xf32> to vector<128x128xf32>
    %197 = vector.extract_strided_slice %187 {offsets = [0, 128], sizes = [128, 128], strides = [1, 1]} : vector<128x384xf32> to vector<128x128xf32>
    %198 = arith.addf %196, %197 : vector<128x128xf32>
    %199 = arith.negf %198 : vector<128x128xf32>
    %200 = math.exp %199 : vector<128x128xf32>
    %cst_89 = arith.constant 1.000000e+00 : f32
    %201 = vector.broadcast %cst_89 : f32 to vector<128x128xf32>
    %202 = arith.addf %201, %200 : vector<128x128xf32>
    %203 = arith.divf %201, %202 : vector<128x128xf32>
    %204 = vector.extract_strided_slice %184 {offsets = [0, 256], sizes = [128, 128], strides = [1, 1]} : vector<128x384xf32> to vector<128x128xf32>
    %205 = vector.extract_strided_slice %187 {offsets = [0, 256], sizes = [128, 128], strides = [1, 1]} : vector<128x384xf32> to vector<128x128xf32>
    %206 = arith.mulf %195, %205 : vector<128x128xf32>
    %207 = arith.addf %204, %206 : vector<128x128xf32>
    %208 = math.tanh %207 : vector<128x128xf32>
    %cst_90 = arith.constant 1.000000e+00 : f32
    %209 = vector.broadcast %cst_90 : f32 to vector<128x128xf32>
    %210 = arith.subf %209, %203 : vector<128x128xf32>
    %211 = arith.mulf %210, %208 : vector<128x128xf32>
    %212 = arith.mulf %203, %164 : vector<128x128xf32>
    %213 = arith.addf %211, %212 : vector<128x128xf32>
    %c4_91 = arith.constant 4 : index
    %c0_92 = arith.constant 0 : index
    %c0_93 = arith.constant 0 : index
    %214 = vector.load %arg5[%c4_91, %c0_92, %c0_93] : memref<6x128x128xf32, #tpu.memory_space<vmem>>, vector<1x128x128xf32>
    %215 = vector.shape_cast %214 : vector<1x128x128xf32> to vector<128x128xf32>
    %cst_94 = arith.constant dense<0.000000e+00> : vector<128x128xf32>
    %216 = tpu.matmul %213, %215, %cst_94 {dimension_numbers = #tpu.dot_dimension_numbers<[1], [0], [0], [1], [0, 0, 1, 1], [], []>} : vector<128x128xf32>, vector<128x128xf32>, vector<128x128xf32> -> vector<128x128xf32>
    %c5 = arith.constant 5 : index
    %c0_95 = arith.constant 0 : index
    %217 = vector.load %arg12[%c5, %c0_95] : memref<24x384xf32, #tpu.memory_space<vmem>>, vector<1x128xf32>
    %218 = vector.broadcast %217 : vector<1x128xf32> to vector<128x128xf32>
    %219 = arith.addf %216, %218 : vector<128x128xf32>
    %cst_96 = arith.constant 0.000000e+00 : f32
    %220 = vector.broadcast %cst_96 : f32 to vector<128x128xf32>
    %221 = arith.maximumf %219, %220 : vector<128x128xf32>
    %cst_97 = arith.constant dense<0.000000e+00> : vector<128x128xf32>
    %222 = tpu.matmul %9, %221, %cst_97 {dimension_numbers = #tpu.dot_dimension_numbers<[1], [0], [0], [1], [0, 0, 1, 1], [], []>} : vector<128x128xf32>, vector<128x128xf32>, vector<128x128xf32> -> vector<128x128xf32>
    %c4_98 = arith.constant 4 : index
    %c0_99 = arith.constant 0 : index
    %c0_100 = arith.constant 0 : index
    %223 = vector.load %arg6[%c4_98, %c0_99, %c0_100] : memref<6x128x128xf32, #tpu.memory_space<vmem>>, vector<1x128x128xf32>
    %224 = vector.shape_cast %223 : vector<1x128x128xf32> to vector<128x128xf32>
    %cst_101 = arith.constant dense<0.000000e+00> : vector<128x128xf32>
    %225 = tpu.matmul %222, %224, %cst_101 {dimension_numbers = #tpu.dot_dimension_numbers<[1], [0], [0], [1], [0, 0, 1, 1], [], []>} : vector<128x128xf32>, vector<128x128xf32>, vector<128x128xf32> -> vector<128x128xf32>
    %c11 = arith.constant 11 : index
    %c0_102 = arith.constant 0 : index
    %226 = vector.load %arg12[%c11, %c0_102] : memref<24x384xf32, #tpu.memory_space<vmem>>, vector<1x128xf32>
    %227 = vector.broadcast %226 : vector<1x128xf32> to vector<128x128xf32>
    %228 = arith.addf %225, %227 : vector<128x128xf32>
    %cst_103 = arith.constant 0.000000e+00 : f32
    %229 = vector.broadcast %cst_103 : f32 to vector<128x128xf32>
    %230 = arith.maximumf %228, %229 : vector<128x128xf32>
    %cst_104 = arith.constant dense<0.000000e+00> : vector<128x384xf32>
    %231 = tpu.matmul %230, %16, %cst_104 {dimension_numbers = #tpu.dot_dimension_numbers<[1], [0], [0], [1], [0, 0, 1, 1], [], []>} : vector<128x128xf32>, vector<128x384xf32>, vector<128x384xf32> -> vector<128x384xf32>
    %232 = vector.broadcast %1 : vector<1x384xf32> to vector<128x384xf32>
    %233 = arith.addf %231, %232 : vector<128x384xf32>
    %cst_105 = arith.constant dense<0.000000e+00> : vector<128x384xf32>
    %234 = tpu.matmul %213, %17, %cst_105 {dimension_numbers = #tpu.dot_dimension_numbers<[1], [0], [0], [1], [0, 0, 1, 1], [], []>} : vector<128x128xf32>, vector<128x384xf32>, vector<128x384xf32> -> vector<128x384xf32>
    %235 = vector.broadcast %2 : vector<1x384xf32> to vector<128x384xf32>
    %236 = arith.addf %234, %235 : vector<128x384xf32>
    %237 = vector.extract_strided_slice %233 {offsets = [0, 0], sizes = [128, 128], strides = [1, 1]} : vector<128x384xf32> to vector<128x128xf32>
    %238 = vector.extract_strided_slice %236 {offsets = [0, 0], sizes = [128, 128], strides = [1, 1]} : vector<128x384xf32> to vector<128x128xf32>
    %239 = arith.addf %237, %238 : vector<128x128xf32>
    %240 = arith.negf %239 : vector<128x128xf32>
    %241 = math.exp %240 : vector<128x128xf32>
    %cst_106 = arith.constant 1.000000e+00 : f32
    %242 = vector.broadcast %cst_106 : f32 to vector<128x128xf32>
    %243 = arith.addf %242, %241 : vector<128x128xf32>
    %244 = arith.divf %242, %243 : vector<128x128xf32>
    %245 = vector.extract_strided_slice %233 {offsets = [0, 128], sizes = [128, 128], strides = [1, 1]} : vector<128x384xf32> to vector<128x128xf32>
    %246 = vector.extract_strided_slice %236 {offsets = [0, 128], sizes = [128, 128], strides = [1, 1]} : vector<128x384xf32> to vector<128x128xf32>
    %247 = arith.addf %245, %246 : vector<128x128xf32>
    %248 = arith.negf %247 : vector<128x128xf32>
    %249 = math.exp %248 : vector<128x128xf32>
    %cst_107 = arith.constant 1.000000e+00 : f32
    %250 = vector.broadcast %cst_107 : f32 to vector<128x128xf32>
    %251 = arith.addf %250, %249 : vector<128x128xf32>
    %252 = arith.divf %250, %251 : vector<128x128xf32>
    %253 = vector.extract_strided_slice %233 {offsets = [0, 256], sizes = [128, 128], strides = [1, 1]} : vector<128x384xf32> to vector<128x128xf32>
    %254 = vector.extract_strided_slice %236 {offsets = [0, 256], sizes = [128, 128], strides = [1, 1]} : vector<128x384xf32> to vector<128x128xf32>
    %255 = arith.mulf %244, %254 : vector<128x128xf32>
    %256 = arith.addf %253, %255 : vector<128x128xf32>
    %257 = math.tanh %256 : vector<128x128xf32>
    %cst_108 = arith.constant 1.000000e+00 : f32
    %258 = vector.broadcast %cst_108 : f32 to vector<128x128xf32>
    %259 = arith.subf %258, %252 : vector<128x128xf32>
    %260 = arith.mulf %259, %257 : vector<128x128xf32>
    %261 = arith.mulf %252, %213 : vector<128x128xf32>
    %262 = arith.addf %260, %261 : vector<128x128xf32>
    %c5_109 = arith.constant 5 : index
    %c0_110 = arith.constant 0 : index
    %c0_111 = arith.constant 0 : index
    %263 = vector.load %arg5[%c5_109, %c0_110, %c0_111] : memref<6x128x128xf32, #tpu.memory_space<vmem>>, vector<1x128x128xf32>
    %264 = vector.shape_cast %263 : vector<1x128x128xf32> to vector<128x128xf32>
    %cst_112 = arith.constant dense<0.000000e+00> : vector<128x128xf32>
    %265 = tpu.matmul %262, %264, %cst_112 {dimension_numbers = #tpu.dot_dimension_numbers<[1], [0], [0], [1], [0, 0, 1, 1], [], []>} : vector<128x128xf32>, vector<128x128xf32>, vector<128x128xf32> -> vector<128x128xf32>
    %c6 = arith.constant 6 : index
    %c0_113 = arith.constant 0 : index
    %266 = vector.load %arg12[%c6, %c0_113] : memref<24x384xf32, #tpu.memory_space<vmem>>, vector<1x128xf32>
    %267 = vector.broadcast %266 : vector<1x128xf32> to vector<128x128xf32>
    %268 = arith.addf %265, %267 : vector<128x128xf32>
    %cst_114 = arith.constant 0.000000e+00 : f32
    %269 = vector.broadcast %cst_114 : f32 to vector<128x128xf32>
    %270 = arith.maximumf %268, %269 : vector<128x128xf32>
    %cst_115 = arith.constant dense<0.000000e+00> : vector<128x128xf32>
    %271 = tpu.matmul %9, %270, %cst_115 {dimension_numbers = #tpu.dot_dimension_numbers<[1], [0], [0], [1], [0, 0, 1, 1], [], []>} : vector<128x128xf32>, vector<128x128xf32>, vector<128x128xf32> -> vector<128x128xf32>
    %c5_116 = arith.constant 5 : index
    %c0_117 = arith.constant 0 : index
    %c0_118 = arith.constant 0 : index
    %272 = vector.load %arg6[%c5_116, %c0_117, %c0_118] : memref<6x128x128xf32, #tpu.memory_space<vmem>>, vector<1x128x128xf32>
    %273 = vector.shape_cast %272 : vector<1x128x128xf32> to vector<128x128xf32>
    %cst_119 = arith.constant dense<0.000000e+00> : vector<128x128xf32>
    %274 = tpu.matmul %271, %273, %cst_119 {dimension_numbers = #tpu.dot_dimension_numbers<[1], [0], [0], [1], [0, 0, 1, 1], [], []>} : vector<128x128xf32>, vector<128x128xf32>, vector<128x128xf32> -> vector<128x128xf32>
    %c12 = arith.constant 12 : index
    %c0_120 = arith.constant 0 : index
    %275 = vector.load %arg12[%c12, %c0_120] : memref<24x384xf32, #tpu.memory_space<vmem>>, vector<1x128xf32>
    %276 = vector.broadcast %275 : vector<1x128xf32> to vector<128x128xf32>
    %277 = arith.addf %274, %276 : vector<128x128xf32>
    %cst_121 = arith.constant 0.000000e+00 : f32
    %278 = vector.broadcast %cst_121 : f32 to vector<128x128xf32>
    %279 = arith.maximumf %277, %278 : vector<128x128xf32>
    %cst_122 = arith.constant dense<0.000000e+00> : vector<128x384xf32>
    %280 = tpu.matmul %279, %16, %cst_122 {dimension_numbers = #tpu.dot_dimension_numbers<[1], [0], [0], [1], [0, 0, 1, 1], [], []>} : vector<128x128xf32>, vector<128x384xf32>, vector<128x384xf32> -> vector<128x384xf32>
    %281 = vector.broadcast %1 : vector<1x384xf32> to vector<128x384xf32>
    %282 = arith.addf %280, %281 : vector<128x384xf32>
    %cst_123 = arith.constant dense<0.000000e+00> : vector<128x384xf32>
    %283 = tpu.matmul %262, %17, %cst_123 {dimension_numbers = #tpu.dot_dimension_numbers<[1], [0], [0], [1], [0, 0, 1, 1], [], []>} : vector<128x128xf32>, vector<128x384xf32>, vector<128x384xf32> -> vector<128x384xf32>
    %284 = vector.broadcast %2 : vector<1x384xf32> to vector<128x384xf32>
    %285 = arith.addf %283, %284 : vector<128x384xf32>
    %286 = vector.extract_strided_slice %282 {offsets = [0, 0], sizes = [128, 128], strides = [1, 1]} : vector<128x384xf32> to vector<128x128xf32>
    %287 = vector.extract_strided_slice %285 {offsets = [0, 0], sizes = [128, 128], strides = [1, 1]} : vector<128x384xf32> to vector<128x128xf32>
    %288 = arith.addf %286, %287 : vector<128x128xf32>
    %289 = arith.negf %288 : vector<128x128xf32>
    %290 = math.exp %289 : vector<128x128xf32>
    %cst_124 = arith.constant 1.000000e+00 : f32
    %291 = vector.broadcast %cst_124 : f32 to vector<128x128xf32>
    %292 = arith.addf %291, %290 : vector<128x128xf32>
    %293 = arith.divf %291, %292 : vector<128x128xf32>
    %294 = vector.extract_strided_slice %282 {offsets = [0, 128], sizes = [128, 128], strides = [1, 1]} : vector<128x384xf32> to vector<128x128xf32>
    %295 = vector.extract_strided_slice %285 {offsets = [0, 128], sizes = [128, 128], strides = [1, 1]} : vector<128x384xf32> to vector<128x128xf32>
    %296 = arith.addf %294, %295 : vector<128x128xf32>
    %297 = arith.negf %296 : vector<128x128xf32>
    %298 = math.exp %297 : vector<128x128xf32>
    %cst_125 = arith.constant 1.000000e+00 : f32
    %299 = vector.broadcast %cst_125 : f32 to vector<128x128xf32>
    %300 = arith.addf %299, %298 : vector<128x128xf32>
    %301 = arith.divf %299, %300 : vector<128x128xf32>
    %302 = vector.extract_strided_slice %282 {offsets = [0, 256], sizes = [128, 128], strides = [1, 1]} : vector<128x384xf32> to vector<128x128xf32>
    %303 = vector.extract_strided_slice %285 {offsets = [0, 256], sizes = [128, 128], strides = [1, 1]} : vector<128x384xf32> to vector<128x128xf32>
    %304 = arith.mulf %293, %303 : vector<128x128xf32>
    %305 = arith.addf %302, %304 : vector<128x128xf32>
    %306 = math.tanh %305 : vector<128x128xf32>
    %cst_126 = arith.constant 1.000000e+00 : f32
    %307 = vector.broadcast %cst_126 : f32 to vector<128x128xf32>
    %308 = arith.subf %307, %301 : vector<128x128xf32>
    %309 = arith.mulf %308, %306 : vector<128x128xf32>
    %310 = arith.mulf %301, %262 : vector<128x128xf32>
    %311 = arith.addf %309, %310 : vector<128x128xf32>
    %c0_127 = arith.constant 0 : index
    %c0_128 = arith.constant 0 : index
    %312 = vector.load %arg9[%c0_127, %c0_128] : memref<128x256xf32, #tpu.memory_space<vmem>>, vector<128x256xf32>
    %cst_129 = arith.constant dense<0.000000e+00> : vector<128x256xf32>
    %313 = tpu.matmul %311, %312, %cst_129 {dimension_numbers = #tpu.dot_dimension_numbers<[1], [0], [0], [1], [0, 0, 1, 1], [], []>} : vector<128x128xf32>, vector<128x256xf32>, vector<128x256xf32> -> vector<128x256xf32>
    %314 = vector.broadcast %3 : vector<1x256xf32> to vector<128x256xf32>
    %315 = arith.addf %313, %314 : vector<128x256xf32>
    %c0_130 = arith.constant 0 : index
    %c0_131 = arith.constant 0 : index
    %c0_132 = arith.constant 0 : index
    %316 = vector.load %arg13[%c0_130, %c0_131, %c0_132] : memref<1x128x256xf32, #tpu.memory_space<vmem>>, vector<1x128x256xf32>
    %317 = vector.shape_cast %316 : vector<1x128x256xf32> to vector<128x256xf32>
    %318 = vector.shape_cast %315 : vector<128x256xf32> to vector<1x128x256xf32>
    tpu.vector_store %arg13[%c0_130, %c0_131, %c0_132], %318 {strides = array<i32>} : memref<1x128x256xf32, #tpu.memory_space<vmem>>, vector<1x128x256xf32>,
    %c0_133 = arith.constant 0 : index
    %c0_134 = arith.constant 0 : index
    %c0_135 = arith.constant 0 : index
    %319 = vector.load %arg3[%c0_133, %c0_134, %c0_135] : memref<1x8x256xf32, #tpu.memory_space<vmem>>, vector<1x8x256xf32>
    %320 = vector.shape_cast %319 : vector<1x8x256xf32> to vector<8x256xf32>
    %321 = vector.extract_strided_slice %320 {offsets = [0, 0], sizes = [8, 128], strides = [1, 1]} : vector<8x256xf32> to vector<8x128xf32>
    %cst_136 = arith.constant dense<0.000000e+00> : vector<8x128xf32>
    %322 = tpu.matmul %321, %311, %cst_136 {dimension_numbers = #tpu.dot_dimension_numbers<[1], [0], [0], [1], [0, 0, 1, 1], [], []>} : vector<8x128xf32>, vector<128x128xf32>, vector<8x128xf32> -> vector<8x128xf32>
    %323 = vector.extract_strided_slice %320 {offsets = [0, 128], sizes = [8, 1], strides = [1, 1]} : vector<8x256xf32> to vector<8x1xf32>
    %324 = vector.broadcast %323 : vector<8x1xf32> to vector<8x128xf32>
    %325 = arith.mulf %322, %324 : vector<8x128xf32>
    %c0_137 = arith.constant 0 : index
    %c0_138 = arith.constant 0 : index
    %326 = vector.load %arg10[%c0_137, %c0_138] : memref<128x256xf32, #tpu.memory_space<vmem>>, vector<128x256xf32>
    %cst_139 = arith.constant dense<0.000000e+00> : vector<8x256xf32>
    %327 = tpu.matmul %325, %326, %cst_139 {dimension_numbers = #tpu.dot_dimension_numbers<[1], [0], [0], [1], [0, 0, 1, 1], [], []>} : vector<8x128xf32>, vector<128x256xf32>, vector<8x256xf32> -> vector<8x256xf32>
    %328 = vector.broadcast %4 : vector<1x256xf32> to vector<8x256xf32>
    %329 = arith.addf %327, %328 : vector<8x256xf32>
    %cst_140 = arith.constant 0.000000e+00 : f32
    %330 = vector.broadcast %cst_140 : f32 to vector<8x256xf32>
    %331 = arith.maximumf %329, %330 : vector<8x256xf32>
    %c0_141 = arith.constant 0 : index
    %c0_142 = arith.constant 0 : index
    %332 = vector.load %arg11[%c0_141, %c0_142] : memref<256x256xf32, #tpu.memory_space<vmem>>, vector<256x256xf32>
    %cst_143 = arith.constant dense<0.000000e+00> : vector<8x256xf32>
    %333 = tpu.matmul %331, %332, %cst_143 {dimension_numbers = #tpu.dot_dimension_numbers<[1], [0], [0], [1], [0, 0, 1, 1], [], []>} : vector<8x256xf32>, vector<256x256xf32>, vector<8x256xf32> -> vector<8x256xf32>
    %334 = vector.broadcast %5 : vector<1x256xf32> to vector<8x256xf32>
    %335 = arith.addf %333, %334 : vector<8x256xf32>
    %c0_144 = arith.constant 0 : index
    %c0_145 = arith.constant 0 : index
    %c0_146 = arith.constant 0 : index
    %336 = vector.load %arg14[%c0_144, %c0_145, %c0_146] : memref<1x8x256xf32, #tpu.memory_space<vmem>>, vector<1x8x256xf32>
    %337 = vector.shape_cast %336 : vector<1x8x256xf32> to vector<8x256xf32>
    %338 = vector.shape_cast %335 : vector<8x256xf32> to vector<1x8x256xf32>
    tpu.vector_store %arg14[%c0_144, %c0_145, %c0_146], %338 {strides = array<i32>} : memref<1x8x256xf32, #tpu.memory_space<vmem>>, vector<1x8x256xf32>,
    return
  }
  func.func @transform_0(%arg0: i32) -> (i32, i32, i32) {
    %c0_i32 = arith.constant 0 : i32
    %c0_i32_0 = arith.constant 0 : i32
    %c0_i32_1 = arith.constant 0 : i32
    return %arg0, %c0_i32, %c0_i32_0 : i32, i32, i32
  }
  func.func @transform_1(%arg0: i32) -> (i32, i32, i32) {
    %c0_i32 = arith.constant 0 : i32
    %c0_i32_0 = arith.constant 0 : i32
    %c0_i32_1 = arith.constant 0 : i32
    return %arg0, %c0_i32, %c0_i32_0 : i32, i32, i32
  }
  func.func @transform_2(%arg0: i32) -> (i32, i32, i32) {
    %c0_i32 = arith.constant 0 : i32
    %c0_i32_0 = arith.constant 0 : i32
    %c0_i32_1 = arith.constant 0 : i32
    return %arg0, %c0_i32, %c0_i32_0 : i32, i32, i32
  }
  func.func @transform_3(%arg0: i32) -> (i32, i32) {
    %c0_i32 = arith.constant 0 : i32
    %c0_i32_0 = arith.constant 0 : i32
    %c0_i32_1 = arith.constant 0 : i32
    return %c0_i32, %c0_i32_0 : i32, i32
  }
  func.func @transform_4(%arg0: i32) -> (i32, i32, i32) {
    %c0_i32 = arith.constant 0 : i32
    %c0_i32_0 = arith.constant 0 : i32
    %c0_i32_1 = arith.constant 0 : i32
    %c0_i32_2 = arith.constant 0 : i32
    return %c0_i32, %c0_i32_0, %c0_i32_1 : i32, i32, i32
  }
  func.func @transform_5(%arg0: i32) -> (i32, i32, i32) {
    %c0_i32 = arith.constant 0 : i32
    %c0_i32_0 = arith.constant 0 : i32
    %c0_i32_1 = arith.constant 0 : i32
    %c0_i32_2 = arith.constant 0 : i32
    return %c0_i32, %c0_i32_0, %c0_i32_1 : i32, i32, i32
  }
  func.func @transform_6(%arg0: i32) -> (i32, i32) {
    %c0_i32 = arith.constant 0 : i32
    %c0_i32_0 = arith.constant 0 : i32
    %c0_i32_1 = arith.constant 0 : i32
    return %c0_i32, %c0_i32_0 : i32, i32
  }
  func.func @transform_7(%arg0: i32) -> (i32, i32) {
    %c0_i32 = arith.constant 0 : i32
    %c0_i32_0 = arith.constant 0 : i32
    %c0_i32_1 = arith.constant 0 : i32
    return %c0_i32, %c0_i32_0 : i32, i32
  }
  func.func @transform_8(%arg0: i32) -> (i32, i32) {
    %c0_i32 = arith.constant 0 : i32
    %c0_i32_0 = arith.constant 0 : i32
    %c0_i32_1 = arith.constant 0 : i32
    return %c0_i32, %c0_i32_0 : i32, i32
  }
  func.func @transform_9(%arg0: i32) -> (i32, i32) {
    %c0_i32 = arith.constant 0 : i32
    %c0_i32_0 = arith.constant 0 : i32
    %c0_i32_1 = arith.constant 0 : i32
    return %c0_i32, %c0_i32_0 : i32, i32
  }
  func.func @transform_10(%arg0: i32) -> (i32, i32) {
    %c0_i32 = arith.constant 0 : i32
    %c0_i32_0 = arith.constant 0 : i32
    %c0_i32_1 = arith.constant 0 : i32
    return %c0_i32, %c0_i32_0 : i32, i32
  }
  func.func @transform_11(%arg0: i32) -> (i32, i32) {
    %c0_i32 = arith.constant 0 : i32
    %c0_i32_0 = arith.constant 0 : i32
    %c0_i32_1 = arith.constant 0 : i32
    return %c0_i32, %c0_i32_0 : i32, i32
  }
  func.func @transform_12(%arg0: i32) -> (i32, i32, i32) {
    %c0_i32 = arith.constant 0 : i32
    %c0_i32_0 = arith.constant 0 : i32
    %c0_i32_1 = arith.constant 0 : i32
    return %arg0, %c0_i32, %c0_i32_0 : i32, i32, i32
  }
  func.func @transform_13(%arg0: i32) -> (i32, i32, i32) {
    %c0_i32 = arith.constant 0 : i32
    %c0_i32_0 = arith.constant 0 : i32
    %c0_i32_1 = arith.constant 0 : i32
    return %arg0, %c0_i32, %c0_i32_0 : i32, i32, i32
  }
}

</mosaic_0001>

<bundles_post_ra>
// kernel: tpu_custom_call.1
= control target key start
LH: loop header
LB: loop body
LE: loop exit
PB: predicated region body
PF: predicated region fallthrough
CT: control target
= control target key end

     0   :  { %s20891_s0 = inlined_call_operand.hbm [shape: f32[2,128,128], index: 0, kind: input, shape index: {}]   ;;  %s20892_s1 = inlined_call_operand.hbm [shape: f32[2,128,128], index: 1, kind: input, shape index: {}]   ;;  %s20893_s2 = inlined_call_operand.hbm [shape: f32[2,8,256], index: 2, kind: input, shape index: {}]   ;;  %s20894_s3 = inlined_call_operand.hbm [shape: f32[128,128], index: 3, kind: input, shape index: {}]   ;;  %s20895_s4 = inlined_call_operand.hbm [shape: f32[6,128,128], index: 4, kind: input, shape index: {}]   ;;  %s20896_s5 = inlined_call_operand.hbm [shape: f32[6,128,128], index: 5, kind: input, shape index: {}]   ;;  %s20897_s6 = inlined_call_operand.hbm [shape: f32[128,384], index: 6, kind: input, shape index: {}]   ;;  %s20898_s7 = inlined_call_operand.hbm [shape: f32[128,384], index: 7, kind: input, shape index: {}]   ;;  %s20899_s8 = inlined_call_operand.hbm [shape: f32[128,256], index: 8, kind: input, shape index: {}]   ;;  %s20900_s9 = inlined_call_operand.hbm [shape: f32[128,256], index: 9, kind: input, shape index: {}]   ;;  %s20901_s10 = inlined_call_operand.hbm [shape: f32[256,256], index: 10, kind: input, shape index: {}]   ;;  %s20902_s11 = inlined_call_operand.hbm [shape: f32[24,384], index: 11, kind: input, shape index: {}]   ;;  %s20903_s12 = inlined_call_operand.hbm [shape: f32[2,128,256], index: 12, kind: output, shape index: {0}]   ;;  %s20904_s13 = inlined_call_operand.hbm [shape: f32[2,8,256], index: 13, kind: output, shape index: {1}]  }
   0x1   :  { %21150 = sst [smem:[#allocation100_spill]] %s20891_s0 }
   0x2   :  { %21151 = sst [smem:[#allocation101_spill]] %s20892_s1 }
   0x3   :  { %21152 = sst [smem:[#allocation102_spill]] %s20893_s2 }
   0x4   :  { %21153 = sst [smem:[#allocation103_spill]] %s20894_s3 }
   0x5   :  { %21154 = sst [smem:[#allocation104_spill]] %s20895_s4 }
   0x6   :  { %21155 = sst [smem:[#allocation105_spill]] %s20896_s5 }
   0x7   :  { %21156 = sst [smem:[#allocation106_spill]] %s20897_s6 }
   0x8   :  { %21157 = sst [smem:[#allocation107_spill]] %s20898_s7 }
   0x9   :  { %21158 = sst [smem:[#allocation108_spill]] %s20900_s9 }
   0xa   :  { %21159 = sst [smem:[#allocation109_spill]] %s20903_s12 }
   0xb   :  { %21160 = sst [smem:[#allocation110_spill]] %s20904_s13 }
   0xc   :  { %19 = vsyncpa [#allocation3], 0 }
   0xd   :  { %21 = vsyncpa [#allocation3 + $0x1], 0 }
   0xe   :  { %22 = vsyncpa [#allocation6], 0 }
   0xf   :  { %24 = vsyncpa [#allocation6 + $0x1], 0 }
  0x10   :  { %25 = vsyncpa [#allocation9], 0 }
  0x11   :  { %26 = vsyncpa [#allocation12], 0 }
  0x12   :  { %27 = vsyncpa [#allocation15], 0 }
  0x13   :  { %28 = vsyncpa [#allocation18], 0 }
  0x14   :  { %29 = vsyncpa [#allocation21], 0 }
  0x15   :  { %30 = vsyncpa [#allocation4], 0 }
  0x16   :  { %32 = vsyncpa [#allocation4 + $0x1], 0 }
  0x17   :  { %33 = vsyncpa [#allocation24], 0 }
  0x18   :  { %35 = vsyncpa [#allocation24 + $0x1], 0  ;;  %s17465_s25 = smov 0   ;;  %s17467_s26 = smov 0  }
  0x19   :  { %s17469_s27 = smov 0   ;;  %s17471_s28 = smov 0  }
  0x1a LB: > { %21161 = sst [smem:[#allocation34_spill]] %s17355_s25  ;;  %s17369_s29 = smov [#allocation8]   ;;  %s17367_s28 = sphi %s17471_s28, %s21637_s28   ;;  %s17363_s27 = sphi %s17469_s27, %s21639_s27   ;;  %s17359_s26 = sphi %s17467_s26, %s21641_s26   ;;  %s17355_s25 = sphi %s17465_s25, %s21640_s25  }
  0x1b   : > { %21162 = sst [smem:[#allocation35_spill]] %s17363_s27  ;;  %s377_s30 = sshll.u32 %s17369_s29, 4  ;;  %s17491_s30 = int_to_ptr.vmem [resolvable:$true] %s377_s30 }
  0x1c   : > { %s17486_s14 = sadd.s32 4294967295, %s17367_s28   ;;  %p10574_p0 = scmp.ge.s32.totalorder %s17367_s28, 1 }
  0x1d   : > { %21163 = sst [smem:[#allocation36_spill]] %s17486_s14  ;;  %p20910_p1 = scmp.eq.s32.totalorder %s17486_s14, 0 }
  0x1e   : > { %p365_p2 = scmp.lt.s32.totalorder %s17367_s28, 3  ;;  %s17370_s16 = smov [#allocation11]  }
  0x1f   : > { %s403_s17 = sshll.u32 %s17370_s16, 4  ;;  %s17371_s19 = smov [#allocation14]   ;;  %s17506_s17 = int_to_ptr.vmem [resolvable:$true] %s403_s17 }
  0x20   : > { %p17493_p3 = pnand %p10574_p0, %p365_p2  ;;  %s17508_s20 = sshll.u32 %s17371_s19, 4  ;;  %s430_s20 = int_to_ptr.vmem [resolvable:$true] %s17508_s20 }
  0x21   : > { %s21167_s3 = sld [smem:[#allocation103_spill]] }
  0x22   : > { %s21164_s15 = scalar_select %p17493_p3, 1, 0 }
  0x23   : > { %p15744_p5 = pneg %p17493_p3 }
  0x24   : > { %21165 = sst [smem:[#allocation37_spill]] %s21164_s15 }
  0x25   : > { %p17502_p6 = pnand %p15744_p5, %p20910_p1 }
  0x27   : > { %s21166_s18 = scalar_select %p17502_p6, 1, 0 }
  0x28   : > { %s16903_s23 = scalar_lea.hbm %s21167_s3, 2048  ;;  %p17518_p8 = pneg %p17502_p6 }
  0x29   : > { %p16904_p7 = scmp.ne.s32.totalorder %s21167_s3, %s16903_s23  ;;  %p16910_p11 = scmp.lt.u32.totalorder %s16903_s23, %s21167_s3 }
  0x2a   : > { %s21168_s16 = scalar_select %p17518_p8, 1, 0 }
  0x2b   : > { %p16906_p9 = pnand %p17518_p8, %p16904_p7 }
  0x2d   : > { %p16907_p10 = pneg %p16906_p9 }
  0x2f   : > { %p16912_p12 = pnand %p16910_p11, %p16907_p10 }
  0x31   : > { %16915 = shalt.err (!%p16912_p12)
}
  0x32   : > { %s16916_s21 = scalar_lea.vmem %s17491_s30, 2048  ;;  %p16924_p5 = scmp.lt.s32.totalorder %s17491_s30, %s17491_s30 }
  0x33   : > { %p16917_p13 = scmp.ne.s32.totalorder %s17491_s30, %s16916_s21  ;;  %p16925_p4 = scmp.lt.s32.totalorder %s16916_s21, %s16916_s21 }
  0x35   : > { %p16919_p0 = pnand %p16917_p13, %p17518_p8  ;;  %p16926_p7 = por %p16925_p4, %p16924_p5 }
  0x37   : > { %p16920_p2 = pneg %p16919_p0 }
  0x39   : > { %p16927_p9 = pnand %p16926_p7, %p16920_p2 }
  0x3b   : > { %16930 = shalt.err (!%p16927_p9)
}
  0x3c   : > { %s20912_s22 = smov 128   ;;  %s20914_s13 = smov 8  }
  0x3d   : > { %15747 = dma.hbm_to_vmem [thread:$0]  (!%p17502_p6), %s21167_s3, 2048, %s17491_s30, [#allocation9], %s20912_s22, %s20912_s22, %s20914_s13  }
  0x3e   : > { %s21169_s5 = sld [smem:[#allocation105_spill]] }
  0x44   : > { %s16931_s21 = scalar_lea.hbm %s21169_s5, 12288 }
  0x45   : > { %p16932_p4 = scmp.ne.s32.totalorder %s21169_s5, %s16931_s21  ;;  %p16938_p12 = scmp.lt.u32.totalorder %s16931_s21, %s21169_s5 }
  0x47   : > { %p16934_p10 = pnand %p16932_p4, %p17518_p8 }
  0x49   : > { %p16935_p11 = pneg %p16934_p10 }
  0x4b   : > { %p16940_p13 = pnand %p16938_p12, %p16935_p11 }
  0x4d   : > { %16943 = shalt.err (!%p16940_p13)
}
  0x4e   : > { %s16944_s30 = scalar_lea.vmem %s17506_s17, 12288  ;;  %p16952_p7 = scmp.lt.s32.totalorder %s17506_s17, %s17506_s17 }
  0x4f   : > { %p16945_p0 = scmp.ne.s32.totalorder %s17506_s17, %s16944_s30  ;;  %p16953_p9 = scmp.lt.s32.totalorder %s16944_s30, %s16944_s30 }
  0x51   : > { %p16947_p2 = pnand %p16945_p0, %p17518_p8  ;;  %p16954_p4 = por %p16953_p9, %p16952_p7 }
  0x53   : > { %p16948_p5 = pneg %p16947_p2 }
  0x55   : > { %p16955_p10 = pnand %p16954_p4, %p16948_p5 }
  0x57   : > { %16958 = shalt.err (!%p16955_p10)
}
  0x58   : > { %15753 = dma.hbm_to_vmem [thread:$0]  (!%p17502_p6), %s21169_s5, 12288, %s17506_s17, [#allocation12], %s20912_s22, %s20912_s22, %s20914_s13  }
  0x59   : > { %s21170_s7 = sld [smem:[#allocation107_spill]] }
  0x5f   : > { %s16959_s23 = scalar_lea.hbm %s21170_s7, 6144 }
  0x60   : > { %p16960_p11 = scmp.ne.s32.totalorder %s21170_s7, %s16959_s23  ;;  %p16966_p0 = scmp.lt.u32.totalorder %s16959_s23, %s21170_s7 }
  0x62   : > { %p16962_p12 = pnand %p16960_p11, %p17518_p8 }
  0x64   : > { %p16963_p13 = pneg %p16962_p12 }
  0x66   : > { %p16968_p2 = pnand %p16966_p0, %p16963_p13 }
  0x68   : > { %16971 = shalt.err (!%p16968_p2)
}
  0x69   : > { %s16972_s30 = scalar_lea.vmem %s430_s20, 6144  ;;  %p16980_p4 = scmp.lt.s32.totalorder %s430_s20, %s430_s20 }
  0x6a   : > { %p16973_p5 = scmp.ne.s32.totalorder %s430_s20, %s16972_s30  ;;  %p16981_p10 = scmp.lt.s32.totalorder %s16972_s30, %s16972_s30 }
  0x6c   : > { %p16975_p7 = pnand %p16973_p5, %p17518_p8  ;;  %p16982_p1 = por %p16981_p10, %p16980_p4 }
  0x6e   : > { %p16976_p9 = pneg %p16975_p7 }
  0x70   : > { %p16983_p3 = pnand %p16982_p1, %p16976_p9 }
  0x72   : > { %16986 = shalt.err (!%p16983_p3)
}
  0x73   : > { %s20920_s17 = smov 384   ;;  %s20922_s0 = smov 24  }
  0x74   : > { %15759 = dma.hbm_to_vmem [thread:$0]  (!%p17502_p6), %s21170_s7, 6144, %s430_s20, [#allocation15], %s20920_s17, %s20920_s17, %s20922_s0  }
  0x75   : > { %s17376_s15 = smov [#allocation17]   ;;  %s21171_s9 = sld [smem:[#allocation108_spill]] }
  0x76   : > { %s455_s23 = sshll.u32 %s17376_s15, 4  ;;  %s456_s23 = int_to_ptr.vmem [resolvable:$true] %s455_s23 }
  0x7b   : > { %s16987_s19 = scalar_lea.hbm %s21171_s9, 4096 }
  0x7c   : > { %p16988_p1 = scmp.ne.s32.totalorder %s21171_s9, %s16987_s19  ;;  %p16994_p12 = scmp.lt.u32.totalorder %s16987_s19, %s21171_s9 }
  0x7e   : > { %p16990_p3 = pnand %p16988_p1, %p17518_p8 }
  0x80   : > { %p16991_p11 = pneg %p16990_p3 }
  0x82   : > { %p16996_p13 = pnand %p16994_p12, %p16991_p11 }
  0x84   : > { %16999 = shalt.err (!%p16996_p13)
}
  0x85   : > { %s17000_s20 = scalar_lea.vmem %s456_s23, 4096  ;;  %p17008_p7 = scmp.lt.s32.totalorder %s456_s23, %s456_s23 }
  0x86   : > { %p17001_p0 = scmp.ne.s32.totalorder %s456_s23, %s17000_s20  ;;  %p17009_p9 = scmp.lt.s32.totalorder %s17000_s20, %s17000_s20 }
  0x88   : > { %p17003_p2 = pnand %p17001_p0, %p17518_p8  ;;  %p17010_p4 = por %p17009_p9, %p17008_p7 }
  0x8a   : > { %p17004_p5 = pneg %p17003_p2 }
  0x8c   : > { %p17011_p10 = pnand %p17010_p4, %p17004_p5 }
  0x8e   : > { %17014 = shalt.err (!%p17011_p10)
}
  0x8f   : > { %s20916_s2 = smov 256   ;;  %s20918_s22 = smov 16  }
  0x90   : > { %15765 = dma.hbm_to_vmem [thread:$0]  (!%p17502_p6), %s21171_s9, 4096, %s456_s23, [#allocation18], %s20916_s2, %s20916_s2, %s20918_s22  }
  0x91   : > { %s10573_s15 = sadd.s32 4294967294, %s17367_s28   ;;  %s17613_s24 = sadd.s32 1, %s17367_s28  }
  0x92   : > { %21172 = sst [smem:[#allocation38_spill]] %s17613_s24  ;;  %s45_s29 = ssub.s32 %s17367_s28, %s17613_s24 }
  0x93   : > { %s48_s19 = sadd.s32 1, %s17363_s27  ;;  %p46_p1 = scmp.eq.s32.totalorder %s45_s29, 0 }
  0x94   : > { %p55_p3 = scmp.ne.s32.totalorder %s17363_s27, %s17359_s26  ;;  %p56_p11 = scmp.eq.s32.totalorder %s17367_s28, 0 }
  0x95   : > { %p61_p12 = scmp.ne.s32.totalorder %s17359_s26, %s17355_s25  ;;  %p21174_p0 = scmp.eq.s32.totalorder %s17486_s14, 0 }
  0x96   : > { %s17624_s21 = scalar_select %p46_p1, %s17363_s27, %s48_s19  }
  0x97   : > { %p57_p13 = por %p56_p11, %p55_p3  ;;  %p17628_p2 = por %p21174_p0, %p61_p12 }
  0x98   : > { %21173 = sst [smem:[#allocation39_spill]] %s17624_s21  ;;  %p326_p5 = scmp.eq.s32.totalorder %s17486_s14, 1 }
  0x99   : > { %s21175_s30 = scalar_select %p17628_p2, 1, 0 }
  0x9a   : > { %p332_p7 = scmp.eq.s32.totalorder %s10573_s15, 1  ;;  %p15798_p9 = scmp.lt.s32.totalorder %s17367_s28, 2 }
  0x9b   : > { %s17635_s23 = sand.u32 1, %s17363_s27   ;;  %p17637_p4 = por %p326_p5, %p55_p3 }
  0x9c   : > { %p17641_p10 = por %p332_p7, %p61_p12  ;;  %s20924_s12 = sshll.u32 %s17635_s23, 7 }
  0x9d   : > { %s21176_s20 = scalar_select %p17637_p4, 1, 0 }
  0x9e   : > { %s21178_s13 = scalar_select %p17641_p10, 1, 0 }
  0x9f   : > { %21177 = sst [smem:[#allocation40_spill]] %s21176_s20  ;;  %s20925_s29 = sshll.u32 %s17367_s28, 11 }
  0xa0   : > { %21179 = sst [smem:[#allocation41_spill]] %s21178_s13  ;;  %p17647_p1 = pnand %p15798_p9, %p57_p13 }
  0xa1   : > { %s516_s15 = sand.u32 1, %s17367_s28   ;;  %s21181_s1 = sld [smem:[#allocation101_spill]] }
  0xa2   : > { %s21180_s19 = scalar_select %p17647_p1, 1, 0 }
  0xa3   : > { %s520_s0 = scalar_lea.vmem [#allocation5], %s20924_s12  ;;  %s17379_s5 = smov [#allocation10]  }
  0xa4   : > { %s527_s3 = sshll.u32 %s520_s0, 4  ;;  %s17663_s7 = sshll.u32 %s17379_s5, 4  ;;  %s17661_s3 = int_to_ptr.vmem [resolvable:$true] %s527_s3  ;;  %s391_s7 = int_to_ptr.vmem [resolvable:$true] %s17663_s7 }
  0xa5   : > { %s17665_s9 = scalar_lea.sflag [#allocation6], %s516_s15  ;;  %p17671_p11 = pneg %p17647_p1 }
  0xa7   : > { %s17657_s17 = scalar_lea.hbm %s21181_s1, %s20925_s29  ;;  %s17020_s12 = scalar_lea.hbm %s21181_s1, 4096 }
  0xa8   : > { %s17015_s21 = scalar_lea.hbm %s17657_s17, 2048  ;;  %p17021_p0 = scmp.lt.u32.totalorder %s17657_s17, %s21181_s1 }
  0xa9   : > { %p17016_p3 = scmp.ne.s32.totalorder %s17657_s17, %s17015_s21  ;;  %p17022_p5 = scmp.lt.u32.totalorder %s17020_s12, %s17015_s21 }
  0xaa   : > { %s21182_s2 = scalar_select %p17671_p11, 1, 0 }
  0xab   : > { %p17018_p12 = pnand %p17671_p11, %p17016_p3  ;;  %p17023_p7 = por %p17022_p5, %p17021_p0 }
  0xac   : > { %p17024_p9 = scmp.lt.u32.totalorder %s17015_s21, %s17657_s17 }
  0xad   : > { %p17019_p13 = pneg %p17018_p12 }
  0xae   : > { %p17025_p10 = por %p17024_p9, %p17023_p7 }
  0xb0   : > { %p17026_p4 = pnand %p17025_p10, %p17019_p13 }
  0xb2   : > { %17029 = shalt.err (!%p17026_p4)
}
  0xb3   : > { %s17030_s15 = scalar_lea.vmem %s17661_s3, 2048  ;;  %s17380_s22 = smov [#allocation5]  }
  0xb4   : > { %p17031_p3 = scmp.ne.s32.totalorder %s17661_s3, %s17030_s15  ;;  %s17035_s0 = sshll.u32 %s17380_s22, 4  ;;  %s17036_s0 = int_to_ptr.vmem [resolvable:$false] %s17035_s0 }
  0xb5   : > { %s17037_s29 = scalar_lea.vmem %s17036_s0, 4096  ;;  %p17038_p6 = scmp.lt.s32.totalorder %s17661_s3, %s17036_s0 }
  0xb6   : > { %p17033_p12 = pnand %p17031_p3, %p17671_p11  ;;  %p17039_p8 = scmp.lt.s32.totalorder %s17037_s29, %s17030_s15 }
  0xb8   : > { %p17034_p2 = pneg %p17033_p12  ;;  %p17040_p0 = por %p17039_p8, %p17038_p6 }
  0xba   : > { %p17041_p5 = pnand %p17040_p0, %p17034_p2 }
  0xbc   : > { %17044 = shalt.err (!%p17041_p5)
}
  0xbd   : > { %s21183_s21 = smov 8   ;;  %s21184_s12 = smov 128  }
  0xbe   : > { %15778 = dma.hbm_to_vmem [thread:$0]  (!%p17647_p1), %s17657_s17, 2048, %s17661_s3, %s17665_s9, %s21184_s12, %s21184_s12, %s21183_s21  }
  0xbf   : > { %s21185_s4 = sld [smem:[#allocation104_spill]]  ;;  %p21186_p8 = scmp.ne.s32.totalorder %s21168_s16, 0 }
  0xc5   : > { %s17045_s0 = scalar_lea.hbm %s21185_s4, 12288 }
  0xc6   : > { %p17046_p6 = scmp.ne.s32.totalorder %s21185_s4, %s17045_s0  ;;  %p17052_p10 = scmp.lt.u32.totalorder %s17045_s0, %s21185_s4 }
  0xc8   : > { %p17048_p2 = pnand %p17046_p6, %p21186_p8 }
  0xca   : > { %p17049_p4 = pneg %p17048_p2 }
  0xcc   : > { %p17054_p13 = pnand %p17052_p10, %p17049_p4 }
  0xce   : > { %17057 = shalt.err (!%p17054_p13)
}
  0xcf   : > { %s17058_s24 = scalar_lea.vmem %s391_s7, 12288  ;;  %p17066_p12 = scmp.lt.s32.totalorder %s391_s7, %s391_s7 }
  0xd0   : > { %p17059_p7 = scmp.ne.s32.totalorder %s391_s7, %s17058_s24  ;;  %p17067_p0 = scmp.lt.s32.totalorder %s17058_s24, %s17058_s24 }
  0xd2   : > { %p17061_p9 = pnand %p17059_p7, %p21186_p8  ;;  %p17068_p5 = por %p17067_p0, %p17066_p12 }
  0xd4   : > { %p17062_p3 = pneg %p17061_p9 }
  0xd6   : > { %p17069_p1 = pnand %p17068_p5, %p17062_p3 }
  0xd8   : > { %17072 = shalt.err (!%p17069_p1)
}
  0xd9   : > { %p21187_p6 = scmp.ne.s32.totalorder %s21166_s18, 0  ;;  %s17381_s27 = smov [#allocation13]  }
  0xda   : > { %s416_s17 = sshll.u32 %s17381_s27, 4  ;;  %s17382_s5 = smov [#allocation16]   ;;  %s417_s17 = int_to_ptr.vmem [resolvable:$true] %s416_s17 }
  0xdb   : > { %15750 = dma.hbm_to_vmem [thread:$0]  (!%p21187_p6), %s21185_s4, 12288, %s391_s7, [#allocation9], %s21184_s12, %s21184_s12, %s21183_s21  }
  0xdc   : > { %s442_s22 = sshll.u32 %s17382_s5, 4  ;;  %s21188_s6 = sld [smem:[#allocation106_spill]]  ;;  %s443_s22 = int_to_ptr.vmem [resolvable:$true] %s442_s22 }
  0xe2   : > { %s17073_s15 = scalar_lea.hbm %s21188_s6, 6144 }
  0xe3   : > { %p17074_p1 = scmp.ne.s32.totalorder %s21188_s6, %s17073_s15  ;;  %p17080_p10 = scmp.lt.u32.totalorder %s17073_s15, %s21188_s6 }
  0xe5   : > { %p17076_p2 = pnand %p17074_p1, %p21186_p8 }
  0xe7   : > { %p17077_p4 = pneg %p17076_p2 }
  0xe9   : > { %p17082_p13 = pnand %p17080_p10, %p17077_p4 }
  0xeb   : > { %17085 = shalt.err (!%p17082_p13)
}
  0xec   : > { %s17086_s7 = scalar_lea.vmem %s417_s17, 6144  ;;  %p17094_p12 = scmp.lt.s32.totalorder %s417_s17, %s417_s17 }
  0xed   : > { %p17087_p7 = scmp.ne.s32.totalorder %s417_s17, %s17086_s7  ;;  %p17095_p0 = scmp.lt.s32.totalorder %s17086_s7, %s17086_s7 }
  0xef   : > { %p17089_p9 = pnand %p17087_p7, %p21186_p8  ;;  %p17096_p5 = por %p17095_p0, %p17094_p12 }
  0xf1   : > { %p17090_p3 = pneg %p17089_p9 }
  0xf3   : > { %p17097_p11 = pnand %p17096_p5, %p17090_p3 }
  0xf5   : > { %17100 = shalt.err (!%p17097_p11)
}
  0xf6   : > { %s21189_s13 = smov 24   ;;  %s21190_s3 = smov 384  }
  0xf7   : > { %15756 = dma.hbm_to_vmem [thread:$0]  (!%p21187_p6), %s21188_s6, 6144, %s417_s17, [#allocation12], %s21190_s3, %s21190_s3, %s21189_s13  }
  0xf8   : > { %s17101_s24 = scalar_lea.hbm %s20899_s8, 4096 }
  0xf9   : > { %p17102_p1 = scmp.ne.s32.totalorder %s20899_s8, %s17101_s24  ;;  %p17108_p4 = scmp.lt.u32.totalorder %s17101_s24, %s20899_s8 }
  0xfb   : > { %p17104_p11 = pnand %p17102_p1, %p21186_p8 }
  0xfd   : > { %p17105_p2 = pneg %p17104_p11 }
  0xff   : > { %p17110_p10 = pnand %p17108_p4, %p17105_p2 }
 0x101   : > { %17113 = shalt.err (!%p17110_p10)
}
 0x102   : > { %s17114_s25 = scalar_lea.vmem %s443_s22, 4096  ;;  %p17122_p3 = scmp.lt.s32.totalorder %s443_s22, %s443_s22 }
 0x103   : > { %p17115_p13 = scmp.ne.s32.totalorder %s443_s22, %s17114_s25  ;;  %p17123_p12 = scmp.lt.s32.totalorder %s17114_s25, %s17114_s25 }
 0x105   : > { %p17117_p7 = pnand %p17115_p13, %p21186_p8  ;;  %p17124_p0 = por %p17123_p12, %p17122_p3 }
 0x107   : > { %p17118_p9 = pneg %p17117_p7 }
 0x109   : > { %p17125_p5 = pnand %p17124_p0, %p17118_p9 }
 0x10b   : > { %17128 = shalt.err (!%p17125_p5)
}
 0x10c   : > { %s21191_s17 = smov 16   ;;  %s21192_s27 = smov 256  }
 0x10d   : > { %15762 = dma.hbm_to_vmem [thread:$0]  (!%p21187_p6), %s20899_s8, 4096, %s443_s22, [#allocation15], %s21192_s27, %s21192_s27, %s21191_s17  }
 0x10e   : > { %s17383_s24 = smov [#allocation19]   ;;  %s17384_s29 = smov [#allocation20]  }
 0x10f   : > { %s468_s15 = sshll.u32 %s17383_s24, 4  ;;  %s481_s1 = sshll.u32 %s17384_s29, 4  ;;  %s469_s15 = int_to_ptr.vmem [resolvable:$true] %s468_s15  ;;  %s482_s1 = int_to_ptr.vmem [resolvable:$true] %s481_s1 }
 0x110   : > { %s17129_s4 = scalar_lea.hbm %s20901_s10, 8192 }
 0x111   : > { %p17130_p1 = scmp.ne.s32.totalorder %s20901_s10, %s17129_s4  ;;  %p17136_p4 = scmp.lt.u32.totalorder %s17129_s4, %s20901_s10 }
 0x113   : > { %p17132_p11 = pnand %p17130_p1, %p21186_p8 }
 0x115   : > { %p17133_p2 = pneg %p17132_p11 }
 0x117   : > { %p17138_p10 = pnand %p17136_p4, %p17133_p2 }
 0x119   : > { %17141 = shalt.err (!%p17138_p10)
}
 0x11a   : > { %s17142_s22 = scalar_lea.vmem %s469_s15, 8192  ;;  %p17150_p3 = scmp.lt.s32.totalorder %s469_s15, %s469_s15 }
 0x11b   : > { %p17143_p13 = scmp.ne.s32.totalorder %s469_s15, %s17142_s22  ;;  %p17151_p12 = scmp.lt.s32.totalorder %s17142_s22, %s17142_s22 }
 0x11d   : > { %p17145_p7 = pnand %p17143_p13, %p21186_p8  ;;  %p17152_p0 = por %p17151_p12, %p17150_p3 }
 0x11f   : > { %p17146_p9 = pneg %p17145_p7 }
 0x121   : > { %p17153_p5 = pnand %p17152_p0, %p17146_p9 }
 0x123   : > { %17156 = shalt.err (!%p17153_p5)
}
 0x124   : > { %15768 = dma.hbm_to_vmem [thread:$0]  (!%p21187_p6), %s20901_s10, 8192, %s469_s15, [#allocation18], %s21192_s27, %s21192_s27, %s21191_s17  }
 0x125   : > { %s17157_s0 = scalar_lea.hbm %s20902_s11, 1152 }
 0x126   : > { %p17158_p1 = scmp.ne.s32.totalorder %s20902_s11, %s17157_s0  ;;  %p17164_p4 = scmp.lt.u32.totalorder %s17157_s0, %s20902_s11 }
 0x128   : > { %p17160_p11 = pnand %p17158_p1, %p21186_p8 }
 0x12a   : > { %p17161_p2 = pneg %p17160_p11 }
 0x12c   : > { %p17166_p10 = pnand %p17164_p4, %p17161_p2 }
 0x12e   : > { %17169 = shalt.err (!%p17166_p10)
}
 0x12f   : > { %s17170_s5 = scalar_lea.vmem %s482_s1, 1152  ;;  %p17178_p3 = scmp.lt.s32.totalorder %s482_s1, %s482_s1 }
 0x130   : > { %p17171_p13 = scmp.ne.s32.totalorder %s482_s1, %s17170_s5  ;;  %p17179_p12 = scmp.lt.s32.totalorder %s17170_s5, %s17170_s5 }
 0x132   : > { %p17173_p7 = pnand %p17171_p13, %p21186_p8  ;;  %p17180_p0 = por %p17179_p12, %p17178_p3 }
 0x134   : > { %p17174_p9 = pneg %p17173_p7 }
 0x136   : > { %p17181_p5 = pnand %p17180_p0, %p17174_p9 }
 0x138   : > { %17184 = shalt.err (!%p17181_p5)
}
 0x139   : > { %15771 = dma.hbm_to_vmem [thread:$0]  (!%p21187_p6), %s20902_s11, 1152, %s482_s1, [#allocation21], %s21190_s3, %s21190_s3, %s21189_s13  }
 0x13a   : > { %s21193_s16 = sshll.u32 %s17367_s28, 11  ;;  %s21194_s6 = sld [smem:[#allocation100_spill]] }
 0x13b   : > { %s21195_s14 = sshll.u32 %s17635_s23, 7  ;;  %s10591_s0 = sshll.u32 %s17635_s23, 4 }
 0x13c   : > { %s499_s18 = scalar_lea.vmem [#allocation2], %s21195_s14  ;;  %s496_s24 = scalar_lea.sflag [#allocation3], %s17635_s23 }
 0x13d   : > { %s506_s20 = sshll.u32 %s499_s18, 4  ;;  %p21196_p6 = scmp.ne.s32.totalorder %s21182_s2, 0  ;;  %s17814_s20 = int_to_ptr.vmem [resolvable:$true] %s506_s20 }
 0x140   : > { %s17809_s4 = scalar_lea.hbm %s21194_s6, %s21193_s16  ;;  %s17190_s1 = scalar_lea.hbm %s21194_s6, 4096 }
 0x141   : > { %s17185_s29 = scalar_lea.hbm %s17809_s4, 2048  ;;  %p17191_p2 = scmp.lt.u32.totalorder %s17809_s4, %s21194_s6 }
 0x142   : > { %p17186_p8 = scmp.ne.s32.totalorder %s17809_s4, %s17185_s29  ;;  %p17192_p4 = scmp.lt.u32.totalorder %s17190_s1, %s17185_s29 }
 0x143   : > { %p17194_p13 = scmp.lt.u32.totalorder %s17185_s29, %s17809_s4 }
 0x144   : > { %p17188_p1 = pnand %p17186_p8, %p21196_p6  ;;  %p17193_p10 = por %p17192_p4, %p17191_p2 }
 0x146   : > { %p17189_p11 = pneg %p17188_p1  ;;  %p17195_p7 = por %p17194_p13, %p17193_p10 }
 0x148   : > { %p17196_p9 = pnand %p17195_p7, %p17189_p11 }
 0x14a   : > { %17199 = shalt.err (!%p17196_p9)
}
 0x14b   : > { %s17200_s5 = scalar_lea.vmem %s17814_s20, 2048  ;;  %s17385_s17 = smov [#allocation2]  }
 0x14c   : > { %p17201_p3 = scmp.ne.s32.totalorder %s17814_s20, %s17200_s5  ;;  %s17205_s27 = sshll.u32 %s17385_s17, 4  ;;  %s17206_s27 = int_to_ptr.vmem [resolvable:$false] %s17205_s27 }
 0x14d   : > { %s17207_s16 = scalar_lea.vmem %s17206_s27, 4096  ;;  %p17208_p5 = scmp.lt.s32.totalorder %s17814_s20, %s17206_s27 }
 0x14e   : > { %p17203_p12 = pnand %p17201_p3, %p21196_p6  ;;  %p17209_p8 = scmp.lt.s32.totalorder %s17207_s16, %s17200_s5 }
 0x150   : > { %p17204_p0 = pneg %p17203_p12  ;;  %p17210_p1 = por %p17209_p8, %p17208_p5 }
 0x152   : > { %p17211_p2 = pnand %p17210_p1, %p17204_p0 }
 0x154   : > { %17214 = shalt.err (!%p17211_p2)
}
 0x155   : > { %p21197_p11 = scmp.ne.s32.totalorder %s21180_s19, 0  ;;  %s10811_s15 = sshll.u32 %s17367_s28, 8 }
 0x156   : > { %s541_s22 = scalar_lea.vmem [#allocation7], %s10591_s0  ;;  %s21198_s13 = sld [smem:[#allocation102_spill]] }
 0x157   : > { %15775 = dma.hbm_to_vmem [thread:$0]  (!%p21197_p11), %s17809_s4, 2048, %s17814_s20, %s496_s24, %s21184_s12, %s21184_s12, %s21183_s21  }
 0x158   : > { %s549_s14 = sshll.u32 %s541_s22, 4  ;;  %s550_s14 = int_to_ptr.vmem [resolvable:$true] %s549_s14 }
 0x15c   : > { %s547_s3 = scalar_lea.hbm %s21198_s13, %s10811_s15  ;;  %s17220_s5 = scalar_lea.hbm %s21198_s13, 512 }
 0x15d   : > { %s17215_s1 = scalar_lea.hbm %s547_s3, 256  ;;  %p17221_p7 = scmp.lt.u32.totalorder %s547_s3, %s21198_s13 }
 0x15e   : > { %p17216_p4 = scmp.ne.s32.totalorder %s547_s3, %s17215_s1  ;;  %p17222_p9 = scmp.lt.u32.totalorder %s17220_s5, %s17215_s1 }
 0x15f   : > { %p17224_p12 = scmp.lt.u32.totalorder %s17215_s1, %s547_s3 }
 0x160   : > { %p17218_p10 = pnand %p17216_p4, %p21196_p6  ;;  %p17223_p3 = por %p17222_p9, %p17221_p7 }
 0x162   : > { %p17219_p13 = pneg %p17218_p10  ;;  %p17225_p0 = por %p17224_p12, %p17223_p3 }
 0x164   : > { %p17226_p5 = pnand %p17225_p0, %p17219_p13 }
 0x166   : > { %17229 = shalt.err (!%p17226_p5)
}
 0x167   : > { %s17230_s23 = scalar_lea.vmem %s550_s14, 256  ;;  %s17386_s12 = smov [#allocation7]  }
 0x168   : > { %p17231_p8 = scmp.ne.s32.totalorder %s550_s14, %s17230_s23  ;;  %s17235_s4 = sshll.u32 %s17386_s12, 4  ;;  %s17236_s4 = int_to_ptr.vmem [resolvable:$false] %s17235_s4 }
 0x169   : > { %s17237_s20 = scalar_lea.vmem %s17236_s4, 512  ;;  %p17238_p4 = scmp.lt.s32.totalorder %s550_s14, %s17236_s4 }
 0x16a   : > { %p17233_p1 = pnand %p17231_p8, %p21196_p6  ;;  %p17239_p10 = scmp.lt.s32.totalorder %s17237_s20, %s17230_s23 }
 0x16c   : > { %p17234_p2 = pneg %p17233_p1  ;;  %p17240_p11 = por %p17239_p10, %p17238_p4 }
 0x16e   : > { %p17241_p7 = pnand %p17240_p11, %p17234_p2 }
 0x170   : > { %17244 = shalt.err (!%p17241_p7)
}
 0x171   : > { %p21199_p9 = scmp.ne.s32.totalorder %s21180_s19, 0  ;;  %s21200_s0 = sld [smem:[#allocation37_spill]] }
 0x173   : > { %15781 = dma.hbm_to_vmem [thread:$0]  (!%p21199_p9), %s547_s3, 256, %s550_s14, %s17665_s9  }
 0x177   : > { %p21201_p13 = scmp.ne.s32.totalorder %s21200_s0, 0 }
 0x179   : > { %558 = sbr.rel (%p21201_p13) target bundleno = 7652 (0x1de4), region = 68 }
 0x180   : > { %s17865_s2 = sand.u32 1, %s17359_s26   ;;  %p21202_p6 = scmp.ne.s32.totalorder %s21175_s30, 0 }
 0x181   : > { %s10595_s24 = sshll.u32 %s17865_s2, 7  ;;  %s561_s27 = scalar_lea.sflag [#allocation3], %s17865_s2 }
 0x182   : > { %s17869_s16 = scalar_lea.vmem [#allocation2], %s10595_s24 }
 0x183   : > { %17318 = dma.done.wait (%p21202_p6), %s561_s27, 2048  }
 0x184   : > { %17320 = vsyncadd (%p21202_p6), %s561_s27, 4294965248  ;;  %s21203_s19 = sld [smem:[#allocation36_spill]]  ;;  %s17876_s22 = scalar_lea.vmem [#allocation5], %s10595_s24 }
 0x18a   : > { %s569_s9 = sand.u32 1, %s21203_s19  }
 0x18b   : > { %s570_s15 = scalar_lea.sflag [#allocation6], %s569_s9 }
 0x18c   : > { %17322 = dma.done.wait (%p21202_p6), %s570_s15, 2304  }
 0x18d   : > { %17324 = vsyncadd (%p21202_p6), %s570_s15, 4294964992  ;;  %s10597_s14 = sshll.u32 %s17865_s2, 4  ;;  %p21204_p11 = scmp.eq.s32.totalorder %s21203_s19, 0 }
 0x18e   : > { %s17885_s18 = scalar_lea.vmem [#allocation7], %s10597_s14 }
 0x18f   : > { %17326 = dma.done.wait (%p21204_p11), [#allocation9], 14336   ;;  %p21205_p3 = pmov %p21204_p11 }
 0x191   : > { %17328 = vsyncadd (%p21205_p3), [#allocation9], 4294952960  ;;  %p21206_p12 = pmov %p21205_p3 }
 0x192   : > { %p21207_p0 = pmov %p21205_p3 }
 0x193   : > { %17330 = dma.done.wait (%p21206_p12), [#allocation12], 18432  }
 0x194   : > { %17332 = vsyncadd (%p21207_p0), [#allocation12], 4294948864  ;;  %p21208_p5 = pmov %p21207_p0 }
 0x195   : > { %p21209_p8 = pmov %p21207_p0 }
 0x196   : > { %17334 = dma.done.wait (%p21208_p5), [#allocation15], 10240  }
 0x197   : > { %17336 = vsyncadd (%p21209_p8), [#allocation15], 4294957056  ;;  %p21210_p1 = pmov %p21207_p0 }
 0x198   : > { %p21211_p2 = pmov %p21207_p0 }
 0x199   : > { %17338 = dma.done.wait (%p21210_p1), [#allocation18], 12288  }
 0x19a   : > { %17340 = vsyncadd (%p21211_p2), [#allocation18], 4294955008  ;;  %p21212_p4 = pmov %p21207_p0 }
 0x19b   : > { %p21213_p10 = pmov %p21207_p0 }
 0x19c   : > { %17342 = dma.done.wait (%p21212_p4), [#allocation21], 1152  }
 0x19d   : > { %17344 = vsyncadd (%p21213_p10), [#allocation21], 4294966144  ;;  %v719_v0 = vld [vmem:[#allocation8] sm:$0xff]  ;;  %v720_v1 = vld [vmem:[#allocation8 + $0x8] sm:$0xff]  ;;  %vm17389_vm0 = vmmov 0   ;;  %s10607_s30 = sshll.u32 %s17865_s2, 8 }
 0x19e   : > { %v721_v2 = vld [vmem:[#allocation8 + $0x10] sm:$0xff]  ;;  %v13594_v3 = vpack.c.bf16 %v720_v1, %v719_v0  ;;  %v722_v4 = vld [vmem:[#allocation8 + $0x18] sm:$0xff]  ;;  %v723_v6 = vld [vmem:[#allocation8 + $0x20] sm:$0xff]  ;;  %s20740_s29 = scalar_lea.vmem [#allocation22], %s10607_s30  ;;  %s21629_s3 = sld [smem:[#allocation40_spill]] }
 0x19f   : > { %v13598_v5 = vpack.c.bf16 %v722_v4, %v721_v2  ;;  %v724_v7 = vld [vmem:[#allocation8 + $0x28] sm:$0xff]  ;;  %v687_v9 = vld [vmem:[%s17869_s16] sm:$0xff]  ;;  %v725_v10 = vld [vmem:[#allocation8 + $0x30] sm:$0xff]  ;;  %s10812_s1 = sshll.u32 %s21203_s19, 12  ;;  %s21630_s5 = sld [smem:[#allocation109_spill]] }
 0x1a0   : > { %13595 = vmatprep.subr.bf16.mxu0 %v13594_v3  ;;  %v13602_v8 = vpack.c.bf16 %v724_v7, %v723_v6  ;;  %v726_v11 = vld [vmem:[#allocation8 + $0x38] sm:$0xff]  ;;  %11855 = vmatprep.mubr.f32.mxu0 %v687_v9  ;;  %v727_v13 = vld [vmem:[#allocation8 + $0x40] sm:$0xff]  ;;  %v728_v14 = vld [vmem:[#allocation8 + $0x48] sm:$0xff]  ;;  %s10325_s21 = sshll.u32 %s20740_s29, 4  ;;  %s10307_s23 = scalar_lea.sflag [#allocation4], %s17865_s2  ;;  %s20813_s21 = int_to_ptr.vmem [resolvable:$true] %s10325_s21 }
 0x1a1   : > { %13597 = vmatpush3.bf16.msra.mxu0 %v13594_v3  ;;  %v13606_v12 = vpack.c.bf16 %v726_v11, %v725_v10  ;;  %v992_v15 = vld [vmem:[#allocation10] sm:$0xff]  ;;  %v993_v16 = vld [vmem:[#allocation10 + $0x8] sm:$0xff]  ;;  %v994_v17 = vld [vmem:[#allocation10 + $0x10] sm:$0xff]  ;;  %v13610_v21 = vpack.c.bf16 %v728_v14, %v727_v13  ;;  %s17245_s12 = scalar_lea.vmem %s20813_s21, 4096  ;;  %s17391_s4 = smov [#allocation22]  }
 0x1a2   : > { %13599 = vmatprep.subr.bf16.mxu0 %v13598_v5  ;;  %v995_v18 = vld [vmem:[#allocation10 + $0x18] sm:$0xff]  ;;  %v13626_v19 = vpack.c.bf16 %v993_v16, %v992_v15  ;;  %v996_v22 = vld [vmem:[#allocation10 + $0x20] sm:$0xff]  ;;  %v997_v23 = vld [vmem:[#allocation10 + $0x28] sm:$0xff]  ;;  %p17246_p7 = scmp.ne.s32.totalorder %s20813_s21, %s17245_s12  ;;  %s17249_s20 = sshll.u32 %s17391_s4, 4  ;;  %s17250_s20 = int_to_ptr.vmem [resolvable:$false] %s17249_s20 }
 0x1a3   : > { %v13630_v20 = vpack.c.bf16 %v995_v18, %v994_v17  ;;  %v729_v24 = vld [vmem:[#allocation8 + $0x50] sm:$0xff]  ;;  %v730_v25 = vld [vmem:[#allocation8 + $0x58] sm:$0xff]  ;;  %v13634_v26 = vpack.c.bf16 %v997_v23, %v996_v22  ;;  %v731_v30 = vld [vmem:[#allocation8 + $0x60] sm:$0xff]  ;;  %s17251_s0 = scalar_lea.vmem %s17250_s20, 8192  ;;  %p17252_p11 = scmp.lt.s32.totalorder %s20813_s21, %s17250_s20 }
 0x1a4   : > { %13627 = vmatprep.subr.bf16.mxu1 %v13626_v19  ;;  %v13614_v27 = vpack.c.bf16 %v730_v25, %v729_v24  ;;  %v998_v28 = vld [vmem:[#allocation10 + $0x30] sm:$0xff]  ;;  %v999_v29 = vld [vmem:[#allocation10 + $0x38] sm:$0xff]  ;;  %v732_v31 = vld [vmem:[#allocation8 + $0x68] sm:$0xff]  ;;  %p21631_p9 = scmp.ne.s32.totalorder %s21629_s3, 0  ;;  %p17253_p3 = scmp.lt.s32.totalorder %s17251_s0, %s17245_s12 }
 0x1a5   : > { %13601 = vmatpush3.bf16.msra.mxu0 %v13598_v5  ;;  %13629 = vmatpush3.bf16.msra.mxu1 %v13626_v19  ;;  %v13638_v32 = vpack.c.bf16 %v999_v29, %v998_v28  ;;  %v13618_v33 = vpack.c.bf16 %v732_v31, %v731_v30  ;;  %v1000_v34 = vld [vmem:[#allocation10 + $0x40] sm:$0xff]  ;;  %v1001_v35 = vld [vmem:[#allocation10 + $0x48] sm:$0xff]  ;;  %v733_v36 = vld [vmem:[#allocation8 + $0x70] sm:$0xff]  ;;  %s20810_s17 = scalar_lea.hbm %s21630_s5, %s10812_s1 }
 0x1a6   : > { %13603 = vmatprep.subr.bf16.mxu0 %v13602_v8  ;;  %13631 = vmatprep.subr.bf16.mxu1 %v13630_v20  ;;  %v734_v37 = vld [vmem:[#allocation8 + $0x78] sm:$0xff]  ;;  %v13642_v38 = vpack.c.bf16 %v1001_v35, %v1000_v34  ;;  %v1002_v40 = vld [vmem:[#allocation10 + $0x50] sm:$0xff]  ;;  %v1004_v43 = vld [vmem:[#allocation10 + $0x60] sm:$0xff]  ;;  %p17247_p13 = pnand %p17246_p7, %p21631_p9  ;;  %p17254_p12 = por %p17253_p3, %p17252_p11 }
 0x1a7   : > { %v13622_v39 = vpack.c.bf16 %v734_v37, %v733_v36  ;;  %v1003_v41 = vld [vmem:[#allocation10 + $0x58] sm:$0xff]  ;;  %v1005_v44 = vld [vmem:[#allocation10 + $0x68] sm:$0xff]  ;;  %v689_v47 = vld [vmem:[%s17869_s16 + $0x10] sm:$0xff] }
 0x1a8   : > { %v13646_v42 = vpack.c.bf16 %v1003_v41, %v1002_v40  ;;  %v688_v45 = vld [vmem:[%s17869_s16 + $0x8] sm:$0xff]  ;;  %v13650_v46 = vpack.c.bf16 %v1005_v44, %v1004_v43  ;;  %v690_v48 = vld [vmem:[%s17869_s16 + $0x18] sm:$0xff]  ;;  %v691_v49 = vld [vmem:[%s17869_s16 + $0x20] sm:$0xff]  ;;  %p17248_p6 = pneg %p17247_p13 }
 0x1a9   : > { %13605 = vmatpush3.bf16.msra.mxu0 %v13602_v8  ;;  %13633 = vmatpush3.bf16.msra.mxu1 %v13630_v20  ;;  %v692_v50 = vld [vmem:[%s17869_s16 + $0x28] sm:$0xff]  ;;  %v693_v51 = vld [vmem:[%s17869_s16 + $0x30] sm:$0xff]  ;;  %v694_v52 = vld [vmem:[%s17869_s16 + $0x38] sm:$0xff] }
 0x1aa   : > { %13607 = vmatprep.subr.bf16.mxu0 %v13606_v12  ;;  %13635 = vmatprep.subr.bf16.mxu1 %v13634_v26  ;;  %v695_v53 = vld [vmem:[%s17869_s16 + $0x40] sm:$0xff]  ;;  %v696_v54 = vld [vmem:[%s17869_s16 + $0x48] sm:$0xff]  ;;  %v697_v55 = vld [vmem:[%s17869_s16 + $0x50] sm:$0xff]  ;;  %p17255_p0 = pnand %p17254_p12, %p17248_p6 }
 0x1ab   : > { %v698_v56 = vld [vmem:[%s17869_s16 + $0x58] sm:$0xff]  ;;  %v699_v57 = vld [vmem:[%s17869_s16 + $0x60] sm:$0xff]  ;;  %v700_v58 = vld [vmem:[%s17869_s16 + $0x68] sm:$0xff] }
 0x1ac   : > { %v701_v59 = vld [vmem:[%s17869_s16 + $0x70] sm:$0xff]  ;;  %v702_v60 = vld [vmem:[%s17869_s16 + $0x78] sm:$0xff]  ;;  %v676_v0 = vld [vmem:[#allocation20] ss:$0 sm:$0xff] }
 0x1ad   : > { %13609 = vmatpush3.bf16.msra.mxu0 %v13606_v12  ;;  %13637 = vmatpush3.bf16.msra.mxu1 %v13634_v26  ;;  %v1006_v61 = vld [vmem:[#allocation10 + $0x70] sm:$0xff]  ;;  %v1007_v62 = vld [vmem:[#allocation10 + $0x78] sm:$0xff] }
 0x1ae   : > { %13611 = vmatprep.subr.bf16.mxu0 %v13610_v21  ;;  %13639 = vmatprep.subr.bf16.mxu1 %v13638_v32  ;;  %v13654_v63 = vpack.c.bf16 %v1007_v62, %v1006_v61  ;;  %v1323_v62 = vld [vmem:[#allocation11 + $0x40] sm:$0xff] }
 0x1b1   : > { %13613 = vmatpush3.bf16.msra.mxu0 %v13610_v21  ;;  %13641 = vmatpush3.bf16.msra.mxu1 %v13638_v32 }
 0x1b2   : > { %13615 = vmatprep.subr.bf16.mxu0 %v13614_v27  ;;  %13643 = vmatprep.subr.bf16.mxu1 %v13642_v38 }
 0x1b5   : > { %13617 = vmatpush3.bf16.msra.mxu0 %v13614_v27  ;;  %13645 = vmatpush3.bf16.msra.mxu1 %v13642_v38 }
 0x1b6   : > { %13619 = vmatprep.subr.bf16.mxu0 %v13618_v33  ;;  %13647 = vmatprep.subr.bf16.mxu1 %v13646_v42 }
 0x1b9   : > { %13621 = vmatpush3.bf16.msra.mxu0 %v13618_v33  ;;  %13649 = vmatpush3.bf16.msra.mxu1 %v13646_v42 }
 0x1ba   : > { %13623 = vmatprep.subr.bf16.mxu0 %v13622_v39  ;;  %13651 = vmatprep.subr.bf16.mxu1 %v13650_v46 }
 0x1bd   : > { %13625 = vmatpush3.bf16.msra.mxu0 %v13622_v39  ;;  %13653 = vmatpush3.bf16.msra.mxu1 %v13650_v46 }
 0x1be   : > { %13655 = vmatprep.subr.bf16.mxu1 %v13654_v63 }
 0x1c0   : > { %11856 = vmatmul.mubr.f32.vlgmr.msra.gmra.mrb[0].mxu0 %v688_v45 }
 0x1c1   : > { %11858 = vmatprep.mubr.f32.mxu0 %v689_v47  ;;  %13657 = vmatpush3.bf16.msra.mxu1 %v13654_v63  ;;  %v1324_v63 = vld [vmem:[#allocation11 + $0x48] sm:$0xff] }
 0x1c4   : > { %11859 = vmatmul.mubr.f32.gmra.mrb[2].mxu0 %v690_v48 }
 0x1c5   : > { %11861 = vmatprep.mubr.f32.mxu0 %v691_v49  ;;  %v703_v49 = vld [vmem:[%s17876_s22] sm:$0xff] }
 0x1c8   : > { %11862 = vmatmul.mubr.f32.gmra.mrb[4].mxu0 %v692_v50  ;;  %v1315_v50 = vld [vmem:[#allocation11] sm:$0xff] }
 0x1c9   : > { %11864 = vmatprep.mubr.f32.mxu0 %v693_v51  ;;  %v1316_v51 = vld [vmem:[#allocation11 + $0x8] sm:$0xff] }
 0x1cc   : > { %11865 = vmatmul.mubr.f32.gmra.mrb[6].mxu0 %v694_v52  ;;  %v1317_v52 = vld [vmem:[#allocation11 + $0x10] sm:$0xff] }
 0x1cd   : > { %11867 = vmatprep.mubr.f32.mxu0 %v695_v53  ;;  %v13690_v53 = vpack.c.bf16 %v1316_v51, %v1315_v50 }
 0x1cf   : > { %13691 = vmatprep.subr.bf16.mxu1 %v13690_v53 }
 0x1d0   : > { %11868 = vmatmul.mubr.f32.gmra.mrb[8].mxu0 %v696_v54  ;;  %v1318_v54 = vld [vmem:[#allocation11 + $0x18] sm:$0xff] }
 0x1d1   : > { %11870 = vmatprep.mubr.f32.mxu0 %v697_v55  ;;  %v13694_v55 = vpack.c.bf16 %v1318_v54, %v1317_v52 }
 0x1d4   : > { %11871 = vmatmul.mubr.f32.gmra.mrb[10].mxu0 %v698_v56  ;;  %v1319_v56 = vld [vmem:[#allocation11 + $0x20] sm:$0xff] }
 0x1d5   : > { %11873 = vmatprep.mubr.f32.mxu0 %v699_v57  ;;  %v1320_v57 = vld [vmem:[#allocation11 + $0x28] sm:$0xff] }
 0x1d8   : > { %11874 = vmatmul.mubr.f32.gmra.mrb[12].mxu0 %v700_v58  ;;  %v13698_v58 = vpack.c.bf16 %v1320_v57, %v1319_v56 }
 0x1d9   : > { %11876 = vmatprep.mubr.f32.mxu0 %v701_v59  ;;  %v1321_v59 = vld [vmem:[#allocation11 + $0x30] sm:$0xff] }
 0x1dc   : > { %11877 = vmatmul.mubr.f32.gmra.mrb[14].mxu0 %v702_v60  ;;  %v1322_v60 = vld [vmem:[#allocation11 + $0x38] sm:$0xff] }
 0x1dd   : > { %11967 = vmatprep.mubr.f32.mxu0 %v703_v49  ;;  %v13702_v61 = vpack.c.bf16 %v1322_v60, %v1321_v59 }
 0x293   : > { %v11857_v1 = vpop.f32.mrb[0].mxu0 }
 0x294   : > { %v807_v2 = vadd.f32 %v11857_v1, %v676_v0  ;;  %v801_v3 = vpop.f32.mrb[1].mxu0  ;;  %v1325_v1 = vld [vmem:[#allocation11 + $0x50] sm:$0xff] }
 0x295   : > { %v802_v4 = vadd.f32 %v801_v3, %v676_v0 }
 0x296   : > { %v17925_v7 = vmax.f32 %v807_v2, 0.0  ;;  %v1326_v2 = vld [vmem:[#allocation11 + $0x58] sm:$0xff] }
 0x297   : > { %v17923_v5 = vmax.f32 %v802_v4, 0.0  ;;  %v11860_v6 = vpop.f32.mrb[2].mxu0  ;;  %v13710_v3 = vpack.c.bf16 %v1326_v2, %v1325_v1  ;;  %v1327_v4 = vld [vmem:[#allocation11 + $0x60] sm:$0xff] }
 0x298   : > { %v817_v8 = vadd.f32 %v11860_v6, %v676_v0  ;;  %v811_v9 = vpop.f32.mrb[3].mxu0  ;;  %v1328_v6 = vld [vmem:[#allocation11 + $0x68] sm:$0xff] }
 0x299   : > { %v812_v10 = vadd.f32 %v811_v9, %v676_v0  ;;  %11911 = vmatprep.mubr.f32.mxu1 %v17923_v5  ;;  %v1329_v9 = vld [vmem:[#allocation11 + $0x70] sm:$0xff] }
 0x29a   : > { %11912 = vmatmul.mubr.f32.vlgmr.msra.gmra.mrb[0].mxu1 %v17925_v7  ;;  %v17931_v13 = vmax.f32 %v817_v8, 0.0  ;;  %v13714_v8 = vpack.c.bf16 %v1328_v6, %v1327_v4 }
 0x29b   : > { %v17929_v11 = vmax.f32 %v812_v10, 0.0  ;;  %v11863_v12 = vpop.f32.mrb[4].mxu0  ;;  %13693 = vmatpush3.bf16.msra.mxu1 %v13690_v53  ;;  %v1330_v10 = vld [vmem:[#allocation11 + $0x78] sm:$0xff] }
 0x29c   : > { %v827_v14 = vadd.f32 %v11863_v12, %v676_v0  ;;  %v821_v15 = vpop.f32.mrb[5].mxu0  ;;  %13695 = vmatprep.subr.bf16.mxu1 %v13694_v55  ;;  %v13718_v12 = vpack.c.bf16 %v1330_v10, %v1329_v9 }
 0x29d   : > { %v822_v16 = vadd.f32 %v821_v15, %v676_v0  ;;  %11914 = vmatprep.mubr.f32.mxu1 %v17929_v11 }
 0x29e   : > { %11915 = vmatmul.mubr.f32.gmra.mrb[2].mxu1 %v17931_v13  ;;  %v17937_v19 = vmax.f32 %v827_v14, 0.0  ;;  %v17972_v14 = vld [vmem:[#allocation20 + $0x1] ss:$0 sm:$0xff] }
 0x29f   : > { %v17935_v17 = vmax.f32 %v822_v16, 0.0  ;;  %v11866_v18 = vpop.f32.mrb[6].mxu0  ;;  %13697 = vmatpush3.bf16.msra.mxu1 %v13694_v55 }
 0x2a0   : > { %v837_v20 = vadd.f32 %v11866_v18, %v676_v0  ;;  %v831_v21 = vpop.f32.mrb[7].mxu0  ;;  %13699 = vmatprep.subr.bf16.mxu1 %v13698_v58 }
 0x2a1   : > { %v832_v22 = vadd.f32 %v831_v21, %v676_v0  ;;  %11917 = vmatprep.mubr.f32.mxu1 %v17935_v17 }
 0x2a2   : > { %11918 = vmatmul.mubr.f32.gmra.mrb[4].mxu1 %v17937_v19  ;;  %v17943_v25 = vmax.f32 %v837_v20, 0.0 }
 0x2a3   : > { %v17941_v23 = vmax.f32 %v832_v22, 0.0  ;;  %v11869_v24 = vpop.f32.mrb[8].mxu0  ;;  %13701 = vmatpush3.bf16.msra.mxu1 %v13698_v58 }
 0x2a4   : > { %v847_v26 = vadd.f32 %v11869_v24, %v676_v0  ;;  %v841_v27 = vpop.f32.mrb[9].mxu0  ;;  %13703 = vmatprep.subr.bf16.mxu1 %v13702_v61 }
 0x2a5   : > { %v842_v28 = vadd.f32 %v841_v27, %v676_v0  ;;  %11920 = vmatprep.mubr.f32.mxu1 %v17941_v23 }
 0x2a6   : > { %11921 = vmatmul.mubr.f32.gmra.mrb[6].mxu1 %v17943_v25  ;;  %v17949_v31 = vmax.f32 %v847_v26, 0.0 }
 0x2a7   : > { %v17947_v29 = vmax.f32 %v842_v28, 0.0  ;;  %v11872_v30 = vpop.f32.mrb[10].mxu0  ;;  %13705 = vmatpush3.bf16.msra.mxu1 %v13702_v61 }
 0x2a8   : > { %21214 = vst [vmem:[#allocation42_spill] sm:$0xff] %v17949_v31  ;;  %v857_v32 = vadd.f32 %v11872_v30, %v676_v0  ;;  %v851_v33 = vpop.f32.mrb[11].mxu0 }
 0x2a9   : > { %v852_v34 = vadd.f32 %v851_v33, %v676_v0  ;;  %11923 = vmatprep.mubr.f32.mxu1 %v17947_v29 }
 0x2aa   : > { %11924 = vmatmul.mubr.f32.gmra.mrb[8].mxu1 %v17949_v31  ;;  %v17955_v37 = vmax.f32 %v857_v32, 0.0 }
 0x2ab   : > { %v17953_v35 = vmax.f32 %v852_v34, 0.0  ;;  %v11875_v36 = vpop.f32.mrb[12].mxu0 }
 0x2ac   : > { %21216 = vst [vmem:[#allocation44_spill] sm:$0xff] %v17955_v37  ;;  %v867_v38 = vadd.f32 %v11875_v36, %v676_v0  ;;  %v861_v39 = vpop.f32.mrb[13].mxu0 }
 0x2ad   : > { %21215 = vst [vmem:[#allocation43_spill] sm:$0xff] %v17953_v35  ;;  %v862_v40 = vadd.f32 %v861_v39, %v676_v0  ;;  %11926 = vmatprep.mubr.f32.mxu1 %v17953_v35 }
 0x2ae   : > { %11927 = vmatmul.mubr.f32.gmra.mrb[10].mxu1 %v17955_v37  ;;  %v17961_v43 = vmax.f32 %v867_v38, 0.0 }
 0x2af   : > { %v17959_v41 = vmax.f32 %v862_v40, 0.0  ;;  %v11878_v42 = vpop.f32.mrb[14].mxu0 }
 0x2b0   : > { %21218 = vst [vmem:[#allocation46_spill] sm:$0xff] %v17961_v43  ;;  %v877_v44 = vadd.f32 %v11878_v42, %v676_v0  ;;  %v871_v45 = vpop.f32.mrb[15].mxu0 }
 0x2b1   : > { %21217 = vst [vmem:[#allocation45_spill] sm:$0xff] %v17959_v41  ;;  %v872_v46 = vadd.f32 %v871_v45, %v676_v0  ;;  %11929 = vmatprep.mubr.f32.mxu1 %v17959_v41  ;;  %v13706_v0 = vpack.c.bf16 %v1324_v63, %v1323_v62 }
 0x2b2   : > { %11930 = vmatmul.mubr.f32.gmra.mrb[12].mxu1 %v17961_v43  ;;  %v17967_v48 = vmax.f32 %v877_v44, 0.0 }
 0x2b3   : > { %v17965_v47 = vmax.f32 %v872_v46, 0.0  ;;  %13707 = vmatprep.subr.bf16.mxu1 %v13706_v0 }
 0x2b4   : > { %21220 = vst [vmem:[#allocation48_spill] sm:$0xff] %v17967_v48  ;;  %13709 = vmatpush3.bf16.msra.mxu1 %v13706_v0 }
 0x2b5   : > { %21219 = vst [vmem:[#allocation47_spill] sm:$0xff] %v17965_v47  ;;  %11932 = vmatprep.mubr.f32.mxu1 %v17965_v47  ;;  %13711 = vmatprep.subr.bf16.mxu1 %v13710_v3 }
 0x2b6   : > { %11933 = vmatmul.mubr.f32.gmra.mrb[14].mxu1 %v17967_v48 }
 0x2b8   : > { %13713 = vmatpush3.bf16.msra.mxu1 %v13710_v3 }
 0x2b9   : > { %13715 = vmatprep.subr.bf16.mxu1 %v13714_v8 }
 0x2bc   : > { %13717 = vmatpush3.bf16.msra.mxu1 %v13714_v8 }
 0x2bd   : > { %13719 = vmatprep.subr.bf16.mxu1 %v13718_v12 }
 0x2c0   : > { %13721 = vmatpush3.bf16.msra.mxu1 %v13718_v12 }
 0x36d   : > { %v11913_v15 = vpop.f32.mrb[0].mxu1 }
 0x36e   : > { %v1081_v16 = vadd.f32 %v11913_v15, %v17972_v14  ;;  %v1075_v18 = vpop.f32.mrb[1].mxu1 }
 0x36f   : > { %v1076_v20 = vadd.f32 %v1075_v18, %v17972_v14 }
 0x370   : > { %v1155_v21 = vmax.f32 %v1081_v16, 0.0 }
 0x371   : > { %v1154_v22 = vmax.f32 %v1076_v20, 0.0  ;;  %v11916_v24 = vpop.f32.mrb[2].mxu1 }
 0x372   : > { %v1091_v26 = vadd.f32 %v11916_v24, %v17972_v14  ;;  %v1085_v27 = vpop.f32.mrb[3].mxu1 }
 0x373   : > { %v1086_v28 = vadd.f32 %v1085_v27, %v17972_v14  ;;  %v13658_v30 = vpack.c.bf16 %v1155_v21, %v1154_v22 }
 0x374   : > { %v1157_v32 = vmax.f32 %v1091_v26, 0.0 }
 0x375   : > { %v1156_v33 = vmax.f32 %v1086_v28, 0.0  ;;  %v11919_v34 = vpop.f32.mrb[4].mxu1  ;;  %13659 = vmatprep.subr.bf16.mxu0 %v13658_v30  ;;  %v704_v28 = vld [vmem:[%s17876_s22 + $0x8] sm:$0xff] }
 0x376   : > { %v1101_v36 = vadd.f32 %v11919_v34, %v17972_v14  ;;  %v1095_v38 = vpop.f32.mrb[5].mxu1  ;;  %13661 = vmatpush3.bf16.msra.mxu0 %v13658_v30  ;;  %v705_v30 = vld [vmem:[%s17876_s22 + $0x10] sm:$0xff] }
 0x377   : > { %v1096_v39 = vadd.f32 %v1095_v38, %v17972_v14  ;;  %v13662_v40 = vpack.c.bf16 %v1157_v32, %v1156_v33  ;;  %v706_v32 = vld [vmem:[%s17876_s22 + $0x18] sm:$0xff]  ;;  %v708_v33 = vld [vmem:[%s17876_s22 + $0x28] sm:$0xff]  ;;  %v709_v34 = vld [vmem:[%s17876_s22 + $0x30] sm:$0xff] }
 0x378   : > { %v1159_v42 = vmax.f32 %v1101_v36, 0.0  ;;  %v710_v36 = vld [vmem:[%s17876_s22 + $0x38] sm:$0xff]  ;;  %v711_v38 = vld [vmem:[%s17876_s22 + $0x40] sm:$0xff] }
 0x379   : > { %v1158_v44 = vmax.f32 %v1096_v39, 0.0  ;;  %v11922_v45 = vpop.f32.mrb[6].mxu1  ;;  %13663 = vmatprep.subr.bf16.mxu0 %v13662_v40  ;;  %v712_v39 = vld [vmem:[%s17876_s22 + $0x48] sm:$0xff] }
 0x37a   : > { %v1111_v46 = vadd.f32 %v11922_v45, %v17972_v14  ;;  %v1105_v49 = vpop.f32.mrb[7].mxu1  ;;  %13665 = vmatpush3.bf16.msra.mxu0 %v13662_v40  ;;  %v713_v40 = vld [vmem:[%s17876_s22 + $0x50] sm:$0xff]  ;;  %v716_v45 = vld [vmem:[%s17876_s22 + $0x68] sm:$0xff] }
 0x37b   : > { %v1106_v50 = vadd.f32 %v1105_v49, %v17972_v14  ;;  %v13666_v51 = vpack.c.bf16 %v1159_v42, %v1158_v44  ;;  %v714_v42 = vld [vmem:[%s17876_s22 + $0x58] sm:$0xff]  ;;  %v715_v44 = vld [vmem:[%s17876_s22 + $0x60] sm:$0xff] }
 0x37c   : > { %v1161_v52 = vmax.f32 %v1111_v46, 0.0  ;;  %v717_v46 = vld [vmem:[%s17876_s22 + $0x70] sm:$0xff]  ;;  %v718_v49 = vld [vmem:[%s17876_s22 + $0x78] sm:$0xff] }
 0x37d   : > { %v1160_v53 = vmax.f32 %v1106_v50, 0.0  ;;  %v11925_v54 = vpop.f32.mrb[8].mxu1  ;;  %13667 = vmatprep.subr.bf16.mxu0 %v13666_v51  ;;  %v897_v50 = vld [vmem:[#allocation13 + $0x8] sm:$0xff] }
 0x37e   : > { %v1121_v55 = vadd.f32 %v11925_v54, %v17972_v14  ;;  %v1115_v56 = vpop.f32.mrb[9].mxu1  ;;  %13669 = vmatpush3.bf16.msra.mxu0 %v13666_v51  ;;  %v900_v51 = vld [vmem:[#allocation13 + $0x20] sm:$0xff]  ;;  %v899_v54 = vld [vmem:[#allocation13 + $0x18] sm:$0xff] }
 0x37f   : > { %v1116_v57 = vadd.f32 %v1115_v56, %v17972_v14  ;;  %v13670_v58 = vpack.c.bf16 %v1161_v52, %v1160_v53  ;;  %v896_v52 = vld [vmem:[#allocation13] sm:$0xff]  ;;  %v18005_v53 = vpack.c.bf16 %v900_v51, %v897_v50  ;;  %v901_v56 = vld [vmem:[#allocation13 + $0x28] sm:$0xff] }
 0x380   : > { %v1163_v59 = vmax.f32 %v1121_v55, 0.0  ;;  %v898_v55 = vld [vmem:[#allocation13 + $0x10] sm:$0xff] }
 0x381   : > { %v1162_v60 = vmax.f32 %v1116_v57, 0.0  ;;  %v11928_v61 = vpop.f32.mrb[10].mxu1  ;;  %13671 = vmatprep.subr.bf16.mxu0 %v13670_v58  ;;  %21221 = vst [vmem:[#allocation49_spill] sm:$0xff] %v18005_v53  ;;  %v18007_v57 = vpack.c.bf16 %v899_v54, %v896_v52  ;;  %v910_v52 = vld [vmem:[#allocation13 + $0x70] sm:$0xff]  ;;  %v913_v54 = vld [vmem:[#allocation13 + $0x88] sm:$0xff] }
 0x382   : > { %v1131_v62 = vadd.f32 %v11928_v61, %v17972_v14  ;;  %v1125_v63 = vpop.f32.mrb[11].mxu1  ;;  %13673 = vmatpush3.bf16.msra.mxu0 %v13670_v58  ;;  %v18009_v58 = vpack.c.bf16 %v901_v56, %v898_v55  ;;  %v902_v61 = vld [vmem:[#allocation13 + $0x30] sm:$0xff] }
 0x383   : > { %v1126_v0 = vadd.f32 %v1125_v63, %v17972_v14  ;;  %v13674_v1 = vpack.c.bf16 %v1163_v59, %v1162_v60  ;;  %21222 = vst [vmem:[#allocation50_spill] sm:$0xff] %v18007_v57  ;;  %v903_v59 = vld [vmem:[#allocation13 + $0x38] sm:$0xff]  ;;  %v906_v60 = vld [vmem:[#allocation13 + $0x50] sm:$0xff]  ;;  %v905_v63 = vld [vmem:[#allocation13 + $0x48] sm:$0xff] }
 0x384   : > { %v1165_v2 = vmax.f32 %v1131_v62, 0.0  ;;  %21223 = vst [vmem:[#allocation51_spill] sm:$0xff] %v18009_v58  ;;  %v18012_v62 = vpack.c.bf16 %v906_v60, %v903_v59  ;;  %13755 = vmatprep.subr.bf16.mxu1 %v18009_v58  ;;  %v18054_v59 = vpack.c.bf16 %v913_v54, %v910_v52  ;;  %v916_v60 = vld [vmem:[#allocation13 + $0xa0] sm:$0xff]  ;;  %v938_v52 = vld [vmem:[#allocation13 + $0x150] sm:$0xff]  ;;  %v941_v54 = vld [vmem:[#allocation13 + $0x168] sm:$0xff] }
 0x385   : > { %v1164_v3 = vmax.f32 %v1126_v0, 0.0  ;;  %v11931_v4 = vpop.f32.mrb[12].mxu1  ;;  %13675 = vmatprep.subr.bf16.mxu0 %v13674_v1  ;;  %v18016_v0 = vpack.c.bf16 %v905_v63, %v902_v61  ;;  %v919_v61 = vld [vmem:[#allocation13 + $0xb8] sm:$0xff] }
 0x386   : > { %v1141_v6 = vadd.f32 %v11931_v4, %v17972_v14  ;;  %v1135_v8 = vpop.f32.mrb[13].mxu1  ;;  %13677 = vmatpush3.bf16.msra.mxu0 %v13674_v1  ;;  %21224 = vst [vmem:[#allocation52_spill] sm:$0xff] %v18012_v62  ;;  %v909_v1 = vld [vmem:[#allocation13 + $0x68] sm:$0xff]  ;;  %v908_v4 = vld [vmem:[#allocation13 + $0x60] sm:$0xff]  ;;  %21237 = vst [vmem:[#allocation65_spill] sm:$0xff] %v18054_v59 }
 0x387   : > { %v1136_v9 = vadd.f32 %v1135_v8, %v17972_v14  ;;  %v13678_v10 = vpack.c.bf16 %v1165_v2, %v1164_v3  ;;  %21225 = vst [vmem:[#allocation53_spill] sm:$0xff] %v18016_v0  ;;  %v912_v2 = vld [vmem:[#allocation13 + $0x80] sm:$0xff]  ;;  %v915_v8 = vld [vmem:[#allocation13 + $0x98] sm:$0xff] }
 0x388   : > { %v1167_v12 = vmax.f32 %v1141_v6, 0.0  ;;  %v18019_v3 = vpack.c.bf16 %v912_v2, %v909_v1  ;;  %v911_v6 = vld [vmem:[#allocation13 + $0x78] sm:$0xff]  ;;  %v18058_v2 = vpack.c.bf16 %v919_v61, %v916_v60 }
 0x389   : > { %v1166_v15 = vmax.f32 %v1136_v9, 0.0  ;;  %v11934_v16 = vpop.f32.mrb[14].mxu1  ;;  %13679 = vmatprep.subr.bf16.mxu0 %v13678_v10  ;;  %v918_v9 = vld [vmem:[#allocation13 + $0xb0] sm:$0xff]  ;;  %v943_v60 = vld [vmem:[#allocation13 + $0x178] sm:$0xff] }
 0x38a   : > { %v1151_v18 = vadd.f32 %v11934_v16, %v17972_v14  ;;  %v1145_v20 = vpop.f32.mrb[15].mxu1  ;;  %13681 = vmatpush3.bf16.msra.mxu0 %v13678_v10  ;;  %21226 = vst [vmem:[#allocation54_spill] sm:$0xff] %v18019_v3  ;;  %v18022_v10 = vpack.c.bf16 %v911_v6, %v908_v4  ;;  %v917_v16 = vld [vmem:[#allocation13 + $0xa8] sm:$0xff]  ;;  %21238 = vst [vmem:[#allocation66_spill] sm:$0xff] %v18058_v2  ;;  %v922_v4 = vld [vmem:[#allocation13 + $0xd0] sm:$0xff] }
 0x38b   : > { %v1146_v21 = vadd.f32 %v1145_v20, %v17972_v14  ;;  %v13682_v22 = vpack.c.bf16 %v1167_v12, %v1166_v15  ;;  %v707_v14 = vld [vmem:[%s17876_s22 + $0x20] sm:$0xff]  ;;  %v18025_v12 = vpack.c.bf16 %v918_v9, %v915_v8  ;;  %v914_v15 = vld [vmem:[#allocation13 + $0x90] sm:$0xff]  ;;  %v925_v6 = vld [vmem:[#allocation13 + $0xe8] sm:$0xff] }
 0x38c   : > { %v1169_v24 = vmax.f32 %v1151_v18, 0.0  ;;  %21227 = vst [vmem:[#allocation55_spill] sm:$0xff] %v18022_v10  ;;  %v921_v18 = vld [vmem:[#allocation13 + $0xc8] sm:$0xff]  ;;  %v924_v20 = vld [vmem:[#allocation13 + $0xe0] sm:$0xff] }
 0x38d   : > { %v1168_v26 = vmax.f32 %v1146_v21, 0.0  ;;  %13683 = vmatprep.subr.bf16.mxu0 %v13682_v22  ;;  %21228 = vst [vmem:[#allocation56_spill] sm:$0xff] %v18025_v12  ;;  %v18028_v21 = vpack.c.bf16 %v917_v16, %v914_v15  ;;  %v18062_v15 = vpack.c.bf16 %v925_v6, %v922_v4  ;;  %v928_v16 = vld [vmem:[#allocation13 + $0x100] sm:$0xff]  ;;  %v20945_v4 = vmov 0.0  }
 0x38e   : > { %13685 = vmatpush3.bf16.msra.mxu0 %v13682_v22  ;;  %v18031_v22 = vpack.c.bf16 %v924_v20, %v921_v18  ;;  %v931_v18 = vld [vmem:[#allocation13 + $0x118] sm:$0xff] }
 0x38f   : > { %v13686_v27 = vpack.c.bf16 %v1169_v24, %v1168_v26  ;;  %21229 = vst [vmem:[#allocation57_spill] sm:$0xff] %v18028_v21  ;;  %v920_v24 = vld [vmem:[#allocation13 + $0xc0] sm:$0xff]  ;;  %v923_v26 = vld [vmem:[#allocation13 + $0xd8] sm:$0xff]  ;;  %21239 = vst [vmem:[#allocation67_spill] sm:$0xff] %v18062_v15 }
 0x390   : > { %21230 = vst [vmem:[#allocation58_spill] sm:$0xff] %v18031_v22 }
 0x391   : > { %13687 = vmatprep.subr.bf16.mxu0 %v13686_v27 }
 0x392   : > { %13689 = vmatpush3.bf16.msra.mxu0 %v13686_v27  ;;  %v927_v27 = vld [vmem:[#allocation13 + $0xf8] sm:$0xff] }
 0x393   : > { %13723 = vmatprep.subr.bf16.mxu0 %v18005_v53 }
 0x395   : > { %11968 = vmatmul.mubr.f32.vlgmr.msra.gmra.mrb[16].mxu0 %v704_v28  ;;  %v930_v28 = vld [vmem:[#allocation13 + $0x110] sm:$0xff] }
 0x396   : > { %11970 = vmatprep.mubr.f32.mxu0 %v705_v30  ;;  %13725 = vmatpush1.bf16.msra.mxu0 %v18007_v57  ;;  %v18034_v30 = vpack.c.bf16 %v923_v26, %v920_v24  ;;  %v18066_v26 = vpack.c.bf16 %v931_v18, %v928_v16  ;;  %v18092_v18 = vld [vmem:[#allocation20 + $0x7] ss:$0 sm:$0xff] }
 0x397   : > { %13727 = vmatprep.subr.bf16.mxu0 %v18012_v62 }
 0x398   : > { %21231 = vst [vmem:[#allocation59_spill] sm:$0xff] %v18034_v30  ;;  %21240 = vst [vmem:[#allocation68_spill] sm:$0xff] %v18066_v26 }
 0x399   : > { %11971 = vmatmul.mubr.f32.gmra.mrb[18].mxu0 %v706_v32  ;;  %v18037_v32 = vpack.c.bf16 %v930_v28, %v927_v27  ;;  %v934_v27 = vld [vmem:[#allocation13 + $0x130] sm:$0xff]  ;;  %v937_v28 = vld [vmem:[#allocation13 + $0x148] sm:$0xff] }
 0x39a   : > { %11973 = vmatprep.mubr.f32.mxu0 %v707_v14  ;;  %13729 = vmatpush1.bf16.msra.mxu0 %v18016_v0  ;;  %v926_v14 = vld [vmem:[#allocation13 + $0xf0] sm:$0xff] }
 0x39b   : > { %13731 = vmatprep.subr.bf16.mxu0 %v18019_v3  ;;  %21232 = vst [vmem:[#allocation60_spill] sm:$0xff] %v18037_v32 }
 0x39d   : > { %11974 = vmatmul.mubr.f32.gmra.mrb[20].mxu0 %v708_v33  ;;  %v929_v33 = vld [vmem:[#allocation13 + $0x108] sm:$0xff] }
 0x39e   : > { %11976 = vmatprep.mubr.f32.mxu0 %v709_v34  ;;  %13733 = vmatpush1.bf16.msra.mxu0 %v18022_v10  ;;  %v933_v34 = vld [vmem:[#allocation13 + $0x128] sm:$0xff] }
 0x39f   : > { %13735 = vmatprep.subr.bf16.mxu0 %v18025_v12 }
 0x3a1   : > { %11977 = vmatmul.mubr.f32.gmra.mrb[22].mxu0 %v710_v36  ;;  %v936_v36 = vld [vmem:[#allocation13 + $0x140] sm:$0xff] }
 0x3a2   : > { %11979 = vmatprep.mubr.f32.mxu0 %v711_v38  ;;  %13737 = vmatpush1.bf16.msra.mxu0 %v18028_v21  ;;  %v18040_v38 = vpack.c.bf16 %v929_v33, %v926_v14 }
 0x3a3   : > { %13739 = vmatprep.subr.bf16.mxu0 %v18031_v22 }
 0x3a4   : > { %21233 = vst [vmem:[#allocation61_spill] sm:$0xff] %v18040_v38 }
 0x3a5   : > { %11980 = vmatmul.mubr.f32.gmra.mrb[24].mxu0 %v712_v39  ;;  %v18043_v39 = vpack.c.bf16 %v936_v36, %v933_v34  ;;  %v18070_v34 = vpack.c.bf16 %v937_v28, %v934_v27  ;;  %v944_v28 = vld [vmem:[#allocation14] sm:$0xff] }
 0x3a6   : > { %11982 = vmatprep.mubr.f32.mxu0 %v713_v40  ;;  %13741 = vmatpush1.bf16.msra.mxu0 %v18034_v30  ;;  %v932_v40 = vld [vmem:[#allocation13 + $0x120] sm:$0xff] }
 0x3a7   : > { %13743 = vmatprep.subr.bf16.mxu0 %v18037_v32  ;;  %21234 = vst [vmem:[#allocation62_spill] sm:$0xff] %v18043_v39  ;;  %21241 = vst [vmem:[#allocation69_spill] sm:$0xff] %v18070_v34 }
 0x3a9   : > { %11983 = vmatmul.mubr.f32.gmra.mrb[26].mxu0 %v714_v42  ;;  %v935_v42 = vld [vmem:[#allocation13 + $0x138] sm:$0xff] }
 0x3aa   : > { %11985 = vmatprep.mubr.f32.mxu0 %v715_v44  ;;  %13745 = vmatpush1.bf16.msra.mxu0 %v18040_v38  ;;  %v18046_v44 = vpack.c.bf16 %v935_v42, %v932_v40 }
 0x3ab   : > { %13747 = vmatprep.subr.bf16.mxu0 %v18043_v39 }
 0x3ac   : > { %21235 = vst [vmem:[#allocation63_spill] sm:$0xff] %v18046_v44 }
 0x3ad   : > { %11986 = vmatmul.mubr.f32.gmra.mrb[28].mxu0 %v716_v45  ;;  %v904_v45 = vld [vmem:[#allocation13 + $0x40] sm:$0xff] }
 0x3ae   : > { %11988 = vmatprep.mubr.f32.mxu0 %v717_v46  ;;  %13749 = vmatpush1.bf16.msra.mxu0 %v18046_v44  ;;  %v907_v46 = vld [vmem:[#allocation13 + $0x58] sm:$0xff] }
 0x3af   : > { %v18050_v51 = vpack.c.bf16 %v907_v46, %v904_v45  ;;  %v939_v46 = vld [vmem:[#allocation13 + $0x158] sm:$0xff] }
 0x3b0   : > { %v18367_v44 = vld [vmem:[#allocation20 + $0x1e] ss:$8 sm:$0x7] }
 0x3b1   : > { %11989 = vmatmul.mubr.f32.gmra.mrb[30].mxu0 %v718_v49  ;;  %21236 = vst [vmem:[#allocation64_spill] sm:$0xff] %v18050_v51 }
 0x3b2   : > { %1573 = vmatprep.mubr.f32.mxu0 %v20945_v4  ;;  %v957_v4 = vld [vmem:[#allocation14 + $0x68] sm:$0xff] }
 0x468   : > { %v11969_v49 = vpop.f32.mrb[16].mxu0 }
 0x469   : > { %v1236_v50 = vpop.f32.mrb[17].mxu0 }
 0x46a   : > { %12023 = vmatprep.mubr.f32.mxu1 %v1236_v50 }
 0x46b   : > { %12024 = vmatmul.mubr.f32.vlgmr.msra.gmra.mrb[16].mxu1 %v11969_v49  ;;  %v942_v49 = vld [vmem:[#allocation13 + $0x170] sm:$0xff] }
 0x46c   : > { %v11972_v55 = vpop.f32.mrb[18].mxu0  ;;  %13757 = vmatpush3.bf16.msra.mxu1 %v18009_v58  ;;  %v18075_v50 = vpack.c.bf16 %v942_v49, %v939_v46 }
 0x46d   : > { %v1246_v56 = vpop.f32.mrb[19].mxu0  ;;  %13759 = vmatprep.subr.bf16.mxu1 %v18050_v51 }
 0x46e   : > { %12026 = vmatprep.mubr.f32.mxu1 %v1246_v56  ;;  %21242 = vst [vmem:[#allocation70_spill] sm:$0xff] %v18075_v50  ;;  %v940_v56 = vld [vmem:[#allocation13 + $0x160] sm:$0xff]  ;;  %13751 = vmatprep.subr.bf16.mxu0 %v18075_v50 }
 0x46f   : > { %12027 = vmatmul.mubr.f32.gmra.mrb[18].mxu1 %v11972_v55  ;;  %v18077_v55 = vpack.c.bf16 %v941_v54, %v938_v52  ;;  %v18080_v61 = vpack.c.bf16 %v943_v60, %v940_v56  ;;  %v18365_v50 = vld [vmem:[#allocation20 + $0x1d] ss:$8 sm:$0x7] }
 0x470   : > { %v11975_v63 = vpop.f32.mrb[20].mxu0  ;;  %13761 = vmatpush3.bf16.msra.mxu1 %v18050_v51 }
 0x471   : > { %v1256_v1 = vpop.f32.mrb[21].mxu0  ;;  %13763 = vmatprep.subr.bf16.mxu1 %v18054_v59  ;;  %21243 = vst [vmem:[#allocation71_spill] sm:$0xff] %v18077_v55  ;;  %21244 = vst [vmem:[#allocation72_spill] sm:$0xff] %v18080_v61  ;;  %13753 = vmatpush1.bf16.msra.mxu0 %v18077_v55 }
 0x472   : > { %12029 = vmatprep.mubr.f32.mxu1 %v1256_v1  ;;  %v949_v1 = vld [vmem:[#allocation14 + $0x28] sm:$0xff] }
 0x473   : > { %12030 = vmatmul.mubr.f32.gmra.mrb[20].mxu1 %v11975_v63  ;;  %v946_v63 = vld [vmem:[#allocation14 + $0x10] sm:$0xff] }
 0x474   : > { %v11978_v8 = vpop.f32.mrb[22].mxu0  ;;  %13765 = vmatpush3.bf16.msra.mxu1 %v18054_v59  ;;  %v18086_v6 = vpack.c.bf16 %v949_v1, %v946_v63  ;;  %v958_v1 = vld [vmem:[#allocation14 + $0x70] sm:$0xff] }
 0x475   : > { %v1266_v9 = vpop.f32.mrb[23].mxu0  ;;  %13767 = vmatprep.subr.bf16.mxu1 %v18058_v2 }
 0x476   : > { %12032 = vmatprep.mubr.f32.mxu1 %v1266_v9  ;;  %21245 = vst [vmem:[#allocation73_spill] sm:$0xff] %v18086_v6  ;;  %v948_v9 = vld [vmem:[#allocation14 + $0x20] sm:$0xff] }
 0x477   : > { %12033 = vmatmul.mubr.f32.gmra.mrb[22].mxu1 %v11978_v8  ;;  %v945_v8 = vld [vmem:[#allocation14 + $0x8] sm:$0xff] }
 0x478   : > { %v11981_v20 = vpop.f32.mrb[24].mxu0  ;;  %13769 = vmatpush3.bf16.msra.mxu1 %v18058_v2  ;;  %v18089_v16 = vpack.c.bf16 %v948_v9, %v945_v8  ;;  %v950_v9 = vld [vmem:[#allocation14 + $0x30] sm:$0xff]  ;;  %v983_v2 = vld [vmem:[#allocation14 + $0x138] sm:$0xff] }
 0x479   : > { %v1276_v24 = vpop.f32.mrb[25].mxu0  ;;  %13771 = vmatprep.subr.bf16.mxu1 %v18062_v15 }
 0x47a   : > { %12035 = vmatprep.mubr.f32.mxu1 %v1276_v24  ;;  %21246 = vst [vmem:[#allocation74_spill] sm:$0xff] %v18089_v16  ;;  %13787 = vmatprep.subr.bf16.mxu0 %v18089_v16 }
 0x47b   : > { %12036 = vmatmul.mubr.f32.gmra.mrb[24].mxu1 %v11981_v20 }
 0x47c   : > { %v11984_v14 = vpop.f32.mrb[26].mxu0  ;;  %13773 = vmatpush3.bf16.msra.mxu1 %v18062_v15  ;;  %v977_v15 = vld [vmem:[#allocation14 + $0x108] sm:$0xff] }
 0x47d   : > { %v1286_v33 = vpop.f32.mrb[27].mxu0  ;;  %13775 = vmatprep.subr.bf16.mxu1 %v18066_v26 }
 0x47e   : > { %12038 = vmatprep.mubr.f32.mxu1 %v1286_v33  ;;  %v952_v33 = vld [vmem:[#allocation14 + $0x40] sm:$0xff] }
 0x47f   : > { %12039 = vmatmul.mubr.f32.gmra.mrb[26].mxu1 %v11984_v14  ;;  %v947_v14 = vld [vmem:[#allocation14 + $0x18] sm:$0xff] }
 0x480   : > { %v11987_v36 = vpop.f32.mrb[28].mxu0  ;;  %13777 = vmatpush3.bf16.msra.mxu1 %v18066_v26  ;;  %v18096_v52 = vpack.c.bf16 %v947_v14, %v944_v28  ;;  %v960_v28 = vld [vmem:[#allocation14 + $0x80] sm:$0xff]  ;;  %v971_v26 = vld [vmem:[#allocation14 + $0xd8] sm:$0xff] }
 0x481   : > { %v1296_v40 = vpop.f32.mrb[29].mxu0  ;;  %13779 = vmatprep.subr.bf16.mxu1 %v18070_v34 }
 0x482   : > { %12041 = vmatprep.mubr.f32.mxu1 %v1296_v40  ;;  %v955_v40 = vld [vmem:[#allocation14 + $0x58] sm:$0xff]  ;;  %21247 = vst [vmem:[#allocation75_spill] sm:$0xff] %v18096_v52 }
 0x483   : > { %12042 = vmatmul.mubr.f32.gmra.mrb[28].mxu1 %v11987_v36  ;;  %v18101_v63 = vpack.c.bf16 %v955_v40, %v952_v33 }
 0x484   : > { %v11990_v42 = vpop.f32.mrb[30].mxu0  ;;  %13781 = vmatpush3.bf16.msra.mxu1 %v18070_v34  ;;  %v965_v34 = vld [vmem:[#allocation14 + $0xa8] sm:$0xff] }
 0x485   : > { %v1306_v45 = vpop.f32.mrb[31].mxu0  ;;  %13783 = vmatprep.subr.bf16.mxu1 %v18080_v61  ;;  %21248 = vst [vmem:[#allocation76_spill] sm:$0xff] %v18101_v63 }
 0x486   : > { %12044 = vmatprep.mubr.f32.mxu1 %v1306_v45  ;;  %v954_v45 = vld [vmem:[#allocation14 + $0x50] sm:$0xff] }
 0x487   : > { %12045 = vmatmul.mubr.f32.gmra.mrb[30].mxu1 %v11990_v42  ;;  %v951_v42 = vld [vmem:[#allocation14 + $0x38] sm:$0xff] }
 0x488   : > { %13785 = vmatpush3.bf16.msra.mxu1 %v18080_v61  ;;  %v18103_v8 = vpack.c.bf16 %v954_v45, %v951_v42  ;;  %v956_v61 = vld [vmem:[#allocation14 + $0x60] sm:$0xff] }
 0x489   : > { %13819 = vmatprep.subr.bf16.mxu1 %v18086_v6 }
 0x48a   : > { %21249 = vst [vmem:[#allocation77_spill] sm:$0xff] %v18103_v8 }
 0x53e   : > { %v12025_v20 = vpop.f32.mrb[16].mxu1 }
 0x53f   : > { %v1404_v24 = vadd.f32 %v12025_v20, %v18092_v18  ;;  %v1398_v27 = vpop.f32.mrb[17].mxu1  ;;  %v953_v20 = vld [vmem:[#allocation14 + $0x48] sm:$0xff] }
 0x540   : > { %v1399_v36 = vadd.f32 %v1398_v27, %v18092_v18  ;;  %v18110_v40 = vpack.c.bf16 %v953_v20, %v950_v9  ;;  %v967_v9 = vld [vmem:[#allocation14 + $0xb8] sm:$0xff] }
 0x541   : > { %v1478_v54 = vmax.f32 %v1404_v24, 0.0  ;;  %v21250_v24 = vmov 0.0   ;;  %v963_v20 = vld [vmem:[#allocation14 + $0x98] sm:$0xff] }
 0x542   : > { %v1477_v46 = vmax.f32 %v1399_v36, 0.0  ;;  %v12028_v49 = vpop.f32.mrb[18].mxu1  ;;  %v961_v36 = vld [vmem:[#allocation14 + $0x88] sm:$0xff]  ;;  %21251 = vst [vmem:[#allocation78_spill] sm:$0xff] %v18110_v40 }
 0x543   : > { %v18099_v56 = vadd.f32 %v12028_v49, %v18092_v18  ;;  %v1408_v60 = vpop.f32.mrb[19].mxu1 }
 0x544   : > { %v1409_v27 = vadd.f32 %v1408_v60, %v18092_v18  ;;  %1574 = vmatmul.mubr.f32.vlgmr.msra.gmra.mrb[32].mxu0 %v1477_v46  ;;  %12079 = vmatprep.mubr.f32.mxu1 %v1477_v46  ;;  %v18116_v46 = vpack.c.bf16 %v961_v36, %v958_v1  ;;  %v964_v60 = vld [vmem:[#allocation14 + $0xa0] sm:$0xff] }
 0x545   : > { %12080 = vmatmul.mubr.f32.vlgmr.msra.gmra.mrb[32].mxu1 %v1478_v54  ;;  %1579 = vmatprep.mubr.f32.mxu0 %v21250_v24  ;;  %v1480_v14 = vmax.f32 %v18099_v56, 0.0  ;;  %v18119_v56 = vpack.c.bf16 %v960_v28, %v957_v4 }
 0x546   : > { %v12031_v49 = vpop.f32.mrb[20].mxu1  ;;  %13821 = vmatpush3.bf16.msra.mxu1 %v18086_v6  ;;  %v1479_v33 = vmax.f32 %v1409_v27, 0.0  ;;  %13789 = vmatpush1.bf16.msra.mxu0 %v18096_v52  ;;  %21252 = vst [vmem:[#allocation79_spill] sm:$0xff] %v18116_v46  ;;  %v959_v6 = vld [vmem:[#allocation14 + $0x78] sm:$0xff]  ;;  %v970_v52 = vld [vmem:[#allocation14 + $0xd0] sm:$0xff] }
 0x547   : > { %v18113_v42 = vadd.f32 %v12031_v49, %v18092_v18  ;;  %v1418_v45 = vpop.f32.mrb[21].mxu1  ;;  %13823 = vmatprep.subr.bf16.mxu1 %v18101_v63  ;;  %13791 = vmatprep.subr.bf16.mxu0 %v18103_v8  ;;  %21253 = vst [vmem:[#allocation80_spill] sm:$0xff] %v18119_v56  ;;  %v966_v49 = vld [vmem:[#allocation14 + $0xb0] sm:$0xff]  ;;  %v18129_v28 = vpack.c.bf16 %v959_v6, %v956_v61  ;;  %v973_v61 = vld [vmem:[#allocation14 + $0xe8] sm:$0xff] }
 0x548   : > { %v18122_v27 = vadd.f32 %v1418_v45, %v18092_v18  ;;  %1580 = vmatmul.mubr.f32.gmra.mrb[34].mxu0 %v1478_v54  ;;  %12082 = vmatprep.mubr.f32.mxu1 %v1479_v33  ;;  %v18135_v8 = vpack.c.bf16 %v967_v9, %v964_v60  ;;  %v18138_v1 = vpack.c.bf16 %v966_v49, %v963_v20  ;;  %v969_v6 = vld [vmem:[#allocation14 + $0xc8] sm:$0xff] }
 0x549   : > { %12083 = vmatmul.mubr.f32.gmra.mrb[34].mxu1 %v1480_v14  ;;  %1585 = vmatprep.mubr.f32.mxu0 %v21250_v24  ;;  %21254 = vst [vmem:[#allocation81_spill] sm:$0xff] %v18129_v28 }
 0x54a   : > { %v12034_v36 = vpop.f32.mrb[22].mxu1  ;;  %13825 = vmatpush3.bf16.msra.mxu1 %v18101_v63  ;;  %v1481_v4 = vmax.f32 %v18122_v27, 0.0  ;;  %13793 = vmatpush1.bf16.msra.mxu0 %v18110_v40  ;;  %21255 = vst [vmem:[#allocation82_spill] sm:$0xff] %v18135_v8  ;;  %21256 = vst [vmem:[#allocation83_spill] sm:$0xff] %v18138_v1  ;;  %v962_v63 = vld [vmem:[#allocation14 + $0x90] sm:$0xff]  ;;  %v21257_v40 = vmax.f32 %v18113_v42, 0.0 }
 0x54b   : > { %v18132_v54 = vadd.f32 %v12034_v36, %v18092_v18  ;;  %v1428_v45 = vpop.f32.mrb[23].mxu1  ;;  %13827 = vmatprep.subr.bf16.mxu1 %v18116_v46  ;;  %13795 = vmatprep.subr.bf16.mxu0 %v18119_v56  ;;  %v972_v36 = vld [vmem:[#allocation14 + $0xe0] sm:$0xff]  ;;  %v18150_v49 = vpack.c.bf16 %v965_v34, %v962_v63  ;;  %v979_v63 = vld [vmem:[#allocation14 + $0x118] sm:$0xff] }
 0x54c   : > { %v18141_v27 = vadd.f32 %v1428_v45, %v18092_v18  ;;  %1586 = vmatmul.mubr.f32.gmra.mrb[36].mxu0 %v1479_v33  ;;  %12085 = vmatprep.mubr.f32.mxu1 %v1481_v4  ;;  %v976_v56 = vld [vmem:[#allocation14 + $0x100] sm:$0xff]  ;;  %v18159_v60 = vpack.c.bf16 %v972_v36, %v969_v6 }
 0x54d   : > { %12086 = vmatmul.mubr.f32.gmra.mrb[36].mxu1 %v21257_v40  ;;  %1591 = vmatprep.mubr.f32.mxu0 %v21250_v24  ;;  %21258 = vst [vmem:[#allocation84_spill] sm:$0xff] %v18150_v49  ;;  %v18156_v40 = vpack.c.bf16 %v973_v61, %v970_v52  ;;  %v21262_v52 = vmax.f32 %v18132_v54, 0.0 }
 0x54e   : > { %v12037_v9 = vpop.f32.mrb[24].mxu1  ;;  %13829 = vmatpush3.bf16.msra.mxu1 %v18116_v46  ;;  %13797 = vmatpush1.bf16.msra.mxu0 %v18129_v28  ;;  %21260 = vst [vmem:[#allocation86_spill] sm:$0xff] %v18159_v60  ;;  %v968_v46 = vld [vmem:[#allocation14 + $0xc0] sm:$0xff]  ;;  %v21261_v34 = vmax.f32 %v18141_v27, 0.0  ;;  %v978_v28 = vld [vmem:[#allocation14 + $0x110] sm:$0xff] }
 0x54f   : > { %v18153_v33 = vadd.f32 %v12037_v9, %v18092_v18  ;;  %v1438_v45 = vpop.f32.mrb[25].mxu1  ;;  %13831 = vmatprep.subr.bf16.mxu1 %v18135_v8  ;;  %21259 = vst [vmem:[#allocation85_spill] sm:$0xff] %v18156_v40  ;;  %13799 = vmatprep.subr.bf16.mxu0 %v18138_v1  ;;  %v975_v9 = vld [vmem:[#allocation14 + $0xf8] sm:$0xff]  ;;  %v982_v1 = vld [vmem:[#allocation14 + $0x130] sm:$0xff] }
 0x550   : > { %v18162_v20 = vadd.f32 %v1438_v45, %v18092_v18  ;;  %1592 = vmatmul.mubr.f32.gmra.mrb[38].mxu0 %v1480_v14  ;;  %12088 = vmatprep.mubr.f32.mxu1 %v21261_v34  ;;  %v18173_v14 = vpack.c.bf16 %v971_v26, %v968_v46  ;;  %v18182_v61 = vpack.c.bf16 %v978_v28, %v975_v9  ;;  %v985_v46 = vld [vmem:[#allocation14 + $0x148] sm:$0xff] }
 0x551   : > { %12089 = vmatmul.mubr.f32.gmra.mrb[38].mxu1 %v21262_v52  ;;  %1597 = vmatprep.mubr.f32.mxu0 %v21250_v24  ;;  %v18179_v52 = vpack.c.bf16 %v979_v63, %v976_v56  ;;  %v21267_v56 = vmax.f32 %v18153_v33, 0.0 }
 0x552   : > { %v12040_v6 = vpop.f32.mrb[26].mxu1  ;;  %13833 = vmatpush3.bf16.msra.mxu1 %v18135_v8  ;;  %13801 = vmatpush1.bf16.msra.mxu0 %v18150_v49  ;;  %21263 = vst [vmem:[#allocation87_spill] sm:$0xff] %v18173_v14  ;;  %21265 = vst [vmem:[#allocation89_spill] sm:$0xff] %v18182_v61  ;;  %v974_v8 = vld [vmem:[#allocation14 + $0xf0] sm:$0xff]  ;;  %v21266_v26 = vmax.f32 %v18162_v20, 0.0  ;;  %v984_v49 = vld [vmem:[#allocation14 + $0x140] sm:$0xff] }
 0x553   : > { %v18176_v45 = vadd.f32 %v12040_v6, %v18092_v18  ;;  %v1448_v34 = vpop.f32.mrb[27].mxu1  ;;  %13835 = vmatprep.subr.bf16.mxu1 %v18156_v40  ;;  %21264 = vst [vmem:[#allocation88_spill] sm:$0xff] %v18179_v52  ;;  %13803 = vmatprep.subr.bf16.mxu0 %v18159_v60  ;;  %v981_v6 = vld [vmem:[#allocation14 + $0x128] sm:$0xff]  ;;  %v988_v60 = vld [vmem:[#allocation14 + $0x160] sm:$0xff] }
 0x554   : > { %v18185_v36 = vadd.f32 %v1448_v34, %v18092_v18  ;;  %1598 = vmatmul.mubr.f32.gmra.mrb[40].mxu0 %v1481_v4  ;;  %12091 = vmatprep.mubr.f32.mxu1 %v21266_v26  ;;  %v18196_v4 = vpack.c.bf16 %v977_v15, %v974_v8  ;;  %v18205_v28 = vpack.c.bf16 %v984_v49, %v981_v6  ;;  %v21271_v15 = vmax.f32 %v18113_v42, 0.0  ;;  %v991_v8 = vld [vmem:[#allocation14 + $0x178] sm:$0xff] }
 0x555   : > { %12092 = vmatmul.mubr.f32.gmra.mrb[40].mxu1 %v21267_v56  ;;  %1603 = vmatprep.mubr.f32.mxu0 %v21250_v24  ;;  %v18202_v56 = vpack.c.bf16 %v985_v46, %v982_v1  ;;  %v21272_v59 = vmax.f32 %v18176_v45, 0.0 }
 0x556   : > { %v12043_v63 = vpop.f32.mrb[28].mxu1  ;;  %13837 = vmatpush3.bf16.msra.mxu1 %v18156_v40  ;;  %v1487_v9 = vmax.f32 %v18185_v36, 0.0  ;;  %13805 = vmatpush1.bf16.msra.mxu0 %v18173_v14  ;;  %21268 = vst [vmem:[#allocation90_spill] sm:$0xff] %v18196_v4  ;;  %21270 = vst [vmem:[#allocation92_spill] sm:$0xff] %v18205_v28  ;;  %v980_v40 = vld [vmem:[#allocation14 + $0x120] sm:$0xff]  ;;  %v990_v14 = vld [vmem:[#allocation14 + $0x170] sm:$0xff] }
 0x557   : > { %v18199_v34 = vadd.f32 %v12043_v63, %v18092_v18  ;;  %v1458_v26 = vpop.f32.mrb[29].mxu1  ;;  %13839 = vmatprep.subr.bf16.mxu1 %v18179_v52  ;;  %21269 = vst [vmem:[#allocation91_spill] sm:$0xff] %v18202_v56  ;;  %13807 = vmatprep.subr.bf16.mxu0 %v18182_v61  ;;  %v987_v63 = vld [vmem:[#allocation14 + $0x158] sm:$0xff]  ;;  %v18216_v6 = vpack.c.bf16 %v983_v2, %v980_v40  ;;  %v21276_v61 = vmax.f32 %v18141_v27, 0.0  ;;  %v989_v2 = vld [vmem:[#allocation14 + $0x168] sm:$0xff]  ;;  %v21278_v27 = vmax.f32 %v18132_v54, 0.0 }
 0x558   : > { %v1459_v36 = vadd.f32 %v1458_v26, %v18092_v18  ;;  %1604 = vmatmul.mubr.f32.gmra.mrb[42].mxu0 %v21271_v15  ;;  %12094 = vmatprep.mubr.f32.mxu1 %v1487_v9  ;;  %v18220_v15 = vpack.c.bf16 %v991_v8, %v988_v60  ;;  %v21280_v54 = vmax.f32 %v18153_v33, 0.0  ;;  %v2474_v33 = vld [vmem:[#allocation10 + $0x80] sm:$0xff]  ;;  %v2477_v8 = vld [vmem:[#allocation10 + $0x98] sm:$0xff] }
 0x559   : > { %12095 = vmatmul.mubr.f32.gmra.mrb[42].mxu1 %v21272_v59  ;;  %1609 = vmatprep.mubr.f32.mxu0 %v21250_v24  ;;  %v1490_v1 = vmax.f32 %v18199_v34, 0.0  ;;  %21273 = vst [vmem:[#allocation93_spill] sm:$0xff] %v18216_v6  ;;  %v18223_v59 = vpack.c.bf16 %v990_v14, %v987_v63  ;;  %v2475_v14 = vld [vmem:[#allocation10 + $0x88] sm:$0xff] }
 0x55a   : > { %v12046_v49 = vpop.f32.mrb[30].mxu1  ;;  %13841 = vmatpush3.bf16.msra.mxu1 %v18179_v52  ;;  %v1489_v46 = vmax.f32 %v1459_v36, 0.0  ;;  %13809 = vmatpush1.bf16.msra.mxu0 %v18196_v4  ;;  %21274 = vst [vmem:[#allocation94_spill] sm:$0xff] %v18220_v15  ;;  %v986_v36 = vld [vmem:[#allocation14 + $0x150] sm:$0xff] }
 0x55b   : > { %v1474_v42 = vadd.f32 %v12046_v49, %v18092_v18  ;;  %v1468_v26 = vpop.f32.mrb[31].mxu1  ;;  %13843 = vmatprep.subr.bf16.mxu1 %v18202_v56  ;;  %13811 = vmatprep.subr.bf16.mxu0 %v18205_v28  ;;  %21275 = vst [vmem:[#allocation95_spill] sm:$0xff] %v18223_v59  ;;  %v2479_v49 = vld [vmem:[#allocation10 + $0xa8] sm:$0xff]  ;;  %v1494_v28 = vlaneseq }
 0x55c   : > { %v1469_v34 = vadd.f32 %v1468_v26, %v18092_v18  ;;  %1610 = vmatmul.mubr.f32.gmra.mrb[44].mxu0 %v21276_v61  ;;  %12097 = vmatprep.mubr.f32.mxu1 %v1489_v46  ;;  %v18233_v18 = vpack.c.bf16 %v989_v2, %v986_v36  ;;  %v21279_v61 = vmax.f32 %v18162_v20, 0.0  ;;  %v21281_v20 = vmax.f32 %v18176_v45, 0.0  ;;  %v2481_v26 = vld [vmem:[#allocation10 + $0xb8] sm:$0xff]  ;;  %v2482_v36 = vld [vmem:[#allocation10 + $0xc0] sm:$0xff]  ;;  %v2483_v2 = vld [vmem:[#allocation10 + $0xc8] sm:$0xff] }
 0x55d   : > { %12098 = vmatmul.mubr.f32.gmra.mrb[44].mxu1 %v1490_v1  ;;  %1615 = vmatprep.mubr.f32.mxu0 %v21250_v24  ;;  %v1492_v40 = vmax.f32 %v1474_v42, 0.0  ;;  %v13850_v45 = vpack.c.bf16 %v2475_v14, %v2474_v33  ;;  %v2480_v42 = vld [vmem:[#allocation10 + $0xb0] sm:$0xff]  ;;  %v18353_v52 = vshrl.u32 %v1494_v28, 7 }
 0x55e   : > { %13845 = vmatpush3.bf16.msra.mxu1 %v18202_v56  ;;  %v1491_v60 = vmax.f32 %v1469_v34, 0.0  ;;  %13813 = vmatpush1.bf16.msra.mxu0 %v18216_v6  ;;  %21277 = vst [vmem:[#allocation96_spill] sm:$0xff] %v18233_v18  ;;  %v13862_v34 = vpack.c.bf16 %v2481_v26, %v2480_v42  ;;  %v2488_v14 = vld [vmem:[#allocation10 + $0xf0] sm:$0xff] }
 0x55f   : > { %13847 = vmatprep.subr.bf16.mxu1 %v18220_v15  ;;  %13815 = vmatprep.subr.bf16.mxu0 %v18223_v59  ;;  %v18358_v16 = vsub.s32 0, %v18353_v52  ;;  %v18363_v55 = vsub.s32 1, %v18353_v52 }
 0x560   : > { %1616 = vmatmul.mubr.f32.gmra.mrb[46].mxu0 %v21278_v27  ;;  %12100 = vmatprep.mubr.f32.mxu1 %v1491_v60  ;;  %v2485_v27 = vld [vmem:[#allocation10 + $0xd8] sm:$0xff] }
 0x561   : > { %12101 = vmatmul.mubr.f32.gmra.mrb[46].mxu1 %v1492_v40  ;;  %1621 = vmatprep.mubr.f32.mxu0 %v21250_v24  ;;  %21283 = vst [vmem:[#allocation98_spill] sm:$0xff] %v18358_v16  ;;  %21284 = vst [vmem:[#allocation99_spill] sm:$0xff] %v18363_v55  ;;  %v1497_v28 = vrot.slane %v18365_v50, %v18358_v16  ;;  %v1819_v38 = vrot.slane %v18367_v44, %v18358_v16 }
 0x562   : > { %13849 = vmatpush3.bf16.msra.mxu1 %v18220_v15  ;;  %12135 = vmatprep.mubr.f32.mxu1 %v17923_v5  ;;  %v1501_v30 = vrot.slane %v18365_v50, %v18363_v55  ;;  %v1823_v22 = vrot.slane %v18367_v44, %v18363_v55 }
 0x563   : > { %13817 = vmatpush1.bf16.msra.mxu0 %v18233_v18  ;;  %13851 = vmatprep.subr.bf16.mxu1 %v13850_v45  ;;  %v18383_v12 = vadd.f32 %v1819_v38, %v1497_v28 }
 0x564   : > { %1622 = vmatmul.mubr.f32.gmra.mrb[48].mxu0 %v21279_v61  ;;  %v18387_v3 = vadd.f32 %v1823_v22, %v1501_v30 }
 0x565   : > { %12136 = vmatmul.mubr.f32.vlgmr.msra.gmra.mrb[48].mxu1 %v17925_v7  ;;  %1627 = vmatprep.mubr.f32.mxu0 %v21250_v24 }
 0x566   : > { %12138 = vmatprep.mubr.f32.mxu1 %v17929_v11  ;;  %13853 = vmatpush3.bf16.msra.mxu1 %v13850_v45  ;;  %v2489_v45 = vld [vmem:[#allocation10 + $0xf8] sm:$0xff] }
 0x568   : > { %1628 = vmatmul.mubr.f32.gmra.mrb[50].mxu0 %v21280_v54  ;;  %v2486_v54 = vld [vmem:[#allocation10 + $0xe0] sm:$0xff] }
 0x569   : > { %12139 = vmatmul.mubr.f32.gmra.mrb[50].mxu1 %v17931_v13  ;;  %1633 = vmatprep.mubr.f32.mxu0 %v21250_v24 }
 0x56a   : > { %12141 = vmatprep.mubr.f32.mxu1 %v17935_v17 }
 0x56c   : > { %1634 = vmatmul.mubr.f32.gmra.mrb[52].mxu0 %v1487_v9  ;;  %v2476_v9 = vld [vmem:[#allocation10 + $0x90] sm:$0xff] }
 0x56d   : > { %12142 = vmatmul.mubr.f32.gmra.mrb[52].mxu1 %v17937_v19  ;;  %1639 = vmatprep.mubr.f32.mxu0 %v21250_v24  ;;  %v13854_v63 = vpack.c.bf16 %v2477_v8, %v2476_v9  ;;  %v13878_v9 = vpack.c.bf16 %v2489_v45, %v2488_v14 }
 0x56e   : > { %12144 = vmatprep.mubr.f32.mxu1 %v17941_v23 }
 0x56f   : > { %13855 = vmatprep.subr.bf16.mxu1 %v13854_v63 }
 0x570   : > { %1640 = vmatmul.mubr.f32.gmra.mrb[54].mxu0 %v21281_v20  ;;  %13857 = vmatpush3.bf16.msra.mxu1 %v13854_v63  ;;  %v2487_v20 = vld [vmem:[#allocation10 + $0xe8] sm:$0xff] }
 0x571   : > { %12145 = vmatmul.mubr.f32.gmra.mrb[54].mxu1 %v17943_v25  ;;  %1645 = vmatprep.mubr.f32.mxu0 %v21250_v24  ;;  %v13874_v33 = vpack.c.bf16 %v2487_v20, %v2486_v54 }
 0x572   : > { %12147 = vmatprep.mubr.f32.mxu1 %v17947_v29 }
 0x574   : > { %1646 = vmatmul.mubr.f32.gmra.mrb[56].mxu0 %v1489_v46 }
 0x575   : > { %12148 = vmatmul.mubr.f32.gmra.mrb[56].mxu1 %v17949_v31  ;;  %1651 = vmatprep.mubr.f32.mxu0 %v21250_v24 }
 0x576   : > { %12150 = vmatprep.mubr.f32.mxu1 %v17953_v35 }
 0x578   : > { %1652 = vmatmul.mubr.f32.gmra.mrb[58].mxu0 %v1490_v1  ;;  %v2478_v1 = vld [vmem:[#allocation10 + $0xa0] sm:$0xff] }
 0x579   : > { %12151 = vmatmul.mubr.f32.gmra.mrb[58].mxu1 %v17955_v37  ;;  %1657 = vmatprep.mubr.f32.mxu0 %v21250_v24  ;;  %v13858_v46 = vpack.c.bf16 %v2479_v49, %v2478_v1 }
 0x57a   : > { %12153 = vmatprep.mubr.f32.mxu1 %v17959_v41 }
 0x57b   : > { %13859 = vmatprep.subr.bf16.mxu1 %v13858_v46 }
 0x57c   : > { %1658 = vmatmul.mubr.f32.gmra.mrb[60].mxu0 %v1491_v60  ;;  %13861 = vmatpush3.bf16.msra.mxu1 %v13858_v46  ;;  %v2484_v60 = vld [vmem:[#allocation10 + $0xd0] sm:$0xff] }
 0x57d   : > { %12154 = vmatmul.mubr.f32.gmra.mrb[60].mxu1 %v17961_v43  ;;  %1663 = vmatprep.mubr.f32.mxu0 %v21250_v24  ;;  %v13870_v61 = vpack.c.bf16 %v2485_v27, %v2484_v60 }
 0x57e   : > { %12156 = vmatprep.mubr.f32.mxu1 %v17965_v47  ;;  %13863 = vmatprep.subr.bf16.mxu1 %v13862_v34 }
 0x580   : > { %1664 = vmatmul.mubr.f32.gmra.mrb[62].mxu0 %v1492_v40  ;;  %13865 = vmatpush3.bf16.msra.mxu1 %v13862_v34  ;;  %v13866_v40 = vpack.c.bf16 %v2483_v2, %v2482_v36 }
 0x581   : > { %12157 = vmatmul.mubr.f32.gmra.mrb[62].mxu1 %v17967_v48  ;;  %1895 = vmatprep.mubr.f32.mxu0 %v21250_v24 }
 0x582   : > { %13867 = vmatprep.subr.bf16.mxu1 %v13866_v40 }
 0x584   : > { %1896 = vmatmul.mubr.f32.vlgmr.msra.gmra.mrb[32].mxu0 %v17923_v5  ;;  %13869 = vmatpush3.bf16.msra.mxu1 %v13866_v40 }
 0x585   : > { %1901 = vmatprep.mubr.f32.mxu0 %v21250_v24  ;;  %13871 = vmatprep.subr.bf16.mxu1 %v13870_v61 }
 0x588   : > { %1902 = vmatmul.mubr.f32.gmra.mrb[34].mxu0 %v17925_v7  ;;  %13873 = vmatpush3.bf16.msra.mxu1 %v13870_v61 }
 0x589   : > { %1907 = vmatprep.mubr.f32.mxu0 %v21250_v24  ;;  %13875 = vmatprep.subr.bf16.mxu1 %v13874_v33 }
 0x58c   : > { %1908 = vmatmul.mubr.f32.gmra.mrb[36].mxu0 %v17929_v11  ;;  %13877 = vmatpush3.bf16.msra.mxu1 %v13874_v33 }
 0x58d   : > { %1913 = vmatprep.mubr.f32.mxu0 %v21250_v24  ;;  %13879 = vmatprep.subr.bf16.mxu1 %v13878_v9 }
 0x590   : > { %1914 = vmatmul.mubr.f32.gmra.mrb[38].mxu0 %v17931_v13  ;;  %13881 = vmatpush3.bf16.msra.mxu1 %v13878_v9 }
 0x591   : > { %1919 = vmatprep.mubr.f32.mxu0 %v21250_v24 }
 0x594   : > { %1920 = vmatmul.mubr.f32.gmra.mrb[40].mxu0 %v17935_v17 }
 0x595   : > { %1925 = vmatprep.mubr.f32.mxu0 %v21250_v24 }
 0x598   : > { %1926 = vmatmul.mubr.f32.gmra.mrb[42].mxu0 %v17937_v19 }
 0x599   : > { %1931 = vmatprep.mubr.f32.mxu0 %v21250_v24 }
 0x59c   : > { %1932 = vmatmul.mubr.f32.gmra.mrb[44].mxu0 %v17941_v23 }
 0x59d   : > { %1937 = vmatprep.mubr.f32.mxu0 %v21250_v24 }
 0x5a0   : > { %1938 = vmatmul.mubr.f32.gmra.mrb[46].mxu0 %v17943_v25 }
 0x5a1   : > { %1943 = vmatprep.mubr.f32.mxu0 %v21250_v24 }
 0x5a4   : > { %1944 = vmatmul.mubr.f32.gmra.mrb[48].mxu0 %v17947_v29 }
 0x5a5   : > { %1949 = vmatprep.mubr.f32.mxu0 %v21250_v24 }
 0x5a8   : > { %1950 = vmatmul.mubr.f32.gmra.mrb[50].mxu0 %v17949_v31 }
 0x5a9   : > { %1955 = vmatprep.mubr.f32.mxu0 %v21250_v24 }
 0x5ac   : > { %1956 = vmatmul.mubr.f32.gmra.mrb[52].mxu0 %v17953_v35 }
 0x5ad   : > { %1961 = vmatprep.mubr.f32.mxu0 %v21250_v24 }
 0x5b0   : > { %1962 = vmatmul.mubr.f32.gmra.mrb[54].mxu0 %v17955_v37 }
 0x5b1   : > { %1967 = vmatprep.mubr.f32.mxu0 %v21250_v24 }
 0x5b4   : > { %1968 = vmatmul.mubr.f32.gmra.mrb[56].mxu0 %v17959_v41 }
 0x5b5   : > { %1973 = vmatprep.mubr.f32.mxu0 %v21250_v24 }
 0x5b8   : > { %1974 = vmatmul.mubr.f32.gmra.mrb[58].mxu0 %v17961_v43 }
 0x5b9   : > { %1979 = vmatprep.mubr.f32.mxu0 %v21250_v24 }
 0x5bc   : > { %1980 = vmatmul.mubr.f32.gmra.mrb[60].mxu0 %v17965_v47 }
 0x5bd   : > { %1985 = vmatprep.mubr.f32.mxu0 %v21250_v24 }
 0x5c0   : > { %1986 = vmatmul.mubr.f32.gmra.mrb[62].mxu0 %v17967_v48 }
 0x618   : > { %v18301_v8 = vpop.f32.mrb[32].mxu1 }
 0x619   : > { %v18303_v63 = vpop.f32.mrb[33].mxu1 }
 0x61c   : > { %v18305_v1 = vpop.f32.mrb[34].mxu1 }
 0x61d   : > { %v18307_v49 = vpop.f32.mrb[35].mxu1 }
 0x620   : > { %v18309_v46 = vpop.f32.mrb[36].mxu1 }
 0x621   : > { %v18311_v42 = vpop.f32.mrb[37].mxu1 }
 0x624   : > { %v18313_v26 = vpop.f32.mrb[38].mxu1 }
 0x625   : > { %v18315_v34 = vpop.f32.mrb[39].mxu1 }
 0x628   : > { %v18317_v36 = vpop.f32.mrb[40].mxu1 }
 0x629   : > { %v18319_v2 = vpop.f32.mrb[41].mxu1 }
 0x62c   : > { %v18321_v40 = vpop.f32.mrb[42].mxu1 }
 0x62d   : > { %v18323_v60 = vpop.f32.mrb[43].mxu1 }
 0x630   : > { %v18325_v27 = vpop.f32.mrb[44].mxu1 }
 0x631   : > { %v18327_v61 = vpop.f32.mrb[45].mxu1 }
 0x634   : > { %v18329_v54 = vpop.f32.mrb[46].mxu1 }
 0x635   : > { %21282 = vst [vmem:[#allocation97_spill] sm:$0xff] %v18329_v54  ;;  %v18331_v20 = vpop.f32.mrb[47].mxu1 }
 0x638   : > { %v18333_v33 = vpop.f32.mrb[48].mxu1 }
 0x639   : > { %v18335_v14 = vpop.f32.mrb[49].mxu1 }
 0x63c   : > { %v18337_v45 = vpop.f32.mrb[50].mxu1 }
 0x63d   : > { %v18339_v9 = vpop.f32.mrb[51].mxu1 }
 0x640   : > { %v18341_v18 = vpop.f32.mrb[52].mxu1 }
 0x641   : > { %v18343_v59 = vpop.f32.mrb[53].mxu1 }
 0x644   : > { %v18345_v15 = vpop.f32.mrb[54].mxu1 }
 0x645   : > { %v18347_v6 = vpop.f32.mrb[55].mxu1 }
 0x648   : > { %v18349_v56 = vpop.f32.mrb[56].mxu1 }
 0x649   : > { %v18351_v4 = vpop.f32.mrb[57].mxu1 }
 0x64c   : > { %v18355_v51 = vpop.f32.mrb[58].mxu1 }
 0x64d   : > { %v18360_v24 = vpop.f32.mrb[59].mxu1 }
 0x650   : > { %v18369_v39 = vpop.f32.mrb[60].mxu1 }
 0x651   : > { %v18375_v32 = vpop.f32.mrb[61].mxu1 }
 0x654   : > { %v18381_v21 = vpop.f32.mrb[62].mxu1 }
 0x655   : > { %v18385_v10 = vpop.f32.mrb[63].mxu1 }
 0x657   : > { %v1897_v0 = vpop.f32.mrb[32].mxu0 }
 0x658   : > { %v15123_v62 = vadd.f32 %v18383_v12, %v1897_v0  ;;  %v1899_v16 = vpop.f32.mrb[33].mxu0 }
 0x659   : > { %v15125_v57 = vadd.f32 %v18387_v3, %v1899_v16 }
 0x65a   : > { %v10609_v53 = vmul.f32 -1.442695, %v15123_v62 }
 0x65b   : > { %v1903_v58 = vpop.f32.mrb[34].mxu0  ;;  %v10625_v47 = vmul.f32 -1.442695, %v15125_v57 }
 0x65c   : > { %15863 = vpow2.f32 %v10609_v53  ;;  %v15127_v48 = vadd.f32 %v18383_v12, %v1903_v58  ;;  %v1905_v55 = vpop.f32.mrb[35].mxu0 }
 0x65d   : > { %v15129_v38 = vadd.f32 %v18387_v3, %v1905_v55 }
 0x65e   : > { %v10610_v28 = vmul.f32 -1.442695, %v15127_v48 }
 0x65f   : > { %v1909_v43 = vpop.f32.mrb[36].mxu0  ;;  %v10626_v0 = vmul.f32 -1.442695, %v15129_v38 }
 0x660   : > { %15865 = vpow2.f32 %v10610_v28  ;;  %v15131_v22 = vadd.f32 %v18383_v12, %v1909_v43  ;;  %v1911_v30 = vpop.f32.mrb[37].mxu0 }
 0x661   : > { %15867 = vpow2.f32 %v10625_v47  ;;  %v15133_v41 = vadd.f32 %v18387_v3, %v1911_v30 }
 0x662   : > { %v10611_v16 = vmul.f32 -1.442695, %v15131_v22 }
 0x663   : > { %v10627_v62 = vmul.f32 -1.442695, %v15133_v41  ;;  %v1915_v37 = vpop.f32.mrb[38].mxu0 }
 0x664   : > { %15869 = vpow2.f32 %v10611_v16  ;;  %v15135_v53 = vadd.f32 %v18383_v12, %v1915_v37  ;;  %v1917_v58 = vpop.f32.mrb[39].mxu0 }
 0x665   : > { %15871 = vpow2.f32 %v10626_v0  ;;  %v15137_v57 = vadd.f32 %v18387_v3, %v1917_v58  ;;  %v1504_v0 = vsub.s32 2, %v18353_v52 }
 0x666   : > { %v15864_v48 = vpop.eup %15863  ;;  %v10612_v55 = vmul.f32 -1.442695, %v15135_v53  ;;  %15873 = vpow2.f32 %v10627_v62 }
 0x667   : > { %v2201_v28 = vadd.f32 1.0, %v15864_v48  ;;  %v10628_v43 = vmul.f32 -1.442695, %v15137_v57  ;;  %v1921_v35 = vpop.f32.mrb[40].mxu0  ;;  %v18406_v52 = vrot.slane %v18365_v50, %v1504_v0 }
 0x668   : > { %15875 = vpow2.f32 %v10612_v55  ;;  %v15139_v47 = vadd.f32 %v18383_v12, %v1921_v35  ;;  %v1923_v38 = vpop.f32.mrb[41].mxu0  ;;  %v18403_v55 = vrot.slane %v18367_v44, %v1504_v0 }
 0x669   : > { %15877 = vrcp.f32 %v2201_v28  ;;  %v15141_v41 = vadd.f32 %v18387_v3, %v1923_v38 }
 0x66a   : > { %v15866_v22 = vpop.eup %15865  ;;  %v10613_v30 = vmul.f32 -1.442695, %v15139_v47  ;;  %15879 = vpow2.f32 %v10628_v43 }
 0x66b   : > { %v15868_v37 = vpop.eup %15867  ;;  %v2202_v16 = vadd.f32 1.0, %v15866_v22  ;;  %v10629_v58 = vmul.f32 -1.442695, %v15141_v41  ;;  %v1927_v53 = vpop.f32.mrb[42].mxu0 }
 0x66c   : > { %15881 = vpow2.f32 %v10613_v30  ;;  %v15143_v62 = vadd.f32 %v18383_v12, %v1927_v53  ;;  %v1929_v57 = vpop.f32.mrb[43].mxu0  ;;  %v2313_v28 = vadd.f32 1.0, %v15868_v37  ;;  %v2059_v37 = vadd.f32 %v18335_v14, %v18403_v55 }
 0x66d   : > { %15883 = vrcp.f32 %v2202_v16  ;;  %v15145_v35 = vadd.f32 %v18387_v3, %v1929_v57 }
 0x66e   : > { %v15870_v48 = vpop.eup %15869  ;;  %v10614_v47 = vmul.f32 -1.442695, %v15143_v62  ;;  %15885 = vpow2.f32 %v10629_v58  ;;  %v1737_v58 = vadd.f32 %v18303_v63, %v18406_v52 }
 0x66f   : > { %v15872_v38 = vpop.eup %15871  ;;  %v2203_v43 = vadd.f32 1.0, %v15870_v48  ;;  %v10630_v41 = vmul.f32 -1.442695, %v15145_v35  ;;  %v1933_v22 = vpop.f32.mrb[44].mxu0 }
 0x670   : > { %15887 = vpow2.f32 %v10614_v47  ;;  %v15147_v30 = vadd.f32 %v18383_v12, %v1933_v22  ;;  %v1935_v16 = vpop.f32.mrb[45].mxu0  ;;  %v15874_v53 = vpop.eup %15873  ;;  %v2314_v62 = vadd.f32 1.0, %v15872_v38  ;;  %v2064_v38 = vadd.f32 %v18333_v33, %v18403_v55 }
 0x671   : > { %15889 = vrcp.f32 %v2203_v43  ;;  %v15149_v57 = vadd.f32 %v18387_v3, %v1935_v16  ;;  %v2315_v54 = vadd.f32 1.0, %v15874_v53 }
 0x672   : > { %v15876_v44 = vpop.eup %15875  ;;  %15891 = vrcp.f32 %v2313_v28  ;;  %v10615_v50 = vmul.f32 -1.442695, %v15147_v30 }
 0x673   : > { %v15878_v0 = vpop.eup %15877  ;;  %v2204_v35 = vadd.f32 1.0, %v15876_v44  ;;  %15893 = vpow2.f32 %v10630_v41  ;;  %v10631_v48 = vmul.f32 -1.442695, %v15149_v57  ;;  %v1939_v47 = vpop.f32.mrb[46].mxu0 }
 0x674   : > { %v2361_v22 = vmul.f32 %v15878_v0, %v2059_v37  ;;  %15895 = vpow2.f32 %v10615_v50  ;;  %v15151_v43 = vadd.f32 %v18383_v12, %v1939_v47  ;;  %v1941_v16 = vpop.f32.mrb[47].mxu0  ;;  %v15880_v31 = vpop.eup %15879  ;;  %v1742_v37 = vadd.f32 %v18301_v8, %v18406_v52 }
 0x675   : > { %15897 = vrcp.f32 %v2204_v35  ;;  %v15153_v14 = vadd.f32 %v18387_v3, %v1941_v16  ;;  %v2316_v57 = vadd.f32 1.0, %v15880_v31  ;;  %v1747_v8 = vadd.f32 %v18307_v49, %v18406_v52 }
 0x676   : > { %v15882_v28 = vpop.eup %15881  ;;  %v18418_v30 = vadd.f32 %v2361_v22, %v1737_v58  ;;  %15899 = vrcp.f32 %v2314_v62  ;;  %v10616_v63 = vmul.f32 -1.442695, %v15151_v43  ;;  %v2069_v62 = vadd.f32 %v18339_v9, %v18403_v55 }
 0x677   : > { %v15884_v41 = vpop.eup %15883  ;;  %v2205_v44 = vadd.f32 1.0, %v15882_v28  ;;  %15901 = vpow2.f32 %v10631_v48  ;;  %v1945_v53 = vpop.f32.mrb[48].mxu0  ;;  %v10632_v33 = vmul.f32 -1.442695, %v15153_v14  ;;  %v2074_v49 = vadd.f32 %v18337_v45, %v18403_v55 }
 0x678   : > { %v2362_v50 = vmul.f32 %v15884_v41, %v2064_v38  ;;  %15903 = vrcp.f32 %v2315_v54  ;;  %v15155_v0 = vadd.f32 %v18383_v12, %v1945_v53  ;;  %v1947_v35 = vpop.f32.mrb[49].mxu0  ;;  %v15886_v47 = vpop.eup %15885 }
 0x679   : > { %15905 = vrcp.f32 %v2205_v44  ;;  %v15157_v31 = vadd.f32 %v18387_v3, %v1947_v35  ;;  %v2317_v38 = vadd.f32 1.0, %v15886_v47 }
 0x67a   : > { %v15888_v58 = vpop.eup %15887  ;;  %v2378_v22 = vadd.f32 %v2362_v50, %v1742_v37  ;;  %15907 = vpow2.f32 %v10616_v63  ;;  %v10617_v43 = vmul.f32 -1.442695, %v15155_v0  ;;  %v1752_v0 = vadd.f32 %v18305_v1, %v18406_v52 }
 0x67b   : > { %v15890_v48 = vpop.eup %15889  ;;  %15909 = vrcp.f32 %v2316_v57  ;;  %v2206_v54 = vadd.f32 1.0, %v15888_v58  ;;  %v1951_v16 = vpop.f32.mrb[50].mxu0  ;;  %v10633_v37 = vmul.f32 -1.442695, %v15157_v31  ;;  %v2079_v1 = vadd.f32 %v18343_v59, %v18403_v55 }
 0x67c   : > { %v18428_v28 = vpop.eup %15891  ;;  %15911 = vtanh.f32 %v2378_v22  ;;  %v2363_v14 = vmul.f32 %v15890_v48, %v2069_v62  ;;  %v15159_v41 = vadd.f32 %v18383_v12, %v1951_v16  ;;  %v1953_v9 = vpop.f32.mrb[51].mxu0 }
 0x67d   : > { %v15894_v44 = vpop.eup %15893  ;;  %15913 = vpow2.f32 %v10632_v33  ;;  %v15161_v63 = vadd.f32 %v18387_v3, %v1953_v9 }
 0x67e   : > { %v15896_v53 = vpop.eup %15895  ;;  %v18434_v57 = vadd.f32 %v2363_v14, %v1747_v8  ;;  %15915 = vrcp.f32 %v2206_v54  ;;  %v2318_v35 = vadd.f32 1.0, %v15894_v44  ;;  %v10618_v22 = vmul.f32 -1.442695, %v15159_v41 }
 0x67f   : > { %v15898_v50 = vpop.eup %15897  ;;  %v2207_v47 = vadd.f32 1.0, %v15896_v53  ;;  %15917 = vpow2.f32 %v10617_v43  ;;  %v1957_v58 = vpop.f32.mrb[52].mxu0  ;;  %v10634_v8 = vmul.f32 -1.442695, %v15161_v63 }
 0x680   : > { %v15900_v62 = vpop.eup %15899  ;;  %v2364_v33 = vmul.f32 %v15898_v50, %v2074_v49  ;;  %15919 = vrcp.f32 %v2317_v38  ;;  %v15163_v48 = vadd.f32 %v18383_v12, %v1957_v58  ;;  %v1959_v16 = vpop.f32.mrb[53].mxu0  ;;  %v1757_v38 = vadd.f32 %v18311_v42, %v18406_v52 }
 0x681   : > { %v15902_v45 = vpop.eup %15901  ;;  %15921 = vrcp.f32 %v2207_v47  ;;  %v15165_v31 = vadd.f32 %v18387_v3, %v1959_v16  ;;  %v2410_v44 = vsub.f32 1.0, %v15900_v62  ;;  %v2084_v42 = vadd.f32 %v18341_v18, %v18403_v55 }
 0x682   : > { %v18440_v54 = vpop.eup %15903  ;;  %v18444_v14 = vadd.f32 %v2364_v33, %v1752_v0  ;;  %15923 = vpow2.f32 %v10633_v37  ;;  %v10619_v43 = vmul.f32 -1.442695, %v15163_v48  ;;  %v2319_v49 = vadd.f32 1.0, %v15902_v45 }
 0x683   : > { %v15906_v9 = vpop.eup %15905  ;;  %15925 = vrcp.f32 %v2318_v35  ;;  %v1963_v41 = vpop.f32.mrb[54].mxu0  ;;  %v10635_v37 = vmul.f32 -1.442695, %v15165_v31 }
 0x684   : > { %v15908_v53 = vpop.eup %15907  ;;  %v2365_v63 = vmul.f32 %v15906_v9, %v2079_v1  ;;  %15927 = vpow2.f32 %v10618_v22  ;;  %v15167_v50 = vadd.f32 %v18383_v12, %v1963_v41  ;;  %v1965_v47 = vpop.f32.mrb[55].mxu0  ;;  %v2442_v9 = vmul.f32 %v15900_v62, %v17925_v7 }
 0x685   : > { %v18449_v58 = vpop.eup %15909  ;;  %v2208_v59 = vadd.f32 1.0, %v15908_v53  ;;  %15929 = vpow2.f32 %v10634_v8  ;;  %v15169_v0 = vadd.f32 %v18387_v3, %v1965_v47  ;;  %v1762_v8 = vadd.f32 %v18309_v46, %v18406_v52 }
 0x686   : > { %v15912_v33 = vpop.eup %15911  ;;  %v18454_v35 = vadd.f32 %v2365_v63, %v1757_v38  ;;  %15931 = vpow2.f32 %v10619_v43  ;;  %v10620_v48 = vmul.f32 -1.442695, %v15167_v50  ;;  %v2089_v7 = vadd.f32 %v18347_v6, %v18403_v55 }
 0x687   : > { %v15914_v16 = vpop.eup %15913  ;;  %15933 = vrcp.f32 %v2208_v59  ;;  %v10636_v22 = vmul.f32 -1.442695, %v15169_v0  ;;  %v1969_v45 = vpop.f32.mrb[56].mxu0  ;;  %v2426_v1 = vmul.f32 %v15912_v33, %v2410_v44 }
 0x688   : > { %v15916_v41 = vpop.eup %15915  ;;  %15935 = vrcp.f32 %v2319_v49  ;;  %v15171_v31 = vadd.f32 %v18383_v12, %v1969_v45  ;;  %v1971_v53 = vpop.f32.mrb[57].mxu0  ;;  %v1767_v49 = vadd.f32 %v18315_v34, %v18406_v52  ;;  %v2320_v59 = vadd.f32 1.0, %v15914_v16 }
 0x689   : > { %v15918_v18 = vpop.eup %15917  ;;  %v2366_v38 = vmul.f32 %v15916_v41, %v2084_v42  ;;  %15937 = vpow2.f32 %v10635_v37  ;;  %v15173_v43 = vadd.f32 %v18387_v3, %v1971_v53  ;;  %v18461_v63 = vadd.f32 %v2442_v9, %v2426_v1 }
 0x68a   : > { %v18463_v50 = vpop.eup %15919  ;;  %v2209_v62 = vadd.f32 1.0, %v15918_v18  ;;  %15939 = vpow2.f32 %v10620_v48  ;;  %v10621_v44 = vmul.f32 -1.442695, %v15171_v31  ;;  %v2094_v53 = vadd.f32 %v18345_v15, %v18403_v55 }
 0x68b   : > { %v15922_v46 = vpop.eup %15921  ;;  %v18469_v47 = vadd.f32 %v2366_v38, %v1762_v8  ;;  %15941 = vpow2.f32 %v10636_v22  ;;  %v1975_v37 = vpop.f32.mrb[58].mxu0  ;;  %v10637_v42 = vmul.f32 -1.442695, %v15173_v43 }
 0x68c   : > { %v15924_v0 = vpop.eup %15923  ;;  %v2367_v33 = vmul.f32 %v15922_v46, %v2089_v7  ;;  %15943 = vrcp.f32 %v2209_v62  ;;  %v15175_v45 = vadd.f32 %v18383_v12, %v1975_v37  ;;  %v1977_v1 = vpop.f32.mrb[59].mxu0  ;;  %v1772_v46 = vadd.f32 %v18313_v26, %v18406_v52 }
 0x68d   : > { %v18472_v6 = vpop.eup %15925  ;;  %15945 = vpow2.f32 %v10621_v44  ;;  %v2321_v41 = vadd.f32 1.0, %v15924_v0  ;;  %v15177_v34 = vadd.f32 %v18387_v3, %v1977_v1 }
 0x68e   : > { %v15928_v48 = vpop.eup %15927  ;;  %v18474_v9 = vadd.f32 %v2367_v33, %v1767_v49  ;;  %15947 = vtanh.f32 %v18418_v30  ;;  %v10622_v18 = vmul.f32 -1.442695, %v15175_v45  ;;  %v2099_v33 = vadd.f32 %v18351_v4, %v18403_v55 }
 0x68f   : > { %v15930_v16 = vpop.eup %15929  ;;  %15949 = vrcp.f32 %v2320_v59  ;;  %v2210_v22 = vadd.f32 1.0, %v15928_v48  ;;  %v1981_v8 = vpop.f32.mrb[60].mxu0  ;;  %v10638_v59 = vmul.f32 -1.442695, %v15177_v34 }
 0x690   : > { %v15932_v31 = vpop.eup %15931  ;;  %15951 = vpow2.f32 %v10637_v42  ;;  %v1983_v38 = vpop.f32.mrb[61].mxu0  ;;  %v2322_v7 = vadd.f32 1.0, %v15930_v16  ;;  %v15179_v44 = vadd.f32 %v18383_v12, %v1981_v8 }
 0x691   : > { %v15934_v43 = vpop.eup %15933  ;;  %15953 = vrcp.f32 %v2210_v22  ;;  %v2211_v62 = vadd.f32 1.0, %v15932_v31  ;;  %v15181_v26 = vadd.f32 %v18387_v3, %v1983_v38  ;;  %v1777_v31 = vadd.f32 %v18319_v2, %v18406_v52 }
 0x692   : > { %v18481_v30 = vpop.eup %15935  ;;  %v2368_v49 = vmul.f32 %v15934_v43, %v2094_v53  ;;  %15955 = vrcp.f32 %v2321_v41  ;;  %v10623_v22 = vmul.f32 -1.442695, %v15179_v44  ;;  %v2409_v53 = vsub.f32 1.0, %v18428_v28 }
 0x693   : > { %v15938_v37 = vpop.eup %15937  ;;  %15957 = vrcp.f32 %v2211_v62  ;;  %v1987_v15 = vpop.f32.mrb[62].mxu0  ;;  %v2441_v62 = vmul.f32 %v18428_v28, %v17923_v5  ;;  %v2104_v2 = vadd.f32 %v18349_v56, %v18403_v55 }
 0x694   : > { %v15940_v0 = vpop.eup %15939  ;;  %v18487_v42 = vadd.f32 %v2368_v49, %v1772_v46  ;;  %v2323_v45 = vadd.f32 1.0, %v15938_v37  ;;  %15959 = vpow2.f32 %v10622_v18  ;;  %v1989_v1 = vpop.f32.mrb[63].mxu0  ;;  %v15183_v34 = vadd.f32 %v18383_v12, %v1987_v15 }
 0x695   : > { %v15942_v48 = vpop.eup %15941  ;;  %15961 = vrcp.f32 %v2322_v7  ;;  %v2212_v16 = vadd.f32 1.0, %v15940_v0  ;;  %v10639_v49 = vmul.f32 -1.442695, %v15181_v26  ;;  %v15185_v15 = vadd.f32 %v18387_v3, %v1989_v1 }
 0x696   : > { %v15944_v41 = vpop.eup %15943  ;;  %15963 = vpow2.f32 %v10638_v59  ;;  %v2324_v43 = vadd.f32 1.0, %v15942_v48  ;;  %v10624_v37 = vmul.f32 -1.442695, %v15183_v34  ;;  %v1787_v1 = vadd.f32 %v18323_v60, %v18406_v52 }
 0x697   : > { %v15946_v8 = vpop.eup %15945  ;;  %v2369_v4 = vmul.f32 %v15944_v41, %v2099_v33  ;;  %15965 = vrcp.f32 %v2212_v16  ;;  %v1782_v33 = vadd.f32 %v18317_v36, %v18406_v52 }
 0x698   : > { %v15948_v18 = vpop.eup %15947  ;;  %15967 = vrcp.f32 %v2323_v45  ;;  %v2213_v7 = vadd.f32 1.0, %v15946_v8  ;;  %v2109_v45 = vadd.f32 %v18360_v24, %v18403_v55  ;;  %v2114_v8 = vadd.f32 %v18355_v51, %v18403_v55 }
 0x699   : > { %v18496_v38 = vpop.eup %15949  ;;  %v18498_v44 = vadd.f32 %v2369_v4, %v1777_v31  ;;  %v2425_v46 = vmul.f32 %v15948_v18, %v2409_v53  ;;  %15969 = vpow2.f32 %v10623_v22  ;;  %v1792_v53 = vadd.f32 %v18321_v40, %v18406_v52 }
 0x69a   : > { %v15952_v59 = vpop.eup %15951  ;;  %15971 = vrcp.f32 %v2213_v7  ;;  %v2119_v7 = vadd.f32 %v18375_v32, %v18403_v55 }
 0x69b   : > { %v15954_v0 = vpop.eup %15953  ;;  %v18505_v5 = vadd.f32 %v2441_v62, %v2425_v46  ;;  %15973 = vtanh.f32 %v18434_v57  ;;  %v2325_v56 = vadd.f32 1.0, %v15952_v59  ;;  %v10640_v57 = vmul.f32 -1.442695, %v15185_v15 }
 0x69c   : > { %v18508_v28 = vpop.eup %15955  ;;  %v2370_v48 = vmul.f32 %v15954_v0, %v2104_v2  ;;  %15975 = vrcp.f32 %v2324_v43  ;;  %v2411_v46 = vsub.f32 1.0, %v18440_v54  ;;  %v1797_v59 = vadd.f32 %v18327_v61, %v18406_v52 }
 0x69d   : > { %v15958_v16 = vpop.eup %15957  ;;  %12191 = vmatprep.mubr.f32.mxu1 %v18505_v5  ;;  %15977 = vpow2.f32 %v10639_v49  ;;  %v2412_v61 = vsub.f32 1.0, %v18449_v58 }
 0x69e   : > { %v15960_v36 = vpop.eup %15959  ;;  %v2386_v22 = vadd.f32 %v2370_v48, %v1782_v33  ;;  %v2371_v26 = vmul.f32 %v15958_v16, %v2109_v45  ;;  %12192 = vmatmul.mubr.f32.vlgmr.msra.gmra.mrb[64].mxu1 %v18461_v63  ;;  %15979 = vpow2.f32 %v10624_v37  ;;  %v1802_v16 = vadd.f32 %v18325_v27, %v18406_v52 }
 0x69f   : > { %v18516_v41 = vpop.eup %15961  ;;  %v2214_v24 = vadd.f32 1.0, %v15960_v36  ;;  %15981 = vtanh.f32 %v18444_v14  ;;  %v2414_v27 = vsub.f32 1.0, %v18472_v6 }
 0x6a0   : > { %v15964_v34 = vpop.eup %15963  ;;  %v2387_v60 = vadd.f32 %v2371_v26, %v1787_v1  ;;  %15983 = vrcp.f32 %v2325_v56  ;;  %v2124_v56 = vadd.f32 %v18369_v39, %v18403_v55  ;;  %v2413_v39 = vsub.f32 1.0, %v18463_v50 }
 0x6a1   : > { %v15966_v31 = vpop.eup %15965  ;;  %15985 = vrcp.f32 %v2214_v24  ;;  %v2326_v2 = vadd.f32 1.0, %v15964_v34 }
 0x6a2   : > { %v18521_v4 = vpop.eup %15967  ;;  %v2372_v18 = vmul.f32 %v15966_v31, %v2114_v8  ;;  %15987 = vpow2.f32 %v10640_v57  ;;  %v2415_v8 = vsub.f32 1.0, %v18481_v30 }
 0x6a3   : > { %v15970_v43 = vpop.eup %15969  ;;  %15989 = vtanh.f32 %v18454_v35  ;;  %v2443_v35 = vmul.f32 %v18440_v54, %v17929_v11  ;;  %v2444_v54 = vmul.f32 %v18449_v58, %v17931_v13  ;;  %v2129_v13 = vadd.f32 %v18385_v10, %v18403_v55 }
 0x6a4   : > { %v15972_v14 = vpop.eup %15971  ;;  %v2388_v62 = vadd.f32 %v2372_v18, %v1792_v53  ;;  %v2215_v51 = vadd.f32 1.0, %v15970_v43  ;;  %15991 = vtanh.f32 %v18469_v47  ;;  %v2446_v53 = vmul.f32 %v18472_v6, %v17937_v19 }
 0x6a5   : > { %v15974_v49 = vpop.eup %15973  ;;  %v2373_v40 = vmul.f32 %v15972_v14, %v2119_v7  ;;  %15993 = vtanh.f32 %v18474_v9  ;;  %v2447_v10 = vmul.f32 %v18481_v30, %v17941_v23  ;;  %v2416_v43 = vsub.f32 1.0, %v18496_v38 }
 0x6a6   : > { %v18533_v37 = vpop.eup %15975  ;;  %15995 = vrcp.f32 %v2215_v51  ;;  %v2427_v32 = vmul.f32 %v15974_v49, %v2411_v46  ;;  %v2417_v51 = vsub.f32 1.0, %v18508_v28  ;;  %v2448_v30 = vmul.f32 %v18496_v38, %v17943_v25 }
 0x6a7   : > { %v15978_v15 = vpop.eup %15977  ;;  %v2389_v0 = vadd.f32 %v2373_v40, %v1797_v59  ;;  %15997 = vtanh.f32 %v18487_v42 }
 0x6a8   : > { %v15980_v47 = vpop.eup %15979  ;;  %v18538_v33 = vadd.f32 %v2443_v35, %v2427_v32  ;;  %15999 = vtanh.f32 %v18498_v44  ;;  %v1807_v44 = vadd.f32 %v18331_v20, %v18406_v52  ;;  %v2327_v58 = vadd.f32 1.0, %v15978_v15 }
 0x6a9   : > { %v15982_v45 = vpop.eup %15981  ;;  %16001 = vrcp.f32 %v2326_v2  ;;  %v2216_v9 = vadd.f32 1.0, %v15980_v47  ;;  %v2449_v2 = vmul.f32 %v18508_v28, %v17947_v29  ;;  %v2418_v32 = vsub.f32 1.0, %v18516_v41  ;;  %v21285_v47 = vld [vmem:[#allocation42_spill] sm:$0xff]  ;;  %v21286_v28 = vld [vmem:[#allocation97_spill] sm:$0xff] }
 0x6aa   : > { %v18542_v48 = vpop.eup %15983  ;;  %12194 = vmatprep.mubr.f32.mxu1 %v18538_v33  ;;  %v2428_v11 = vmul.f32 %v15982_v45, %v2412_v61  ;;  %16003 = vtanh.f32 %v2386_v22  ;;  %v2445_v22 = vmul.f32 %v18463_v50, %v17935_v17  ;;  %v2134_v15 = vadd.f32 %v18381_v21, %v18403_v55 }
 0x6ab   : > { %v15986_v42 = vpop.eup %15985  ;;  %16005 = vrcp.f32 %v2216_v9  ;;  %v2450_v25 = vmul.f32 %v18516_v41, %v21285_v47  ;;  %v2419_v9 = vsub.f32 1.0, %v18521_v4 }
 0x6ac   : > { %v15988_v1 = vpop.eup %15987  ;;  %v2374_v36 = vmul.f32 %v15986_v42, %v2124_v56  ;;  %v18553_v26 = vadd.f32 %v2444_v54, %v2428_v11  ;;  %16007 = vtanh.f32 %v2387_v60  ;;  %v1812_v56 = vadd.f32 %v21286_v28, %v18406_v52  ;;  %v21287_v42 = vld [vmem:[#allocation43_spill] sm:$0xff] }
 0x6ad   : > { %v15990_v57 = vpop.eup %15989  ;;  %16009 = vtanh.f32 %v2388_v62  ;;  %v2328_v19 = vadd.f32 1.0, %v15988_v1  ;;  %v2451_v41 = vmul.f32 %v18521_v4, %v21287_v42  ;;  %v2804_v28 = vld [vmem:[#allocation11 + $0xb0] sm:$0xff]  ;;  %v2807_v42 = vld [vmem:[#allocation11 + $0xc8] sm:$0xff] }
 0x6ae   : > { %v15992_v24 = vpop.eup %15991  ;;  %v2390_v20 = vadd.f32 %v2374_v36, %v1802_v16  ;;  %12195 = vmatmul.mubr.f32.gmra.mrb[66].mxu1 %v18553_v26  ;;  %v2429_v34 = vmul.f32 %v15990_v57, %v2413_v39  ;;  %16011 = vtanh.f32 %v2389_v0  ;;  %v2420_v16 = vsub.f32 1.0, %v18533_v37 }
 0x6af   : > { %v15994_v31 = vpop.eup %15993  ;;  %v2430_v60 = vmul.f32 %v15992_v24, %v2414_v27  ;;  %v2421_v36 = vsub.f32 1.0, %v18542_v48 }
 0x6b0   : > { %v15996_v17 = vpop.eup %15995  ;;  %v18567_v50 = vadd.f32 %v2445_v22, %v2429_v34  ;;  %v2431_v18 = vmul.f32 %v15994_v31, %v2415_v8  ;;  %16013 = vtanh.f32 %v2390_v20  ;;  %v21289_v34 = vld [vmem:[#allocation45_spill] sm:$0xff] }
 0x6b1   : > { %v15998_v7 = vpop.eup %15997  ;;  %v2375_v14 = vmul.f32 %v15996_v17, %v2129_v13  ;;  %16015 = vrcp.f32 %v2327_v58  ;;  %v18570_v62 = vadd.f32 %v2446_v53, %v2430_v60  ;;  %v21288_v58 = vld [vmem:[#allocation44_spill] sm:$0xff]  ;;  %v2453_v4 = vmul.f32 %v18542_v48, %v21289_v34  ;;  %v21291_v53 = vld [vmem:[#allocation46_spill] sm:$0xff] }
 0x6b2   : > { %v16000_v46 = vpop.eup %15999  ;;  %12197 = vmatprep.mubr.f32.mxu1 %v18567_v50  ;;  %v18574_v23 = vadd.f32 %v2447_v10, %v2431_v18  ;;  %v2432_v6 = vmul.f32 %v15998_v7, %v2416_v43  ;;  %v2452_v22 = vmul.f32 %v18533_v37, %v21288_v58  ;;  %v2812_v58 = vld [vmem:[#allocation11 + $0xf0] sm:$0xff] }
 0x6b3   : > { %v16002_v49 = vpop.eup %16001  ;;  %v2391_v59 = vadd.f32 %v2375_v14, %v1807_v44  ;;  %12198 = vmatmul.mubr.f32.gmra.mrb[68].mxu1 %v18570_v62  ;;  %v2433_v40 = vmul.f32 %v16000_v46, %v2417_v51  ;;  %v21294_v14 = vld [vmem:[#allocation47_spill] sm:$0xff] }
 0x6b4   : > { %v16004_v35 = vpop.eup %16003  ;;  %12200 = vmatprep.mubr.f32.mxu1 %v18574_v23  ;;  %v18585_v0 = vadd.f32 %v2448_v30, %v2432_v6  ;;  %v2422_v27 = vsub.f32 1.0, %v16002_v49  ;;  %v2454_v10 = vmul.f32 %v16002_v49, %v21291_v53  ;;  %v21296_v49 = vld [vmem:[#allocation48_spill] sm:$0xff] }
 0x6b5   : > { %v16006_v38 = vpop.eup %16005  ;;  %v18589_v61 = vadd.f32 %v2449_v2, %v2433_v40  ;;  %v2434_v45 = vmul.f32 %v16004_v35, %v2418_v32  ;;  %16017 = vtanh.f32 %v2391_v59  ;;  %v16823_v2 = vld [vmem:[%s17876_s22] sm:$0xff]  ;;  %v2799_v35 = vld [vmem:[#allocation11 + $0x88] sm:$0xff] }
 0x6b6   : > { %v16008_v29 = vpop.eup %16007  ;;  %v2376_v11 = vmul.f32 %v16006_v38, %v2134_v15  ;;  %16019 = vrcp.f32 %v2328_v19  ;;  %v2798_v32 = vld [vmem:[#allocation11 + $0x80] sm:$0xff]  ;;  %v2800_v15 = vld [vmem:[#allocation11 + $0x90] sm:$0xff] }
 0x6b7   : > { %12201 = vmatmul.mubr.f32.gmra.mrb[70].mxu1 %v18585_v0  ;;  %v18595_v21 = vadd.f32 %v2450_v25, %v2434_v45  ;;  %v2435_v54 = vmul.f32 %v16008_v29, %v2419_v9  ;;  %v16010_v44 = vpop.eup %16009  ;;  %v13914_v47 = vpack.c.bf16 %v2799_v35, %v2798_v32  ;;  %v2801_v25 = vld [vmem:[#allocation11 + $0x98] sm:$0xff]  ;;  %v2802_v45 = vld [vmem:[#allocation11 + $0xa0] sm:$0xff]  ;;  %v2803_v9 = vld [vmem:[#allocation11 + $0xa8] sm:$0xff] }
 0x6b8   : > { %v2392_v1 = vadd.f32 %v2376_v11, %v1812_v56  ;;  %12203 = vmatprep.mubr.f32.mxu1 %v18589_v61  ;;  %v16012_v39 = vpop.eup %16011  ;;  %v2436_v13 = vmul.f32 %v16010_v44, %v2420_v16  ;;  %v13918_v38 = vpack.c.bf16 %v2801_v25, %v2800_v15  ;;  %v13922_v29 = vpack.c.bf16 %v2803_v9, %v2802_v45  ;;  %v2805_v56 = vld [vmem:[#allocation11 + $0xb8] sm:$0xff]  ;;  %v2808_v16 = vld [vmem:[#allocation11 + $0xd0] sm:$0xff] }
 0x6b9   : > { %v18602_v57 = vadd.f32 %v2451_v41, %v2435_v54  ;;  %v2437_v20 = vmul.f32 %v16012_v39, %v2421_v36  ;;  %13915 = vmatprep.subr.bf16.mxu0 %v13914_v47  ;;  %v13926_v11 = vpack.c.bf16 %v2805_v56, %v2804_v28  ;;  %v2806_v54 = vld [vmem:[#allocation11 + $0xc0] sm:$0xff]  ;;  %v2809_v44 = vld [vmem:[#allocation11 + $0xd8] sm:$0xff]  ;;  %v2811_v39 = vld [vmem:[#allocation11 + $0xe8] sm:$0xff] }
 0x6ba   : > { %v16014_v24 = vpop.eup %16013  ;;  %16021 = vtanh.f32 %v2392_v1  ;;  %v18609_v31 = vadd.f32 %v2452_v22, %v2436_v13  ;;  %13917 = vmatpush3.bf16.msra.mxu0 %v13914_v47  ;;  %v13930_v41 = vpack.c.bf16 %v2807_v42, %v2806_v54  ;;  %v13934_v1 = vpack.c.bf16 %v2809_v44, %v2808_v16  ;;  %v2810_v36 = vld [vmem:[#allocation11 + $0xe0] sm:$0xff]  ;;  %v2813_v22 = vld [vmem:[#allocation11 + $0xf8] sm:$0xff] }
 0x6bb   : > { %v16016_v8 = vpop.eup %16015  ;;  %12204 = vmatmul.mubr.f32.gmra.mrb[72].mxu1 %v18595_v21  ;;  %v2438_v60 = vmul.f32 %v16014_v24, %v2422_v27  ;;  %v18613_v17 = vadd.f32 %v2453_v4, %v2437_v20  ;;  %13919 = vmatprep.subr.bf16.mxu0 %v13918_v38  ;;  %v13938_v13 = vpack.c.bf16 %v2811_v39, %v2810_v36  ;;  %v21298_v24 = vld [vmem:[#allocation51_spill] sm:$0xff]  ;;  %v18630_v20 = vld [vmem:[#allocation20 + $0x2] ss:$0 sm:$0xff] }
 0x6bc   : > { %21290 = vst [vmem:[#allocation42_spill] sm:$0xff] %v18609_v31  ;;  %12206 = vmatprep.mubr.f32.mxu1 %v18602_v57  ;;  %v2423_v18 = vsub.f32 1.0, %v16016_v8  ;;  %v2455_v51 = vmul.f32 %v16016_v8, %v21294_v14  ;;  %v13942_v27 = vpack.c.bf16 %v2813_v22, %v2812_v58 }
 0x6bd   : > { %21292 = vst [vmem:[#allocation97_spill] sm:$0xff] %v18613_v17  ;;  %v18615_v37 = vadd.f32 %v2454_v10, %v2438_v60 }
 0x6be   : > { %13921 = vmatpush3.bf16.msra.mxu0 %v13918_v38 }
 0x6bf   : > { %21293 = vst [vmem:[#allocation43_spill] sm:$0xff] %v18615_v37  ;;  %v16018_v43 = vpop.eup %16017  ;;  %12207 = vmatmul.mubr.f32.gmra.mrb[74].mxu1 %v18609_v31  ;;  %13923 = vmatprep.subr.bf16.mxu0 %v13922_v29 }
 0x6c0   : > { %v16020_v48 = vpop.eup %16019  ;;  %12209 = vmatprep.mubr.f32.mxu1 %v18613_v17  ;;  %v2439_v7 = vmul.f32 %v16018_v43, %v2423_v18 }
 0x6c1   : > { %v2424_v19 = vsub.f32 1.0, %v16020_v48  ;;  %v2456_v59 = vmul.f32 %v16020_v48, %v21296_v49 }
 0x6c2   : > { %v18620_v46 = vadd.f32 %v2455_v51, %v2439_v7  ;;  %13925 = vmatpush3.bf16.msra.mxu0 %v13922_v29 }
 0x6c3   : > { %12210 = vmatmul.mubr.f32.gmra.mrb[76].mxu1 %v18615_v37  ;;  %13927 = vmatprep.subr.bf16.mxu0 %v13926_v11 }
 0x6c4   : > { %21295 = vst [vmem:[#allocation44_spill] sm:$0xff] %v18620_v46  ;;  %v16022_v6 = vpop.eup %16021  ;;  %12212 = vmatprep.mubr.f32.mxu1 %v18620_v46 }
 0x6c5   : > { %v2440_v30 = vmul.f32 %v16022_v6, %v2424_v19 }
 0x6c6   : > { %13929 = vmatpush3.bf16.msra.mxu0 %v13926_v11 }
 0x6c7   : > { %v18625_v40 = vadd.f32 %v2456_v59, %v2440_v30  ;;  %13931 = vmatprep.subr.bf16.mxu0 %v13930_v41 }
 0x6c9   : > { %21297 = vst [vmem:[#allocation45_spill] sm:$0xff] %v18625_v40  ;;  %12213 = vmatmul.mubr.f32.gmra.mrb[78].mxu1 %v18625_v40 }
 0x6ca   : > { %12247 = vmatprep.mubr.f32.mxu1 %v16823_v2  ;;  %13933 = vmatpush3.bf16.msra.mxu0 %v13930_v41 }
 0x6cb   : > { %13935 = vmatprep.subr.bf16.mxu0 %v13934_v1 }
 0x6ce   : > { %13937 = vmatpush3.bf16.msra.mxu0 %v13934_v1 }
 0x6cf   : > { %13939 = vmatprep.subr.bf16.mxu0 %v13938_v13 }
 0x6d2   : > { %13941 = vmatpush3.bf16.msra.mxu0 %v13938_v13 }
 0x6d3   : > { %13943 = vmatprep.subr.bf16.mxu0 %v13942_v27 }
 0x6d6   : > { %13945 = vmatpush3.bf16.msra.mxu0 %v13942_v27 }
 0x6d7   : > { %13979 = vmatprep.subr.bf16.mxu0 %v21298_v24 }
 0x771   : > { %v12193_v34 = vpop.f32.mrb[64].mxu1 }
 0x772   : > { %v2563_v4 = vadd.f32 %v12193_v34, %v18630_v20  ;;  %v2557_v8 = vpop.f32.mrb[65].mxu1 }
 0x773   : > { %v2558_v60 = vadd.f32 %v2557_v8, %v18630_v20 }
 0x774   : > { %v2637_v53 = vmax.f32 %v2563_v4, 0.0 }
 0x775   : > { %v2636_v10 = vmax.f32 %v2558_v60, 0.0 }
 0x777   : > { %v13882_v18 = vpack.c.bf16 %v2637_v53, %v2636_v10 }
 0x779   : > { %13883 = vmatprep.subr.bf16.mxu1 %v13882_v18 }
 0x77a   : > { %13885 = vmatpush3.bf16.msra.mxu1 %v13882_v18 }
 0x781   : > { %v12196_v43 = vpop.f32.mrb[66].mxu1 }
 0x782   : > { %v2573_v48 = vadd.f32 %v12196_v43, %v18630_v20  ;;  %v2567_v7 = vpop.f32.mrb[67].mxu1 }
 0x783   : > { %v2568_v14 = vadd.f32 %v2567_v7, %v18630_v20 }
 0x784   : > { %v2639_v51 = vmax.f32 %v2573_v48, 0.0 }
 0x785   : > { %v2638_v19 = vmax.f32 %v2568_v14, 0.0 }
 0x786   : > { %v12199_v6 = vpop.f32.mrb[68].mxu1 }
 0x787   : > { %v2583_v30 = vadd.f32 %v12199_v6, %v18630_v20  ;;  %v13886_v49 = vpack.c.bf16 %v2639_v51, %v2638_v19  ;;  %v2577_v59 = vpop.f32.mrb[69].mxu1 }
 0x788   : > { %v2578_v2 = vadd.f32 %v2577_v59, %v18630_v20  ;;  %v16825_v59 = vld [vmem:[%s17876_s22 + $0x10] sm:$0xff] }
 0x789   : > { %13887 = vmatprep.subr.bf16.mxu1 %v13886_v49  ;;  %v2641_v32 = vmax.f32 %v2583_v30, 0.0  ;;  %v21299_v30 = vld [vmem:[#allocation49_spill] sm:$0xff] }
 0x78a   : > { %13889 = vmatpush3.bf16.msra.mxu1 %v13886_v49  ;;  %v12202_v35 = vpop.f32.mrb[70].mxu1  ;;  %v2640_v15 = vmax.f32 %v2578_v2, 0.0  ;;  %v16824_v49 = vld [vmem:[%s17876_s22 + $0x8] sm:$0xff] }
 0x78b   : > { %v2593_v47 = vadd.f32 %v12202_v35, %v18630_v20  ;;  %v2587_v25 = vpop.f32.mrb[71].mxu1  ;;  %v21300_v2 = vld [vmem:[#allocation50_spill] sm:$0xff]  ;;  %v16827_v35 = vld [vmem:[%s17876_s22 + $0x20] sm:$0xff] }
 0x78c   : > { %v13890_v38 = vpack.c.bf16 %v2641_v32, %v2640_v15  ;;  %v2588_v45 = vadd.f32 %v2587_v25, %v18630_v20  ;;  %v21301_v32 = vld [vmem:[#allocation52_spill] sm:$0xff]  ;;  %v21302_v15 = vld [vmem:[#allocation53_spill] sm:$0xff]  ;;  %v16828_v25 = vld [vmem:[%s17876_s22 + $0x28] sm:$0xff] }
 0x78d   : > { %v2643_v9 = vmax.f32 %v2593_v47, 0.0  ;;  %v21303_v47 = vld [vmem:[#allocation54_spill] sm:$0xff] }
 0x78e   : > { %13891 = vmatprep.subr.bf16.mxu1 %v13890_v38  ;;  %v12205_v29 = vpop.f32.mrb[72].mxu1  ;;  %v2642_v28 = vmax.f32 %v2588_v45, 0.0  ;;  %v21304_v45 = vld [vmem:[#allocation55_spill] sm:$0xff] }
 0x78f   : > { %13893 = vmatpush3.bf16.msra.mxu1 %v13890_v38  ;;  %v2603_v56 = vadd.f32 %v12205_v29, %v18630_v20  ;;  %v2597_v11 = vpop.f32.mrb[73].mxu1  ;;  %v16829_v38 = vld [vmem:[%s17876_s22 + $0x30] sm:$0xff]  ;;  %v16830_v29 = vld [vmem:[%s17876_s22 + $0x38] sm:$0xff] }
 0x790   : > { %v13894_v54 = vpack.c.bf16 %v2643_v9, %v2642_v28  ;;  %v2598_v42 = vadd.f32 %v2597_v11, %v18630_v20  ;;  %v21305_v9 = vld [vmem:[#allocation56_spill] sm:$0xff]  ;;  %v16831_v28 = vld [vmem:[%s17876_s22 + $0x40] sm:$0xff]  ;;  %v21307_v11 = vld [vmem:[#allocation58_spill] sm:$0xff] }
 0x791   : > { %v2645_v41 = vmax.f32 %v2603_v56, 0.0  ;;  %v21306_v56 = vld [vmem:[#allocation57_spill] sm:$0xff] }
 0x792   : > { %13895 = vmatprep.subr.bf16.mxu1 %v13894_v54  ;;  %v12208_v16 = vpop.f32.mrb[74].mxu1  ;;  %v2644_v44 = vmax.f32 %v2598_v42, 0.0  ;;  %v16833_v42 = vld [vmem:[%s17876_s22 + $0x50] sm:$0xff] }
 0x793   : > { %13897 = vmatpush3.bf16.msra.mxu1 %v13894_v54  ;;  %v2613_v1 = vadd.f32 %v12208_v16, %v18630_v20  ;;  %v2607_v36 = vpop.f32.mrb[75].mxu1  ;;  %v16832_v54 = vld [vmem:[%s17876_s22 + $0x48] sm:$0xff]  ;;  %v21309_v16 = vld [vmem:[#allocation60_spill] sm:$0xff] }
 0x794   : > { %v13898_v39 = vpack.c.bf16 %v2645_v41, %v2644_v44  ;;  %v2608_v13 = vadd.f32 %v2607_v36, %v18630_v20  ;;  %v21308_v41 = vld [vmem:[#allocation59_spill] sm:$0xff]  ;;  %v16834_v44 = vld [vmem:[%s17876_s22 + $0x58] sm:$0xff]  ;;  %v21310_v36 = vld [vmem:[#allocation61_spill] sm:$0xff] }
 0x795   : > { %v2647_v58 = vmax.f32 %v2613_v1, 0.0  ;;  %v16835_v1 = vld [vmem:[%s17876_s22 + $0x60] sm:$0xff] }
 0x796   : > { %13899 = vmatprep.subr.bf16.mxu1 %v13898_v39  ;;  %v12211_v22 = vpop.f32.mrb[76].mxu1  ;;  %v2646_v27 = vmax.f32 %v2608_v13, 0.0  ;;  %v16836_v13 = vld [vmem:[%s17876_s22 + $0x68] sm:$0xff] }
 0x797   : > { %13901 = vmatpush3.bf16.msra.mxu1 %v13898_v39  ;;  %v2623_v34 = vadd.f32 %v12211_v22, %v18630_v20  ;;  %v2617_v4 = vpop.f32.mrb[77].mxu1  ;;  %v21311_v39 = vld [vmem:[#allocation62_spill] sm:$0xff]  ;;  %v21312_v22 = vld [vmem:[#allocation63_spill] sm:$0xff] }
 0x798   : > { %v13902_v8 = vpack.c.bf16 %v2647_v58, %v2646_v27  ;;  %v2618_v60 = vadd.f32 %v2617_v4, %v18630_v20  ;;  %v16837_v58 = vld [vmem:[%s17876_s22 + $0x70] sm:$0xff]  ;;  %v21313_v27 = vld [vmem:[#allocation70_spill] sm:$0xff] }
 0x799   : > { %v2649_v53 = vmax.f32 %v2623_v34, 0.0  ;;  %v16838_v34 = vld [vmem:[%s17876_s22 + $0x78] sm:$0xff]  ;;  %v21314_v4 = vld [vmem:[#allocation71_spill] sm:$0xff] }
 0x79a   : > { %13903 = vmatprep.subr.bf16.mxu1 %v13902_v8  ;;  %v2648_v10 = vmax.f32 %v2618_v60, 0.0  ;;  %v21316_v60 = vld [vmem:[#allocation74_spill] sm:$0xff] }
 0x79b   : > { %13905 = vmatpush3.bf16.msra.mxu1 %v13902_v8  ;;  %v21315_v8 = vmov 0.0  }
 0x79c   : > { %v12214_v18 = vpop.f32.mrb[78].mxu1  ;;  %v13906_v43 = vpack.c.bf16 %v2649_v53, %v2648_v10 }
 0x79d   : > { %v2633_v48 = vadd.f32 %v12214_v18, %v18630_v20  ;;  %v2627_v7 = vpop.f32.mrb[79].mxu1 }
 0x79e   : > { %13907 = vmatprep.subr.bf16.mxu1 %v13906_v43  ;;  %v2628_v14 = vadd.f32 %v2627_v7, %v18630_v20  ;;  %v16826_v20 = vld [vmem:[%s17876_s22 + $0x18] sm:$0xff] }
 0x79f   : > { %13909 = vmatpush3.bf16.msra.mxu1 %v13906_v43  ;;  %v2651_v51 = vmax.f32 %v2633_v48, 0.0  ;;  %v21317_v48 = vld [vmem:[#allocation64_spill] sm:$0xff] }
 0x7a0   : > { %v2650_v19 = vmax.f32 %v2628_v14, 0.0 }
 0x7a2   : > { %v13910_v6 = vpack.c.bf16 %v2651_v51, %v2650_v19  ;;  %v21318_v51 = vld [vmem:[#allocation65_spill] sm:$0xff] }
 0x7a4   : > { %13911 = vmatprep.subr.bf16.mxu1 %v13910_v6 }
 0x7a5   : > { %13913 = vmatpush3.bf16.msra.mxu1 %v13910_v6 }
 0x7a6   : > { %13947 = vmatprep.subr.bf16.mxu1 %v21299_v30 }
 0x7a8   : > { %12248 = vmatmul.mubr.f32.vlgmr.msra.gmra.mrb[80].mxu1 %v16824_v49  ;;  %v21319_v49 = vld [vmem:[#allocation66_spill] sm:$0xff] }
 0x7a9   : > { %12250 = vmatprep.mubr.f32.mxu1 %v16825_v59  ;;  %13949 = vmatpush1.bf16.msra.mxu1 %v21300_v2 }
 0x7aa   : > { %13951 = vmatprep.subr.bf16.mxu1 %v21301_v32 }
 0x7ac   : > { %12251 = vmatmul.mubr.f32.gmra.mrb[82].mxu1 %v16826_v20 }
 0x7ad   : > { %12253 = vmatprep.mubr.f32.mxu1 %v16827_v35  ;;  %13953 = vmatpush1.bf16.msra.mxu1 %v21302_v15  ;;  %v21320_v35 = vld [vmem:[#allocation67_spill] sm:$0xff] }
 0x7ae   : > { %13955 = vmatprep.subr.bf16.mxu1 %v21303_v47 }
 0x7b0   : > { %12254 = vmatmul.mubr.f32.gmra.mrb[84].mxu1 %v16828_v25 }
 0x7b1   : > { %12256 = vmatprep.mubr.f32.mxu1 %v16829_v38  ;;  %13957 = vmatpush1.bf16.msra.mxu1 %v21304_v45 }
 0x7b2   : > { %13959 = vmatprep.subr.bf16.mxu1 %v21305_v9 }
 0x7b4   : > { %12257 = vmatmul.mubr.f32.gmra.mrb[86].mxu1 %v16830_v29  ;;  %v21321_v29 = vld [vmem:[#allocation68_spill] sm:$0xff] }
 0x7b5   : > { %12259 = vmatprep.mubr.f32.mxu1 %v16831_v28  ;;  %13961 = vmatpush1.bf16.msra.mxu1 %v21306_v56 }
 0x7b6   : > { %13963 = vmatprep.subr.bf16.mxu1 %v21307_v11 }
 0x7b8   : > { %12260 = vmatmul.mubr.f32.gmra.mrb[88].mxu1 %v16832_v54 }
 0x7b9   : > { %12262 = vmatprep.mubr.f32.mxu1 %v16833_v42  ;;  %13965 = vmatpush1.bf16.msra.mxu1 %v21308_v41  ;;  %v21322_v42 = vld [vmem:[#allocation69_spill] sm:$0xff] }
 0x7ba   : > { %13967 = vmatprep.subr.bf16.mxu1 %v21309_v16 }
 0x7bc   : > { %12263 = vmatmul.mubr.f32.gmra.mrb[90].mxu1 %v16834_v44 }
 0x7bd   : > { %12265 = vmatprep.mubr.f32.mxu1 %v16835_v1  ;;  %13969 = vmatpush1.bf16.msra.mxu1 %v21310_v36 }
 0x7be   : > { %13971 = vmatprep.subr.bf16.mxu1 %v21311_v39 }
 0x7c0   : > { %12266 = vmatmul.mubr.f32.gmra.mrb[92].mxu1 %v16836_v13  ;;  %v21323_v13 = vld [vmem:[#allocation72_spill] sm:$0xff] }
 0x7c1   : > { %12268 = vmatprep.mubr.f32.mxu1 %v16837_v58  ;;  %13973 = vmatpush1.bf16.msra.mxu1 %v21312_v22  ;;  %v21324_v58 = vld [vmem:[#allocation73_spill] sm:$0xff] }
 0x7c2   : > { %13975 = vmatprep.subr.bf16.mxu1 %v21313_v27 }
 0x7c4   : > { %12269 = vmatmul.mubr.f32.gmra.mrb[94].mxu1 %v16838_v34  ;;  %v18697_v34 = vld [vmem:[#allocation20 + $0x18] ss:$0 sm:$0xff] }
 0x7c5   : > { %13977 = vmatpush1.bf16.msra.mxu1 %v21314_v4  ;;  %3040 = vmatprep.mubr.f32.mxu1 %v21315_v8 }
 0x7c6   : > { %14011 = vmatprep.subr.bf16.mxu1 %v21316_v60 }
 0x87b   : > { %v12249_v53 = vpop.f32.mrb[80].mxu1 }
 0x87c   : > { %v2718_v10 = vpop.f32.mrb[81].mxu1 }
 0x87d   : > { %12303 = vmatprep.mubr.f32.mxu0 %v2718_v10 }
 0x87e   : > { %12304 = vmatmul.mubr.f32.vlgmr.msra.gmra.mrb[64].mxu0 %v12249_v53 }
 0x87f   : > { %v12252_v18 = vpop.f32.mrb[82].mxu1  ;;  %13981 = vmatpush3.bf16.msra.mxu0 %v21298_v24 }
 0x880   : > { %v2728_v43 = vpop.f32.mrb[83].mxu1  ;;  %13983 = vmatprep.subr.bf16.mxu0 %v21317_v48 }
 0x881   : > { %12306 = vmatprep.mubr.f32.mxu0 %v2728_v43 }
 0x882   : > { %12307 = vmatmul.mubr.f32.gmra.mrb[66].mxu0 %v12252_v18 }
 0x883   : > { %v12255_v7 = vpop.f32.mrb[84].mxu1  ;;  %13985 = vmatpush3.bf16.msra.mxu0 %v21317_v48 }
 0x884   : > { %v2738_v14 = vpop.f32.mrb[85].mxu1  ;;  %13987 = vmatprep.subr.bf16.mxu0 %v21318_v51 }
 0x885   : > { %12309 = vmatprep.mubr.f32.mxu0 %v2738_v14 }
 0x886   : > { %12310 = vmatmul.mubr.f32.gmra.mrb[68].mxu0 %v12255_v7 }
 0x887   : > { %v12258_v19 = vpop.f32.mrb[86].mxu1  ;;  %13989 = vmatpush3.bf16.msra.mxu0 %v21318_v51 }
 0x888   : > { %v2748_v6 = vpop.f32.mrb[87].mxu1  ;;  %13991 = vmatprep.subr.bf16.mxu0 %v21319_v49 }
 0x889   : > { %12312 = vmatprep.mubr.f32.mxu0 %v2748_v6 }
 0x88a   : > { %12313 = vmatmul.mubr.f32.gmra.mrb[70].mxu0 %v12258_v19 }
 0x88b   : > { %v12261_v59 = vpop.f32.mrb[88].mxu1  ;;  %13993 = vmatpush3.bf16.msra.mxu0 %v21319_v49 }
 0x88c   : > { %v2758_v20 = vpop.f32.mrb[89].mxu1  ;;  %13995 = vmatprep.subr.bf16.mxu0 %v21320_v35 }
 0x88d   : > { %12315 = vmatprep.mubr.f32.mxu0 %v2758_v20 }
 0x88e   : > { %12316 = vmatmul.mubr.f32.gmra.mrb[72].mxu0 %v12261_v59 }
 0x88f   : > { %v12264_v25 = vpop.f32.mrb[90].mxu1  ;;  %13997 = vmatpush3.bf16.msra.mxu0 %v21320_v35 }
 0x890   : > { %v2768_v38 = vpop.f32.mrb[91].mxu1  ;;  %13999 = vmatprep.subr.bf16.mxu0 %v21321_v29 }
 0x891   : > { %12318 = vmatprep.mubr.f32.mxu0 %v2768_v38 }
 0x892   : > { %12319 = vmatmul.mubr.f32.gmra.mrb[74].mxu0 %v12264_v25 }
 0x893   : > { %v12267_v28 = vpop.f32.mrb[92].mxu1  ;;  %14001 = vmatpush3.bf16.msra.mxu0 %v21321_v29 }
 0x894   : > { %v2778_v54 = vpop.f32.mrb[93].mxu1  ;;  %14003 = vmatprep.subr.bf16.mxu0 %v21322_v42 }
 0x895   : > { %12321 = vmatprep.mubr.f32.mxu0 %v2778_v54  ;;  %v21325_v54 = vld [vmem:[#allocation75_spill] sm:$0xff] }
 0x896   : > { %12322 = vmatmul.mubr.f32.gmra.mrb[76].mxu0 %v12267_v28 }
 0x897   : > { %v12270_v44 = vpop.f32.mrb[94].mxu1  ;;  %14005 = vmatpush3.bf16.msra.mxu0 %v21322_v42  ;;  %v21341_v42 = vld [vmem:[#allocation91_spill] sm:$0xff] }
 0x898   : > { %v2788_v1 = vpop.f32.mrb[95].mxu1  ;;  %14007 = vmatprep.subr.bf16.mxu0 %v21323_v13 }
 0x899   : > { %12324 = vmatprep.mubr.f32.mxu0 %v2788_v1 }
 0x89a   : > { %12325 = vmatmul.mubr.f32.gmra.mrb[78].mxu0 %v12270_v44 }
 0x89b   : > { %14009 = vmatpush3.bf16.msra.mxu0 %v21323_v13  ;;  %v21338_v13 = vld [vmem:[#allocation88_spill] sm:$0xff] }
 0x89c   : > { %14043 = vmatprep.subr.bf16.mxu0 %v21324_v58 }
 0x951   : > { %v12305_v53 = vpop.f32.mrb[64].mxu0 }
 0x952   : > { %v2887_v10 = vadd.f32 %v12305_v53, %v18697_v34  ;;  %v2881_v18 = vpop.f32.mrb[65].mxu0  ;;  %v21326_v53 = vld [vmem:[#allocation76_spill] sm:$0xff] }
 0x953   : > { %v2882_v43 = vadd.f32 %v2881_v18, %v18697_v34 }
 0x954   : > { %v2961_v19 = vmax.f32 %v2887_v10, 0.0  ;;  %v21327_v10 = vld [vmem:[#allocation77_spill] sm:$0xff] }
 0x955   : > { %v2960_v7 = vmax.f32 %v2882_v43, 0.0  ;;  %v12308_v14 = vpop.f32.mrb[66].mxu0 }
 0x956   : > { %v2897_v6 = vadd.f32 %v12308_v14, %v18697_v34  ;;  %v2891_v59 = vpop.f32.mrb[67].mxu0 }
 0x957   : > { %v2892_v20 = vadd.f32 %v2891_v59, %v18697_v34  ;;  %3041 = vmatmul.mubr.f32.vlgmr.msra.gmra.mrb[96].mxu1 %v2960_v7  ;;  %12359 = vmatprep.mubr.f32.mxu0 %v2960_v7 }
 0x958   : > { %12360 = vmatmul.mubr.f32.vlgmr.msra.gmra.mrb[80].mxu0 %v2961_v19  ;;  %3046 = vmatprep.mubr.f32.mxu1 %v21315_v8  ;;  %v2963_v25 = vmax.f32 %v2897_v6, 0.0  ;;  %v21328_v6 = vld [vmem:[#allocation78_spill] sm:$0xff] }
 0x959   : > { %v12311_v38 = vpop.f32.mrb[68].mxu0  ;;  %14045 = vmatpush3.bf16.msra.mxu0 %v21324_v58  ;;  %v2962_v28 = vmax.f32 %v2892_v20, 0.0  ;;  %14013 = vmatpush1.bf16.msra.mxu1 %v21325_v54  ;;  %v21335_v58 = vld [vmem:[#allocation85_spill] sm:$0xff] }
 0x95a   : > { %v2907_v44 = vadd.f32 %v12311_v38, %v18697_v34  ;;  %v2901_v1 = vpop.f32.mrb[69].mxu0  ;;  %14047 = vmatprep.subr.bf16.mxu0 %v21326_v53  ;;  %14015 = vmatprep.subr.bf16.mxu1 %v21327_v10  ;;  %v21329_v38 = vld [vmem:[#allocation79_spill] sm:$0xff]  ;;  %v21330_v10 = vld [vmem:[#allocation80_spill] sm:$0xff] }
 0x95b   : > { %v2902_v18 = vadd.f32 %v2901_v1, %v18697_v34  ;;  %3047 = vmatmul.mubr.f32.gmra.mrb[98].mxu1 %v2961_v19  ;;  %12362 = vmatprep.mubr.f32.mxu0 %v2962_v28 }
 0x95c   : > { %12363 = vmatmul.mubr.f32.gmra.mrb[82].mxu0 %v2963_v25  ;;  %3052 = vmatprep.mubr.f32.mxu1 %v21315_v8  ;;  %v2965_v43 = vmax.f32 %v2907_v44, 0.0 }
 0x95d   : > { %v12314_v7 = vpop.f32.mrb[70].mxu0  ;;  %14049 = vmatpush3.bf16.msra.mxu0 %v21326_v53  ;;  %v2964_v14 = vmax.f32 %v2902_v18, 0.0  ;;  %14017 = vmatpush1.bf16.msra.mxu1 %v21328_v6 }
 0x95e   : > { %v18714_v59 = vadd.f32 %v12314_v7, %v18697_v34  ;;  %v2911_v20 = vpop.f32.mrb[71].mxu0  ;;  %14051 = vmatprep.subr.bf16.mxu0 %v21329_v38  ;;  %14019 = vmatprep.subr.bf16.mxu1 %v21330_v10  ;;  %v21331_v7 = vld [vmem:[#allocation81_spill] sm:$0xff]  ;;  %v21332_v10 = vld [vmem:[#allocation82_spill] sm:$0xff] }
 0x95f   : > { %v2912_v19 = vadd.f32 %v2911_v20, %v18697_v34  ;;  %3053 = vmatmul.mubr.f32.gmra.mrb[100].mxu1 %v2962_v28  ;;  %12365 = vmatprep.mubr.f32.mxu0 %v2964_v14  ;;  %v21333_v20 = vld [vmem:[#allocation83_spill] sm:$0xff] }
 0x960   : > { %12366 = vmatmul.mubr.f32.gmra.mrb[84].mxu0 %v2965_v43  ;;  %3058 = vmatprep.mubr.f32.mxu1 %v21315_v8  ;;  %v2967_v44 = vmax.f32 %v18714_v59, 0.0 }
 0x961   : > { %v12317_v1 = vpop.f32.mrb[72].mxu0  ;;  %14053 = vmatpush3.bf16.msra.mxu0 %v21329_v38  ;;  %v2966_v18 = vmax.f32 %v2912_v19, 0.0  ;;  %14021 = vmatpush1.bf16.msra.mxu1 %v21331_v7 }
 0x962   : > { %v18724_v6 = vadd.f32 %v12317_v1, %v18697_v34  ;;  %v2921_v53 = vpop.f32.mrb[73].mxu0  ;;  %14055 = vmatprep.subr.bf16.mxu0 %v21332_v10  ;;  %14023 = vmatprep.subr.bf16.mxu1 %v21333_v20  ;;  %v21334_v1 = vld [vmem:[#allocation84_spill] sm:$0xff]  ;;  %v21336_v20 = vld [vmem:[#allocation86_spill] sm:$0xff] }
 0x963   : > { %v2922_v28 = vadd.f32 %v2921_v53, %v18697_v34  ;;  %3059 = vmatmul.mubr.f32.gmra.mrb[102].mxu1 %v2963_v25  ;;  %12368 = vmatprep.mubr.f32.mxu0 %v2966_v18 }
 0x964   : > { %12369 = vmatmul.mubr.f32.gmra.mrb[86].mxu0 %v2967_v44  ;;  %3064 = vmatprep.mubr.f32.mxu1 %v21315_v8  ;;  %v2969_v59 = vmax.f32 %v18724_v6, 0.0 }
 0x965   : > { %v12320_v19 = vpop.f32.mrb[74].mxu0  ;;  %14057 = vmatpush3.bf16.msra.mxu0 %v21332_v10  ;;  %v2968_v7 = vmax.f32 %v2922_v28, 0.0  ;;  %14025 = vmatpush1.bf16.msra.mxu1 %v21334_v1  ;;  %v21337_v1 = vld [vmem:[#allocation87_spill] sm:$0xff] }
 0x966   : > { %v2937_v38 = vadd.f32 %v12320_v19, %v18697_v34  ;;  %v2931_v54 = vpop.f32.mrb[75].mxu0  ;;  %14059 = vmatprep.subr.bf16.mxu0 %v21335_v58  ;;  %14027 = vmatprep.subr.bf16.mxu1 %v21336_v20  ;;  %v21339_v20 = vld [vmem:[#allocation89_spill] sm:$0xff] }
 0x967   : > { %v2932_v25 = vadd.f32 %v2931_v54, %v18697_v34  ;;  %3065 = vmatmul.mubr.f32.gmra.mrb[104].mxu1 %v2964_v14  ;;  %12371 = vmatprep.mubr.f32.mxu0 %v2968_v7 }
 0x968   : > { %12372 = vmatmul.mubr.f32.gmra.mrb[88].mxu0 %v2969_v59  ;;  %3070 = vmatprep.mubr.f32.mxu1 %v21315_v8  ;;  %v2971_v53 = vmax.f32 %v2937_v38, 0.0 }
 0x969   : > { %v12323_v6 = vpop.f32.mrb[76].mxu0  ;;  %14061 = vmatpush3.bf16.msra.mxu0 %v21335_v58  ;;  %v2970_v28 = vmax.f32 %v2932_v25, 0.0  ;;  %14029 = vmatpush1.bf16.msra.mxu1 %v21337_v1  ;;  %v21340_v1 = vld [vmem:[#allocation90_spill] sm:$0xff] }
 0x96a   : > { %v2947_v19 = vadd.f32 %v12323_v6, %v18697_v34  ;;  %v2941_v10 = vpop.f32.mrb[77].mxu0  ;;  %14063 = vmatprep.subr.bf16.mxu0 %v21338_v13  ;;  %14031 = vmatprep.subr.bf16.mxu1 %v21339_v20  ;;  %v21342_v20 = vld [vmem:[#allocation92_spill] sm:$0xff] }
 0x96b   : > { %v2942_v54 = vadd.f32 %v2941_v10, %v18697_v34  ;;  %3071 = vmatmul.mubr.f32.gmra.mrb[106].mxu1 %v2965_v43  ;;  %12374 = vmatprep.mubr.f32.mxu0 %v2970_v28 }
 0x96c   : > { %12375 = vmatmul.mubr.f32.gmra.mrb[90].mxu0 %v2971_v53  ;;  %3076 = vmatprep.mubr.f32.mxu1 %v21315_v8  ;;  %v2973_v14 = vmax.f32 %v2947_v19, 0.0 }
 0x96d   : > { %v12326_v38 = vpop.f32.mrb[78].mxu0  ;;  %14065 = vmatpush3.bf16.msra.mxu0 %v21338_v13  ;;  %v2972_v25 = vmax.f32 %v2942_v54, 0.0  ;;  %14033 = vmatpush1.bf16.msra.mxu1 %v21340_v1  ;;  %v21343_v54 = vld [vmem:[#allocation93_spill] sm:$0xff]  ;;  %v21344_v1 = vld [vmem:[#allocation94_spill] sm:$0xff] }
 0x96e   : > { %v2957_v6 = vadd.f32 %v12326_v38, %v18697_v34  ;;  %v2951_v58 = vpop.f32.mrb[79].mxu0  ;;  %14067 = vmatprep.subr.bf16.mxu0 %v21341_v42  ;;  %14035 = vmatprep.subr.bf16.mxu1 %v21342_v20  ;;  %v21345_v38 = vld [vmem:[#allocation95_spill] sm:$0xff] }
 0x96f   : > { %v2952_v10 = vadd.f32 %v2951_v58, %v18697_v34  ;;  %3077 = vmatmul.mubr.f32.gmra.mrb[108].mxu1 %v2966_v18  ;;  %12377 = vmatprep.mubr.f32.mxu0 %v2972_v25  ;;  %v21346_v58 = vld [vmem:[#allocation96_spill] sm:$0xff]  ;;  %v3925_v34 = vld [vmem:[#allocation10 + $0x100] sm:$0xff] }
 0x970   : > { %12378 = vmatmul.mubr.f32.gmra.mrb[92].mxu0 %v2973_v14  ;;  %3082 = vmatprep.mubr.f32.mxu1 %v21315_v8  ;;  %v2975_v43 = vmax.f32 %v2957_v6, 0.0  ;;  %v3931_v6 = vld [vmem:[#allocation10 + $0x130] sm:$0xff] }
 0x971   : > { %14069 = vmatpush3.bf16.msra.mxu0 %v21341_v42  ;;  %v2974_v19 = vmax.f32 %v2952_v10, 0.0  ;;  %14037 = vmatpush1.bf16.msra.mxu1 %v21343_v54  ;;  %v3932_v10 = vld [vmem:[#allocation10 + $0x138] sm:$0xff] }
 0x972   : > { %14071 = vmatprep.subr.bf16.mxu0 %v21344_v1  ;;  %14039 = vmatprep.subr.bf16.mxu1 %v21345_v38 }
 0x973   : > { %3083 = vmatmul.mubr.f32.gmra.mrb[110].mxu1 %v2967_v44  ;;  %12380 = vmatprep.mubr.f32.mxu0 %v2974_v19  ;;  %v3926_v44 = vld [vmem:[#allocation10 + $0x108] sm:$0xff] }
 0x974   : > { %12381 = vmatmul.mubr.f32.gmra.mrb[94].mxu0 %v2975_v43  ;;  %3088 = vmatprep.mubr.f32.mxu1 %v21315_v8  ;;  %v14074_v18 = vpack.c.bf16 %v3926_v44, %v3925_v34  ;;  %v3935_v44 = vld [vmem:[#allocation10 + $0x150] sm:$0xff] }
 0x975   : > { %14073 = vmatpush3.bf16.msra.mxu0 %v21344_v1  ;;  %12415 = vmatprep.mubr.f32.mxu0 %v18505_v5 }
 0x976   : > { %14041 = vmatpush1.bf16.msra.mxu1 %v21346_v58  ;;  %14075 = vmatprep.subr.bf16.mxu0 %v14074_v18  ;;  %v3934_v58 = vld [vmem:[#allocation10 + $0x148] sm:$0xff] }
 0x977   : > { %3089 = vmatmul.mubr.f32.gmra.mrb[112].mxu1 %v2968_v7  ;;  %v3927_v7 = vld [vmem:[#allocation10 + $0x110] sm:$0xff] }
 0x978   : > { %12416 = vmatmul.mubr.f32.vlgmr.msra.gmra.mrb[96].mxu0 %v18461_v63  ;;  %3094 = vmatprep.mubr.f32.mxu1 %v21315_v8 }
 0x979   : > { %12418 = vmatprep.mubr.f32.mxu0 %v18538_v33  ;;  %14077 = vmatpush3.bf16.msra.mxu0 %v14074_v18  ;;  %v3936_v18 = vld [vmem:[#allocation10 + $0x158] sm:$0xff] }
 0x97b   : > { %3095 = vmatmul.mubr.f32.gmra.mrb[114].mxu1 %v2969_v59  ;;  %v3928_v59 = vld [vmem:[#allocation10 + $0x118] sm:$0xff] }
 0x97c   : > { %12419 = vmatmul.mubr.f32.gmra.mrb[98].mxu0 %v18553_v26  ;;  %3100 = vmatprep.mubr.f32.mxu1 %v21315_v8 }
 0x97d   : > { %12421 = vmatprep.mubr.f32.mxu0 %v18567_v50 }
 0x97f   : > { %3101 = vmatmul.mubr.f32.gmra.mrb[116].mxu1 %v2970_v28  ;;  %v3929_v28 = vld [vmem:[#allocation10 + $0x120] sm:$0xff] }
 0x980   : > { %12422 = vmatmul.mubr.f32.gmra.mrb[100].mxu0 %v18570_v62  ;;  %3106 = vmatprep.mubr.f32.mxu1 %v21315_v8 }
 0x981   : > { %12424 = vmatprep.mubr.f32.mxu0 %v18574_v23 }
 0x983   : > { %3107 = vmatmul.mubr.f32.gmra.mrb[118].mxu1 %v2971_v53  ;;  %v14078_v53 = vpack.c.bf16 %v3928_v59, %v3927_v7  ;;  %v14094_v7 = vpack.c.bf16 %v3936_v18, %v3935_v44  ;;  %v3937_v59 = vld [vmem:[#allocation10 + $0x160] sm:$0xff] }
 0x984   : > { %12425 = vmatmul.mubr.f32.gmra.mrb[102].mxu0 %v18585_v0  ;;  %3112 = vmatprep.mubr.f32.mxu1 %v21315_v8 }
 0x985   : > { %12427 = vmatprep.mubr.f32.mxu0 %v18589_v61  ;;  %14079 = vmatprep.subr.bf16.mxu0 %v14078_v53 }
 0x986   : > { %14081 = vmatpush3.bf16.msra.mxu0 %v14078_v53  ;;  %v3938_v53 = vld [vmem:[#allocation10 + $0x168] sm:$0xff] }
 0x987   : > { %3113 = vmatmul.mubr.f32.gmra.mrb[120].mxu1 %v2972_v25 }
 0x988   : > { %12428 = vmatmul.mubr.f32.gmra.mrb[104].mxu0 %v18595_v21  ;;  %3118 = vmatprep.mubr.f32.mxu1 %v21315_v8 }
 0x989   : > { %12430 = vmatprep.mubr.f32.mxu0 %v18602_v57 }
 0x98b   : > { %3119 = vmatmul.mubr.f32.gmra.mrb[122].mxu1 %v2973_v14  ;;  %v3930_v14 = vld [vmem:[#allocation10 + $0x128] sm:$0xff] }
 0x98c   : > { %12431 = vmatmul.mubr.f32.gmra.mrb[106].mxu0 %v18609_v31  ;;  %3124 = vmatprep.mubr.f32.mxu1 %v21315_v8  ;;  %v14082_v25 = vpack.c.bf16 %v3930_v14, %v3929_v28  ;;  %v14098_v28 = vpack.c.bf16 %v3938_v53, %v3937_v59 }
 0x98d   : > { %12433 = vmatprep.mubr.f32.mxu0 %v18613_v17 }
 0x98e   : > { %14083 = vmatprep.subr.bf16.mxu0 %v14082_v25 }
 0x98f   : > { %3125 = vmatmul.mubr.f32.gmra.mrb[124].mxu1 %v2974_v19  ;;  %14085 = vmatpush3.bf16.msra.mxu0 %v14082_v25  ;;  %v3933_v19 = vld [vmem:[#allocation10 + $0x140] sm:$0xff] }
 0x990   : > { %12434 = vmatmul.mubr.f32.gmra.mrb[108].mxu0 %v18615_v37  ;;  %3130 = vmatprep.mubr.f32.mxu1 %v21315_v8  ;;  %v14090_v34 = vpack.c.bf16 %v3934_v58, %v3933_v19 }
 0x991   : > { %12436 = vmatprep.mubr.f32.mxu0 %v18620_v46 }
 0x993   : > { %3131 = vmatmul.mubr.f32.gmra.mrb[126].mxu1 %v2975_v43  ;;  %v14086_v43 = vpack.c.bf16 %v3932_v10, %v3931_v6  ;;  %v3939_v6 = vld [vmem:[#allocation10 + $0x170] sm:$0xff]  ;;  %v3940_v10 = vld [vmem:[#allocation10 + $0x178] sm:$0xff] }
 0x994   : > { %12437 = vmatmul.mubr.f32.gmra.mrb[110].mxu0 %v18625_v40  ;;  %3346 = vmatprep.mubr.f32.mxu1 %v21315_v8 }
 0x995   : > { %14087 = vmatprep.subr.bf16.mxu0 %v14086_v43 }
 0x996   : > { %14089 = vmatpush3.bf16.msra.mxu0 %v14086_v43  ;;  %v14102_v43 = vpack.c.bf16 %v3940_v10, %v3939_v6 }
 0x997   : > { %3347 = vmatmul.mubr.f32.vlgmr.msra.gmra.mrb[96].mxu1 %v18505_v5  ;;  %14091 = vmatprep.subr.bf16.mxu0 %v14090_v34 }
 0x998   : > { %3352 = vmatprep.mubr.f32.mxu1 %v21315_v8 }
 0x99a   : > { %14093 = vmatpush3.bf16.msra.mxu0 %v14090_v34 }
 0x99b   : > { %3353 = vmatmul.mubr.f32.gmra.mrb[98].mxu1 %v18461_v63  ;;  %14095 = vmatprep.subr.bf16.mxu0 %v14094_v7 }
 0x99c   : > { %3358 = vmatprep.mubr.f32.mxu1 %v21315_v8 }
 0x99e   : > { %14097 = vmatpush3.bf16.msra.mxu0 %v14094_v7 }
 0x99f   : > { %3359 = vmatmul.mubr.f32.gmra.mrb[100].mxu1 %v18538_v33  ;;  %14099 = vmatprep.subr.bf16.mxu0 %v14098_v28 }
 0x9a0   : > { %3364 = vmatprep.mubr.f32.mxu1 %v21315_v8 }
 0x9a2   : > { %14101 = vmatpush3.bf16.msra.mxu0 %v14098_v28 }
 0x9a3   : > { %3365 = vmatmul.mubr.f32.gmra.mrb[102].mxu1 %v18553_v26  ;;  %14103 = vmatprep.subr.bf16.mxu0 %v14102_v43 }
 0x9a4   : > { %3370 = vmatprep.mubr.f32.mxu1 %v21315_v8 }
 0x9a6   : > { %14105 = vmatpush3.bf16.msra.mxu0 %v14102_v43 }
 0x9a7   : > { %3371 = vmatmul.mubr.f32.gmra.mrb[104].mxu1 %v18567_v50 }
 0x9a8   : > { %3376 = vmatprep.mubr.f32.mxu1 %v21315_v8 }
 0x9ab   : > { %3377 = vmatmul.mubr.f32.gmra.mrb[106].mxu1 %v18570_v62 }
 0x9ac   : > { %3382 = vmatprep.mubr.f32.mxu1 %v21315_v8 }
 0x9af   : > { %3383 = vmatmul.mubr.f32.gmra.mrb[108].mxu1 %v18574_v23 }
 0x9b0   : > { %3388 = vmatprep.mubr.f32.mxu1 %v21315_v8 }
 0x9b3   : > { %3389 = vmatmul.mubr.f32.gmra.mrb[110].mxu1 %v18585_v0 }
 0x9b4   : > { %3394 = vmatprep.mubr.f32.mxu1 %v21315_v8 }
 0x9b7   : > { %3395 = vmatmul.mubr.f32.gmra.mrb[112].mxu1 %v18589_v61 }
 0x9b8   : > { %3400 = vmatprep.mubr.f32.mxu1 %v21315_v8 }
 0x9bb   : > { %3401 = vmatmul.mubr.f32.gmra.mrb[114].mxu1 %v18595_v21 }
 0x9bc   : > { %3406 = vmatprep.mubr.f32.mxu1 %v21315_v8 }
 0x9bf   : > { %3407 = vmatmul.mubr.f32.gmra.mrb[116].mxu1 %v18602_v57 }
 0x9c0   : > { %3412 = vmatprep.mubr.f32.mxu1 %v21315_v8 }
 0x9c3   : > { %3413 = vmatmul.mubr.f32.gmra.mrb[118].mxu1 %v18609_v31 }
 0x9c4   : > { %3418 = vmatprep.mubr.f32.mxu1 %v21315_v8 }
 0x9c7   : > { %3419 = vmatmul.mubr.f32.gmra.mrb[120].mxu1 %v18613_v17 }
 0x9c8   : > { %3424 = vmatprep.mubr.f32.mxu1 %v21315_v8 }
 0x9cb   : > { %3425 = vmatmul.mubr.f32.gmra.mrb[122].mxu1 %v18615_v37 }
 0x9cc   : > { %3430 = vmatprep.mubr.f32.mxu1 %v21315_v8 }
 0x9cf   : > { %3431 = vmatmul.mubr.f32.gmra.mrb[124].mxu1 %v18620_v46 }
 0x9d0   : > { %3436 = vmatprep.mubr.f32.mxu1 %v21315_v8 }
 0x9d3   : > { %3437 = vmatmul.mubr.f32.gmra.mrb[126].mxu1 %v18625_v40 }
 0xa2b   : > { %v18814_v14 = vpop.f32.mrb[80].mxu0 }
 0xa2c   : > { %v18816_v25 = vpop.f32.mrb[81].mxu0 }
 0xa2f   : > { %v18818_v58 = vpop.f32.mrb[82].mxu0 }
 0xa30   : > { %v18820_v19 = vpop.f32.mrb[83].mxu0 }
 0xa33   : > { %v18822_v34 = vpop.f32.mrb[84].mxu0 }
 0xa34   : > { %v18824_v44 = vpop.f32.mrb[85].mxu0 }
 0xa37   : > { %v18826_v18 = vpop.f32.mrb[86].mxu0 }
 0xa38   : > { %v18828_v7 = vpop.f32.mrb[87].mxu0 }
 0xa3b   : > { %v18830_v59 = vpop.f32.mrb[88].mxu0 }
 0xa3c   : > { %v18832_v53 = vpop.f32.mrb[89].mxu0 }
 0xa3f   : > { %v18834_v28 = vpop.f32.mrb[90].mxu0 }
 0xa40   : > { %v18836_v6 = vpop.f32.mrb[91].mxu0 }
 0xa43   : > { %v18838_v10 = vpop.f32.mrb[92].mxu0 }
 0xa44   : > { %v18840_v38 = vpop.f32.mrb[93].mxu0 }
 0xa47   : > { %v18842_v43 = vpop.f32.mrb[94].mxu0 }
 0xa48   : > { %21347 = vst [vmem:[#allocation46_spill] sm:$0xff] %v18842_v43  ;;  %v18844_v1 = vpop.f32.mrb[95].mxu0 }
 0xa49   : > { %21348 = vst [vmem:[#allocation47_spill] sm:$0xff] %v18844_v1 }
 0xa4b   : > { %v18846_v54 = vpop.f32.mrb[96].mxu0 }
 0xa4c   : > { %v18848_v20 = vpop.f32.mrb[97].mxu0 }
 0xa4f   : > { %v18850_v42 = vpop.f32.mrb[98].mxu0 }
 0xa50   : > { %v18852_v13 = vpop.f32.mrb[99].mxu0 }
 0xa53   : > { %v18854_v29 = vpop.f32.mrb[100].mxu0 }
 0xa54   : > { %v18856_v35 = vpop.f32.mrb[101].mxu0 }
 0xa57   : > { %v18858_v49 = vpop.f32.mrb[102].mxu0 }
 0xa58   : > { %v18860_v51 = vpop.f32.mrb[103].mxu0 }
 0xa5b   : > { %v18862_v48 = vpop.f32.mrb[104].mxu0 }
 0xa5c   : > { %v18864_v60 = vpop.f32.mrb[105].mxu0 }
 0xa5f   : > { %v18866_v8 = vpop.f32.mrb[106].mxu0 }
 0xa60   : > { %v18868_v4 = vpop.f32.mrb[107].mxu0 }
 0xa63   : > { %v18870_v27 = vpop.f32.mrb[108].mxu0 }
 0xa64   : > { %v18872_v22 = vpop.f32.mrb[109].mxu0 }
 0xa67   : > { %v18874_v39 = vpop.f32.mrb[110].mxu0 }
 0xa68   : > { %21349 = vst [vmem:[#allocation48_spill] sm:$0xff] %v18874_v39  ;;  %v18876_v36 = vpop.f32.mrb[111].mxu0 }
 0xa6a   : > { %v3348_v16 = vpop.f32.mrb[96].mxu1 }
 0xa6b   : > { %v15187_v41 = vadd.f32 %v18383_v12, %v3348_v16  ;;  %v3350_v11 = vpop.f32.mrb[97].mxu1 }
 0xa6c   : > { %v15189_v56 = vadd.f32 %v18387_v3, %v3350_v11 }
 0xa6d   : > { %v10641_v9 = vmul.f32 -1.442695, %v15187_v41 }
 0xa6e   : > { %v3354_v45 = vpop.f32.mrb[98].mxu1  ;;  %v10657_v32 = vmul.f32 -1.442695, %v15189_v56 }
 0xa6f   : > { %16023 = vpow2.f32 %v10641_v9  ;;  %v15191_v47 = vadd.f32 %v18383_v12, %v3354_v45  ;;  %v3356_v15 = vpop.f32.mrb[99].mxu1 }
 0xa70   : > { %v15193_v2 = vadd.f32 %v18387_v3, %v3356_v15 }
 0xa71   : > { %v10642_v30 = vmul.f32 -1.442695, %v15191_v47 }
 0xa72   : > { %v3360_v24 = vpop.f32.mrb[100].mxu1  ;;  %v10658_v16 = vmul.f32 -1.442695, %v15193_v2 }
 0xa73   : > { %16025 = vpow2.f32 %v10642_v30  ;;  %v15195_v40 = vadd.f32 %v18383_v12, %v3360_v24  ;;  %v3362_v46 = vpop.f32.mrb[101].mxu1 }
 0xa74   : > { %16027 = vpow2.f32 %v10657_v32  ;;  %v15197_v37 = vadd.f32 %v18387_v3, %v3362_v46 }
 0xa75   : > { %v10643_v11 = vmul.f32 -1.442695, %v15195_v40 }
 0xa76   : > { %v10659_v41 = vmul.f32 -1.442695, %v15197_v37  ;;  %v3366_v43 = vpop.f32.mrb[102].mxu1 }
 0xa77   : > { %16029 = vpow2.f32 %v10643_v11  ;;  %v15199_v45 = vadd.f32 %v18383_v12, %v3366_v43  ;;  %v3368_v9 = vpop.f32.mrb[103].mxu1 }
 0xa78   : > { %16031 = vpow2.f32 %v10658_v16  ;;  %v15201_v15 = vadd.f32 %v18387_v3, %v3368_v9 }
 0xa79   : > { %v16024_v47 = vpop.eup %16023  ;;  %16033 = vpow2.f32 %v10659_v41  ;;  %v10644_v30 = vmul.f32 -1.442695, %v15199_v45 }
 0xa7a   : > { %v3652_v56 = vadd.f32 1.0, %v16024_v47  ;;  %v10660_v24 = vmul.f32 -1.442695, %v15201_v15  ;;  %v3372_v17 = vpop.f32.mrb[104].mxu1 }
 0xa7b   : > { %16035 = vpow2.f32 %v10644_v30  ;;  %v15203_v2 = vadd.f32 %v18383_v12, %v3372_v17  ;;  %v3374_v46 = vpop.f32.mrb[105].mxu1 }
 0xa7c   : > { %16037 = vrcp.f32 %v3652_v56  ;;  %v15205_v37 = vadd.f32 %v18387_v3, %v3374_v46 }
 0xa7d   : > { %v16026_v40 = vpop.eup %16025  ;;  %v10645_v32 = vmul.f32 -1.442695, %v15203_v2  ;;  %16039 = vpow2.f32 %v10660_v24 }
 0xa7e   : > { %v16028_v43 = vpop.eup %16027  ;;  %v3653_v11 = vadd.f32 1.0, %v16026_v40  ;;  %v10661_v16 = vmul.f32 -1.442695, %v15205_v37  ;;  %v3378_v9 = vpop.f32.mrb[106].mxu1 }
 0xa7f   : > { %16041 = vpow2.f32 %v10645_v32  ;;  %v15207_v41 = vadd.f32 %v18383_v12, %v3378_v9  ;;  %v3380_v45 = vpop.f32.mrb[107].mxu1  ;;  %v3764_v17 = vadd.f32 1.0, %v16028_v43 }
 0xa80   : > { %16043 = vrcp.f32 %v3653_v11  ;;  %v15209_v15 = vadd.f32 %v18387_v3, %v3380_v45  ;;  %v3510_v11 = vadd.f32 %v18848_v20, %v18403_v55 }
 0xa81   : > { %v16030_v47 = vpop.eup %16029  ;;  %v10646_v30 = vmul.f32 -1.442695, %v15207_v41  ;;  %16045 = vpow2.f32 %v10661_v16  ;;  %v3204_v16 = vadd.f32 %v18816_v25, %v18406_v52 }
 0xa82   : > { %v16032_v56 = vpop.eup %16031  ;;  %v3654_v39 = vadd.f32 1.0, %v16030_v47  ;;  %v10662_v46 = vmul.f32 -1.442695, %v15209_v15  ;;  %v3384_v2 = vpop.f32.mrb[108].mxu1 }
 0xa83   : > { %v16034_v1 = vpop.eup %16033  ;;  %16047 = vpow2.f32 %v10646_v30  ;;  %v15211_v24 = vadd.f32 %v18383_v12, %v3384_v2  ;;  %v3386_v37 = vpop.f32.mrb[109].mxu1  ;;  %v3765_v43 = vadd.f32 1.0, %v16032_v56  ;;  %v3515_v56 = vadd.f32 %v18846_v54, %v18403_v55 }
 0xa84   : > { %16049 = vrcp.f32 %v3654_v39  ;;  %v15213_v40 = vadd.f32 %v18387_v3, %v3386_v37  ;;  %v3766_v45 = vadd.f32 1.0, %v16034_v1 }
 0xa85   : > { %v16036_v32 = vpop.eup %16035  ;;  %16051 = vrcp.f32 %v3764_v17  ;;  %v10647_v9 = vmul.f32 -1.442695, %v15211_v24 }
 0xa86   : > { %v16038_v41 = vpop.eup %16037  ;;  %v3655_v15 = vadd.f32 1.0, %v16036_v32  ;;  %16053 = vpow2.f32 %v10662_v46  ;;  %v3390_v47 = vpop.f32.mrb[110].mxu1  ;;  %v10663_v39 = vmul.f32 -1.442695, %v15213_v40 }
 0xa87   : > { %v3812_v30 = vmul.f32 %v16038_v41, %v3510_v11  ;;  %16055 = vpow2.f32 %v10647_v9  ;;  %v15215_v2 = vadd.f32 %v18383_v12, %v3390_v47  ;;  %v3392_v37 = vpop.f32.mrb[111].mxu1  ;;  %v16040_v31 = vpop.eup %16039  ;;  %v3209_v11 = vadd.f32 %v18814_v14, %v18406_v52 }
 0xa88   : > { %16057 = vrcp.f32 %v3655_v15  ;;  %v15217_v20 = vadd.f32 %v18387_v3, %v3392_v37  ;;  %v3767_v46 = vadd.f32 1.0, %v16040_v31 }
 0xa89   : > { %v16042_v17 = vpop.eup %16041  ;;  %v18900_v24 = vadd.f32 %v3812_v30, %v3204_v16  ;;  %16059 = vrcp.f32 %v3765_v43  ;;  %v10648_v1 = vmul.f32 -1.442695, %v15215_v2  ;;  %v3520_v43 = vadd.f32 %v18852_v13, %v18403_v55 }
 0xa8a   : > { %v16044_v25 = vpop.eup %16043  ;;  %16061 = vrcp.f32 %v3766_v45  ;;  %v3656_v32 = vadd.f32 1.0, %v16042_v17  ;;  %v3396_v40 = vpop.f32.mrb[112].mxu1  ;;  %v10664_v54 = vmul.f32 -1.442695, %v15217_v20 }
 0xa8b   : > { %v3813_v9 = vmul.f32 %v16044_v25, %v3515_v56  ;;  %16063 = vpow2.f32 %v10663_v39  ;;  %v15219_v41 = vadd.f32 %v18383_v12, %v3396_v40  ;;  %v3398_v15 = vpop.f32.mrb[113].mxu1  ;;  %v16046_v47 = vpop.eup %16045  ;;  %v3214_v39 = vadd.f32 %v18820_v19, %v18406_v52 }
 0xa8c   : > { %16065 = vrcp.f32 %v3656_v32  ;;  %v3768_v25 = vadd.f32 1.0, %v16046_v47  ;;  %v15221_v13 = vadd.f32 %v18387_v3, %v3398_v15  ;;  %v3219_v47 = vadd.f32 %v18818_v58, %v18406_v52 }
 0xa8d   : > { %v16048_v16 = vpop.eup %16047  ;;  %v3829_v30 = vadd.f32 %v3813_v9, %v3209_v11  ;;  %16067 = vpow2.f32 %v10648_v1  ;;  %v10649_v2 = vmul.f32 -1.442695, %v15219_v41  ;;  %v3525_v1 = vadd.f32 %v18850_v42, %v18403_v55 }
 0xa8e   : > { %v16050_v31 = vpop.eup %16049  ;;  %16069 = vrcp.f32 %v3767_v46  ;;  %v3657_v45 = vadd.f32 1.0, %v16048_v16  ;;  %v3402_v37 = vpop.f32.mrb[114].mxu1  ;;  %v3530_v42 = vadd.f32 %v18856_v35, %v18403_v55  ;;  %v3224_v35 = vadd.f32 %v18824_v44, %v18406_v52 }
 0xa8f   : > { %v18907_v14 = vpop.eup %16051  ;;  %16071 = vtanh.f32 %v3829_v30  ;;  %v3814_v17 = vmul.f32 %v16050_v31, %v3520_v43  ;;  %v3404_v56 = vpop.f32.mrb[115].mxu1  ;;  %v15223_v40 = vadd.f32 %v18383_v12, %v3402_v37  ;;  %v10665_v30 = vmul.f32 -1.442695, %v15221_v13 }
 0xa90   : > { %v16054_v20 = vpop.eup %16053  ;;  %16073 = vpow2.f32 %v10664_v54 }
 0xa91   : > { %v16056_v32 = vpop.eup %16055  ;;  %v3830_v46 = vadd.f32 %v3814_v17, %v3214_v39  ;;  %16075 = vrcp.f32 %v3657_v45  ;;  %v3769_v9 = vadd.f32 1.0, %v16054_v20  ;;  %v10650_v37 = vmul.f32 -1.442695, %v15223_v40 }
 0xa92   : > { %v16058_v11 = vpop.eup %16057  ;;  %v3658_v41 = vadd.f32 1.0, %v16056_v32  ;;  %16077 = vpow2.f32 %v10649_v2  ;;  %v3408_v19 = vpop.f32.mrb[116].mxu1  ;;  %v15225_v2 = vadd.f32 %v18387_v3, %v3404_v56  ;;  %v3229_v17 = vadd.f32 %v18822_v34, %v18406_v52 }
 0xa93   : > { %v16060_v16 = vpop.eup %16059  ;;  %16079 = vtanh.f32 %v3830_v46  ;;  %v3815_v54 = vmul.f32 %v16058_v11, %v3525_v1  ;;  %v3410_v15 = vpop.f32.mrb[117].mxu1  ;;  %v15227_v58 = vadd.f32 %v18383_v12, %v3408_v19 }
 0xa94   : > { %v16062_v43 = vpop.eup %16061  ;;  %16081 = vrcp.f32 %v3768_v25  ;;  %v3535_v25 = vadd.f32 %v18854_v29, %v18403_v55  ;;  %v3861_v11 = vsub.f32 1.0, %v16060_v16  ;;  %v3893_v19 = vmul.f32 %v16060_v16, %v18461_v63 }
 0xa95   : > { %v16064_v31 = vpop.eup %16063  ;;  %v3831_v45 = vadd.f32 %v3815_v54, %v3219_v47  ;;  %16083 = vrcp.f32 %v3658_v41  ;;  %v10666_v41 = vmul.f32 -1.442695, %v15225_v2  ;;  %v10651_v44 = vmul.f32 -1.442695, %v15227_v58 }
 0xa96   : > { %v16066_v39 = vpop.eup %16065  ;;  %16085 = vrcp.f32 %v3769_v9  ;;  %v3414_v20 = vpop.f32.mrb[118].mxu1  ;;  %v3770_v56 = vadd.f32 1.0, %v16064_v31  ;;  %v3540_v31 = vadd.f32 %v18860_v51, %v18403_v55  ;;  %v3894_v16 = vmul.f32 %v16062_v43, %v18538_v33 }
 0xa97   : > { %v16068_v32 = vpop.eup %16067  ;;  %16087 = vtanh.f32 %v3831_v45  ;;  %v3816_v13 = vmul.f32 %v16066_v39, %v3530_v42  ;;  %v3416_v1 = vpop.f32.mrb[119].mxu1  ;;  %v15231_v54 = vadd.f32 %v18383_v12, %v3414_v20 }
 0xa98   : > { %v16070_v46 = vpop.eup %16069  ;;  %v3659_v40 = vadd.f32 1.0, %v16068_v32  ;;  %16089 = vpow2.f32 %v10665_v30  ;;  %v15229_v30 = vadd.f32 %v18387_v3, %v3410_v15  ;;  %v3862_v32 = vsub.f32 1.0, %v16062_v43 }
 0xa99   : > { %v16072_v34 = vpop.eup %16071  ;;  %v3832_v9 = vadd.f32 %v3816_v13, %v3224_v35  ;;  %16091 = vpow2.f32 %v10650_v37  ;;  %v15233_v13 = vadd.f32 %v18387_v3, %v3416_v1  ;;  %v3863_v1 = vsub.f32 1.0, %v16070_v46 }
 0xa9a   : > { %v16074_v47 = vpop.eup %16073  ;;  %16093 = vrcp.f32 %v3659_v40  ;;  %v3420_v29 = vpop.f32.mrb[120].mxu1  ;;  %v3877_v45 = vmul.f32 %v16072_v34, %v3861_v11  ;;  %v10652_v11 = vmul.f32 -1.442695, %v15231_v54 }
 0xa9b   : > { %v16076_v42 = vpop.eup %16075  ;;  %16095 = vtanh.f32 %v3832_v9  ;;  %v3422_v39 = vpop.f32.mrb[121].mxu1  ;;  %v3771_v20 = vadd.f32 1.0, %v16074_v47  ;;  %v15235_v33 = vadd.f32 %v18383_v12, %v3420_v29  ;;  %v3545_v29 = vadd.f32 %v18858_v49, %v18403_v55 }
 0xa9c   : > { %v16078_v37 = vpop.eup %16077  ;;  %v3817_v2 = vmul.f32 %v16076_v42, %v3535_v25  ;;  %16097 = vrcp.f32 %v3770_v56  ;;  %v18932_v63 = vadd.f32 %v3893_v19, %v3877_v45  ;;  %v3234_v25 = vadd.f32 %v18828_v7, %v18406_v52 }
 0xa9d   : > { %v16080_v58 = vpop.eup %16079  ;;  %v3660_v35 = vadd.f32 1.0, %v16078_v37  ;;  %16099 = vpow2.f32 %v10666_v41  ;;  %v10667_v56 = vmul.f32 -1.442695, %v15229_v30  ;;  %v3895_v7 = vmul.f32 %v16070_v46, %v18553_v26 }
 0xa9e   : > { %v16082_v40 = vpop.eup %16081  ;;  %v3833_v51 = vadd.f32 %v3817_v2, %v3229_v17  ;;  %16101 = vpow2.f32 %v10651_v44  ;;  %v3426_v15 = vpop.f32.mrb[122].mxu1  ;;  %v3878_v34 = vmul.f32 %v16080_v58, %v3862_v32  ;;  %v10668_v44 = vmul.f32 -1.442695, %v15233_v13 }
 0xa9f   : > { %v16084_v9 = vpop.eup %16083  ;;  %16103 = vrcp.f32 %v3660_v35  ;;  %v3428_v43 = vpop.f32.mrb[123].mxu1  ;;  %v10653_v37 = vmul.f32 -1.442695, %v15235_v33  ;;  %v3864_v2 = vsub.f32 1.0, %v16082_v40  ;;  %v3239_v26 = vadd.f32 %v18826_v18, %v18406_v52 }
 0xaa0   : > { %v16086_v19 = vpop.eup %16085  ;;  %16105 = vtanh.f32 %v3833_v51  ;;  %v3818_v41 = vmul.f32 %v16084_v9, %v3540_v31  ;;  %v18939_v47 = vadd.f32 %v3894_v16, %v3878_v34  ;;  %v15239_v49 = vadd.f32 %v18383_v12, %v3426_v15 }
 0xaa1   : > { %v16088_v17 = vpop.eup %16087  ;;  %16107 = vrcp.f32 %v3771_v20  ;;  %v15237_v20 = vadd.f32 %v18387_v3, %v3422_v39  ;;  %v3550_v18 = vadd.f32 %v18864_v60, %v18403_v55 }
 0xaa2   : > { %v16090_v54 = vpop.eup %16089  ;;  %v3834_v45 = vadd.f32 %v3818_v41, %v3234_v25  ;;  %16109 = vpow2.f32 %v10652_v11  ;;  %v3432_v42 = vpop.f32.mrb[124].mxu1  ;;  %v3879_v32 = vmul.f32 %v16088_v17, %v3863_v1  ;;  %v3896_v25 = vmul.f32 %v16082_v40, %v18567_v50 }
 0xaa3   : > { %v16092_v30 = vpop.eup %16091  ;;  %16111 = vpow2.f32 %v10667_v56  ;;  %v18944_v31 = vpop.f32.mrb[125].mxu1  ;;  %v3772_v11 = vadd.f32 1.0, %v16090_v54  ;;  %v10669_v1 = vmul.f32 -1.442695, %v15237_v20  ;;  %v10654_v54 = vmul.f32 -1.442695, %v15239_v49 }
 0xaa4   : > { %v16094_v16 = vpop.eup %16093  ;;  %16113 = vtanh.f32 %v3834_v45  ;;  %v3661_v58 = vadd.f32 1.0, %v16092_v30  ;;  %v18947_v35 = vadd.f32 %v3895_v7, %v3879_v32  ;;  %v3865_v45 = vsub.f32 1.0, %v16086_v19 }
 0xaa5   : > { %v16096_v13 = vpop.eup %16095  ;;  %v3819_v46 = vmul.f32 %v16094_v16, %v3545_v29  ;;  %16115 = vpow2.f32 %v10668_v44  ;;  %v3244_v40 = vadd.f32 %v18832_v53, %v18406_v52  ;;  %v15241_v7 = vadd.f32 %v18387_v3, %v3428_v43 }
 0xaa6   : > { %v16098_v51 = vpop.eup %16097  ;;  %16117 = vrcp.f32 %v3661_v58  ;;  %v3438_v34 = vpop.f32.mrb[126].mxu1  ;;  %v3880_v9 = vmul.f32 %v16096_v13, %v3864_v2  ;;  %v15243_v60 = vadd.f32 %v18383_v12, %v3432_v42  ;;  %v3897_v29 = vmul.f32 %v16086_v19, %v18570_v62 }
 0xaa7   : > { %v16100_v56 = vpop.eup %16099  ;;  %v3835_v33 = vadd.f32 %v3819_v46, %v3239_v26  ;;  %16119 = vpow2.f32 %v10653_v37  ;;  %v18953_v39 = vpop.f32.mrb[127].mxu1  ;;  %v3866_v16 = vsub.f32 1.0, %v16098_v51  ;;  %v3249_v43 = vadd.f32 %v18830_v59, %v18406_v52 }
 0xaa8   : > { %v16102_v41 = vpop.eup %16101  ;;  %16121 = vtanh.f32 %v18900_v24  ;;  %v18958_v15 = vadd.f32 %v3896_v25, %v3880_v9  ;;  %v3773_v20 = vadd.f32 1.0, %v16100_v56  ;;  %v3555_v42 = vadd.f32 %v18862_v48, %v18403_v55 }
 0xaa9   : > { %v16104_v17 = vpop.eup %16103  ;;  %16123 = vtanh.f32 %v3835_v33  ;;  %v3662_v44 = vadd.f32 1.0, %v16102_v41  ;;  %v10670_v46 = vmul.f32 -1.442695, %v15241_v7  ;;  %v10655_v19 = vmul.f32 -1.442695, %v15243_v60 }
 0xaaa   : > { %v16106_v50 = vpop.eup %16105  ;;  %v3820_v32 = vmul.f32 %v16104_v17, %v3550_v18  ;;  %16125 = vrcp.f32 %v3772_v11  ;;  %v15247_v49 = vadd.f32 %v18383_v12, %v3438_v34  ;;  %v3898_v9 = vmul.f32 %v16098_v51, %v18574_v23 }
 0xaab   : > { %v16108_v30 = vpop.eup %16107  ;;  %16127 = vrcp.f32 %v3662_v44  ;;  %v3881_v24 = vmul.f32 %v16106_v50, %v3865_v45  ;;  %v3560_v56 = vadd.f32 %v18868_v4, %v18403_v55  ;;  %v3860_v33 = vsub.f32 1.0, %v18907_v14 }
 0xaac   : > { %v16110_v37 = vpop.eup %16109  ;;  %v3836_v2 = vadd.f32 %v3820_v32, %v3244_v40  ;;  %16129 = vpow2.f32 %v10669_v1  ;;  %v3892_v59 = vmul.f32 %v18907_v14, %v18505_v5  ;;  %v15245_v18 = vadd.f32 %v18387_v3, %v18944_v31 }
 0xaad   : > { %v16112_v58 = vpop.eup %16111  ;;  %v3663_v13 = vadd.f32 1.0, %v16110_v37  ;;  %16131 = vpow2.f32 %v10654_v54  ;;  %v18965_v53 = vadd.f32 %v3897_v29, %v3881_v24  ;;  %v3867_v17 = vsub.f32 1.0, %v16108_v30 }
 0xaae   : > { %v16114_v26 = vpop.eup %16113  ;;  %16133 = vtanh.f32 %v3836_v2  ;;  %v3774_v23 = vadd.f32 1.0, %v16112_v58  ;;  %v10656_v45 = vmul.f32 -1.442695, %v15247_v49  ;;  %v3899_v40 = vmul.f32 %v16108_v30, %v18585_v0 }
 0xaaf   : > { %v16116_v62 = vpop.eup %16115  ;;  %v3882_v11 = vmul.f32 %v16114_v26, %v3866_v16  ;;  %16135 = vrcp.f32 %v3663_v13  ;;  %v10671_v7 = vmul.f32 -1.442695, %v15245_v18  ;;  %v15249_v60 = vadd.f32 %v18387_v3, %v18953_v39 }
 0xab0   : > { %v16118_v25 = vpop.eup %16117  ;;  %16137 = vrcp.f32 %v3773_v20  ;;  %v3775_v5 = vadd.f32 1.0, %v16116_v62  ;;  %v3254_v29 = vadd.f32 %v18836_v6, %v18406_v52  ;;  %v3565_v58 = vadd.f32 %v18866_v8, %v18403_v55 }
 0xab1   : > { %v16120_v48 = vpop.eup %16119  ;;  %v3821_v41 = vmul.f32 %v16118_v25, %v3555_v42  ;;  %v18980_v34 = vadd.f32 %v3898_v9, %v3882_v11  ;;  %16139 = vpow2.f32 %v10670_v46  ;;  %v10672_v6 = vmul.f32 -1.442695, %v15249_v60 }
 0xab2   : > { %v16122_v1 = vpop.eup %16121  ;;  %v3664_v51 = vadd.f32 1.0, %v16120_v48  ;;  %16141 = vpow2.f32 %v10655_v19  ;;  %v3259_v62 = vadd.f32 %v18834_v28, %v18406_v52  ;;  %v3570_v9 = vadd.f32 %v18872_v22, %v18403_v55 }
 0xab3   : > { %v16124_v4 = vpop.eup %16123  ;;  %v3837_v44 = vadd.f32 %v3821_v41, %v3249_v43  ;;  %v3876_v54 = vmul.f32 %v16122_v1, %v3860_v33 }
 0xab4   : > { %v16126_v50 = vpop.eup %16125  ;;  %16143 = vrcp.f32 %v3664_v51  ;;  %v3883_v14 = vmul.f32 %v16124_v4, %v3867_v17 }
 0xab5   : > { %v16128_v32 = vpop.eup %16127  ;;  %16145 = vtanh.f32 %v3837_v44  ;;  %v18983_v31 = vadd.f32 %v3892_v59, %v3876_v54  ;;  %v3868_v0 = vsub.f32 1.0, %v16126_v50  ;;  %v3900_v26 = vmul.f32 %v16126_v50, %v18589_v61 }
 0xab6   : > { %v16130_v24 = vpop.eup %16129  ;;  %v3822_v37 = vmul.f32 %v16128_v32, %v3560_v56  ;;  %16147 = vrcp.f32 %v3774_v23  ;;  %v18989_v2 = vadd.f32 %v3899_v40, %v3883_v14  ;;  %v3264_v59 = vadd.f32 %v18840_v38, %v18406_v52 }
 0xab7   : > { %v16132_v16 = vpop.eup %16131  ;;  %12471 = vmatprep.mubr.f32.mxu0 %v18983_v31  ;;  %16149 = vpow2.f32 %v10656_v45  ;;  %v3776_v42 = vadd.f32 1.0, %v16130_v24  ;;  %v3575_v50 = vadd.f32 %v18870_v27, %v18403_v55  ;;  %v3269_v40 = vadd.f32 %v18838_v10, %v18406_v52  ;;  %v21350_v10 = vld [vmem:[#allocation42_spill] sm:$0xff] }
 0xab8   : > { %v16134_v30 = vpop.eup %16133  ;;  %v3838_v20 = vadd.f32 %v3822_v37, %v3254_v29  ;;  %16151 = vrcp.f32 %v3775_v5  ;;  %v3665_v39 = vadd.f32 1.0, %v16132_v16  ;;  %12472 = vmatmul.mubr.f32.vlgmr.msra.gmra.mrb[112].mxu0 %v18932_v63 }
 0xab9   : > { %12474 = vmatprep.mubr.f32.mxu0 %v18939_v47  ;;  %16153 = vpow2.f32 %v10671_v7  ;;  %v3884_v13 = vmul.f32 %v16134_v30, %v3868_v0  ;;  %v16136_v43 = vpop.eup %16135 }
 0xaba   : > { %16155 = vtanh.f32 %v3838_v20  ;;  %v16138_v46 = vpop.eup %16137  ;;  %v3823_v8 = vmul.f32 %v16136_v43, %v3565_v58  ;;  %v21351_v20 = vld [vmem:[#allocation47_spill] sm:$0xff] }
 0xabb   : > { %16157 = vrcp.f32 %v3665_v39  ;;  %v18999_v19 = vadd.f32 %v3900_v26, %v3884_v13  ;;  %v16140_v49 = vpop.eup %16139  ;;  %v3869_v33 = vsub.f32 1.0, %v16138_v46  ;;  %v3901_v22 = vmul.f32 %v16138_v46, %v18595_v21  ;;  %v21353_v46 = vld [vmem:[#allocation48_spill] sm:$0xff] }
 0xabc   : > { %12475 = vmatmul.mubr.f32.gmra.mrb[114].mxu0 %v18947_v35  ;;  %v16142_v11 = vpop.eup %16141  ;;  %v3839_v25 = vadd.f32 %v3823_v8, %v3259_v62  ;;  %16159 = vpow2.f32 %v10672_v6  ;;  %v3777_v17 = vadd.f32 1.0, %v16140_v49  ;;  %v3274_v39 = vadd.f32 %v21351_v20, %v18406_v52  ;;  %v21354_v49 = vld [vmem:[#allocation97_spill] sm:$0xff] }
 0xabd   : > { %12477 = vmatprep.mubr.f32.mxu0 %v18958_v15  ;;  %16161 = vrcp.f32 %v3776_v42  ;;  %v3666_v56 = vadd.f32 1.0, %v16142_v11  ;;  %v3585_v62 = vadd.f32 %v21353_v46, %v18403_v55 }
 0xabe   : > { %v16144_v61 = vpop.eup %16143  ;;  %16163 = vtanh.f32 %v3839_v25 }
 0xabf   : > { %v16146_v28 = vpop.eup %16145  ;;  %v3824_v48 = vmul.f32 %v16144_v61, %v3570_v9  ;;  %16165 = vrcp.f32 %v3666_v56  ;;  %v21355_v61 = vld [vmem:[#allocation46_spill] sm:$0xff] }
 0xac0   : > { %v16148_v41 = vpop.eup %16147  ;;  %12478 = vmatmul.mubr.f32.gmra.mrb[116].mxu0 %v18965_v53  ;;  %v3885_v18 = vmul.f32 %v16146_v28, %v3869_v33  ;;  %v3279_v56 = vadd.f32 %v21355_v61, %v18406_v52  ;;  %v4264_v61 = vld [vmem:[#allocation11 + $0x178] sm:$0xff] }
 0xac1   : > { %v16150_v1 = vpop.eup %16149  ;;  %v3840_v23 = vadd.f32 %v3824_v48, %v3264_v59  ;;  %12480 = vmatprep.mubr.f32.mxu0 %v18980_v34  ;;  %v3870_v38 = vsub.f32 1.0, %v16148_v41  ;;  %v3902_v14 = vmul.f32 %v16148_v41, %v18602_v57  ;;  %v3580_v57 = vadd.f32 %v18876_v36, %v18403_v55 }
 0xac2   : > { %v16152_v51 = vpop.eup %16151  ;;  %v3667_v4 = vadd.f32 1.0, %v16150_v1  ;;  %v19010_v44 = vadd.f32 %v3901_v22, %v3885_v18  ;;  %v21357_v22 = vld [vmem:[#allocation43_spill] sm:$0xff] }
 0xac3   : > { %v16154_v54 = vpop.eup %16153  ;;  %16167 = vtanh.f32 %v3840_v23  ;;  %v3871_v37 = vsub.f32 1.0, %v16152_v51  ;;  %v3903_v30 = vmul.f32 %v16152_v51, %v21350_v10 }
 0xac4   : > { %v16156_v45 = vpop.eup %16155  ;;  %12481 = vmatmul.mubr.f32.gmra.mrb[118].mxu0 %v18989_v2  ;;  %16169 = vrcp.f32 %v3667_v4  ;;  %v3778_v27 = vadd.f32 1.0, %v16154_v54 }
 0xac5   : > { %v16158_v21 = vpop.eup %16157  ;;  %12483 = vmatprep.mubr.f32.mxu0 %v18999_v19  ;;  %v3886_v5 = vmul.f32 %v16156_v45, %v3870_v38  ;;  %16171 = vrcp.f32 %v3777_v17  ;;  %v21359_v45 = vld [vmem:[#allocation44_spill] sm:$0xff] }
 0xac6   : > { %v3825_v32 = vmul.f32 %v16158_v21, %v3575_v50  ;;  %v16160_v7 = vpop.eup %16159 }
 0xac7   : > { %v19019_v60 = vadd.f32 %v3902_v14, %v3886_v5  ;;  %v16162_v24 = vpop.eup %16161  ;;  %v3779_v6 = vadd.f32 1.0, %v16160_v7 }
 0xac8   : > { %v3841_v29 = vadd.f32 %v3825_v32, %v3269_v40  ;;  %12484 = vmatmul.mubr.f32.gmra.mrb[120].mxu0 %v19010_v44  ;;  %v16164_v16 = vpop.eup %16163  ;;  %v3872_v43 = vsub.f32 1.0, %v16162_v24  ;;  %v3904_v11 = vmul.f32 %v16162_v24, %v21354_v49  ;;  %v21361_v32 = vld [vmem:[#allocation45_spill] sm:$0xff] }
 0xac9   : > { %12486 = vmatprep.mubr.f32.mxu0 %v19019_v60  ;;  %v3887_v0 = vmul.f32 %v16164_v16, %v3871_v37  ;;  %v16166_v58 = vpop.eup %16165  ;;  %v4250_v37 = vld [vmem:[#allocation11 + $0x108] sm:$0xff]  ;;  %v4251_v16 = vld [vmem:[#allocation11 + $0x110] sm:$0xff]  ;;  %v4261_v49 = vld [vmem:[#allocation11 + $0x160] sm:$0xff] }
 0xaca   : > { %16173 = vtanh.f32 %v3841_v29  ;;  %v3826_v13 = vmul.f32 %v16166_v58, %v3580_v57  ;;  %v16839_v29 = vld [vmem:[%s17876_s22] sm:$0xff]  ;;  %v4254_v58 = vld [vmem:[#allocation11 + $0x128] sm:$0xff] }
 0xacb   : > { %16175 = vrcp.f32 %v3778_v27  ;;  %v19028_v26 = vadd.f32 %v3903_v30, %v3887_v0  ;;  %v4249_v27 = vld [vmem:[#allocation11 + $0x100] sm:$0xff]  ;;  %v4252_v0 = vld [vmem:[#allocation11 + $0x118] sm:$0xff] }
 0xacc   : > { %v3842_v8 = vadd.f32 %v3826_v13, %v3274_v39  ;;  %16177 = vrcp.f32 %v3779_v6  ;;  %v14138_v57 = vpack.c.bf16 %v4250_v37, %v4249_v27  ;;  %v14142_v10 = vpack.c.bf16 %v4252_v0, %v4251_v16  ;;  %v4253_v30 = vld [vmem:[#allocation11 + $0x120] sm:$0xff]  ;;  %v4255_v39 = vld [vmem:[#allocation11 + $0x130] sm:$0xff]  ;;  %v4256_v6 = vld [vmem:[#allocation11 + $0x138] sm:$0xff] }
 0xacd   : > { %21352 = vst [vmem:[#allocation42_spill] sm:$0xff] %v19028_v26  ;;  %v16168_v42 = vpop.eup %16167  ;;  %12487 = vmatmul.mubr.f32.gmra.mrb[122].mxu0 %v19028_v26  ;;  %v14146_v20 = vpack.c.bf16 %v4254_v58, %v4253_v30  ;;  %v14150_v13 = vpack.c.bf16 %v4256_v6, %v4255_v39 }
 0xace   : > { %v3888_v36 = vmul.f32 %v16168_v42, %v3872_v43  ;;  %v16170_v9 = vpop.eup %16169  ;;  %16179 = vtanh.f32 %v3842_v8  ;;  %14139 = vmatprep.subr.bf16.mxu1 %v14138_v57  ;;  %v4257_v43 = vld [vmem:[#allocation11 + $0x140] sm:$0xff]  ;;  %v4258_v42 = vld [vmem:[#allocation11 + $0x148] sm:$0xff]  ;;  %v4260_v8 = vld [vmem:[#allocation11 + $0x158] sm:$0xff] }
 0xacf   : > { %v16172_v25 = vpop.eup %16171  ;;  %v3827_v33 = vmul.f32 %v16170_v9, %v3585_v62  ;;  %14141 = vmatpush3.bf16.msra.mxu1 %v14138_v57  ;;  %v14154_v46 = vpack.c.bf16 %v4258_v42, %v4257_v43  ;;  %v4259_v62 = vld [vmem:[#allocation11 + $0x150] sm:$0xff] }
 0xad0   : > { %v19036_v28 = vadd.f32 %v3904_v11, %v3888_v36  ;;  %v3873_v48 = vsub.f32 1.0, %v16172_v25  ;;  %v3905_v1 = vmul.f32 %v16172_v25, %v21357_v22  ;;  %14143 = vmatprep.subr.bf16.mxu1 %v14142_v10  ;;  %v14158_v36 = vpack.c.bf16 %v4260_v8, %v4259_v62  ;;  %v4262_v11 = vld [vmem:[#allocation11 + $0x168] sm:$0xff]  ;;  %v4263_v25 = vld [vmem:[#allocation11 + $0x170] sm:$0xff] }
 0xad1   : > { %v3843_v59 = vadd.f32 %v3827_v33, %v3279_v56  ;;  %v14162_v9 = vpack.c.bf16 %v4262_v11, %v4261_v49  ;;  %v14166_v56 = vpack.c.bf16 %v4264_v61, %v4263_v25  ;;  %v21363_v33 = vld [vmem:[#allocation51_spill] sm:$0xff] }
 0xad2   : > { %21356 = vst [vmem:[#allocation47_spill] sm:$0xff] %v19036_v28  ;;  %12489 = vmatprep.mubr.f32.mxu0 %v19036_v28 }
 0xad3   : > { %16181 = vtanh.f32 %v3843_v59  ;;  %14145 = vmatpush3.bf16.msra.mxu1 %v14142_v10  ;;  %v19053_v59 = vld [vmem:[#allocation20 + $0x3] ss:$0 sm:$0xff] }
 0xad4   : > { %v16174_v41 = vpop.eup %16173  ;;  %14147 = vmatprep.subr.bf16.mxu1 %v14146_v20 }
 0xad5   : > { %v3889_v18 = vmul.f32 %v16174_v41, %v3873_v48  ;;  %v16176_v23 = vpop.eup %16175 }
 0xad6   : > { %v16178_v17 = vpop.eup %16177  ;;  %v3874_v4 = vsub.f32 1.0, %v16176_v23  ;;  %v3906_v50 = vmul.f32 %v16176_v23, %v21359_v45 }
 0xad7   : > { %v19040_v51 = vadd.f32 %v3905_v1, %v3889_v18  ;;  %v3875_v5 = vsub.f32 1.0, %v16178_v17  ;;  %v3907_v7 = vmul.f32 %v16178_v17, %v21361_v32  ;;  %14149 = vmatpush3.bf16.msra.mxu1 %v14146_v20 }
 0xad8   : > { %v16180_v54 = vpop.eup %16179  ;;  %14151 = vmatprep.subr.bf16.mxu1 %v14150_v13 }
 0xad9   : > { %21358 = vst [vmem:[#allocation48_spill] sm:$0xff] %v19040_v51  ;;  %12490 = vmatmul.mubr.f32.gmra.mrb[124].mxu0 %v19040_v51  ;;  %v3890_v38 = vmul.f32 %v16180_v54, %v3874_v4 }
 0xadb   : > { %v19044_v21 = vadd.f32 %v3906_v50, %v3890_v38  ;;  %14153 = vmatpush3.bf16.msra.mxu1 %v14150_v13 }
 0xadc   : > { %14155 = vmatprep.subr.bf16.mxu1 %v14154_v46 }
 0xadd   : > { %21360 = vst [vmem:[#allocation97_spill] sm:$0xff] %v19044_v21  ;;  %v16182_v14 = vpop.eup %16181  ;;  %12492 = vmatprep.mubr.f32.mxu0 %v19044_v21 }
 0xade   : > { %v3891_v40 = vmul.f32 %v16182_v14, %v3875_v5 }
 0xadf   : > { %14157 = vmatpush3.bf16.msra.mxu1 %v14154_v46 }
 0xae0   : > { %v19048_v24 = vadd.f32 %v3907_v7, %v3891_v40  ;;  %14159 = vmatprep.subr.bf16.mxu1 %v14158_v36 }
 0xae2   : > { %21362 = vst [vmem:[#allocation46_spill] sm:$0xff] %v19048_v24  ;;  %12493 = vmatmul.mubr.f32.gmra.mrb[126].mxu0 %v19048_v24 }
 0xae3   : > { %12527 = vmatprep.mubr.f32.mxu0 %v16839_v29  ;;  %14161 = vmatpush3.bf16.msra.mxu1 %v14158_v36 }
 0xae4   : > { %14163 = vmatprep.subr.bf16.mxu1 %v14162_v9 }
 0xae7   : > { %14165 = vmatpush3.bf16.msra.mxu1 %v14162_v9 }
 0xae8   : > { %14167 = vmatprep.subr.bf16.mxu1 %v14166_v56 }
 0xaeb   : > { %14169 = vmatpush3.bf16.msra.mxu1 %v14166_v56 }
 0xaec   : > { %14203 = vmatprep.subr.bf16.mxu1 %v21363_v33 }
 0xb8b   : > { %v12473_v48 = vpop.f32.mrb[112].mxu0 }
 0xb8c   : > { %v4014_v41 = vadd.f32 %v12473_v48, %v19053_v59  ;;  %v4008_v18 = vpop.f32.mrb[113].mxu0 }
 0xb8d   : > { %v4009_v22 = vadd.f32 %v4008_v18, %v19053_v59 }
 0xb8e   : > { %v4088_v1 = vmax.f32 %v4014_v41, 0.0 }
 0xb8f   : > { %v4087_v23 = vmax.f32 %v4009_v22, 0.0  ;;  %v12476_v17 = vpop.f32.mrb[114].mxu0 }
 0xb90   : > { %v4024_v4 = vadd.f32 %v12476_v17, %v19053_v59  ;;  %v4018_v54 = vpop.f32.mrb[115].mxu0 }
 0xb91   : > { %v14106_v38 = vpack.c.bf16 %v4088_v1, %v4087_v23  ;;  %v4019_v45 = vadd.f32 %v4018_v54, %v19053_v59 }
 0xb92   : > { %v4090_v50 = vmax.f32 %v4024_v4, 0.0 }
 0xb93   : > { %14107 = vmatprep.subr.bf16.mxu0 %v14106_v38  ;;  %v4089_v5 = vmax.f32 %v4019_v45, 0.0  ;;  %v12479_v14 = vpop.f32.mrb[116].mxu0 }
 0xb94   : > { %14109 = vmatpush3.bf16.msra.mxu0 %v14106_v38  ;;  %v4034_v40 = vadd.f32 %v12479_v14, %v19053_v59  ;;  %v4028_v32 = vpop.f32.mrb[117].mxu0 }
 0xb95   : > { %v14110_v7 = vpack.c.bf16 %v4090_v50, %v4089_v5  ;;  %v4029_v29 = vadd.f32 %v4028_v32, %v19053_v59  ;;  %v16840_v32 = vld [vmem:[%s17876_s22 + $0x8] sm:$0xff] }
 0xb96   : > { %v4092_v27 = vmax.f32 %v4034_v40, 0.0  ;;  %v21364_v40 = vld [vmem:[#allocation49_spill] sm:$0xff] }
 0xb97   : > { %14111 = vmatprep.subr.bf16.mxu0 %v14110_v7  ;;  %v4091_v37 = vmax.f32 %v4029_v29, 0.0  ;;  %v12482_v16 = vpop.f32.mrb[118].mxu0  ;;  %v21365_v29 = vld [vmem:[#allocation50_spill] sm:$0xff] }
 0xb98   : > { %14113 = vmatpush3.bf16.msra.mxu0 %v14110_v7  ;;  %v4044_v57 = vadd.f32 %v12482_v16, %v19053_v59  ;;  %v4038_v0 = vpop.f32.mrb[119].mxu0  ;;  %v16841_v7 = vld [vmem:[%s17876_s22 + $0x10] sm:$0xff]  ;;  %v21367_v16 = vld [vmem:[#allocation53_spill] sm:$0xff] }
 0xb99   : > { %v14114_v10 = vpack.c.bf16 %v4092_v27, %v4091_v37  ;;  %v4039_v30 = vadd.f32 %v4038_v0, %v19053_v59  ;;  %v21366_v27 = vld [vmem:[#allocation52_spill] sm:$0xff]  ;;  %v16843_v37 = vld [vmem:[%s17876_s22 + $0x20] sm:$0xff]  ;;  %v16844_v0 = vld [vmem:[%s17876_s22 + $0x28] sm:$0xff] }
 0xb9a   : > { %v4094_v58 = vmax.f32 %v4044_v57, 0.0  ;;  %v21368_v57 = vld [vmem:[#allocation54_spill] sm:$0xff] }
 0xb9b   : > { %14115 = vmatprep.subr.bf16.mxu0 %v14114_v10  ;;  %v4093_v20 = vmax.f32 %v4039_v30, 0.0  ;;  %v12485_v39 = vpop.f32.mrb[120].mxu0  ;;  %v21369_v30 = vld [vmem:[#allocation55_spill] sm:$0xff] }
 0xb9c   : > { %14117 = vmatpush3.bf16.msra.mxu0 %v14114_v10  ;;  %v4054_v6 = vadd.f32 %v12485_v39, %v19053_v59  ;;  %v4048_v13 = vpop.f32.mrb[121].mxu0  ;;  %v16845_v10 = vld [vmem:[%s17876_s22 + $0x30] sm:$0xff]  ;;  %v16847_v39 = vld [vmem:[%s17876_s22 + $0x40] sm:$0xff] }
 0xb9d   : > { %v14118_v43 = vpack.c.bf16 %v4094_v58, %v4093_v20  ;;  %v4049_v42 = vadd.f32 %v4048_v13, %v19053_v59  ;;  %v21370_v58 = vld [vmem:[#allocation56_spill] sm:$0xff]  ;;  %v21372_v13 = vld [vmem:[#allocation58_spill] sm:$0xff] }
 0xb9e   : > { %v4096_v46 = vmax.f32 %v4054_v6, 0.0  ;;  %v16846_v20 = vld [vmem:[%s17876_s22 + $0x38] sm:$0xff]  ;;  %v21371_v6 = vld [vmem:[#allocation57_spill] sm:$0xff] }
 0xb9f   : > { %14119 = vmatprep.subr.bf16.mxu0 %v14118_v43  ;;  %v4095_v62 = vmax.f32 %v4049_v42, 0.0  ;;  %v16849_v42 = vld [vmem:[%s17876_s22 + $0x50] sm:$0xff] }
 0xba0   : > { %14121 = vmatpush3.bf16.msra.mxu0 %v14118_v43  ;;  %v12488_v36 = vpop.f32.mrb[122].mxu0  ;;  %v16848_v43 = vld [vmem:[%s17876_s22 + $0x48] sm:$0xff] }
 0xba1   : > { %v14122_v8 = vpack.c.bf16 %v4096_v46, %v4095_v62  ;;  %v4064_v49 = vadd.f32 %v12488_v36, %v19053_v59  ;;  %v4058_v11 = vpop.f32.mrb[123].mxu0  ;;  %v21373_v46 = vld [vmem:[#allocation59_spill] sm:$0xff]  ;;  %v21374_v62 = vld [vmem:[#allocation60_spill] sm:$0xff]  ;;  %v16851_v36 = vld [vmem:[%s17876_s22 + $0x60] sm:$0xff] }
 0xba2   : > { %v4059_v9 = vadd.f32 %v4058_v11, %v19053_v59  ;;  %v21376_v11 = vld [vmem:[#allocation62_spill] sm:$0xff] }
 0xba3   : > { %14123 = vmatprep.subr.bf16.mxu0 %v14122_v8  ;;  %v4098_v25 = vmax.f32 %v4064_v49, 0.0  ;;  %v21375_v49 = vld [vmem:[#allocation61_spill] sm:$0xff] }
 0xba4   : > { %14125 = vmatpush3.bf16.msra.mxu0 %v14122_v8  ;;  %v4097_v61 = vmax.f32 %v4059_v9, 0.0  ;;  %v16850_v8 = vld [vmem:[%s17876_s22 + $0x58] sm:$0xff]  ;;  %v16852_v9 = vld [vmem:[%s17876_s22 + $0x68] sm:$0xff] }
 0xba6   : > { %v14126_v56 = vpack.c.bf16 %v4098_v25, %v4097_v61  ;;  %v16853_v25 = vld [vmem:[%s17876_s22 + $0x70] sm:$0xff] }
 0xba7   : > { %v21377_v61 = vld [vmem:[#allocation63_spill] sm:$0xff] }
 0xba8   : > { %14127 = vmatprep.subr.bf16.mxu0 %v14126_v56 }
 0xba9   : > { %14129 = vmatpush3.bf16.msra.mxu0 %v14126_v56  ;;  %v21378_v56 = vld [vmem:[#allocation70_spill] sm:$0xff] }
 0xbac   : > { %v12491_v48 = vpop.f32.mrb[124].mxu0 }
 0xbad   : > { %v4074_v41 = vadd.f32 %v12491_v48, %v19053_v59  ;;  %v4068_v18 = vpop.f32.mrb[125].mxu0  ;;  %v16854_v48 = vld [vmem:[%s17876_s22 + $0x78] sm:$0xff] }
 0xbae   : > { %v4069_v22 = vadd.f32 %v4068_v18, %v19053_v59  ;;  %v21380_v18 = vmov 0.0  }
 0xbaf   : > { %v4100_v1 = vmax.f32 %v4074_v41, 0.0  ;;  %v21379_v41 = vld [vmem:[#allocation71_spill] sm:$0xff] }
 0xbb0   : > { %v4099_v23 = vmax.f32 %v4069_v22, 0.0  ;;  %v21381_v22 = vld [vmem:[#allocation74_spill] sm:$0xff] }
 0xbb2   : > { %v14130_v17 = vpack.c.bf16 %v4100_v1, %v4099_v23 }
 0xbb4   : > { %14131 = vmatprep.subr.bf16.mxu0 %v14130_v17 }
 0xbb5   : > { %14133 = vmatpush3.bf16.msra.mxu0 %v14130_v17  ;;  %v12494_v4 = vpop.f32.mrb[126].mxu0 }
 0xbb6   : > { %v4084_v54 = vadd.f32 %v12494_v4, %v19053_v59  ;;  %v4078_v38 = vpop.f32.mrb[127].mxu0 }
 0xbb7   : > { %v4079_v45 = vadd.f32 %v4078_v38, %v19053_v59  ;;  %v16842_v59 = vld [vmem:[%s17876_s22 + $0x18] sm:$0xff] }
 0xbb8   : > { %v4102_v50 = vmax.f32 %v4084_v54, 0.0  ;;  %v21382_v54 = vld [vmem:[#allocation64_spill] sm:$0xff] }
 0xbb9   : > { %v4101_v5 = vmax.f32 %v4079_v45, 0.0 }
 0xbbb   : > { %v14134_v14 = vpack.c.bf16 %v4102_v50, %v4101_v5  ;;  %v21383_v50 = vld [vmem:[#allocation65_spill] sm:$0xff] }
 0xbbd   : > { %14135 = vmatprep.subr.bf16.mxu0 %v14134_v14 }
 0xbbe   : > { %14137 = vmatpush3.bf16.msra.mxu0 %v14134_v14 }
 0xbbf   : > { %14171 = vmatprep.subr.bf16.mxu0 %v21364_v40 }
 0xbc1   : > { %12528 = vmatmul.mubr.f32.vlgmr.msra.gmra.mrb[128].mxu0 %v16840_v32  ;;  %v21384_v32 = vld [vmem:[#allocation66_spill] sm:$0xff] }
 0xbc2   : > { %12530 = vmatprep.mubr.f32.mxu0 %v16841_v7  ;;  %14173 = vmatpush1.bf16.msra.mxu0 %v21365_v29 }
 0xbc3   : > { %14175 = vmatprep.subr.bf16.mxu0 %v21366_v27 }
 0xbc5   : > { %12531 = vmatmul.mubr.f32.gmra.mrb[130].mxu0 %v16842_v59 }
 0xbc6   : > { %12533 = vmatprep.mubr.f32.mxu0 %v16843_v37  ;;  %14177 = vmatpush1.bf16.msra.mxu0 %v21367_v16  ;;  %v21385_v37 = vld [vmem:[#allocation67_spill] sm:$0xff] }
 0xbc7   : > { %14179 = vmatprep.subr.bf16.mxu0 %v21368_v57 }
 0xbc9   : > { %12534 = vmatmul.mubr.f32.gmra.mrb[132].mxu0 %v16844_v0 }
 0xbca   : > { %12536 = vmatprep.mubr.f32.mxu0 %v16845_v10  ;;  %14181 = vmatpush1.bf16.msra.mxu0 %v21369_v30 }
 0xbcb   : > { %14183 = vmatprep.subr.bf16.mxu0 %v21370_v58 }
 0xbcd   : > { %12537 = vmatmul.mubr.f32.gmra.mrb[134].mxu0 %v16846_v20  ;;  %v21386_v20 = vld [vmem:[#allocation68_spill] sm:$0xff] }
 0xbce   : > { %12539 = vmatprep.mubr.f32.mxu0 %v16847_v39  ;;  %14185 = vmatpush1.bf16.msra.mxu0 %v21371_v6 }
 0xbcf   : > { %14187 = vmatprep.subr.bf16.mxu0 %v21372_v13 }
 0xbd1   : > { %12540 = vmatmul.mubr.f32.gmra.mrb[136].mxu0 %v16848_v43 }
 0xbd2   : > { %12542 = vmatprep.mubr.f32.mxu0 %v16849_v42  ;;  %14189 = vmatpush1.bf16.msra.mxu0 %v21373_v46  ;;  %v21387_v42 = vld [vmem:[#allocation69_spill] sm:$0xff] }
 0xbd3   : > { %14191 = vmatprep.subr.bf16.mxu0 %v21374_v62 }
 0xbd5   : > { %12543 = vmatmul.mubr.f32.gmra.mrb[138].mxu0 %v16850_v8 }
 0xbd6   : > { %12545 = vmatprep.mubr.f32.mxu0 %v16851_v36  ;;  %14193 = vmatpush1.bf16.msra.mxu0 %v21375_v49 }
 0xbd7   : > { %14195 = vmatprep.subr.bf16.mxu0 %v21376_v11 }
 0xbd9   : > { %12546 = vmatmul.mubr.f32.gmra.mrb[140].mxu0 %v16852_v9  ;;  %v21388_v9 = vld [vmem:[#allocation72_spill] sm:$0xff] }
 0xbda   : > { %12548 = vmatprep.mubr.f32.mxu0 %v16853_v25  ;;  %14197 = vmatpush1.bf16.msra.mxu0 %v21377_v61  ;;  %v21389_v25 = vld [vmem:[#allocation73_spill] sm:$0xff] }
 0xbdb   : > { %14199 = vmatprep.subr.bf16.mxu0 %v21378_v56 }
 0xbdd   : > { %12549 = vmatmul.mubr.f32.gmra.mrb[142].mxu0 %v16854_v48  ;;  %v19120_v48 = vld [vmem:[#allocation20 + $0x19] ss:$0 sm:$0xff] }
 0xbde   : > { %14201 = vmatpush1.bf16.msra.mxu0 %v21379_v41  ;;  %4491 = vmatprep.mubr.f32.mxu0 %v21380_v18 }
 0xbdf   : > { %14235 = vmatprep.subr.bf16.mxu0 %v21381_v22 }
 0xc94   : > { %v12529_v1 = vpop.f32.mrb[128].mxu0 }
 0xc95   : > { %v4169_v23 = vpop.f32.mrb[129].mxu0 }
 0xc96   : > { %12583 = vmatprep.mubr.f32.mxu1 %v4169_v23 }
 0xc97   : > { %12584 = vmatmul.mubr.f32.vlgmr.msra.gmra.mrb[128].mxu1 %v12529_v1 }
 0xc98   : > { %v12532_v17 = vpop.f32.mrb[130].mxu0  ;;  %14205 = vmatpush3.bf16.msra.mxu1 %v21363_v33 }
 0xc99   : > { %v4179_v4 = vpop.f32.mrb[131].mxu0  ;;  %14207 = vmatprep.subr.bf16.mxu1 %v21382_v54 }
 0xc9a   : > { %12586 = vmatprep.mubr.f32.mxu1 %v4179_v4 }
 0xc9b   : > { %12587 = vmatmul.mubr.f32.gmra.mrb[130].mxu1 %v12532_v17 }
 0xc9c   : > { %v12535_v38 = vpop.f32.mrb[132].mxu0  ;;  %14209 = vmatpush3.bf16.msra.mxu1 %v21382_v54 }
 0xc9d   : > { %v4189_v45 = vpop.f32.mrb[133].mxu0  ;;  %14211 = vmatprep.subr.bf16.mxu1 %v21383_v50 }
 0xc9e   : > { %12589 = vmatprep.mubr.f32.mxu1 %v4189_v45 }
 0xc9f   : > { %12590 = vmatmul.mubr.f32.gmra.mrb[132].mxu1 %v12535_v38 }
 0xca0   : > { %v12538_v5 = vpop.f32.mrb[134].mxu0  ;;  %14213 = vmatpush3.bf16.msra.mxu1 %v21383_v50 }
 0xca1   : > { %v4199_v14 = vpop.f32.mrb[135].mxu0  ;;  %14215 = vmatprep.subr.bf16.mxu1 %v21384_v32 }
 0xca2   : > { %12592 = vmatprep.mubr.f32.mxu1 %v4199_v14 }
 0xca3   : > { %12593 = vmatmul.mubr.f32.gmra.mrb[134].mxu1 %v12538_v5 }
 0xca4   : > { %v12541_v7 = vpop.f32.mrb[136].mxu0  ;;  %14217 = vmatpush3.bf16.msra.mxu1 %v21384_v32 }
 0xca5   : > { %v4209_v59 = vpop.f32.mrb[137].mxu0  ;;  %14219 = vmatprep.subr.bf16.mxu1 %v21385_v37 }
 0xca6   : > { %12595 = vmatprep.mubr.f32.mxu1 %v4209_v59 }
 0xca7   : > { %12596 = vmatmul.mubr.f32.gmra.mrb[136].mxu1 %v12541_v7 }
 0xca8   : > { %v12544_v0 = vpop.f32.mrb[138].mxu0  ;;  %14221 = vmatpush3.bf16.msra.mxu1 %v21385_v37 }
 0xca9   : > { %v4219_v10 = vpop.f32.mrb[139].mxu0  ;;  %14223 = vmatprep.subr.bf16.mxu1 %v21386_v20 }
 0xcaa   : > { %12598 = vmatprep.mubr.f32.mxu1 %v4219_v10 }
 0xcab   : > { %12599 = vmatmul.mubr.f32.gmra.mrb[138].mxu1 %v12544_v0 }
 0xcac   : > { %v12547_v39 = vpop.f32.mrb[140].mxu0  ;;  %14225 = vmatpush3.bf16.msra.mxu1 %v21386_v20 }
 0xcad   : > { %v4229_v43 = vpop.f32.mrb[141].mxu0  ;;  %14227 = vmatprep.subr.bf16.mxu1 %v21387_v42 }
 0xcae   : > { %12601 = vmatprep.mubr.f32.mxu1 %v4229_v43  ;;  %v21390_v43 = vld [vmem:[#allocation75_spill] sm:$0xff] }
 0xcaf   : > { %12602 = vmatmul.mubr.f32.gmra.mrb[140].mxu1 %v12547_v39 }
 0xcb0   : > { %v12550_v8 = vpop.f32.mrb[142].mxu0  ;;  %14229 = vmatpush3.bf16.msra.mxu1 %v21387_v42  ;;  %v21407_v42 = vld [vmem:[#allocation91_spill] sm:$0xff] }
 0xcb1   : > { %v4239_v36 = vpop.f32.mrb[143].mxu0  ;;  %14231 = vmatprep.subr.bf16.mxu1 %v21388_v9 }
 0xcb2   : > { %12604 = vmatprep.mubr.f32.mxu1 %v4239_v36 }
 0xcb3   : > { %12605 = vmatmul.mubr.f32.gmra.mrb[142].mxu1 %v12550_v8 }
 0xcb4   : > { %14233 = vmatpush3.bf16.msra.mxu1 %v21388_v9  ;;  %v21404_v9 = vld [vmem:[#allocation88_spill] sm:$0xff] }
 0xcb5   : > { %14267 = vmatprep.subr.bf16.mxu1 %v21389_v25 }
 0xd6a   : > { %v12585_v1 = vpop.f32.mrb[128].mxu1 }
 0xd6b   : > { %v4338_v23 = vadd.f32 %v12585_v1, %v19120_v48  ;;  %v4332_v17 = vpop.f32.mrb[129].mxu1  ;;  %v21391_v1 = vld [vmem:[#allocation76_spill] sm:$0xff] }
 0xd6c   : > { %v4333_v4 = vadd.f32 %v4332_v17, %v19120_v48 }
 0xd6d   : > { %v4412_v5 = vmax.f32 %v4338_v23, 0.0  ;;  %v21392_v23 = vld [vmem:[#allocation77_spill] sm:$0xff] }
 0xd6e   : > { %v4411_v38 = vmax.f32 %v4333_v4, 0.0  ;;  %v12588_v45 = vpop.f32.mrb[130].mxu1 }
 0xd6f   : > { %v4348_v14 = vadd.f32 %v12588_v45, %v19120_v48  ;;  %v4342_v7 = vpop.f32.mrb[131].mxu1 }
 0xd70   : > { %v4343_v59 = vadd.f32 %v4342_v7, %v19120_v48  ;;  %4492 = vmatmul.mubr.f32.vlgmr.msra.gmra.mrb[144].mxu0 %v4411_v38  ;;  %12639 = vmatprep.mubr.f32.mxu1 %v4411_v38 }
 0xd71   : > { %v4414_v0 = vmax.f32 %v4348_v14, 0.0  ;;  %12640 = vmatmul.mubr.f32.vlgmr.msra.gmra.mrb[144].mxu1 %v4412_v5  ;;  %4497 = vmatprep.mubr.f32.mxu0 %v21380_v18  ;;  %v21393_v14 = vld [vmem:[#allocation78_spill] sm:$0xff] }
 0xd72   : > { %v4413_v10 = vmax.f32 %v4343_v59, 0.0  ;;  %v12591_v39 = vpop.f32.mrb[132].mxu1  ;;  %14269 = vmatpush3.bf16.msra.mxu1 %v21389_v25  ;;  %14237 = vmatpush1.bf16.msra.mxu0 %v21390_v43  ;;  %v21401_v25 = vld [vmem:[#allocation85_spill] sm:$0xff] }
 0xd73   : > { %v4358_v8 = vadd.f32 %v12591_v39, %v19120_v48  ;;  %v4352_v36 = vpop.f32.mrb[133].mxu1  ;;  %14271 = vmatprep.subr.bf16.mxu1 %v21391_v1  ;;  %14239 = vmatprep.subr.bf16.mxu0 %v21392_v23  ;;  %v21394_v39 = vld [vmem:[#allocation79_spill] sm:$0xff]  ;;  %v21395_v23 = vld [vmem:[#allocation80_spill] sm:$0xff] }
 0xd74   : > { %v4353_v17 = vadd.f32 %v4352_v36, %v19120_v48  ;;  %4498 = vmatmul.mubr.f32.gmra.mrb[146].mxu0 %v4412_v5  ;;  %12642 = vmatprep.mubr.f32.mxu1 %v4413_v10 }
 0xd75   : > { %v4416_v4 = vmax.f32 %v4358_v8, 0.0  ;;  %12643 = vmatmul.mubr.f32.gmra.mrb[146].mxu1 %v4414_v0  ;;  %4503 = vmatprep.mubr.f32.mxu0 %v21380_v18 }
 0xd76   : > { %v4415_v38 = vmax.f32 %v4353_v17, 0.0  ;;  %v12594_v45 = vpop.f32.mrb[134].mxu1  ;;  %14273 = vmatpush3.bf16.msra.mxu1 %v21391_v1  ;;  %14241 = vmatpush1.bf16.msra.mxu0 %v21393_v14 }
 0xd77   : > { %v19137_v7 = vadd.f32 %v12594_v45, %v19120_v48  ;;  %v4362_v59 = vpop.f32.mrb[135].mxu1  ;;  %14275 = vmatprep.subr.bf16.mxu1 %v21394_v39  ;;  %14243 = vmatprep.subr.bf16.mxu0 %v21395_v23  ;;  %v21396_v45 = vld [vmem:[#allocation81_spill] sm:$0xff]  ;;  %v21397_v23 = vld [vmem:[#allocation82_spill] sm:$0xff] }
 0xd78   : > { %v4363_v5 = vadd.f32 %v4362_v59, %v19120_v48  ;;  %4504 = vmatmul.mubr.f32.gmra.mrb[148].mxu0 %v4413_v10  ;;  %12645 = vmatprep.mubr.f32.mxu1 %v4415_v38  ;;  %v21398_v59 = vld [vmem:[#allocation83_spill] sm:$0xff] }
 0xd79   : > { %12646 = vmatmul.mubr.f32.gmra.mrb[148].mxu1 %v4416_v4  ;;  %4509 = vmatprep.mubr.f32.mxu0 %v21380_v18 }
 0xd7a   : > { %v4417_v36 = vmax.f32 %v4363_v5, 0.0  ;;  %v12597_v17 = vpop.f32.mrb[136].mxu1  ;;  %14277 = vmatpush3.bf16.msra.mxu1 %v21394_v39  ;;  %14245 = vmatpush1.bf16.msra.mxu0 %v21396_v45  ;;  %v21399_v5 = vmax.f32 %v19137_v7, 0.0 }
 0xd7b   : > { %v19147_v14 = vadd.f32 %v12597_v17, %v19120_v48  ;;  %v4372_v1 = vpop.f32.mrb[137].mxu1  ;;  %14279 = vmatprep.subr.bf16.mxu1 %v21397_v23  ;;  %14247 = vmatprep.subr.bf16.mxu0 %v21398_v59  ;;  %v21400_v17 = vld [vmem:[#allocation84_spill] sm:$0xff] }
 0xd7c   : > { %v4373_v10 = vadd.f32 %v4372_v1, %v19120_v48  ;;  %4510 = vmatmul.mubr.f32.gmra.mrb[150].mxu0 %v4414_v0  ;;  %12648 = vmatprep.mubr.f32.mxu1 %v4417_v36  ;;  %v21402_v0 = vld [vmem:[#allocation86_spill] sm:$0xff] }
 0xd7d   : > { %v4420_v8 = vmax.f32 %v19147_v14, 0.0  ;;  %12649 = vmatmul.mubr.f32.gmra.mrb[150].mxu1 %v21399_v5  ;;  %4515 = vmatprep.mubr.f32.mxu0 %v21380_v18 }
 0xd7e   : > { %v4419_v45 = vmax.f32 %v4373_v10, 0.0  ;;  %v12600_v39 = vpop.f32.mrb[138].mxu1  ;;  %14281 = vmatpush3.bf16.msra.mxu1 %v21397_v23  ;;  %14249 = vmatpush1.bf16.msra.mxu0 %v21400_v17  ;;  %v21403_v17 = vld [vmem:[#allocation87_spill] sm:$0xff] }
 0xd7f   : > { %v4388_v43 = vadd.f32 %v12600_v39, %v19120_v48  ;;  %v4382_v59 = vpop.f32.mrb[139].mxu1  ;;  %14283 = vmatprep.subr.bf16.mxu1 %v21401_v25  ;;  %14251 = vmatprep.subr.bf16.mxu0 %v21402_v0  ;;  %v21405_v0 = vld [vmem:[#allocation89_spill] sm:$0xff] }
 0xd80   : > { %v4383_v1 = vadd.f32 %v4382_v59, %v19120_v48  ;;  %4516 = vmatmul.mubr.f32.gmra.mrb[152].mxu0 %v4415_v38  ;;  %12651 = vmatprep.mubr.f32.mxu1 %v4419_v45 }
 0xd81   : > { %v4422_v14 = vmax.f32 %v4388_v43, 0.0  ;;  %12652 = vmatmul.mubr.f32.gmra.mrb[152].mxu1 %v4420_v8  ;;  %4521 = vmatprep.mubr.f32.mxu0 %v21380_v18 }
 0xd82   : > { %v4421_v10 = vmax.f32 %v4383_v1, 0.0  ;;  %v12603_v5 = vpop.f32.mrb[140].mxu1  ;;  %14285 = vmatpush3.bf16.msra.mxu1 %v21401_v25  ;;  %14253 = vmatpush1.bf16.msra.mxu0 %v21403_v17  ;;  %v21406_v17 = vld [vmem:[#allocation90_spill] sm:$0xff] }
 0xd83   : > { %v4398_v39 = vadd.f32 %v12603_v5, %v19120_v48  ;;  %v4392_v23 = vpop.f32.mrb[141].mxu1  ;;  %14287 = vmatprep.subr.bf16.mxu1 %v21404_v9  ;;  %14255 = vmatprep.subr.bf16.mxu0 %v21405_v0  ;;  %v21408_v0 = vld [vmem:[#allocation92_spill] sm:$0xff] }
 0xd84   : > { %v4393_v38 = vadd.f32 %v4392_v23, %v19120_v48  ;;  %4522 = vmatmul.mubr.f32.gmra.mrb[154].mxu0 %v4416_v4  ;;  %12654 = vmatprep.mubr.f32.mxu1 %v4421_v10 }
 0xd85   : > { %v4424_v43 = vmax.f32 %v4398_v39, 0.0  ;;  %12655 = vmatmul.mubr.f32.gmra.mrb[154].mxu1 %v4422_v14  ;;  %4527 = vmatprep.mubr.f32.mxu0 %v21380_v18 }
 0xd86   : > { %v4423_v59 = vmax.f32 %v4393_v38, 0.0  ;;  %v12606_v1 = vpop.f32.mrb[142].mxu1  ;;  %14289 = vmatpush3.bf16.msra.mxu1 %v21404_v9  ;;  %14257 = vmatpush1.bf16.msra.mxu0 %v21406_v17  ;;  %v21409_v38 = vld [vmem:[#allocation93_spill] sm:$0xff]  ;;  %v21410_v17 = vld [vmem:[#allocation94_spill] sm:$0xff]  ;;  %v21412_v9 = vmax.f32 %v19137_v7, 0.0 }
 0xd87   : > { %v4408_v5 = vadd.f32 %v12606_v1, %v19120_v48  ;;  %v4402_v25 = vpop.f32.mrb[143].mxu1  ;;  %14291 = vmatprep.subr.bf16.mxu1 %v21407_v42  ;;  %14259 = vmatprep.subr.bf16.mxu0 %v21408_v0  ;;  %v21411_v1 = vld [vmem:[#allocation95_spill] sm:$0xff] }
 0xd88   : > { %v4403_v23 = vadd.f32 %v4402_v25, %v19120_v48  ;;  %4528 = vmatmul.mubr.f32.gmra.mrb[156].mxu0 %v4417_v36  ;;  %12657 = vmatprep.mubr.f32.mxu1 %v4423_v59  ;;  %v21413_v25 = vld [vmem:[#allocation96_spill] sm:$0xff]  ;;  %v5377_v48 = vld [vmem:[#allocation10 + $0x188] sm:$0xff] }
 0xd89   : > { %v4426_v4 = vmax.f32 %v4408_v5, 0.0  ;;  %12658 = vmatmul.mubr.f32.gmra.mrb[156].mxu1 %v4424_v43  ;;  %4533 = vmatprep.mubr.f32.mxu0 %v21380_v18  ;;  %v5379_v36 = vld [vmem:[#allocation10 + $0x198] sm:$0xff] }
 0xd8a   : > { %v4425_v39 = vmax.f32 %v4403_v23, 0.0  ;;  %14293 = vmatpush3.bf16.msra.mxu1 %v21407_v42  ;;  %14261 = vmatpush1.bf16.msra.mxu0 %v21409_v38  ;;  %v5383_v5 = vld [vmem:[#allocation10 + $0x1b8] sm:$0xff] }
 0xd8b   : > { %14295 = vmatprep.subr.bf16.mxu1 %v21410_v17  ;;  %14263 = vmatprep.subr.bf16.mxu0 %v21411_v1 }
 0xd8c   : > { %4534 = vmatmul.mubr.f32.gmra.mrb[158].mxu0 %v21412_v9  ;;  %12660 = vmatprep.mubr.f32.mxu1 %v4425_v39  ;;  %v5376_v9 = vld [vmem:[#allocation10 + $0x180] sm:$0xff] }
 0xd8d   : > { %12661 = vmatmul.mubr.f32.gmra.mrb[158].mxu1 %v4426_v4  ;;  %4539 = vmatprep.mubr.f32.mxu0 %v21380_v18  ;;  %v14298_v7 = vpack.c.bf16 %v5377_v48, %v5376_v9  ;;  %v5386_v48 = vld [vmem:[#allocation10 + $0x1d0] sm:$0xff] }
 0xd8e   : > { %14297 = vmatpush3.bf16.msra.mxu1 %v21410_v17  ;;  %12695 = vmatprep.mubr.f32.mxu1 %v18983_v31 }
 0xd8f   : > { %14265 = vmatpush1.bf16.msra.mxu0 %v21413_v25  ;;  %14299 = vmatprep.subr.bf16.mxu1 %v14298_v7 }
 0xd90   : > { %4540 = vmatmul.mubr.f32.gmra.mrb[160].mxu0 %v4419_v45 }
 0xd91   : > { %12696 = vmatmul.mubr.f32.vlgmr.msra.gmra.mrb[160].mxu1 %v18932_v63  ;;  %4545 = vmatprep.mubr.f32.mxu0 %v21380_v18 }
 0xd92   : > { %12698 = vmatprep.mubr.f32.mxu1 %v18939_v47  ;;  %14301 = vmatpush3.bf16.msra.mxu1 %v14298_v7  ;;  %v5387_v7 = vld [vmem:[#allocation10 + $0x1d8] sm:$0xff] }
 0xd94   : > { %4546 = vmatmul.mubr.f32.gmra.mrb[162].mxu0 %v4420_v8  ;;  %v5378_v8 = vld [vmem:[#allocation10 + $0x190] sm:$0xff] }
 0xd95   : > { %12699 = vmatmul.mubr.f32.gmra.mrb[162].mxu1 %v18947_v35  ;;  %4551 = vmatprep.mubr.f32.mxu0 %v21380_v18  ;;  %v14302_v45 = vpack.c.bf16 %v5379_v36, %v5378_v8  ;;  %v14318_v8 = vpack.c.bf16 %v5387_v7, %v5386_v48  ;;  %v5388_v36 = vld [vmem:[#allocation10 + $0x1e0] sm:$0xff] }
 0xd96   : > { %12701 = vmatprep.mubr.f32.mxu1 %v18958_v15 }
 0xd97   : > { %14303 = vmatprep.subr.bf16.mxu1 %v14302_v45 }
 0xd98   : > { %4552 = vmatmul.mubr.f32.gmra.mrb[164].mxu0 %v4421_v10  ;;  %14305 = vmatpush3.bf16.msra.mxu1 %v14302_v45  ;;  %v5381_v10 = vld [vmem:[#allocation10 + $0x1a8] sm:$0xff] }
 0xd99   : > { %12702 = vmatmul.mubr.f32.gmra.mrb[164].mxu1 %v18965_v53  ;;  %4557 = vmatprep.mubr.f32.mxu0 %v21380_v18  ;;  %v5389_v45 = vld [vmem:[#allocation10 + $0x1e8] sm:$0xff] }
 0xd9a   : > { %12704 = vmatprep.mubr.f32.mxu1 %v18980_v34 }
 0xd9c   : > { %4558 = vmatmul.mubr.f32.gmra.mrb[166].mxu0 %v4422_v14  ;;  %v5380_v14 = vld [vmem:[#allocation10 + $0x1a0] sm:$0xff] }
 0xd9d   : > { %12705 = vmatmul.mubr.f32.gmra.mrb[166].mxu1 %v18989_v2  ;;  %4563 = vmatprep.mubr.f32.mxu0 %v21380_v18 }
 0xd9e   : > { %12707 = vmatprep.mubr.f32.mxu1 %v18999_v19 }
 0xda0   : > { %4564 = vmatmul.mubr.f32.gmra.mrb[168].mxu0 %v4423_v59  ;;  %v5382_v59 = vld [vmem:[#allocation10 + $0x1b0] sm:$0xff] }
 0xda1   : > { %12708 = vmatmul.mubr.f32.gmra.mrb[168].mxu1 %v19010_v44  ;;  %4569 = vmatprep.mubr.f32.mxu0 %v21380_v18  ;;  %v14310_v23 = vpack.c.bf16 %v5383_v5, %v5382_v59 }
 0xda2   : > { %12710 = vmatprep.mubr.f32.mxu1 %v19019_v60 }
 0xda4   : > { %4570 = vmatmul.mubr.f32.gmra.mrb[170].mxu0 %v4424_v43  ;;  %v14306_v43 = vpack.c.bf16 %v5381_v10, %v5380_v14  ;;  %v14322_v14 = vpack.c.bf16 %v5389_v45, %v5388_v36  ;;  %v5390_v10 = vld [vmem:[#allocation10 + $0x1f0] sm:$0xff] }
 0xda5   : > { %12711 = vmatmul.mubr.f32.gmra.mrb[170].mxu1 %v19028_v26  ;;  %4575 = vmatprep.mubr.f32.mxu0 %v21380_v18 }
 0xda6   : > { %12713 = vmatprep.mubr.f32.mxu1 %v19036_v28  ;;  %14307 = vmatprep.subr.bf16.mxu1 %v14306_v43 }
 0xda7   : > { %14309 = vmatpush3.bf16.msra.mxu1 %v14306_v43  ;;  %v5391_v43 = vld [vmem:[#allocation10 + $0x1f8] sm:$0xff] }
 0xda8   : > { %4576 = vmatmul.mubr.f32.gmra.mrb[172].mxu0 %v4425_v39  ;;  %14311 = vmatprep.subr.bf16.mxu1 %v14310_v23  ;;  %v5385_v39 = vld [vmem:[#allocation10 + $0x1c8] sm:$0xff]  ;;  %v14326_v59 = vpack.c.bf16 %v5391_v43, %v5390_v10 }
 0xda9   : > { %12714 = vmatmul.mubr.f32.gmra.mrb[172].mxu1 %v19040_v51  ;;  %4581 = vmatprep.mubr.f32.mxu0 %v21380_v18 }
 0xdaa   : > { %12716 = vmatprep.mubr.f32.mxu1 %v19044_v21 }
 0xdab   : > { %14313 = vmatpush3.bf16.msra.mxu1 %v14310_v23 }
 0xdac   : > { %4582 = vmatmul.mubr.f32.gmra.mrb[174].mxu0 %v4426_v4  ;;  %v5384_v4 = vld [vmem:[#allocation10 + $0x1c0] sm:$0xff] }
 0xdad   : > { %12717 = vmatmul.mubr.f32.gmra.mrb[174].mxu1 %v19048_v24  ;;  %4797 = vmatprep.mubr.f32.mxu0 %v21380_v18  ;;  %v14314_v9 = vpack.c.bf16 %v5385_v39, %v5384_v4 }
 0xdaf   : > { %14315 = vmatprep.subr.bf16.mxu1 %v14314_v9 }
 0xdb0   : > { %4798 = vmatmul.mubr.f32.vlgmr.msra.gmra.mrb[144].mxu0 %v18983_v31  ;;  %14317 = vmatpush3.bf16.msra.mxu1 %v14314_v9 }
 0xdb1   : > { %4803 = vmatprep.mubr.f32.mxu0 %v21380_v18  ;;  %14319 = vmatprep.subr.bf16.mxu1 %v14318_v8 }
 0xdb4   : > { %4804 = vmatmul.mubr.f32.gmra.mrb[146].mxu0 %v18932_v63  ;;  %14321 = vmatpush3.bf16.msra.mxu1 %v14318_v8 }
 0xdb5   : > { %4809 = vmatprep.mubr.f32.mxu0 %v21380_v18  ;;  %14323 = vmatprep.subr.bf16.mxu1 %v14322_v14 }
 0xdb8   : > { %4810 = vmatmul.mubr.f32.gmra.mrb[148].mxu0 %v18939_v47  ;;  %14325 = vmatpush3.bf16.msra.mxu1 %v14322_v14 }
 0xdb9   : > { %4815 = vmatprep.mubr.f32.mxu0 %v21380_v18  ;;  %14327 = vmatprep.subr.bf16.mxu1 %v14326_v59 }
 0xdbc   : > { %4816 = vmatmul.mubr.f32.gmra.mrb[150].mxu0 %v18947_v35  ;;  %14329 = vmatpush3.bf16.msra.mxu1 %v14326_v59 }
 0xdbd   : > { %4821 = vmatprep.mubr.f32.mxu0 %v21380_v18 }
 0xdc0   : > { %4822 = vmatmul.mubr.f32.gmra.mrb[152].mxu0 %v18958_v15 }
 0xdc1   : > { %4827 = vmatprep.mubr.f32.mxu0 %v21380_v18 }
 0xdc4   : > { %4828 = vmatmul.mubr.f32.gmra.mrb[154].mxu0 %v18965_v53 }
 0xdc5   : > { %4833 = vmatprep.mubr.f32.mxu0 %v21380_v18 }
 0xdc8   : > { %4834 = vmatmul.mubr.f32.gmra.mrb[156].mxu0 %v18980_v34 }
 0xdc9   : > { %4839 = vmatprep.mubr.f32.mxu0 %v21380_v18 }
 0xdcc   : > { %4840 = vmatmul.mubr.f32.gmra.mrb[158].mxu0 %v18989_v2 }
 0xdcd   : > { %4845 = vmatprep.mubr.f32.mxu0 %v21380_v18 }
 0xdd0   : > { %4846 = vmatmul.mubr.f32.gmra.mrb[160].mxu0 %v18999_v19 }
 0xdd1   : > { %4851 = vmatprep.mubr.f32.mxu0 %v21380_v18 }
 0xdd4   : > { %4852 = vmatmul.mubr.f32.gmra.mrb[162].mxu0 %v19010_v44 }
 0xdd5   : > { %4857 = vmatprep.mubr.f32.mxu0 %v21380_v18 }
 0xdd8   : > { %4858 = vmatmul.mubr.f32.gmra.mrb[164].mxu0 %v19019_v60 }
 0xdd9   : > { %4863 = vmatprep.mubr.f32.mxu0 %v21380_v18 }
 0xddc   : > { %4864 = vmatmul.mubr.f32.gmra.mrb[166].mxu0 %v19028_v26 }
 0xddd   : > { %4869 = vmatprep.mubr.f32.mxu0 %v21380_v18 }
 0xde0   : > { %4870 = vmatmul.mubr.f32.gmra.mrb[168].mxu0 %v19036_v28 }
 0xde1   : > { %4875 = vmatprep.mubr.f32.mxu0 %v21380_v18 }
 0xde4   : > { %4876 = vmatmul.mubr.f32.gmra.mrb[170].mxu0 %v19040_v51 }
 0xde5   : > { %4881 = vmatprep.mubr.f32.mxu0 %v21380_v18 }
 0xde8   : > { %4882 = vmatmul.mubr.f32.gmra.mrb[172].mxu0 %v19044_v21 }
 0xde9   : > { %4887 = vmatprep.mubr.f32.mxu0 %v21380_v18 }
 0xdec   : > { %4888 = vmatmul.mubr.f32.gmra.mrb[174].mxu0 %v19048_v24 }
 0xe44   : > { %v19241_v5 = vpop.f32.mrb[144].mxu1 }
 0xe45   : > { %v19243_v23 = vpop.f32.mrb[145].mxu1 }
 0xe48   : > { %v19245_v4 = vpop.f32.mrb[146].mxu1 }
 0xe49   : > { %v19247_v39 = vpop.f32.mrb[147].mxu1 }
 0xe4c   : > { %v19249_v9 = vpop.f32.mrb[148].mxu1 }
 0xe4d   : > { %v19251_v48 = vpop.f32.mrb[149].mxu1 }
 0xe50   : > { %v19253_v7 = vpop.f32.mrb[150].mxu1 }
 0xe51   : > { %v19255_v8 = vpop.f32.mrb[151].mxu1 }
 0xe54   : > { %v19257_v36 = vpop.f32.mrb[152].mxu1 }
 0xe55   : > { %v19259_v45 = vpop.f32.mrb[153].mxu1 }
 0xe58   : > { %v19261_v14 = vpop.f32.mrb[154].mxu1 }
 0xe59   : > { %v19263_v10 = vpop.f32.mrb[155].mxu1 }
 0xe5c   : > { %v19265_v43 = vpop.f32.mrb[156].mxu1 }
 0xe5d   : > { %v19267_v59 = vpop.f32.mrb[157].mxu1 }
 0xe60   : > { %v19269_v25 = vpop.f32.mrb[158].mxu1 }
 0xe61   : > { %21414 = vst [vmem:[#allocation43_spill] sm:$0xff] %v19269_v25  ;;  %v19271_v1 = vpop.f32.mrb[159].mxu1 }
 0xe62   : > { %21415 = vst [vmem:[#allocation44_spill] sm:$0xff] %v19271_v1 }
 0xe64   : > { %v19273_v17 = vpop.f32.mrb[160].mxu1 }
 0xe65   : > { %v19275_v38 = vpop.f32.mrb[161].mxu1 }
 0xe68   : > { %v19277_v0 = vpop.f32.mrb[162].mxu1 }
 0xe69   : > { %v19279_v42 = vpop.f32.mrb[163].mxu1 }
 0xe6c   : > { %v19281_v20 = vpop.f32.mrb[164].mxu1 }
 0xe6d   : > { %v19283_v37 = vpop.f32.mrb[165].mxu1 }
 0xe70   : > { %v19285_v32 = vpop.f32.mrb[166].mxu1 }
 0xe71   : > { %v19287_v50 = vpop.f32.mrb[167].mxu1 }
 0xe74   : > { %v19289_v54 = vpop.f32.mrb[168].mxu1 }
 0xe75   : > { %v19291_v22 = vpop.f32.mrb[169].mxu1 }
 0xe78   : > { %v19293_v18 = vpop.f32.mrb[170].mxu1 }
 0xe79   : > { %v19295_v41 = vpop.f32.mrb[171].mxu1 }
 0xe7c   : > { %v19297_v56 = vpop.f32.mrb[172].mxu1 }
 0xe7d   : > { %v19299_v61 = vpop.f32.mrb[173].mxu1 }
 0xe80   : > { %v19301_v11 = vpop.f32.mrb[174].mxu1 }
 0xe81   : > { %21416 = vst [vmem:[#allocation45_spill] sm:$0xff] %v19301_v11  ;;  %v19303_v49 = vpop.f32.mrb[175].mxu1 }
 0xe83   : > { %v4799_v62 = vpop.f32.mrb[144].mxu0 }
 0xe84   : > { %v15251_v46 = vadd.f32 %v18383_v12, %v4799_v62  ;;  %v4801_v13 = vpop.f32.mrb[145].mxu0 }
 0xe85   : > { %v15253_v6 = vadd.f32 %v18387_v3, %v4801_v13 }
 0xe86   : > { %v10673_v58 = vmul.f32 -1.442695, %v15251_v46 }
 0xe87   : > { %v4805_v30 = vpop.f32.mrb[146].mxu0  ;;  %v10689_v27 = vmul.f32 -1.442695, %v15253_v6 }
 0xe88   : > { %16183 = vpow2.f32 %v10673_v58  ;;  %v15255_v57 = vadd.f32 %v18383_v12, %v4805_v30  ;;  %v4807_v16 = vpop.f32.mrb[147].mxu0 }
 0xe89   : > { %v15257_v40 = vadd.f32 %v18387_v3, %v4807_v16 }
 0xe8a   : > { %v10674_v29 = vmul.f32 -1.442695, %v15255_v57 }
 0xe8b   : > { %v4811_v33 = vpop.f32.mrb[148].mxu0  ;;  %v10690_v51 = vmul.f32 -1.442695, %v15257_v40 }
 0xe8c   : > { %16185 = vpow2.f32 %v10674_v29  ;;  %v15259_v24 = vadd.f32 %v18383_v12, %v4811_v33  ;;  %v4813_v21 = vpop.f32.mrb[149].mxu0 }
 0xe8d   : > { %16187 = vpow2.f32 %v10689_v27  ;;  %v15261_v62 = vadd.f32 %v18387_v3, %v4813_v21 }
 0xe8e   : > { %v10675_v13 = vmul.f32 -1.442695, %v15259_v24 }
 0xe8f   : > { %v10691_v46 = vmul.f32 -1.442695, %v15261_v62  ;;  %v4817_v25 = vpop.f32.mrb[150].mxu0 }
 0xe90   : > { %16189 = vpow2.f32 %v10675_v13  ;;  %v15263_v30 = vadd.f32 %v18383_v12, %v4817_v25  ;;  %v4819_v58 = vpop.f32.mrb[151].mxu0 }
 0xe91   : > { %v15265_v57 = vadd.f32 %v18387_v3, %v4819_v58  ;;  %16191 = vpow2.f32 %v10690_v51 }
 0xe92   : > { %v16184_v6 = vpop.eup %16183  ;;  %v10676_v16 = vmul.f32 -1.442695, %v15263_v30  ;;  %16193 = vpow2.f32 %v10691_v46 }
 0xe93   : > { %v5103_v29 = vadd.f32 1.0, %v16184_v6  ;;  %v10692_v33 = vmul.f32 -1.442695, %v15265_v57  ;;  %v4823_v28 = vpop.f32.mrb[152].mxu0 }
 0xe94   : > { %16195 = vpow2.f32 %v10676_v16  ;;  %v15267_v21 = vadd.f32 %v18383_v12, %v4823_v28  ;;  %v4825_v40 = vpop.f32.mrb[153].mxu0 }
 0xe95   : > { %16197 = vrcp.f32 %v5103_v29  ;;  %v15269_v24 = vadd.f32 %v18387_v3, %v4825_v40 }
 0xe96   : > { %v16186_v27 = vpop.eup %16185  ;;  %v10677_v62 = vmul.f32 -1.442695, %v15267_v21  ;;  %16199 = vpow2.f32 %v10692_v33 }
 0xe97   : > { %v16188_v25 = vpop.eup %16187  ;;  %v5104_v13 = vadd.f32 1.0, %v16186_v27  ;;  %v10693_v58 = vmul.f32 -1.442695, %v15269_v24  ;;  %v4829_v11 = vpop.f32.mrb[154].mxu0 }
 0xe98   : > { %16201 = vpow2.f32 %v10677_v62  ;;  %v15271_v51 = vadd.f32 %v18383_v12, %v4829_v11  ;;  %v4831_v46 = vpop.f32.mrb[155].mxu0  ;;  %v5215_v28 = vadd.f32 1.0, %v16188_v25 }
 0xe99   : > { %16203 = vrcp.f32 %v5104_v13  ;;  %v15273_v30 = vadd.f32 %v18387_v3, %v4831_v46  ;;  %v4961_v13 = vadd.f32 %v19275_v38, %v18403_v55 }
 0xe9a   : > { %v16190_v57 = vpop.eup %16189  ;;  %v10678_v6 = vmul.f32 -1.442695, %v15271_v51  ;;  %16205 = vpow2.f32 %v10693_v58 }
 0xe9b   : > { %v5105_v16 = vadd.f32 1.0, %v16190_v57  ;;  %v10694_v29 = vmul.f32 -1.442695, %v15273_v30  ;;  %v4835_v40 = vpop.f32.mrb[156].mxu0  ;;  %v16192_v21 = vpop.eup %16191 }
 0xe9c   : > { %16207 = vpow2.f32 %v10678_v6  ;;  %v15275_v33 = vadd.f32 %v18383_v12, %v4835_v40  ;;  %v4837_v24 = vpop.f32.mrb[157].mxu0  ;;  %v16194_v27 = vpop.eup %16193  ;;  %v5216_v46 = vadd.f32 1.0, %v16192_v21  ;;  %v4655_v6 = vadd.f32 %v19243_v23, %v18406_v52 }
 0xe9d   : > { %16209 = vrcp.f32 %v5105_v16  ;;  %v15277_v11 = vadd.f32 %v18387_v3, %v4837_v24  ;;  %v5217_v26 = vadd.f32 1.0, %v16194_v27 }
 0xe9e   : > { %v16196_v62 = vpop.eup %16195  ;;  %16211 = vrcp.f32 %v5215_v28  ;;  %v10679_v25 = vmul.f32 -1.442695, %v15275_v33  ;;  %v4966_v28 = vadd.f32 %v19273_v17, %v18403_v55  ;;  %v4971_v17 = vadd.f32 %v19279_v42, %v18403_v55 }
 0xe9f   : > { %v16198_v51 = vpop.eup %16197  ;;  %v5106_v58 = vadd.f32 1.0, %v16196_v62  ;;  %16213 = vpow2.f32 %v10694_v29  ;;  %v10695_v30 = vmul.f32 -1.442695, %v15277_v11  ;;  %v4841_v57 = vpop.f32.mrb[158].mxu0 }
 0xea0   : > { %v5263_v40 = vmul.f32 %v16198_v51, %v4961_v13  ;;  %16215 = vpow2.f32 %v10679_v25  ;;  %v15279_v16 = vadd.f32 %v18383_v12, %v4841_v57  ;;  %v4843_v24 = vpop.f32.mrb[159].mxu0  ;;  %v16200_v1 = vpop.eup %16199  ;;  %v4660_v13 = vadd.f32 %v19241_v5, %v18406_v52 }
 0xea1   : > { %16217 = vrcp.f32 %v5106_v58  ;;  %v15281_v23 = vadd.f32 %v18387_v3, %v4843_v24  ;;  %v5218_v58 = vadd.f32 1.0, %v16200_v1  ;;  %v4665_v5 = vadd.f32 %v19247_v39, %v18406_v52 }
 0xea2   : > { %v16202_v38 = vpop.eup %16201  ;;  %v5279_v21 = vadd.f32 %v5263_v40, %v4655_v6  ;;  %16219 = vpow2.f32 %v10695_v30  ;;  %v10680_v11 = vmul.f32 -1.442695, %v15279_v16  ;;  %v4670_v1 = vadd.f32 %v19245_v4, %v18406_v52 }
 0xea3   : > { %v16204_v29 = vpop.eup %16203  ;;  %16221 = vrcp.f32 %v5216_v46  ;;  %v5107_v33 = vadd.f32 1.0, %v16202_v38  ;;  %v4847_v62 = vpop.f32.mrb[160].mxu0  ;;  %v10696_v40 = vmul.f32 -1.442695, %v15281_v23 }
 0xea4   : > { %16223 = vtanh.f32 %v5279_v21  ;;  %v5264_v25 = vmul.f32 %v16204_v29, %v4966_v28  ;;  %v4849_v27 = vpop.f32.mrb[161].mxu0  ;;  %v16206_v51 = vpop.eup %16205  ;;  %v15283_v21 = vadd.f32 %v18383_v12, %v4847_v62  ;;  %v4986_v62 = vadd.f32 %v19281_v20, %v18403_v55 }
 0xea5   : > { %16225 = vrcp.f32 %v5217_v26  ;;  %v5219_v42 = vadd.f32 1.0, %v16206_v51  ;;  %v4981_v51 = vadd.f32 %v19283_v37, %v18403_v55 }
 0xea6   : > { %v16208_v57 = vpop.eup %16207  ;;  %v5280_v30 = vadd.f32 %v5264_v25, %v4660_v13  ;;  %16227 = vrcp.f32 %v5107_v33  ;;  %v4675_v33 = vadd.f32 %v19251_v48, %v18406_v52 }
 0xea7   : > { %v16210_v46 = vpop.eup %16209  ;;  %v5108_v6 = vadd.f32 1.0, %v16208_v57  ;;  %16229 = vpow2.f32 %v10680_v11  ;;  %v4853_v16 = vpop.f32.mrb[162].mxu0  ;;  %v4976_v11 = vadd.f32 %v19277_v0, %v18403_v55 }
 0xea8   : > { %v16212_v24 = vpop.eup %16211  ;;  %16231 = vtanh.f32 %v5280_v30  ;;  %v5265_v38 = vmul.f32 %v16210_v46, %v4971_v17  ;;  %v4855_v28 = vpop.f32.mrb[163].mxu0  ;;  %v15287_v57 = vadd.f32 %v18383_v12, %v4853_v16  ;;  %v10681_v30 = vmul.f32 -1.442695, %v15283_v21 }
 0xea9   : > { %v16214_v26 = vpop.eup %16213  ;;  %16233 = vrcp.f32 %v5218_v58  ;;  %v15285_v46 = vadd.f32 %v18387_v3, %v4849_v27 }
 0xeaa   : > { %v16216_v29 = vpop.eup %16215  ;;  %v5281_v23 = vadd.f32 %v5265_v38, %v4665_v5  ;;  %16235 = vrcp.f32 %v5108_v6  ;;  %v5220_v13 = vadd.f32 1.0, %v16214_v26  ;;  %v5311_v6 = vsub.f32 1.0, %v16212_v24 }
 0xeab   : > { %v16218_v39 = vpop.eup %16217  ;;  %v5109_v25 = vadd.f32 1.0, %v16216_v29  ;;  %16237 = vpow2.f32 %v10696_v40  ;;  %v4859_v4 = vpop.f32.mrb[164].mxu0  ;;  %v10682_v20 = vmul.f32 -1.442695, %v15287_v57 }
 0xeac   : > { %v16220_v58 = vpop.eup %16219  ;;  %16239 = vtanh.f32 %v5281_v23  ;;  %v5266_v48 = vmul.f32 %v16218_v39, %v4976_v11  ;;  %v4861_v17 = vpop.f32.mrb[165].mxu0  ;;  %v15291_v38 = vadd.f32 %v18383_v12, %v4859_v4  ;;  %v5343_v11 = vmul.f32 %v16212_v24, %v18983_v31 }
 0xead   : > { %v16222_v0 = vpop.eup %16221  ;;  %16241 = vrcp.f32 %v5219_v42  ;;  %v5221_v16 = vadd.f32 1.0, %v16220_v58  ;;  %v15289_v42 = vadd.f32 %v18387_v3, %v4855_v28  ;;  %v10697_v58 = vmul.f32 -1.442695, %v15285_v46 }
 0xeae   : > { %v16224_v40 = vpop.eup %16223  ;;  %v5282_v5 = vadd.f32 %v5266_v48, %v4670_v1  ;;  %16243 = vrcp.f32 %v5109_v25  ;;  %v5312_v39 = vsub.f32 1.0, %v16222_v0  ;;  %v5344_v21 = vmul.f32 %v16222_v0, %v18932_v63 }
 0xeaf   : > { %v16226_v26 = vpop.eup %16225  ;;  %16245 = vrcp.f32 %v5220_v13  ;;  %v4865_v29 = vpop.f32.mrb[166].mxu0  ;;  %v5327_v37 = vmul.f32 %v16224_v40, %v5311_v6  ;;  %v10683_v48 = vmul.f32 -1.442695, %v15291_v38  ;;  %v15293_v31 = vadd.f32 %v18387_v3, %v4861_v17 }
 0xeb0   : > { %v16228_v23 = vpop.eup %16227  ;;  %16247 = vtanh.f32 %v5282_v5  ;;  %v4867_v27 = vpop.f32.mrb[167].mxu0  ;;  %v15295_v28 = vadd.f32 %v18383_v12, %v4865_v29  ;;  %v4680_v0 = vadd.f32 %v19249_v9, %v18406_v52  ;;  %v10698_v46 = vmul.f32 -1.442695, %v15289_v42 }
 0xeb1   : > { %v16230_v1 = vpop.eup %16229  ;;  %v5267_v25 = vmul.f32 %v16228_v23, %v4981_v51  ;;  %16249 = vpow2.f32 %v10681_v30  ;;  %v19350_v4 = vadd.f32 %v5343_v11, %v5327_v37  ;;  %v4991_v30 = vadd.f32 %v19287_v50, %v18403_v55 }
 0xeb2   : > { %v16232_v13 = vpop.eup %16231  ;;  %16251 = vrcp.f32 %v5221_v16  ;;  %v5110_v57 = vadd.f32 1.0, %v16230_v1  ;;  %v5313_v38 = vsub.f32 1.0, %v16226_v26  ;;  %v10699_v29 = vmul.f32 -1.442695, %v15293_v31 }
 0xeb3   : > { %v16234_v24 = vpop.eup %16233  ;;  %v5283_v6 = vadd.f32 %v5267_v25, %v4675_v33  ;;  %16253 = vpow2.f32 %v10682_v20  ;;  %v4871_v40 = vpop.f32.mrb[168].mxu0  ;;  %12751 = vmatprep.mubr.f32.mxu1 %v19350_v4  ;;  %v5328_v63 = vmul.f32 %v16232_v13, %v5312_v39  ;;  %v15297_v37 = vadd.f32 %v18387_v3, %v4867_v27 }
 0xeb4   : > { %v16236_v51 = vpop.eup %16235  ;;  %16255 = vrcp.f32 %v5110_v57  ;;  %v4873_v5 = vpop.f32.mrb[169].mxu0  ;;  %v5345_v11 = vmul.f32 %v16226_v26, %v18939_v47  ;;  %v10684_v50 = vmul.f32 -1.442695, %v15295_v28  ;;  %v15299_v47 = vadd.f32 %v18383_v12, %v4871_v40 }
 0xeb5   : > { %v16238_v17 = vpop.eup %16237  ;;  %16257 = vtanh.f32 %v5283_v6  ;;  %v5268_v33 = vmul.f32 %v16236_v51, %v4986_v62  ;;  %v19359_v16 = vadd.f32 %v5344_v21, %v5328_v63  ;;  %v4685_v62 = vadd.f32 %v19255_v8, %v18406_v52 }
 0xeb6   : > { %v16240_v20 = vpop.eup %16239  ;;  %16259 = vpow2.f32 %v10697_v58  ;;  %v5222_v21 = vadd.f32 1.0, %v16238_v17  ;;  %v5314_v58 = vsub.f32 1.0, %v16234_v24  ;;  %v10700_v28 = vmul.f32 -1.442695, %v15297_v37 }
 0xeb7   : > { %v16242_v9 = vpop.eup %16241  ;;  %v5284_v23 = vadd.f32 %v5268_v33, %v4680_v0  ;;  %16261 = vpow2.f32 %v10683_v48  ;;  %v4877_v39 = vpop.f32.mrb[170].mxu0  ;;  %12752 = vmatmul.mubr.f32.vlgmr.msra.gmra.mrb[176].mxu1 %v19359_v16  ;;  %v5329_v42 = vmul.f32 %v16240_v20, %v5313_v38  ;;  %v5346_v48 = vmul.f32 %v16234_v24, %v18947_v35 }
 0xeb8   : > { %v16244_v1 = vpop.eup %16243  ;;  %16263 = vpow2.f32 %v10698_v46  ;;  %v4879_v25 = vpop.f32.mrb[171].mxu0  ;;  %v15301_v40 = vadd.f32 %v18387_v3, %v4873_v5  ;;  %v4996_v35 = vadd.f32 %v19285_v32, %v18403_v55  ;;  %v10685_v24 = vmul.f32 -1.442695, %v15299_v47 }
 0xeb9   : > { %v16246_v13 = vpop.eup %16245  ;;  %16265 = vtanh.f32 %v5284_v23  ;;  %v5269_v27 = vmul.f32 %v16244_v1, %v4991_v30  ;;  %v19367_v26 = vadd.f32 %v5345_v11, %v5329_v42  ;;  %v15303_v20 = vadd.f32 %v18383_v12, %v4877_v39 }
 0xeba   : > { %v16248_v57 = vpop.eup %16247  ;;  %16267 = vpow2.f32 %v10699_v29  ;;  %v5315_v29 = vsub.f32 1.0, %v16242_v9  ;;  %v4690_v5 = vadd.f32 %v19253_v7, %v18406_v52 }
 0xebb   : > { %v16250_v31 = vpop.eup %16249  ;;  %v5285_v6 = vadd.f32 %v5269_v27, %v4685_v62  ;;  %16269 = vpow2.f32 %v10684_v50  ;;  %v4883_v8 = vpop.f32.mrb[172].mxu0  ;;  %12754 = vmatprep.mubr.f32.mxu1 %v19367_v26  ;;  %v5330_v63 = vmul.f32 %v16248_v57, %v5314_v58  ;;  %v10701_v50 = vmul.f32 -1.442695, %v15301_v40 }
 0xebc   : > { %v19371_v51 = vpop.eup %16251  ;;  %16271 = vrcp.f32 %v5222_v21  ;;  %v5111_v0 = vadd.f32 1.0, %v16250_v31  ;;  %v19374_v30 = vpop.f32.mrb[173].mxu0  ;;  %v5347_v62 = vmul.f32 %v16242_v9, %v18958_v15  ;;  %v5316_v58 = vsub.f32 1.0, %v16246_v13 }
 0xebd   : > { %v16254_v46 = vpop.eup %16253  ;;  %16273 = vtanh.f32 %v5285_v6  ;;  %v19378_v17 = vadd.f32 %v5346_v48, %v5330_v63  ;;  %v10686_v7 = vmul.f32 -1.442695, %v15303_v20  ;;  %v15305_v57 = vadd.f32 %v18387_v3, %v4879_v25 }
 0xebe   : > { %v16256_v33 = vpop.eup %16255  ;;  %16275 = vrcp.f32 %v5111_v0  ;;  %v5112_v38 = vadd.f32 1.0, %v16254_v46  ;;  %v5348_v9 = vmul.f32 %v16246_v13, %v18965_v53  ;;  %v5317_v46 = vsub.f32 1.0, %v19371_v51 }
 0xebf   : > { %v16258_v37 = vpop.eup %16257  ;;  %v5270_v11 = vmul.f32 %v16256_v33, %v4996_v35  ;;  %16277 = vpow2.f32 %v10700_v28  ;;  %v4889_v23 = vpop.f32.mrb[174].mxu0  ;;  %12755 = vmatmul.mubr.f32.gmra.mrb[178].mxu1 %v19378_v17  ;;  %v15307_v28 = vadd.f32 %v18383_v12, %v4883_v8  ;;  %v4695_v8 = vadd.f32 %v19259_v45, %v18406_v52 }
 0xec0   : > { %v16260_v32 = vpop.eup %16259  ;;  %16279 = vrcp.f32 %v5112_v38  ;;  %v19384_v42 = vpop.f32.mrb[175].mxu0  ;;  %v5331_v1 = vmul.f32 %v16258_v37, %v5315_v29  ;;  %v5001_v20 = vadd.f32 %v19291_v22, %v18403_v55  ;;  %v15311_v45 = vadd.f32 %v18383_v12, %v4889_v23 }
 0xec1   : > { %v16262_v21 = vpop.eup %16261  ;;  %v5286_v39 = vadd.f32 %v5270_v11, %v4690_v5  ;;  %16281 = vpow2.f32 %v10685_v24  ;;  %v5223_v6 = vadd.f32 1.0, %v16260_v32  ;;  %v10702_v24 = vmul.f32 -1.442695, %v15305_v57 }
 0xec2   : > { %v16264_v27 = vpop.eup %16263  ;;  %v5113_v47 = vadd.f32 1.0, %v16262_v21  ;;  %v19388_v48 = vadd.f32 %v5347_v62, %v5331_v1  ;;  %v10687_v53 = vmul.f32 -1.442695, %v15307_v28  ;;  %v5349_v5 = vmul.f32 %v19371_v51, %v18980_v34 }
 0xec3   : > { %v16266_v31 = vpop.eup %16265  ;;  %16283 = vtanh.f32 %v5286_v39  ;;  %v5224_v40 = vadd.f32 1.0, %v16264_v27  ;;  %v5006_v32 = vadd.f32 %v19289_v54, %v18403_v55  ;;  %v15309_v1 = vadd.f32 %v18387_v3, %v19374_v30 }
 0xec4   : > { %v16268_v63 = vpop.eup %16267  ;;  %16285 = vpow2.f32 %v10701_v50  ;;  %12757 = vmatprep.mubr.f32.mxu1 %v19388_v48  ;;  %v5332_v15 = vmul.f32 %v16266_v31, %v5316_v58  ;;  %v4700_v39 = vadd.f32 %v19257_v36, %v18406_v52 }
 0xec5   : > { %v16270_v0 = vpop.eup %16269  ;;  %16287 = vrcp.f32 %v5113_v47  ;;  %v5225_v29 = vadd.f32 1.0, %v16268_v63  ;;  %v5011_v47 = vadd.f32 %v19295_v41, %v18403_v55  ;;  %v10703_v31 = vmul.f32 -1.442695, %v15309_v1 }
 0xec6   : > { %v16272_v25 = vpop.eup %16271  ;;  %v5114_v35 = vadd.f32 1.0, %v16270_v0  ;;  %16289 = vpow2.f32 %v10686_v7  ;;  %v19394_v33 = vadd.f32 %v5348_v9, %v5332_v15  ;;  %v10688_v7 = vmul.f32 -1.442695, %v15311_v45 }
 0xec7   : > { %v16274_v38 = vpop.eup %16273  ;;  %16291 = vrcp.f32 %v5223_v6  ;;  %v5318_v23 = vsub.f32 1.0, %v16272_v25  ;;  %v5350_v6 = vmul.f32 %v16272_v25, %v18989_v2  ;;  %v4705_v63 = vadd.f32 %v19263_v10, %v18406_v52 }
 0xec8   : > { %v16276_v13 = vpop.eup %16275  ;;  %16293 = vrcp.f32 %v5114_v35  ;;  %12758 = vmatmul.mubr.f32.gmra.mrb[180].mxu1 %v19394_v33  ;;  %v5333_v37 = vmul.f32 %v16274_v38, %v5317_v46  ;;  %v15313_v41 = vadd.f32 %v18387_v3, %v19384_v42  ;;  %v5016_v46 = vadd.f32 %v19293_v18, %v18403_v55 }
 0xec9   : > { %v16278_v11 = vpop.eup %16277  ;;  %v5271_v50 = vmul.f32 %v16276_v13, %v5001_v20  ;;  %16295 = vrcp.f32 %v5224_v40  ;;  %v4710_v38 = vadd.f32 %v19261_v14, %v18406_v52 }
 0xeca   : > { %v16280_v22 = vpop.eup %16279  ;;  %16297 = vpow2.f32 %v10702_v24  ;;  %v19408_v62 = vadd.f32 %v5349_v5, %v5333_v37  ;;  %v5226_v54 = vadd.f32 1.0, %v16278_v11  ;;  %v10704_v20 = vmul.f32 -1.442695, %v15313_v41 }
 0xecb   : > { %v16282_v21 = vpop.eup %16281  ;;  %v5287_v34 = vadd.f32 %v5271_v50, %v4695_v8  ;;  %v5272_v51 = vmul.f32 %v16280_v22, %v5006_v32  ;;  %16299 = vpow2.f32 %v10687_v53  ;;  %v5021_v11 = vadd.f32 %v19299_v61, %v18403_v55 }
 0xecc   : > { %16301 = vrcp.f32 %v5225_v29  ;;  %v5115_v58 = vadd.f32 1.0, %v16282_v21  ;;  %12760 = vmatprep.mubr.f32.mxu1 %v19408_v62  ;;  %v4715_v21 = vadd.f32 %v19267_v59, %v18406_v52 }
 0xecd   : > { %v16284_v27 = vpop.eup %16283  ;;  %16303 = vtanh.f32 %v5287_v34  ;;  %v5288_v30 = vadd.f32 %v5272_v51, %v4700_v39 }
 0xece   : > { %v16286_v57 = vpop.eup %16285  ;;  %16305 = vrcp.f32 %v5115_v58  ;;  %v5334_v36 = vmul.f32 %v16284_v27, %v5318_v23  ;;  %v5026_v27 = vadd.f32 %v19297_v56, %v18403_v55 }
 0xecf   : > { %v16288_v28 = vpop.eup %16287  ;;  %16307 = vtanh.f32 %v5288_v30  ;;  %v5227_v24 = vadd.f32 1.0, %v16286_v57 }
 0xed0   : > { %v16290_v15 = vpop.eup %16289  ;;  %v5273_v9 = vmul.f32 %v16288_v28, %v5011_v47  ;;  %16309 = vrcp.f32 %v5226_v54  ;;  %v19420_v0 = vadd.f32 %v5350_v6, %v5334_v36 }
 0xed1   : > { %v16292_v40 = vpop.eup %16291  ;;  %v5116_v35 = vadd.f32 1.0, %v16290_v15  ;;  %16311 = vpow2.f32 %v10688_v7 }
 0xed2   : > { %v16294_v2 = vpop.eup %16293  ;;  %v5289_v25 = vadd.f32 %v5273_v9, %v4705_v63  ;;  %16313 = vpow2.f32 %v10703_v31  ;;  %12761 = vmatmul.mubr.f32.gmra.mrb[182].mxu1 %v19420_v0  ;;  %v5319_v37 = vsub.f32 1.0, %v16292_v40  ;;  %v5351_v32 = vmul.f32 %v16292_v40, %v18999_v19 }
 0xed3   : > { %v16296_v10 = vpop.eup %16295  ;;  %v5274_v8 = vmul.f32 %v16294_v2, %v5016_v46  ;;  %16315 = vrcp.f32 %v5116_v35  ;;  %v4720_v31 = vadd.f32 %v19265_v43, %v18406_v52  ;;  %v5031_v46 = vadd.f32 %v19303_v49, %v18403_v55  ;;  %v21417_v35 = vld [vmem:[#allocation42_spill] sm:$0xff] }
 0xed4   : > { %v16298_v42 = vpop.eup %16297  ;;  %16317 = vtanh.f32 %v5289_v25  ;;  %v5320_v22 = vsub.f32 1.0, %v16296_v10  ;;  %v5352_v61 = vmul.f32 %v16296_v10, %v19010_v44 }
 0xed5   : > { %v16300_v53 = vpop.eup %16299  ;;  %v5290_v13 = vadd.f32 %v5274_v8, %v4710_v38  ;;  %16319 = vrcp.f32 %v5227_v24  ;;  %v5228_v14 = vadd.f32 1.0, %v16298_v42 }
 0xed6   : > { %v16302_v18 = vpop.eup %16301  ;;  %v5117_v29 = vadd.f32 1.0, %v16300_v53 }
 0xed7   : > { %v16304_v5 = vpop.eup %16303  ;;  %16321 = vtanh.f32 %v5290_v13  ;;  %v5321_v7 = vsub.f32 1.0, %v16302_v18  ;;  %v5353_v56 = vmul.f32 %v16302_v18, %v19019_v60  ;;  %v21418_v60 = vld [vmem:[#allocation44_spill] sm:$0xff]  ;;  %v21420_v13 = vld [vmem:[#allocation45_spill] sm:$0xff] }
 0xed8   : > { %v16306_v50 = vpop.eup %16305  ;;  %16323 = vpow2.f32 %v10704_v20  ;;  %v5335_v45 = vmul.f32 %v16304_v5, %v5319_v37  ;;  %v4725_v24 = vadd.f32 %v21418_v60, %v18406_v52  ;;  %v5036_v18 = vadd.f32 %v21420_v13, %v18403_v55  ;;  %v21421_v5 = vld [vmem:[#allocation47_spill] sm:$0xff]  ;;  %v5711_v13 = vld [vmem:[#allocation11 + $0x1d8] sm:$0xff] }
 0xed9   : > { %v16308_v1 = vpop.eup %16307  ;;  %v5275_v39 = vmul.f32 %v16306_v50, %v5021_v11  ;;  %16325 = vrcp.f32 %v5117_v29 }
 0xeda   : > { %v16310_v34 = vpop.eup %16309  ;;  %v19432_v51 = vadd.f32 %v5351_v32, %v5335_v45  ;;  %v5336_v54 = vmul.f32 %v16308_v1, %v5320_v22  ;;  %16327 = vrcp.f32 %v5228_v14  ;;  %v21422_v32 = vld [vmem:[#allocation43_spill] sm:$0xff] }
 0xedb   : > { %v16312_v58 = vpop.eup %16311  ;;  %v5291_v23 = vadd.f32 %v5275_v39, %v4715_v21  ;;  %v5322_v15 = vsub.f32 1.0, %v16310_v34  ;;  %v5354_v2 = vmul.f32 %v16310_v34, %v21417_v35  ;;  %v4730_v50 = vadd.f32 %v21422_v32, %v18406_v52  ;;  %v21424_v34 = vld [vmem:[#allocation48_spill] sm:$0xff] }
 0xedc   : > { %v16314_v19 = vpop.eup %16313  ;;  %v5118_v47 = vadd.f32 1.0, %v16312_v58  ;;  %12763 = vmatprep.mubr.f32.mxu1 %v19432_v51  ;;  %v19438_v30 = vadd.f32 %v5352_v61, %v5336_v54 }
 0xedd   : > { %v16316_v59 = vpop.eup %16315  ;;  %16329 = vtanh.f32 %v5291_v23  ;;  %v5229_v63 = vadd.f32 1.0, %v16314_v19 }
 0xede   : > { %v16318_v57 = vpop.eup %16317  ;;  %v5276_v44 = vmul.f32 %v16316_v59, %v5026_v27  ;;  %16331 = vrcp.f32 %v5118_v47  ;;  %12764 = vmatmul.mubr.f32.gmra.mrb[184].mxu1 %v19438_v30  ;;  %v21426_v59 = vld [vmem:[#allocation97_spill] sm:$0xff] }
 0xedf   : > { %v5337_v36 = vmul.f32 %v16318_v57, %v5321_v7  ;;  %v16320_v6 = vpop.eup %16319 }
 0xee0   : > { %v5292_v28 = vadd.f32 %v5276_v44, %v4720_v31  ;;  %v5323_v49 = vsub.f32 1.0, %v16320_v6  ;;  %v5355_v11 = vmul.f32 %v16320_v6, %v21421_v5  ;;  %v5713_v5 = vld [vmem:[#allocation11 + $0x1e8] sm:$0xff] }
 0xee1   : > { %v16322_v9 = vpop.eup %16321  ;;  %v19444_v41 = vadd.f32 %v5353_v56, %v5337_v36  ;;  %v21428_v56 = vld [vmem:[#allocation46_spill] sm:$0xff] }
 0xee2   : > { %v16324_v40 = vpop.eup %16323  ;;  %16333 = vtanh.f32 %v5292_v28  ;;  %v5338_v43 = vmul.f32 %v16322_v9, %v5322_v15  ;;  %v5700_v15 = vld [vmem:[#allocation11 + $0x180] sm:$0xff]  ;;  %v5701_v9 = vld [vmem:[#allocation11 + $0x188] sm:$0xff] }
 0xee3   : > { %v16326_v25 = vpop.eup %16325  ;;  %12766 = vmatprep.mubr.f32.mxu1 %v19444_v41  ;;  %16335 = vrcp.f32 %v5229_v63  ;;  %v5230_v8 = vadd.f32 1.0, %v16324_v40  ;;  %v16855_v63 = vld [vmem:[%s17876_s22] sm:$0xff]  ;;  %v5702_v40 = vld [vmem:[#allocation11 + $0x190] sm:$0xff] }
 0xee4   : > { %v5277_v10 = vmul.f32 %v16326_v25, %v5031_v46  ;;  %v19452_v38 = vadd.f32 %v5354_v2, %v5338_v43  ;;  %v16328_v42 = vpop.eup %16327  ;;  %v14362_v46 = vpack.c.bf16 %v5701_v9, %v5700_v15  ;;  %v5703_v43 = vld [vmem:[#allocation11 + $0x198] sm:$0xff]  ;;  %v5704_v2 = vld [vmem:[#allocation11 + $0x1a0] sm:$0xff]  ;;  %v5705_v25 = vld [vmem:[#allocation11 + $0x1a8] sm:$0xff] }
 0xee5   : > { %v5324_v1 = vsub.f32 1.0, %v16328_v42  ;;  %v5356_v54 = vmul.f32 %v16328_v42, %v21424_v34  ;;  %v14366_v35 = vpack.c.bf16 %v5703_v43, %v5702_v40  ;;  %v14370_v60 = vpack.c.bf16 %v5705_v25, %v5704_v2  ;;  %v5708_v42 = vld [vmem:[#allocation11 + $0x1c0] sm:$0xff] }
 0xee6   : > { %21419 = vst [vmem:[#allocation42_spill] sm:$0xff] %v19452_v38  ;;  %v5293_v20 = vadd.f32 %v5277_v10, %v4725_v24  ;;  %12767 = vmatmul.mubr.f32.gmra.mrb[186].mxu1 %v19452_v38  ;;  %14363 = vmatprep.subr.bf16.mxu0 %v14362_v46  ;;  %v5706_v24 = vld [vmem:[#allocation11 + $0x1b0] sm:$0xff]  ;;  %v5707_v10 = vld [vmem:[#allocation11 + $0x1b8] sm:$0xff] }
 0xee7   : > { %v16330_v53 = vpop.eup %16329  ;;  %14365 = vmatpush3.bf16.msra.mxu0 %v14362_v46 }
 0xee8   : > { %v16332_v29 = vpop.eup %16331  ;;  %16337 = vtanh.f32 %v5293_v20  ;;  %v5339_v37 = vmul.f32 %v16330_v53, %v5323_v49  ;;  %14367 = vmatprep.subr.bf16.mxu0 %v14366_v35  ;;  %v5709_v20 = vld [vmem:[#allocation11 + $0x1c8] sm:$0xff]  ;;  %v5710_v53 = vld [vmem:[#allocation11 + $0x1d0] sm:$0xff] }
 0xee9   : > { %v5278_v14 = vmul.f32 %v16332_v29, %v5036_v18  ;;  %16339 = vrcp.f32 %v5230_v8  ;;  %v14374_v8 = vpack.c.bf16 %v5707_v10, %v5706_v24  ;;  %v14378_v49 = vpack.c.bf16 %v5709_v20, %v5708_v42  ;;  %v19476_v18 = vld [vmem:[#allocation20 + $0x4] ss:$0 sm:$0xff] }
 0xeea   : > { %v19460_v45 = vadd.f32 %v5355_v11, %v5339_v37  ;;  %v14382_v29 = vpack.c.bf16 %v5711_v13, %v5710_v53  ;;  %v5712_v37 = vld [vmem:[#allocation11 + $0x1e0] sm:$0xff] }
 0xeeb   : > { %v5294_v22 = vadd.f32 %v5278_v14, %v4730_v50  ;;  %14369 = vmatpush3.bf16.msra.mxu0 %v14366_v35 }
 0xeec   : > { %21423 = vst [vmem:[#allocation44_spill] sm:$0xff] %v19460_v45  ;;  %v16334_v21 = vpop.eup %16333  ;;  %12769 = vmatprep.mubr.f32.mxu1 %v19460_v45  ;;  %14371 = vmatprep.subr.bf16.mxu0 %v14370_v60 }
 0xeed   : > { %16341 = vtanh.f32 %v5294_v22  ;;  %v5340_v39 = vmul.f32 %v16334_v21, %v5324_v1  ;;  %v16336_v61 = vpop.eup %16335  ;;  %v14386_v22 = vpack.c.bf16 %v5713_v5, %v5712_v37  ;;  %v5714_v21 = vld [vmem:[#allocation11 + $0x1f0] sm:$0xff] }
 0xeee   : > { %v5325_v23 = vsub.f32 1.0, %v16336_v61  ;;  %v5357_v7 = vmul.f32 %v16336_v61, %v21426_v59 }
 0xeef   : > { %v19464_v58 = vadd.f32 %v5356_v54, %v5340_v39  ;;  %14373 = vmatpush3.bf16.msra.mxu0 %v14370_v60  ;;  %v5715_v39 = vld [vmem:[#allocation11 + $0x1f8] sm:$0xff] }
 0xef0   : > { %14375 = vmatprep.subr.bf16.mxu0 %v14374_v8  ;;  %v14390_v61 = vpack.c.bf16 %v5715_v39, %v5714_v21 }
 0xef1   : > { %21425 = vst [vmem:[#allocation45_spill] sm:$0xff] %v19464_v58  ;;  %12770 = vmatmul.mubr.f32.gmra.mrb[188].mxu1 %v19464_v58 }
 0xef2   : > { %v16338_v19 = vpop.eup %16337 }
 0xef3   : > { %v16340_v27 = vpop.eup %16339  ;;  %v5341_v47 = vmul.f32 %v16338_v19, %v5325_v23  ;;  %14377 = vmatpush3.bf16.msra.mxu0 %v14374_v8 }
 0xef4   : > { %v5326_v31 = vsub.f32 1.0, %v16340_v27  ;;  %v5358_v6 = vmul.f32 %v16340_v27, %v21428_v56  ;;  %14379 = vmatprep.subr.bf16.mxu0 %v14378_v49 }
 0xef5   : > { %v19468_v57 = vadd.f32 %v5357_v7, %v5341_v47 }
 0xef7   : > { %21427 = vst [vmem:[#allocation47_spill] sm:$0xff] %v19468_v57  ;;  %v16342_v44 = vpop.eup %16341  ;;  %12772 = vmatprep.mubr.f32.mxu1 %v19468_v57  ;;  %14381 = vmatpush3.bf16.msra.mxu0 %v14378_v49 }
 0xef8   : > { %v5342_v36 = vmul.f32 %v16342_v44, %v5326_v31  ;;  %14383 = vmatprep.subr.bf16.mxu0 %v14382_v29  ;;  %v21430_v44 = vld [vmem:[#allocation51_spill] sm:$0xff] }
 0xefa   : > { %v19472_v28 = vadd.f32 %v5358_v6, %v5342_v36 }
 0xefb   : > { %14385 = vmatpush3.bf16.msra.mxu0 %v14382_v29 }
 0xefc   : > { %21429 = vst [vmem:[#allocation43_spill] sm:$0xff] %v19472_v28  ;;  %12773 = vmatmul.mubr.f32.gmra.mrb[190].mxu1 %v19472_v28  ;;  %14387 = vmatprep.subr.bf16.mxu0 %v14386_v22 }
 0xefd   : > { %12807 = vmatprep.mubr.f32.mxu1 %v16855_v63 }
 0xeff   : > { %14389 = vmatpush3.bf16.msra.mxu0 %v14386_v22 }
 0xf00   : > { %14391 = vmatprep.subr.bf16.mxu0 %v14390_v61 }
 0xf03   : > { %14393 = vmatpush3.bf16.msra.mxu0 %v14390_v61 }
 0xf04   : > { %14427 = vmatprep.subr.bf16.mxu0 %v21430_v44 }
 0xf8a   : > { %v12753_v11 = vpop.f32.mrb[176].mxu1 }
 0xf8b   : > { %v5465_v32 = vadd.f32 %v12753_v11, %v19476_v18  ;;  %v5459_v50 = vpop.f32.mrb[177].mxu1 }
 0xf8c   : > { %v5460_v14 = vadd.f32 %v5459_v50, %v19476_v18 }
 0xf8d   : > { %v5539_v1 = vmax.f32 %v5465_v32, 0.0 }
 0xf8e   : > { %v5538_v34 = vmax.f32 %v5460_v14, 0.0 }
 0xf90   : > { %v14330_v54 = vpack.c.bf16 %v5539_v1, %v5538_v34 }
 0xf92   : > { %v12756_v23 = vpop.f32.mrb[178].mxu1  ;;  %14331 = vmatprep.subr.bf16.mxu1 %v14330_v54 }
 0xf93   : > { %v5475_v19 = vadd.f32 %v12756_v23, %v19476_v18  ;;  %v5469_v27 = vpop.f32.mrb[179].mxu1  ;;  %14333 = vmatpush3.bf16.msra.mxu1 %v14330_v54 }
 0xf94   : > { %v5470_v47 = vadd.f32 %v5469_v27, %v19476_v18 }
 0xf95   : > { %v5541_v59 = vmax.f32 %v5475_v19, 0.0 }
 0xf96   : > { %v5540_v7 = vmax.f32 %v5470_v47, 0.0 }
 0xf98   : > { %v14334_v31 = vpack.c.bf16 %v5541_v59, %v5540_v7 }
 0xf9a   : > { %14335 = vmatprep.subr.bf16.mxu1 %v14334_v31 }
 0xf9b   : > { %v12759_v36 = vpop.f32.mrb[180].mxu1  ;;  %14337 = vmatpush3.bf16.msra.mxu1 %v14334_v31 }
 0xf9c   : > { %v5485_v56 = vadd.f32 %v12759_v36, %v19476_v18  ;;  %v5479_v6 = vpop.f32.mrb[181].mxu1  ;;  %v21431_v36 = vld [vmem:[#allocation49_spill] sm:$0xff] }
 0xf9d   : > { %v5480_v63 = vadd.f32 %v5479_v6, %v19476_v18  ;;  %v16857_v6 = vld [vmem:[%s17876_s22 + $0x10] sm:$0xff] }
 0xf9e   : > { %v5543_v15 = vmax.f32 %v5485_v56, 0.0  ;;  %v16856_v56 = vld [vmem:[%s17876_s22 + $0x8] sm:$0xff] }
 0xf9f   : > { %v5542_v9 = vmax.f32 %v5480_v63, 0.0  ;;  %v21432_v63 = vld [vmem:[#allocation50_spill] sm:$0xff] }
 0xfa1   : > { %v14338_v40 = vpack.c.bf16 %v5543_v15, %v5542_v9  ;;  %v21433_v15 = vld [vmem:[#allocation52_spill] sm:$0xff]  ;;  %v16859_v9 = vld [vmem:[%s17876_s22 + $0x20] sm:$0xff] }
 0xfa3   : > { %14339 = vmatprep.subr.bf16.mxu1 %v14338_v40 }
 0xfa4   : > { %14341 = vmatpush3.bf16.msra.mxu1 %v14338_v40  ;;  %v21434_v40 = vld [vmem:[#allocation53_spill] sm:$0xff] }
 0xfa5   : > { %v12762_v46 = vpop.f32.mrb[182].mxu1 }
 0xfa6   : > { %v5495_v43 = vadd.f32 %v12762_v46, %v19476_v18  ;;  %v5489_v35 = vpop.f32.mrb[183].mxu1  ;;  %v21435_v46 = vld [vmem:[#allocation54_spill] sm:$0xff] }
 0xfa7   : > { %v5490_v2 = vadd.f32 %v5489_v35, %v19476_v18  ;;  %v16861_v35 = vld [vmem:[%s17876_s22 + $0x30] sm:$0xff] }
 0xfa8   : > { %v5545_v25 = vmax.f32 %v5495_v43, 0.0  ;;  %v16860_v43 = vld [vmem:[%s17876_s22 + $0x28] sm:$0xff] }
 0xfa9   : > { %v5544_v60 = vmax.f32 %v5490_v2, 0.0  ;;  %v21436_v2 = vld [vmem:[#allocation55_spill] sm:$0xff] }
 0xfab   : > { %v14342_v24 = vpack.c.bf16 %v5545_v25, %v5544_v60  ;;  %v21437_v25 = vld [vmem:[#allocation56_spill] sm:$0xff] }
 0xfac   : > { %v16862_v60 = vld [vmem:[%s17876_s22 + $0x38] sm:$0xff] }
 0xfad   : > { %14343 = vmatprep.subr.bf16.mxu1 %v14342_v24 }
 0xfae   : > { %14345 = vmatpush3.bf16.msra.mxu1 %v14342_v24  ;;  %v16863_v24 = vld [vmem:[%s17876_s22 + $0x40] sm:$0xff] }
 0xfb1   : > { %v12765_v10 = vpop.f32.mrb[184].mxu1 }
 0xfb2   : > { %v5505_v8 = vadd.f32 %v12765_v10, %v19476_v18  ;;  %v5499_v42 = vpop.f32.mrb[185].mxu1  ;;  %v21438_v10 = vld [vmem:[#allocation57_spill] sm:$0xff] }
 0xfb3   : > { %v5500_v20 = vadd.f32 %v5499_v42, %v19476_v18  ;;  %v16864_v42 = vld [vmem:[%s17876_s22 + $0x48] sm:$0xff] }
 0xfb4   : > { %v5547_v49 = vmax.f32 %v5505_v8, 0.0  ;;  %v21439_v8 = vld [vmem:[#allocation58_spill] sm:$0xff] }
 0xfb5   : > { %v5546_v53 = vmax.f32 %v5500_v20, 0.0  ;;  %v16865_v20 = vld [vmem:[%s17876_s22 + $0x50] sm:$0xff] }
 0xfb7   : > { %v14346_v13 = vpack.c.bf16 %v5547_v49, %v5546_v53  ;;  %v21440_v49 = vld [vmem:[#allocation59_spill] sm:$0xff]  ;;  %v21441_v53 = vld [vmem:[#allocation60_spill] sm:$0xff] }
 0xfb9   : > { %v12768_v29 = vpop.f32.mrb[186].mxu1  ;;  %14347 = vmatprep.subr.bf16.mxu1 %v14346_v13 }
 0xfba   : > { %v5515_v37 = vadd.f32 %v12768_v29, %v19476_v18  ;;  %v5509_v5 = vpop.f32.mrb[187].mxu1  ;;  %14349 = vmatpush3.bf16.msra.mxu1 %v14346_v13  ;;  %v16866_v13 = vld [vmem:[%s17876_s22 + $0x58] sm:$0xff]  ;;  %v16867_v29 = vld [vmem:[%s17876_s22 + $0x60] sm:$0xff] }
 0xfbb   : > { %v5510_v11 = vadd.f32 %v5509_v5, %v19476_v18  ;;  %v21443_v5 = vld [vmem:[#allocation62_spill] sm:$0xff] }
 0xfbc   : > { %v5549_v32 = vmax.f32 %v5515_v37, 0.0  ;;  %v21442_v37 = vld [vmem:[#allocation61_spill] sm:$0xff] }
 0xfbd   : > { %v5548_v50 = vmax.f32 %v5510_v11, 0.0  ;;  %v16868_v11 = vld [vmem:[%s17876_s22 + $0x68] sm:$0xff] }
 0xfbf   : > { %v14350_v14 = vpack.c.bf16 %v5549_v32, %v5548_v50  ;;  %v16869_v32 = vld [vmem:[%s17876_s22 + $0x70] sm:$0xff] }
 0xfc0   : > { %v21444_v50 = vld [vmem:[#allocation63_spill] sm:$0xff] }
 0xfc1   : > { %14351 = vmatprep.subr.bf16.mxu1 %v14350_v14 }
 0xfc2   : > { %14353 = vmatpush3.bf16.msra.mxu1 %v14350_v14  ;;  %v21445_v14 = vld [vmem:[#allocation70_spill] sm:$0xff] }
 0xfc4   : > { %v12771_v22 = vpop.f32.mrb[188].mxu1 }
 0xfc5   : > { %v5525_v1 = vadd.f32 %v12771_v22, %v19476_v18  ;;  %v5519_v21 = vpop.f32.mrb[189].mxu1  ;;  %v16870_v22 = vld [vmem:[%s17876_s22 + $0x78] sm:$0xff] }
 0xfc6   : > { %v5520_v39 = vadd.f32 %v5519_v21, %v19476_v18  ;;  %v21447_v21 = vmov 0.0  }
 0xfc7   : > { %v5551_v34 = vmax.f32 %v5525_v1, 0.0  ;;  %v21446_v1 = vld [vmem:[#allocation71_spill] sm:$0xff] }
 0xfc8   : > { %v5550_v54 = vmax.f32 %v5520_v39, 0.0  ;;  %v21448_v39 = vld [vmem:[#allocation74_spill] sm:$0xff] }
 0xfca   : > { %v14354_v61 = vpack.c.bf16 %v5551_v34, %v5550_v54 }
 0xfcc   : > { %14355 = vmatprep.subr.bf16.mxu1 %v14354_v61 }
 0xfcd   : > { %14357 = vmatpush3.bf16.msra.mxu1 %v14354_v61 }
 0xfcf   : > { %v12774_v23 = vpop.f32.mrb[190].mxu1 }
 0xfd0   : > { %v5535_v19 = vadd.f32 %v12774_v23, %v19476_v18  ;;  %v5529_v27 = vpop.f32.mrb[191].mxu1 }
 0xfd1   : > { %v5530_v47 = vadd.f32 %v5529_v27, %v19476_v18  ;;  %v16858_v18 = vld [vmem:[%s17876_s22 + $0x18] sm:$0xff] }
 0xfd2   : > { %v5553_v59 = vmax.f32 %v5535_v19, 0.0  ;;  %v21449_v19 = vld [vmem:[#allocation64_spill] sm:$0xff] }
 0xfd3   : > { %v5552_v7 = vmax.f32 %v5530_v47, 0.0 }
 0xfd5   : > { %v14358_v31 = vpack.c.bf16 %v5553_v59, %v5552_v7  ;;  %v21450_v59 = vld [vmem:[#allocation65_spill] sm:$0xff] }
 0xfd7   : > { %14359 = vmatprep.subr.bf16.mxu1 %v14358_v31 }
 0xfd8   : > { %14361 = vmatpush3.bf16.msra.mxu1 %v14358_v31 }
 0xfd9   : > { %14395 = vmatprep.subr.bf16.mxu1 %v21431_v36 }
 0xfdb   : > { %12808 = vmatmul.mubr.f32.vlgmr.msra.gmra.mrb[192].mxu1 %v16856_v56  ;;  %v21451_v56 = vld [vmem:[#allocation66_spill] sm:$0xff] }
 0xfdc   : > { %12810 = vmatprep.mubr.f32.mxu1 %v16857_v6  ;;  %14397 = vmatpush1.bf16.msra.mxu1 %v21432_v63 }
 0xfdd   : > { %14399 = vmatprep.subr.bf16.mxu1 %v21433_v15 }
 0xfdf   : > { %12811 = vmatmul.mubr.f32.gmra.mrb[194].mxu1 %v16858_v18 }
 0xfe0   : > { %12813 = vmatprep.mubr.f32.mxu1 %v16859_v9  ;;  %14401 = vmatpush1.bf16.msra.mxu1 %v21434_v40  ;;  %v21452_v9 = vld [vmem:[#allocation67_spill] sm:$0xff] }
 0xfe1   : > { %14403 = vmatprep.subr.bf16.mxu1 %v21435_v46 }
 0xfe3   : > { %12814 = vmatmul.mubr.f32.gmra.mrb[196].mxu1 %v16860_v43 }
 0xfe4   : > { %12816 = vmatprep.mubr.f32.mxu1 %v16861_v35  ;;  %14405 = vmatpush1.bf16.msra.mxu1 %v21436_v2 }
 0xfe5   : > { %14407 = vmatprep.subr.bf16.mxu1 %v21437_v25 }
 0xfe7   : > { %12817 = vmatmul.mubr.f32.gmra.mrb[198].mxu1 %v16862_v60  ;;  %v21453_v60 = vld [vmem:[#allocation68_spill] sm:$0xff] }
 0xfe8   : > { %12819 = vmatprep.mubr.f32.mxu1 %v16863_v24  ;;  %14409 = vmatpush1.bf16.msra.mxu1 %v21438_v10 }
 0xfe9   : > { %14411 = vmatprep.subr.bf16.mxu1 %v21439_v8 }
 0xfeb   : > { %12820 = vmatmul.mubr.f32.gmra.mrb[200].mxu1 %v16864_v42 }
 0xfec   : > { %12822 = vmatprep.mubr.f32.mxu1 %v16865_v20  ;;  %14413 = vmatpush1.bf16.msra.mxu1 %v21440_v49  ;;  %v21454_v20 = vld [vmem:[#allocation69_spill] sm:$0xff] }
 0xfed   : > { %14415 = vmatprep.subr.bf16.mxu1 %v21441_v53 }
 0xfef   : > { %12823 = vmatmul.mubr.f32.gmra.mrb[202].mxu1 %v16866_v13 }
 0xff0   : > { %12825 = vmatprep.mubr.f32.mxu1 %v16867_v29  ;;  %14417 = vmatpush1.bf16.msra.mxu1 %v21442_v37 }
 0xff1   : > { %14419 = vmatprep.subr.bf16.mxu1 %v21443_v5 }
 0xff3   : > { %12826 = vmatmul.mubr.f32.gmra.mrb[204].mxu1 %v16868_v11  ;;  %v21455_v11 = vld [vmem:[#allocation72_spill] sm:$0xff] }
 0xff4   : > { %12828 = vmatprep.mubr.f32.mxu1 %v16869_v32  ;;  %14421 = vmatpush1.bf16.msra.mxu1 %v21444_v50  ;;  %v21456_v32 = vld [vmem:[#allocation73_spill] sm:$0xff] }
 0xff5   : > { %14423 = vmatprep.subr.bf16.mxu1 %v21445_v14 }
 0xff7   : > { %12829 = vmatmul.mubr.f32.gmra.mrb[206].mxu1 %v16870_v22  ;;  %v19544_v22 = vld [vmem:[#allocation20 + $0x1a] ss:$0 sm:$0xff] }
 0xff8   : > { %14425 = vmatpush1.bf16.msra.mxu1 %v21446_v1  ;;  %5942 = vmatprep.mubr.f32.mxu1 %v21447_v21 }
 0xff9   : > { %14459 = vmatprep.subr.bf16.mxu1 %v21448_v39 }
0x10ae   : > { %v12809_v34 = vpop.f32.mrb[192].mxu1 }
0x10af   : > { %v5620_v54 = vpop.f32.mrb[193].mxu1 }
0x10b0   : > { %12863 = vmatprep.mubr.f32.mxu0 %v5620_v54 }
0x10b1   : > { %12864 = vmatmul.mubr.f32.vlgmr.msra.gmra.mrb[176].mxu0 %v12809_v34 }
0x10b2   : > { %v12812_v61 = vpop.f32.mrb[194].mxu1  ;;  %14429 = vmatpush3.bf16.msra.mxu0 %v21430_v44 }
0x10b3   : > { %v5630_v23 = vpop.f32.mrb[195].mxu1  ;;  %14431 = vmatprep.subr.bf16.mxu0 %v21449_v19 }
0x10b4   : > { %12866 = vmatprep.mubr.f32.mxu0 %v5630_v23 }
0x10b5   : > { %12867 = vmatmul.mubr.f32.gmra.mrb[178].mxu0 %v12812_v61 }
0x10b6   : > { %v12815_v27 = vpop.f32.mrb[196].mxu1  ;;  %14433 = vmatpush3.bf16.msra.mxu0 %v21449_v19 }
0x10b7   : > { %v5640_v47 = vpop.f32.mrb[197].mxu1  ;;  %14435 = vmatprep.subr.bf16.mxu0 %v21450_v59 }
0x10b8   : > { %12869 = vmatprep.mubr.f32.mxu0 %v5640_v47 }
0x10b9   : > { %12870 = vmatmul.mubr.f32.gmra.mrb[180].mxu0 %v12815_v27 }
0x10ba   : > { %v12818_v7 = vpop.f32.mrb[198].mxu1  ;;  %14437 = vmatpush3.bf16.msra.mxu0 %v21450_v59 }
0x10bb   : > { %v5650_v31 = vpop.f32.mrb[199].mxu1  ;;  %14439 = vmatprep.subr.bf16.mxu0 %v21451_v56 }
0x10bc   : > { %12872 = vmatprep.mubr.f32.mxu0 %v5650_v31 }
0x10bd   : > { %12873 = vmatmul.mubr.f32.gmra.mrb[182].mxu0 %v12818_v7 }
0x10be   : > { %v12821_v6 = vpop.f32.mrb[200].mxu1  ;;  %14441 = vmatpush3.bf16.msra.mxu0 %v21451_v56 }
0x10bf   : > { %v5660_v18 = vpop.f32.mrb[201].mxu1  ;;  %14443 = vmatprep.subr.bf16.mxu0 %v21452_v9 }
0x10c0   : > { %12875 = vmatprep.mubr.f32.mxu0 %v5660_v18 }
0x10c1   : > { %12876 = vmatmul.mubr.f32.gmra.mrb[184].mxu0 %v12821_v6 }
0x10c2   : > { %v12824_v43 = vpop.f32.mrb[202].mxu1  ;;  %14445 = vmatpush3.bf16.msra.mxu0 %v21452_v9 }
0x10c3   : > { %v5670_v35 = vpop.f32.mrb[203].mxu1  ;;  %14447 = vmatprep.subr.bf16.mxu0 %v21453_v60 }
0x10c4   : > { %12878 = vmatprep.mubr.f32.mxu0 %v5670_v35 }
0x10c5   : > { %12879 = vmatmul.mubr.f32.gmra.mrb[186].mxu0 %v12824_v43 }
0x10c6   : > { %v12827_v24 = vpop.f32.mrb[204].mxu1  ;;  %14449 = vmatpush3.bf16.msra.mxu0 %v21453_v60 }
0x10c7   : > { %v5680_v42 = vpop.f32.mrb[205].mxu1  ;;  %14451 = vmatprep.subr.bf16.mxu0 %v21454_v20 }
0x10c8   : > { %12881 = vmatprep.mubr.f32.mxu0 %v5680_v42  ;;  %v21457_v42 = vld [vmem:[#allocation75_spill] sm:$0xff] }
0x10c9   : > { %12882 = vmatmul.mubr.f32.gmra.mrb[188].mxu0 %v12827_v24 }
0x10ca   : > { %v12830_v13 = vpop.f32.mrb[206].mxu1  ;;  %14453 = vmatpush3.bf16.msra.mxu0 %v21454_v20  ;;  %v21474_v20 = vld [vmem:[#allocation91_spill] sm:$0xff] }
0x10cb   : > { %v5690_v29 = vpop.f32.mrb[207].mxu1  ;;  %14455 = vmatprep.subr.bf16.mxu0 %v21455_v11 }
0x10cc   : > { %12884 = vmatprep.mubr.f32.mxu0 %v5690_v29 }
0x10cd   : > { %12885 = vmatmul.mubr.f32.gmra.mrb[190].mxu0 %v12830_v13 }
0x10ce   : > { %14457 = vmatpush3.bf16.msra.mxu0 %v21455_v11  ;;  %v21471_v11 = vld [vmem:[#allocation88_spill] sm:$0xff] }
0x10cf   : > { %14491 = vmatprep.subr.bf16.mxu0 %v21456_v32 }
0x1184   : > { %v12865_v34 = vpop.f32.mrb[176].mxu0 }
0x1185   : > { %v5789_v54 = vadd.f32 %v12865_v34, %v19544_v22  ;;  %v5783_v61 = vpop.f32.mrb[177].mxu0  ;;  %v21458_v34 = vld [vmem:[#allocation76_spill] sm:$0xff] }
0x1186   : > { %v5784_v23 = vadd.f32 %v5783_v61, %v19544_v22 }
0x1187   : > { %v5863_v7 = vmax.f32 %v5789_v54, 0.0  ;;  %v21459_v54 = vld [vmem:[#allocation77_spill] sm:$0xff] }
0x1188   : > { %v5862_v27 = vmax.f32 %v5784_v23, 0.0  ;;  %v12868_v47 = vpop.f32.mrb[178].mxu0 }
0x1189   : > { %v5799_v31 = vadd.f32 %v12868_v47, %v19544_v22  ;;  %v5793_v6 = vpop.f32.mrb[179].mxu0 }
0x118a   : > { %v5794_v18 = vadd.f32 %v5793_v6, %v19544_v22  ;;  %5943 = vmatmul.mubr.f32.vlgmr.msra.gmra.mrb[208].mxu1 %v5862_v27  ;;  %12919 = vmatprep.mubr.f32.mxu0 %v5862_v27 }
0x118b   : > { %v5865_v43 = vmax.f32 %v5799_v31, 0.0  ;;  %12920 = vmatmul.mubr.f32.vlgmr.msra.gmra.mrb[192].mxu0 %v5863_v7  ;;  %5948 = vmatprep.mubr.f32.mxu1 %v21447_v21  ;;  %v21460_v31 = vld [vmem:[#allocation78_spill] sm:$0xff] }
0x118c   : > { %v5864_v35 = vmax.f32 %v5794_v18, 0.0  ;;  %v12871_v24 = vpop.f32.mrb[180].mxu0  ;;  %14493 = vmatpush3.bf16.msra.mxu0 %v21456_v32  ;;  %14461 = vmatpush1.bf16.msra.mxu1 %v21457_v42  ;;  %v21468_v32 = vld [vmem:[#allocation85_spill] sm:$0xff] }
0x118d   : > { %v5809_v13 = vadd.f32 %v12871_v24, %v19544_v22  ;;  %v5803_v29 = vpop.f32.mrb[181].mxu0  ;;  %14495 = vmatprep.subr.bf16.mxu0 %v21458_v34  ;;  %14463 = vmatprep.subr.bf16.mxu1 %v21459_v54  ;;  %v21461_v24 = vld [vmem:[#allocation79_spill] sm:$0xff]  ;;  %v21462_v54 = vld [vmem:[#allocation80_spill] sm:$0xff] }
0x118e   : > { %v5804_v61 = vadd.f32 %v5803_v29, %v19544_v22  ;;  %5949 = vmatmul.mubr.f32.gmra.mrb[210].mxu1 %v5863_v7  ;;  %12922 = vmatprep.mubr.f32.mxu0 %v5864_v35 }
0x118f   : > { %v5867_v23 = vmax.f32 %v5809_v13, 0.0  ;;  %12923 = vmatmul.mubr.f32.gmra.mrb[194].mxu0 %v5865_v43  ;;  %5954 = vmatprep.mubr.f32.mxu1 %v21447_v21 }
0x1190   : > { %v5866_v27 = vmax.f32 %v5804_v61, 0.0  ;;  %v12874_v47 = vpop.f32.mrb[182].mxu0  ;;  %14497 = vmatpush3.bf16.msra.mxu0 %v21458_v34  ;;  %14465 = vmatpush1.bf16.msra.mxu1 %v21460_v31 }
0x1191   : > { %v19561_v6 = vadd.f32 %v12874_v47, %v19544_v22  ;;  %v5813_v18 = vpop.f32.mrb[183].mxu0  ;;  %14499 = vmatprep.subr.bf16.mxu0 %v21461_v24  ;;  %14467 = vmatprep.subr.bf16.mxu1 %v21462_v54  ;;  %v21463_v47 = vld [vmem:[#allocation81_spill] sm:$0xff]  ;;  %v21464_v54 = vld [vmem:[#allocation82_spill] sm:$0xff] }
0x1192   : > { %v5814_v7 = vadd.f32 %v5813_v18, %v19544_v22  ;;  %5955 = vmatmul.mubr.f32.gmra.mrb[212].mxu1 %v5864_v35  ;;  %12925 = vmatprep.mubr.f32.mxu0 %v5866_v27  ;;  %v21465_v18 = vld [vmem:[#allocation83_spill] sm:$0xff] }
0x1193   : > { %12926 = vmatmul.mubr.f32.gmra.mrb[196].mxu0 %v5867_v23  ;;  %5960 = vmatprep.mubr.f32.mxu1 %v21447_v21 }
0x1194   : > { %v5868_v29 = vmax.f32 %v5814_v7, 0.0  ;;  %v12877_v61 = vpop.f32.mrb[184].mxu0  ;;  %14501 = vmatpush3.bf16.msra.mxu0 %v21461_v24  ;;  %14469 = vmatpush1.bf16.msra.mxu1 %v21463_v47  ;;  %v21466_v7 = vmax.f32 %v19561_v6, 0.0 }
0x1195   : > { %v19571_v31 = vadd.f32 %v12877_v61, %v19544_v22  ;;  %v5823_v34 = vpop.f32.mrb[185].mxu0  ;;  %14503 = vmatprep.subr.bf16.mxu0 %v21464_v54  ;;  %14471 = vmatprep.subr.bf16.mxu1 %v21465_v18  ;;  %v21467_v61 = vld [vmem:[#allocation84_spill] sm:$0xff] }
0x1196   : > { %v5824_v35 = vadd.f32 %v5823_v34, %v19544_v22  ;;  %5961 = vmatmul.mubr.f32.gmra.mrb[214].mxu1 %v5865_v43  ;;  %12928 = vmatprep.mubr.f32.mxu0 %v5868_v29  ;;  %v21469_v43 = vld [vmem:[#allocation86_spill] sm:$0xff] }
0x1197   : > { %v5871_v13 = vmax.f32 %v19571_v31, 0.0  ;;  %12929 = vmatmul.mubr.f32.gmra.mrb[198].mxu0 %v21466_v7  ;;  %5966 = vmatprep.mubr.f32.mxu1 %v21447_v21 }
0x1198   : > { %v5870_v47 = vmax.f32 %v5824_v35, 0.0  ;;  %v12880_v24 = vpop.f32.mrb[186].mxu0  ;;  %14505 = vmatpush3.bf16.msra.mxu0 %v21464_v54  ;;  %14473 = vmatpush1.bf16.msra.mxu1 %v21467_v61  ;;  %v21470_v61 = vld [vmem:[#allocation87_spill] sm:$0xff] }
0x1199   : > { %v5839_v42 = vadd.f32 %v12880_v24, %v19544_v22  ;;  %v5833_v18 = vpop.f32.mrb[187].mxu0  ;;  %14507 = vmatprep.subr.bf16.mxu0 %v21468_v32  ;;  %14475 = vmatprep.subr.bf16.mxu1 %v21469_v43  ;;  %v21472_v43 = vld [vmem:[#allocation89_spill] sm:$0xff] }
0x119a   : > { %v5834_v34 = vadd.f32 %v5833_v18, %v19544_v22  ;;  %5967 = vmatmul.mubr.f32.gmra.mrb[216].mxu1 %v5866_v27  ;;  %12931 = vmatprep.mubr.f32.mxu0 %v5870_v47 }
0x119b   : > { %v5873_v31 = vmax.f32 %v5839_v42, 0.0  ;;  %12932 = vmatmul.mubr.f32.gmra.mrb[200].mxu0 %v5871_v13  ;;  %5972 = vmatprep.mubr.f32.mxu1 %v21447_v21 }
0x119c   : > { %v5872_v35 = vmax.f32 %v5834_v34, 0.0  ;;  %v12883_v7 = vpop.f32.mrb[188].mxu0  ;;  %14509 = vmatpush3.bf16.msra.mxu0 %v21468_v32  ;;  %14477 = vmatpush1.bf16.msra.mxu1 %v21470_v61  ;;  %v21473_v61 = vld [vmem:[#allocation90_spill] sm:$0xff] }
0x119d   : > { %v5849_v24 = vadd.f32 %v12883_v7, %v19544_v22  ;;  %v5843_v54 = vpop.f32.mrb[189].mxu0  ;;  %14511 = vmatprep.subr.bf16.mxu0 %v21471_v11  ;;  %14479 = vmatprep.subr.bf16.mxu1 %v21472_v43  ;;  %v21475_v43 = vld [vmem:[#allocation92_spill] sm:$0xff] }
0x119e   : > { %v5844_v27 = vadd.f32 %v5843_v54, %v19544_v22  ;;  %5973 = vmatmul.mubr.f32.gmra.mrb[218].mxu1 %v5867_v23  ;;  %12934 = vmatprep.mubr.f32.mxu0 %v5872_v35 }
0x119f   : > { %v5875_v42 = vmax.f32 %v5849_v24, 0.0  ;;  %12935 = vmatmul.mubr.f32.gmra.mrb[202].mxu0 %v5873_v31  ;;  %5978 = vmatprep.mubr.f32.mxu1 %v21447_v21 }
0x11a0   : > { %v5874_v18 = vmax.f32 %v5844_v27, 0.0  ;;  %v12886_v34 = vpop.f32.mrb[190].mxu0  ;;  %14513 = vmatpush3.bf16.msra.mxu0 %v21471_v11  ;;  %14481 = vmatpush1.bf16.msra.mxu1 %v21473_v61  ;;  %v21476_v27 = vld [vmem:[#allocation93_spill] sm:$0xff]  ;;  %v21477_v61 = vld [vmem:[#allocation94_spill] sm:$0xff]  ;;  %v21479_v11 = vmax.f32 %v19561_v6, 0.0 }
0x11a1   : > { %v5859_v7 = vadd.f32 %v12886_v34, %v19544_v22  ;;  %v5853_v32 = vpop.f32.mrb[191].mxu0  ;;  %14515 = vmatprep.subr.bf16.mxu0 %v21474_v20  ;;  %14483 = vmatprep.subr.bf16.mxu1 %v21475_v43  ;;  %v21478_v34 = vld [vmem:[#allocation95_spill] sm:$0xff] }
0x11a2   : > { %v5854_v54 = vadd.f32 %v5853_v32, %v19544_v22  ;;  %5979 = vmatmul.mubr.f32.gmra.mrb[220].mxu1 %v5868_v29  ;;  %12937 = vmatprep.mubr.f32.mxu0 %v5874_v18  ;;  %v21480_v32 = vld [vmem:[#allocation96_spill] sm:$0xff]  ;;  %v6828_v22 = vld [vmem:[#allocation10 + $0x208] sm:$0xff] }
0x11a3   : > { %v5877_v23 = vmax.f32 %v5859_v7, 0.0  ;;  %12938 = vmatmul.mubr.f32.gmra.mrb[204].mxu0 %v5875_v42  ;;  %5984 = vmatprep.mubr.f32.mxu1 %v21447_v21  ;;  %v6830_v29 = vld [vmem:[#allocation10 + $0x218] sm:$0xff] }
0x11a4   : > { %v5876_v24 = vmax.f32 %v5854_v54, 0.0  ;;  %14517 = vmatpush3.bf16.msra.mxu0 %v21474_v20  ;;  %14485 = vmatpush1.bf16.msra.mxu1 %v21476_v27  ;;  %v6834_v7 = vld [vmem:[#allocation10 + $0x238] sm:$0xff] }
0x11a5   : > { %14519 = vmatprep.subr.bf16.mxu0 %v21477_v61  ;;  %14487 = vmatprep.subr.bf16.mxu1 %v21478_v34 }
0x11a6   : > { %5985 = vmatmul.mubr.f32.gmra.mrb[222].mxu1 %v21479_v11  ;;  %12940 = vmatprep.mubr.f32.mxu0 %v5876_v24  ;;  %v6827_v11 = vld [vmem:[#allocation10 + $0x200] sm:$0xff] }
0x11a7   : > { %12941 = vmatmul.mubr.f32.gmra.mrb[206].mxu0 %v5877_v23  ;;  %5990 = vmatprep.mubr.f32.mxu1 %v21447_v21  ;;  %v14522_v6 = vpack.c.bf16 %v6828_v22, %v6827_v11  ;;  %v6837_v22 = vld [vmem:[#allocation10 + $0x250] sm:$0xff] }
0x11a8   : > { %14521 = vmatpush3.bf16.msra.mxu0 %v21477_v61  ;;  %12975 = vmatprep.mubr.f32.mxu0 %v19350_v4 }
0x11a9   : > { %14489 = vmatpush1.bf16.msra.mxu1 %v21480_v32  ;;  %14523 = vmatprep.subr.bf16.mxu0 %v14522_v6 }
0x11aa   : > { %5991 = vmatmul.mubr.f32.gmra.mrb[224].mxu1 %v5870_v47 }
0x11ab   : > { %12976 = vmatmul.mubr.f32.vlgmr.msra.gmra.mrb[208].mxu0 %v19359_v16  ;;  %5996 = vmatprep.mubr.f32.mxu1 %v21447_v21 }
0x11ac   : > { %12978 = vmatprep.mubr.f32.mxu0 %v19367_v26  ;;  %14525 = vmatpush3.bf16.msra.mxu0 %v14522_v6  ;;  %v6838_v6 = vld [vmem:[#allocation10 + $0x258] sm:$0xff] }
0x11ae   : > { %5997 = vmatmul.mubr.f32.gmra.mrb[226].mxu1 %v5871_v13  ;;  %v6829_v13 = vld [vmem:[#allocation10 + $0x210] sm:$0xff] }
0x11af   : > { %12979 = vmatmul.mubr.f32.gmra.mrb[210].mxu0 %v19378_v17  ;;  %6002 = vmatprep.mubr.f32.mxu1 %v21447_v21  ;;  %v14526_v47 = vpack.c.bf16 %v6830_v29, %v6829_v13  ;;  %v14542_v13 = vpack.c.bf16 %v6838_v6, %v6837_v22  ;;  %v6839_v29 = vld [vmem:[#allocation10 + $0x260] sm:$0xff] }
0x11b0   : > { %12981 = vmatprep.mubr.f32.mxu0 %v19388_v48 }
0x11b1   : > { %14527 = vmatprep.subr.bf16.mxu0 %v14526_v47 }
0x11b2   : > { %6003 = vmatmul.mubr.f32.gmra.mrb[228].mxu1 %v5872_v35  ;;  %14529 = vmatpush3.bf16.msra.mxu0 %v14526_v47  ;;  %v6832_v35 = vld [vmem:[#allocation10 + $0x228] sm:$0xff] }
0x11b3   : > { %12982 = vmatmul.mubr.f32.gmra.mrb[212].mxu0 %v19394_v33  ;;  %6008 = vmatprep.mubr.f32.mxu1 %v21447_v21  ;;  %v6840_v47 = vld [vmem:[#allocation10 + $0x268] sm:$0xff] }
0x11b4   : > { %12984 = vmatprep.mubr.f32.mxu0 %v19408_v62 }
0x11b6   : > { %6009 = vmatmul.mubr.f32.gmra.mrb[230].mxu1 %v5873_v31  ;;  %v6831_v31 = vld [vmem:[#allocation10 + $0x220] sm:$0xff] }
0x11b7   : > { %12985 = vmatmul.mubr.f32.gmra.mrb[214].mxu0 %v19420_v0  ;;  %6014 = vmatprep.mubr.f32.mxu1 %v21447_v21 }
0x11b8   : > { %12987 = vmatprep.mubr.f32.mxu0 %v19432_v51 }
0x11ba   : > { %6015 = vmatmul.mubr.f32.gmra.mrb[232].mxu1 %v5874_v18  ;;  %v6833_v18 = vld [vmem:[#allocation10 + $0x230] sm:$0xff] }
0x11bb   : > { %12988 = vmatmul.mubr.f32.gmra.mrb[216].mxu0 %v19438_v30  ;;  %6020 = vmatprep.mubr.f32.mxu1 %v21447_v21  ;;  %v14534_v54 = vpack.c.bf16 %v6834_v7, %v6833_v18 }
0x11bc   : > { %12990 = vmatprep.mubr.f32.mxu0 %v19444_v41 }
0x11be   : > { %6021 = vmatmul.mubr.f32.gmra.mrb[234].mxu1 %v5875_v42  ;;  %v14530_v42 = vpack.c.bf16 %v6832_v35, %v6831_v31  ;;  %v14546_v31 = vpack.c.bf16 %v6840_v47, %v6839_v29  ;;  %v6841_v35 = vld [vmem:[#allocation10 + $0x270] sm:$0xff] }
0x11bf   : > { %12991 = vmatmul.mubr.f32.gmra.mrb[218].mxu0 %v19452_v38  ;;  %6026 = vmatprep.mubr.f32.mxu1 %v21447_v21 }
0x11c0   : > { %12993 = vmatprep.mubr.f32.mxu0 %v19460_v45  ;;  %14531 = vmatprep.subr.bf16.mxu0 %v14530_v42 }
0x11c1   : > { %14533 = vmatpush3.bf16.msra.mxu0 %v14530_v42  ;;  %v6842_v42 = vld [vmem:[#allocation10 + $0x278] sm:$0xff] }
0x11c2   : > { %6027 = vmatmul.mubr.f32.gmra.mrb[236].mxu1 %v5876_v24  ;;  %14535 = vmatprep.subr.bf16.mxu0 %v14534_v54  ;;  %v6836_v24 = vld [vmem:[#allocation10 + $0x248] sm:$0xff]  ;;  %v14550_v18 = vpack.c.bf16 %v6842_v42, %v6841_v35 }
0x11c3   : > { %12994 = vmatmul.mubr.f32.gmra.mrb[220].mxu0 %v19464_v58  ;;  %6032 = vmatprep.mubr.f32.mxu1 %v21447_v21 }
0x11c4   : > { %12996 = vmatprep.mubr.f32.mxu0 %v19468_v57 }
0x11c5   : > { %14537 = vmatpush3.bf16.msra.mxu0 %v14534_v54 }
0x11c6   : > { %6033 = vmatmul.mubr.f32.gmra.mrb[238].mxu1 %v5877_v23  ;;  %v6835_v23 = vld [vmem:[#allocation10 + $0x240] sm:$0xff] }
0x11c7   : > { %12997 = vmatmul.mubr.f32.gmra.mrb[222].mxu0 %v19472_v28  ;;  %6248 = vmatprep.mubr.f32.mxu1 %v21447_v21  ;;  %v14538_v11 = vpack.c.bf16 %v6836_v24, %v6835_v23 }
0x11c9   : > { %14539 = vmatprep.subr.bf16.mxu0 %v14538_v11 }
0x11ca   : > { %6249 = vmatmul.mubr.f32.vlgmr.msra.gmra.mrb[208].mxu1 %v19350_v4  ;;  %14541 = vmatpush3.bf16.msra.mxu0 %v14538_v11 }
0x11cb   : > { %6254 = vmatprep.mubr.f32.mxu1 %v21447_v21  ;;  %14543 = vmatprep.subr.bf16.mxu0 %v14542_v13 }
0x11ce   : > { %6255 = vmatmul.mubr.f32.gmra.mrb[210].mxu1 %v19359_v16  ;;  %14545 = vmatpush3.bf16.msra.mxu0 %v14542_v13 }
0x11cf   : > { %6260 = vmatprep.mubr.f32.mxu1 %v21447_v21  ;;  %14547 = vmatprep.subr.bf16.mxu0 %v14546_v31 }
0x11d2   : > { %6261 = vmatmul.mubr.f32.gmra.mrb[212].mxu1 %v19367_v26  ;;  %14549 = vmatpush3.bf16.msra.mxu0 %v14546_v31 }
0x11d3   : > { %6266 = vmatprep.mubr.f32.mxu1 %v21447_v21  ;;  %14551 = vmatprep.subr.bf16.mxu0 %v14550_v18 }
0x11d6   : > { %6267 = vmatmul.mubr.f32.gmra.mrb[214].mxu1 %v19378_v17  ;;  %14553 = vmatpush3.bf16.msra.mxu0 %v14550_v18 }
0x11d7   : > { %6272 = vmatprep.mubr.f32.mxu1 %v21447_v21 }
0x11da   : > { %6273 = vmatmul.mubr.f32.gmra.mrb[216].mxu1 %v19388_v48 }
0x11db   : > { %6278 = vmatprep.mubr.f32.mxu1 %v21447_v21 }
0x11de   : > { %6279 = vmatmul.mubr.f32.gmra.mrb[218].mxu1 %v19394_v33 }
0x11df   : > { %6284 = vmatprep.mubr.f32.mxu1 %v21447_v21 }
0x11e2   : > { %6285 = vmatmul.mubr.f32.gmra.mrb[220].mxu1 %v19408_v62 }
0x11e3   : > { %6290 = vmatprep.mubr.f32.mxu1 %v21447_v21 }
0x11e6   : > { %6291 = vmatmul.mubr.f32.gmra.mrb[222].mxu1 %v19420_v0 }
0x11e7   : > { %6296 = vmatprep.mubr.f32.mxu1 %v21447_v21 }
0x11ea   : > { %6297 = vmatmul.mubr.f32.gmra.mrb[224].mxu1 %v19432_v51 }
0x11eb   : > { %6302 = vmatprep.mubr.f32.mxu1 %v21447_v21 }
0x11ee   : > { %6303 = vmatmul.mubr.f32.gmra.mrb[226].mxu1 %v19438_v30 }
0x11ef   : > { %6308 = vmatprep.mubr.f32.mxu1 %v21447_v21 }
0x11f2   : > { %6309 = vmatmul.mubr.f32.gmra.mrb[228].mxu1 %v19444_v41 }
0x11f3   : > { %6314 = vmatprep.mubr.f32.mxu1 %v21447_v21 }
0x11f6   : > { %6315 = vmatmul.mubr.f32.gmra.mrb[230].mxu1 %v19452_v38 }
0x11f7   : > { %6320 = vmatprep.mubr.f32.mxu1 %v21447_v21 }
0x11fa   : > { %6321 = vmatmul.mubr.f32.gmra.mrb[232].mxu1 %v19460_v45 }
0x11fb   : > { %6326 = vmatprep.mubr.f32.mxu1 %v21447_v21 }
0x11fe   : > { %6327 = vmatmul.mubr.f32.gmra.mrb[234].mxu1 %v19464_v58 }
0x11ff   : > { %6332 = vmatprep.mubr.f32.mxu1 %v21447_v21 }
0x1202   : > { %6333 = vmatmul.mubr.f32.gmra.mrb[236].mxu1 %v19468_v57 }
0x1203   : > { %6338 = vmatprep.mubr.f32.mxu1 %v21447_v21 }
0x1206   : > { %6339 = vmatmul.mubr.f32.gmra.mrb[238].mxu1 %v19472_v28 }
0x125e   : > { %v19665_v7 = vpop.f32.mrb[192].mxu0 }
0x125f   : > { %v19667_v54 = vpop.f32.mrb[193].mxu0 }
0x1262   : > { %v19669_v23 = vpop.f32.mrb[194].mxu0 }
0x1263   : > { %v19671_v24 = vpop.f32.mrb[195].mxu0 }
0x1266   : > { %v19673_v11 = vpop.f32.mrb[196].mxu0 }
0x1267   : > { %v19675_v22 = vpop.f32.mrb[197].mxu0 }
0x126a   : > { %v19677_v6 = vpop.f32.mrb[198].mxu0 }
0x126b   : > { %v19679_v13 = vpop.f32.mrb[199].mxu0 }
0x126e   : > { %v19681_v29 = vpop.f32.mrb[200].mxu0 }
0x126f   : > { %v19683_v47 = vpop.f32.mrb[201].mxu0 }
0x1272   : > { %v19685_v31 = vpop.f32.mrb[202].mxu0 }
0x1273   : > { %v19687_v35 = vpop.f32.mrb[203].mxu0 }
0x1276   : > { %v19689_v42 = vpop.f32.mrb[204].mxu0 }
0x1277   : > { %v19691_v18 = vpop.f32.mrb[205].mxu0 }
0x127a   : > { %v19693_v32 = vpop.f32.mrb[206].mxu0 }
0x127b   : > { %21481 = vst [vmem:[#allocation48_spill] sm:$0xff] %v19693_v32  ;;  %v19695_v34 = vpop.f32.mrb[207].mxu0 }
0x127c   : > { %21482 = vst [vmem:[#allocation97_spill] sm:$0xff] %v19695_v34 }
0x127e   : > { %v19697_v61 = vpop.f32.mrb[208].mxu0 }
0x127f   : > { %v19699_v27 = vpop.f32.mrb[209].mxu0 }
0x1282   : > { %v19701_v43 = vpop.f32.mrb[210].mxu0 }
0x1283   : > { %v19703_v20 = vpop.f32.mrb[211].mxu0 }
0x1286   : > { %v19705_v60 = vpop.f32.mrb[212].mxu0 }
0x1287   : > { %v19707_v9 = vpop.f32.mrb[213].mxu0 }
0x128a   : > { %v19709_v56 = vpop.f32.mrb[214].mxu0 }
0x128b   : > { %v19711_v59 = vpop.f32.mrb[215].mxu0 }
0x128e   : > { %v19713_v19 = vpop.f32.mrb[216].mxu0 }
0x128f   : > { %v19715_v39 = vpop.f32.mrb[217].mxu0 }
0x1292   : > { %v19717_v21 = vpop.f32.mrb[218].mxu0 }
0x1293   : > { %v19719_v1 = vpop.f32.mrb[219].mxu0 }
0x1296   : > { %v19721_v14 = vpop.f32.mrb[220].mxu0 }
0x1297   : > { %v19723_v50 = vpop.f32.mrb[221].mxu0 }
0x129a   : > { %v19725_v5 = vpop.f32.mrb[222].mxu0 }
0x129b   : > { %21483 = vst [vmem:[#allocation46_spill] sm:$0xff] %v19725_v5  ;;  %v19727_v37 = vpop.f32.mrb[223].mxu0 }
0x129d   : > { %v6250_v53 = vpop.f32.mrb[208].mxu1 }
0x129e   : > { %v15315_v49 = vadd.f32 %v18383_v12, %v6250_v53  ;;  %v6252_v8 = vpop.f32.mrb[209].mxu1 }
0x129f   : > { %v15317_v10 = vadd.f32 %v18387_v3, %v6252_v8 }
0x12a0   : > { %v10705_v25 = vmul.f32 -1.442695, %v15315_v49 }
0x12a1   : > { %v6256_v2 = vpop.f32.mrb[210].mxu1  ;;  %v10721_v15 = vmul.f32 -1.442695, %v15317_v10 }
0x12a2   : > { %16343 = vpow2.f32 %v10705_v25  ;;  %v15319_v46 = vadd.f32 %v18383_v12, %v6256_v2  ;;  %v6258_v40 = vpop.f32.mrb[211].mxu1 }
0x12a3   : > { %v15321_v36 = vadd.f32 %v18387_v3, %v6258_v40 }
0x12a4   : > { %v10706_v63 = vmul.f32 -1.442695, %v15319_v46 }
0x12a5   : > { %v6262_v44 = vpop.f32.mrb[212].mxu1  ;;  %v10722_v58 = vmul.f32 -1.442695, %v15321_v36 }
0x12a6   : > { %16345 = vpow2.f32 %v10706_v63  ;;  %v15323_v28 = vadd.f32 %v18383_v12, %v6262_v44  ;;  %v6264_v57 = vpop.f32.mrb[213].mxu1 }
0x12a7   : > { %16347 = vpow2.f32 %v10721_v15  ;;  %v15325_v53 = vadd.f32 %v18387_v3, %v6264_v57 }
0x12a8   : > { %v10707_v8 = vmul.f32 -1.442695, %v15323_v28 }
0x12a9   : > { %v10723_v49 = vmul.f32 -1.442695, %v15325_v53  ;;  %v6268_v32 = vpop.f32.mrb[214].mxu1 }
0x12aa   : > { %16349 = vpow2.f32 %v10707_v8  ;;  %v15327_v2 = vadd.f32 %v18383_v12, %v6268_v32  ;;  %v6270_v25 = vpop.f32.mrb[215].mxu1 }
0x12ab   : > { %v15329_v46 = vadd.f32 %v18387_v3, %v6270_v25  ;;  %16351 = vpow2.f32 %v10722_v58 }
0x12ac   : > { %v16344_v10 = vpop.eup %16343  ;;  %v10708_v40 = vmul.f32 -1.442695, %v15327_v2  ;;  %16353 = vpow2.f32 %v10723_v49 }
0x12ad   : > { %v6554_v63 = vadd.f32 1.0, %v16344_v10  ;;  %v10724_v44 = vmul.f32 -1.442695, %v15329_v46  ;;  %v6274_v45 = vpop.f32.mrb[216].mxu1 }
0x12ae   : > { %16355 = vpow2.f32 %v10708_v40  ;;  %v15331_v57 = vadd.f32 %v18383_v12, %v6274_v45  ;;  %v6276_v36 = vpop.f32.mrb[217].mxu1 }
0x12af   : > { %16357 = vrcp.f32 %v6554_v63  ;;  %v15333_v28 = vadd.f32 %v18387_v3, %v6276_v36 }
0x12b0   : > { %v16346_v15 = vpop.eup %16345  ;;  %v10709_v53 = vmul.f32 -1.442695, %v15331_v57  ;;  %16359 = vpow2.f32 %v10724_v44 }
0x12b1   : > { %v16348_v32 = vpop.eup %16347  ;;  %v6555_v8 = vadd.f32 1.0, %v16346_v15  ;;  %v10725_v25 = vmul.f32 -1.442695, %v15333_v28  ;;  %v6280_v5 = vpop.f32.mrb[218].mxu1 }
0x12b2   : > { %16361 = vpow2.f32 %v10709_v53  ;;  %v15335_v58 = vadd.f32 %v18383_v12, %v6280_v5  ;;  %v6282_v49 = vpop.f32.mrb[219].mxu1  ;;  %v6666_v45 = vadd.f32 1.0, %v16348_v32 }
0x12b3   : > { %16363 = vrcp.f32 %v6555_v8  ;;  %v15337_v2 = vadd.f32 %v18387_v3, %v6282_v49  ;;  %v6412_v8 = vadd.f32 %v19699_v27, %v18403_v55 }
0x12b4   : > { %v16350_v46 = vpop.eup %16349  ;;  %v10710_v10 = vmul.f32 -1.442695, %v15335_v58  ;;  %16365 = vpow2.f32 %v10725_v25 }
0x12b5   : > { %v6556_v40 = vadd.f32 1.0, %v16350_v46  ;;  %v10726_v63 = vmul.f32 -1.442695, %v15337_v2  ;;  %v6286_v36 = vpop.f32.mrb[220].mxu1  ;;  %v16352_v57 = vpop.eup %16351 }
0x12b6   : > { %16367 = vpow2.f32 %v10710_v10  ;;  %v15339_v44 = vadd.f32 %v18383_v12, %v6286_v36  ;;  %v6288_v28 = vpop.f32.mrb[221].mxu1  ;;  %v16354_v15 = vpop.eup %16353  ;;  %v6667_v49 = vadd.f32 1.0, %v16352_v57  ;;  %v6106_v10 = vadd.f32 %v19667_v54, %v18406_v52 }
0x12b7   : > { %16369 = vrcp.f32 %v6556_v40  ;;  %v15341_v5 = vadd.f32 %v18387_v3, %v6288_v28  ;;  %v6668_v38 = vadd.f32 1.0, %v16354_v15 }
0x12b8   : > { %v16356_v53 = vpop.eup %16355  ;;  %16371 = vrcp.f32 %v6666_v45  ;;  %v10711_v32 = vmul.f32 -1.442695, %v15339_v44  ;;  %v6417_v45 = vadd.f32 %v19697_v61, %v18403_v55  ;;  %v6422_v61 = vadd.f32 %v19703_v20, %v18403_v55 }
0x12b9   : > { %v16358_v58 = vpop.eup %16357  ;;  %v6557_v25 = vadd.f32 1.0, %v16356_v53  ;;  %16373 = vpow2.f32 %v10726_v63  ;;  %v10727_v2 = vmul.f32 -1.442695, %v15341_v5  ;;  %v6292_v46 = vpop.f32.mrb[222].mxu1 }
0x12ba   : > { %v6714_v36 = vmul.f32 %v16358_v58, %v6412_v8  ;;  %16375 = vpow2.f32 %v10711_v32  ;;  %v15343_v40 = vadd.f32 %v18383_v12, %v6292_v46  ;;  %v6294_v28 = vpop.f32.mrb[223].mxu1  ;;  %v16360_v34 = vpop.eup %16359  ;;  %v6111_v8 = vadd.f32 %v19665_v7, %v18406_v52 }
0x12bb   : > { %16377 = vrcp.f32 %v6557_v25  ;;  %v15345_v54 = vadd.f32 %v18387_v3, %v6294_v28  ;;  %v6669_v25 = vadd.f32 1.0, %v16360_v34  ;;  %v6116_v7 = vadd.f32 %v19671_v24, %v18406_v52 }
0x12bc   : > { %v16362_v27 = vpop.eup %16361  ;;  %v6730_v57 = vadd.f32 %v6714_v36, %v6106_v10  ;;  %16379 = vpow2.f32 %v10727_v2  ;;  %v10712_v5 = vmul.f32 -1.442695, %v15343_v40  ;;  %v6121_v34 = vadd.f32 %v19669_v23, %v18406_v52 }
0x12bd   : > { %v16364_v63 = vpop.eup %16363  ;;  %16381 = vrcp.f32 %v6667_v49  ;;  %v6558_v44 = vadd.f32 1.0, %v16362_v27  ;;  %v6298_v53 = vpop.f32.mrb[224].mxu1  ;;  %v10728_v36 = vmul.f32 -1.442695, %v15345_v54 }
0x12be   : > { %16383 = vtanh.f32 %v6730_v57  ;;  %v6715_v32 = vmul.f32 %v16364_v63, %v6417_v45  ;;  %v6300_v15 = vpop.f32.mrb[225].mxu1  ;;  %v16366_v58 = vpop.eup %16365  ;;  %v15347_v57 = vadd.f32 %v18383_v12, %v6298_v53  ;;  %v6437_v53 = vadd.f32 %v19705_v60, %v18403_v55 }
0x12bf   : > { %16385 = vrcp.f32 %v6668_v38  ;;  %v6670_v20 = vadd.f32 1.0, %v16366_v58  ;;  %v6432_v58 = vadd.f32 %v19707_v9, %v18403_v55 }
0x12c0   : > { %v16368_v46 = vpop.eup %16367  ;;  %v6731_v2 = vadd.f32 %v6715_v32, %v6111_v8  ;;  %16387 = vrcp.f32 %v6558_v44  ;;  %v6126_v44 = vadd.f32 %v19675_v22, %v18406_v52 }
0x12c1   : > { %v16370_v49 = vpop.eup %16369  ;;  %v6559_v10 = vadd.f32 1.0, %v16368_v46  ;;  %16389 = vpow2.f32 %v10712_v5  ;;  %v6304_v40 = vpop.f32.mrb[226].mxu1  ;;  %v6427_v5 = vadd.f32 %v19701_v43, %v18403_v55 }
0x12c2   : > { %v16372_v28 = vpop.eup %16371  ;;  %16391 = vtanh.f32 %v6731_v2  ;;  %v6716_v27 = vmul.f32 %v16370_v49, %v6422_v61  ;;  %v6306_v45 = vpop.f32.mrb[227].mxu1  ;;  %v15351_v46 = vadd.f32 %v18383_v12, %v6304_v40  ;;  %v10713_v2 = vmul.f32 -1.442695, %v15347_v57 }
0x12c3   : > { %v16374_v38 = vpop.eup %16373  ;;  %16393 = vrcp.f32 %v6669_v25  ;;  %v15349_v49 = vadd.f32 %v18387_v3, %v6300_v15 }
0x12c4   : > { %v16376_v63 = vpop.eup %16375  ;;  %v6732_v54 = vadd.f32 %v6716_v27, %v6116_v7  ;;  %16395 = vrcp.f32 %v6559_v10  ;;  %v6671_v8 = vadd.f32 1.0, %v16374_v38  ;;  %v6762_v10 = vsub.f32 1.0, %v16372_v28 }
0x12c5   : > { %v16378_v24 = vpop.eup %16377  ;;  %v6560_v32 = vadd.f32 1.0, %v16376_v63  ;;  %16397 = vpow2.f32 %v10728_v36  ;;  %v6310_v23 = vpop.f32.mrb[228].mxu1  ;;  %v10714_v60 = vmul.f32 -1.442695, %v15351_v46 }
0x12c6   : > { %v16380_v25 = vpop.eup %16379  ;;  %16399 = vtanh.f32 %v6732_v54  ;;  %v6717_v22 = vmul.f32 %v16378_v24, %v6427_v5  ;;  %v6312_v61 = vpop.f32.mrb[229].mxu1  ;;  %v15355_v27 = vadd.f32 %v18383_v12, %v6310_v23  ;;  %v6794_v5 = vmul.f32 %v16372_v28, %v19350_v4 }
0x12c7   : > { %v16382_v43 = vpop.eup %16381  ;;  %16401 = vrcp.f32 %v6670_v20  ;;  %v6672_v40 = vadd.f32 1.0, %v16380_v25  ;;  %v15353_v20 = vadd.f32 %v18387_v3, %v6306_v45  ;;  %v10729_v25 = vmul.f32 -1.442695, %v15349_v49 }
0x12c8   : > { %v16384_v36 = vpop.eup %16383  ;;  %v6733_v7 = vadd.f32 %v6717_v22, %v6121_v34  ;;  %16403 = vrcp.f32 %v6560_v32  ;;  %v6763_v24 = vsub.f32 1.0, %v16382_v43  ;;  %v6795_v57 = vmul.f32 %v16382_v43, %v19359_v16 }
0x12c9   : > { %v16386_v38 = vpop.eup %16385  ;;  %16405 = vrcp.f32 %v6671_v8  ;;  %v6316_v63 = vpop.f32.mrb[230].mxu1  ;;  %v6778_v9 = vmul.f32 %v16384_v36, %v6762_v10  ;;  %v10715_v22 = vmul.f32 -1.442695, %v15355_v27  ;;  %v15357_v4 = vadd.f32 %v18387_v3, %v6312_v61 }
0x12ca   : > { %v16388_v54 = vpop.eup %16387  ;;  %16407 = vtanh.f32 %v6733_v7  ;;  %v6318_v15 = vpop.f32.mrb[231].mxu1  ;;  %v15359_v45 = vadd.f32 %v18383_v12, %v6316_v63  ;;  %v6131_v43 = vadd.f32 %v19673_v11, %v18406_v52  ;;  %v10730_v49 = vmul.f32 -1.442695, %v15353_v20 }
0x12cb   : > { %v16390_v34 = vpop.eup %16389  ;;  %v6718_v32 = vmul.f32 %v16388_v54, %v6432_v58  ;;  %16409 = vpow2.f32 %v10713_v2  ;;  %v19774_v23 = vadd.f32 %v6794_v5, %v6778_v9  ;;  %v6442_v2 = vadd.f32 %v19711_v59, %v18403_v55 }
0x12cc   : > { %v16392_v8 = vpop.eup %16391  ;;  %16411 = vrcp.f32 %v6672_v40  ;;  %v6561_v46 = vadd.f32 1.0, %v16390_v34  ;;  %v6764_v27 = vsub.f32 1.0, %v16386_v38  ;;  %v10731_v63 = vmul.f32 -1.442695, %v15357_v4 }
0x12cd   : > { %v16394_v28 = vpop.eup %16393  ;;  %v6734_v10 = vadd.f32 %v6718_v32, %v6126_v44  ;;  %16413 = vpow2.f32 %v10714_v60  ;;  %v6322_v36 = vpop.f32.mrb[232].mxu1  ;;  %13031 = vmatprep.mubr.f32.mxu0 %v19774_v23  ;;  %v6779_v16 = vmul.f32 %v16392_v8, %v6763_v24  ;;  %v15361_v9 = vadd.f32 %v18387_v3, %v6318_v15 }
0x12ce   : > { %v16396_v58 = vpop.eup %16395  ;;  %16415 = vrcp.f32 %v6561_v46  ;;  %v6324_v7 = vpop.f32.mrb[233].mxu1  ;;  %v6796_v5 = vmul.f32 %v16386_v38, %v19367_v26  ;;  %v10716_v59 = vmul.f32 -1.442695, %v15359_v45  ;;  %v15363_v26 = vadd.f32 %v18383_v12, %v6322_v36 }
0x12cf   : > { %v16398_v61 = vpop.eup %16397  ;;  %16417 = vtanh.f32 %v6734_v10  ;;  %v6719_v44 = vmul.f32 %v16396_v58, %v6437_v53  ;;  %v19783_v40 = vadd.f32 %v6795_v57, %v6779_v16  ;;  %v6136_v53 = vadd.f32 %v19679_v13, %v18406_v52 }
0x12d0   : > { %v16400_v60 = vpop.eup %16399  ;;  %16419 = vpow2.f32 %v10729_v25  ;;  %v6673_v57 = vadd.f32 1.0, %v16398_v61  ;;  %v6765_v25 = vsub.f32 1.0, %v16394_v28  ;;  %v10732_v45 = vmul.f32 -1.442695, %v15361_v9 }
0x12d1   : > { %v16402_v11 = vpop.eup %16401  ;;  %v6735_v54 = vadd.f32 %v6719_v44, %v6131_v43  ;;  %16421 = vpow2.f32 %v10715_v22  ;;  %v6328_v24 = vpop.f32.mrb[234].mxu1  ;;  %13032 = vmatmul.mubr.f32.vlgmr.msra.gmra.mrb[224].mxu0 %v19783_v40  ;;  %v6780_v20 = vmul.f32 %v16400_v60, %v6764_v27  ;;  %v6797_v22 = vmul.f32 %v16394_v28, %v19378_v17 }
0x12d2   : > { %v16404_v34 = vpop.eup %16403  ;;  %16423 = vpow2.f32 %v10730_v49  ;;  %v6330_v32 = vpop.f32.mrb[235].mxu1  ;;  %v15365_v36 = vadd.f32 %v18387_v3, %v6324_v7  ;;  %v6447_v17 = vadd.f32 %v19709_v56, %v18403_v55  ;;  %v10717_v28 = vmul.f32 -1.442695, %v15363_v26 }
0x12d3   : > { %v16406_v8 = vpop.eup %16405  ;;  %16425 = vtanh.f32 %v6735_v54  ;;  %v6720_v15 = vmul.f32 %v16404_v34, %v6442_v2  ;;  %v19791_v38 = vadd.f32 %v6796_v5, %v6780_v20  ;;  %v15367_v60 = vadd.f32 %v18383_v12, %v6328_v24 }
0x12d4   : > { %v16408_v46 = vpop.eup %16407  ;;  %16427 = vpow2.f32 %v10731_v63  ;;  %v6766_v63 = vsub.f32 1.0, %v16402_v11  ;;  %v6141_v7 = vadd.f32 %v19677_v6, %v18406_v52 }
0x12d5   : > { %v16410_v4 = vpop.eup %16409  ;;  %v6736_v10 = vadd.f32 %v6720_v15, %v6136_v53  ;;  %16429 = vpow2.f32 %v10716_v59  ;;  %v6334_v13 = vpop.f32.mrb[236].mxu1  ;;  %13034 = vmatprep.mubr.f32.mxu0 %v19791_v38  ;;  %v6781_v16 = vmul.f32 %v16408_v46, %v6765_v25  ;;  %v10733_v59 = vmul.f32 -1.442695, %v15365_v36 }
0x12d6   : > { %v19795_v58 = vpop.eup %16411  ;;  %16431 = vrcp.f32 %v6673_v57  ;;  %v6562_v43 = vadd.f32 1.0, %v16410_v4  ;;  %v19798_v2 = vpop.f32.mrb[237].mxu1  ;;  %v6798_v53 = vmul.f32 %v16402_v11, %v19388_v48  ;;  %v6767_v25 = vsub.f32 1.0, %v16406_v8 }
0x12d7   : > { %v16414_v49 = vpop.eup %16413  ;;  %16433 = vtanh.f32 %v6736_v10  ;;  %v19802_v61 = vadd.f32 %v6797_v22, %v6781_v16  ;;  %v10718_v6 = vmul.f32 -1.442695, %v15367_v60  ;;  %v15369_v46 = vadd.f32 %v18387_v3, %v6330_v32 }
0x12d8   : > { %v16416_v44 = vpop.eup %16415  ;;  %16435 = vrcp.f32 %v6562_v43  ;;  %v6563_v27 = vadd.f32 1.0, %v16414_v49  ;;  %v6799_v11 = vmul.f32 %v16406_v8, %v19394_v33  ;;  %v6768_v49 = vsub.f32 1.0, %v19795_v58 }
0x12d9   : > { %v16418_v9 = vpop.eup %16417  ;;  %v6721_v5 = vmul.f32 %v16416_v44, %v6447_v17  ;;  %16437 = vpow2.f32 %v10732_v45  ;;  %v6340_v54 = vpop.f32.mrb[238].mxu1  ;;  %13035 = vmatmul.mubr.f32.gmra.mrb[226].mxu0 %v19802_v61  ;;  %v15371_v45 = vadd.f32 %v18383_v12, %v6334_v13  ;;  %v6146_v13 = vadd.f32 %v19683_v47, %v18406_v52 }
0x12da   : > { %v16420_v56 = vpop.eup %16419  ;;  %16439 = vrcp.f32 %v6563_v27  ;;  %v19808_v20 = vpop.f32.mrb[239].mxu1  ;;  %v6782_v34 = vmul.f32 %v16418_v9, %v6766_v63  ;;  %v6452_v60 = vadd.f32 %v19715_v39, %v18403_v55  ;;  %v15375_v47 = vadd.f32 %v18383_v12, %v6340_v54 }
0x12db   : > { %v16422_v57 = vpop.eup %16421  ;;  %v6737_v24 = vadd.f32 %v6721_v5, %v6141_v7  ;;  %16441 = vpow2.f32 %v10717_v28  ;;  %v6674_v10 = vadd.f32 1.0, %v16420_v56  ;;  %v10734_v28 = vmul.f32 -1.442695, %v15369_v46 }
0x12dc   : > { %v16424_v15 = vpop.eup %16423  ;;  %v6564_v26 = vadd.f32 1.0, %v16422_v57  ;;  %v19812_v22 = vadd.f32 %v6798_v53, %v6782_v34  ;;  %v10719_v33 = vmul.f32 -1.442695, %v15371_v45  ;;  %v6800_v7 = vmul.f32 %v19795_v58, %v19408_v62 }
0x12dd   : > { %v16426_v4 = vpop.eup %16425  ;;  %16443 = vtanh.f32 %v6737_v24  ;;  %v6675_v36 = vadd.f32 1.0, %v16424_v15  ;;  %v6457_v56 = vadd.f32 %v19713_v19, %v18403_v55  ;;  %v15373_v34 = vadd.f32 %v18387_v3, %v19798_v2 }
0x12de   : > { %v16428_v16 = vpop.eup %16427  ;;  %16445 = vpow2.f32 %v10733_v59  ;;  %13037 = vmatprep.mubr.f32.mxu0 %v19812_v22  ;;  %v6783_v48 = vmul.f32 %v16426_v4, %v6767_v25  ;;  %v6151_v24 = vadd.f32 %v19681_v29, %v18406_v52 }
0x12df   : > { %v16430_v43 = vpop.eup %16429  ;;  %16447 = vrcp.f32 %v6564_v26  ;;  %v6676_v63 = vadd.f32 1.0, %v16428_v16  ;;  %v6462_v26 = vadd.f32 %v19719_v1, %v18403_v55  ;;  %v10735_v4 = vmul.f32 -1.442695, %v15373_v34 }
0x12e0   : > { %v16432_v32 = vpop.eup %16431  ;;  %v6565_v17 = vadd.f32 1.0, %v16430_v43  ;;  %16449 = vpow2.f32 %v10718_v6  ;;  %v19818_v44 = vadd.f32 %v6799_v11, %v6783_v48  ;;  %v10720_v6 = vmul.f32 -1.442695, %v15375_v47 }
0x12e1   : > { %v16434_v27 = vpop.eup %16433  ;;  %16451 = vrcp.f32 %v6674_v10  ;;  %v6769_v54 = vsub.f32 1.0, %v16432_v32  ;;  %v6801_v10 = vmul.f32 %v16432_v32, %v19420_v0  ;;  %v6156_v16 = vadd.f32 %v19687_v35, %v18406_v52 }
0x12e2   : > { %v16436_v8 = vpop.eup %16435  ;;  %16453 = vrcp.f32 %v6565_v17  ;;  %13038 = vmatmul.mubr.f32.gmra.mrb[228].mxu0 %v19818_v44  ;;  %v6784_v9 = vmul.f32 %v16434_v27, %v6768_v49  ;;  %v15377_v1 = vadd.f32 %v18387_v3, %v19808_v20  ;;  %v6467_v49 = vadd.f32 %v19717_v21, %v18403_v55 }
0x12e3   : > { %v16438_v5 = vpop.eup %16437  ;;  %v6722_v59 = vmul.f32 %v16436_v8, %v6452_v60  ;;  %16455 = vrcp.f32 %v6675_v36  ;;  %v6161_v27 = vadd.f32 %v19685_v31, %v18406_v52 }
0x12e4   : > { %v16440_v39 = vpop.eup %16439  ;;  %16457 = vpow2.f32 %v10734_v28  ;;  %v19832_v53 = vadd.f32 %v6800_v7, %v6784_v9  ;;  %v6677_v19 = vadd.f32 1.0, %v16438_v5  ;;  %v10736_v60 = vmul.f32 -1.442695, %v15377_v1 }
0x12e5   : > { %v16442_v57 = vpop.eup %16441  ;;  %v6738_v62 = vadd.f32 %v6722_v59, %v6146_v13  ;;  %v6723_v58 = vmul.f32 %v16440_v39, %v6457_v56  ;;  %16459 = vpow2.f32 %v10719_v33  ;;  %v6472_v5 = vadd.f32 %v19723_v50, %v18403_v55 }
0x12e6   : > { %16461 = vrcp.f32 %v6676_v63  ;;  %v6566_v25 = vadd.f32 1.0, %v16442_v57  ;;  %13040 = vmatprep.mubr.f32.mxu0 %v19832_v53  ;;  %v6166_v57 = vadd.f32 %v19691_v18, %v18406_v52 }
0x12e7   : > { %v16444_v15 = vpop.eup %16443  ;;  %16463 = vtanh.f32 %v6738_v62  ;;  %v6739_v2 = vadd.f32 %v6723_v58, %v6151_v24 }
0x12e8   : > { %v16446_v46 = vpop.eup %16445  ;;  %16465 = vrcp.f32 %v6566_v25  ;;  %v6785_v29 = vmul.f32 %v16444_v15, %v6769_v54  ;;  %v6477_v15 = vadd.f32 %v19721_v14, %v18403_v55 }
0x12e9   : > { %v16448_v45 = vpop.eup %16447  ;;  %16467 = vtanh.f32 %v6739_v2  ;;  %v6678_v28 = vadd.f32 1.0, %v16446_v46 }
0x12ea   : > { %v16450_v48 = vpop.eup %16449  ;;  %v6724_v11 = vmul.f32 %v16448_v45, %v6462_v26  ;;  %16469 = vrcp.f32 %v6677_v19  ;;  %v19844_v43 = vadd.f32 %v6801_v10, %v6785_v29 }
0x12eb   : > { %v16452_v36 = vpop.eup %16451  ;;  %v6567_v17 = vadd.f32 1.0, %v16450_v48  ;;  %16471 = vpow2.f32 %v10720_v6 }
0x12ec   : > { %v16454_v0 = vpop.eup %16453  ;;  %v6740_v32 = vadd.f32 %v6724_v11, %v6156_v16  ;;  %16473 = vpow2.f32 %v10735_v4  ;;  %13041 = vmatmul.mubr.f32.gmra.mrb[230].mxu0 %v19844_v43  ;;  %v6770_v9 = vsub.f32 1.0, %v16452_v36  ;;  %v6802_v56 = vmul.f32 %v16452_v36, %v19432_v51 }
0x12ed   : > { %v16456_v35 = vpop.eup %16455  ;;  %v6725_v13 = vmul.f32 %v16454_v0, %v6467_v49  ;;  %16475 = vrcp.f32 %v6567_v17  ;;  %v6171_v4 = vadd.f32 %v19689_v42, %v18406_v52  ;;  %v6482_v49 = vadd.f32 %v19727_v37, %v18403_v55  ;;  %v21484_v17 = vld [vmem:[#allocation42_spill] sm:$0xff] }
0x12ee   : > { %v16458_v20 = vpop.eup %16457  ;;  %16477 = vtanh.f32 %v6740_v32  ;;  %v6771_v39 = vsub.f32 1.0, %v16456_v35  ;;  %v6803_v50 = vmul.f32 %v16456_v35, %v19438_v30 }
0x12ef   : > { %v16460_v33 = vpop.eup %16459  ;;  %v6741_v8 = vadd.f32 %v6725_v13, %v6161_v27  ;;  %16479 = vrcp.f32 %v6678_v28  ;;  %v6679_v31 = vadd.f32 1.0, %v16458_v20 }
0x12f0   : > { %v16462_v21 = vpop.eup %16461  ;;  %v6568_v63 = vadd.f32 1.0, %v16460_v33 }
0x12f1   : > { %v16464_v7 = vpop.eup %16463  ;;  %16481 = vtanh.f32 %v6741_v8  ;;  %v6772_v6 = vsub.f32 1.0, %v16462_v21  ;;  %v6804_v14 = vmul.f32 %v16462_v21, %v19444_v41  ;;  %v21485_v41 = vld [vmem:[#allocation97_spill] sm:$0xff]  ;;  %v21487_v8 = vld [vmem:[#allocation46_spill] sm:$0xff] }
0x12f2   : > { %v16466_v59 = vpop.eup %16465  ;;  %16483 = vpow2.f32 %v10736_v60  ;;  %v6786_v47 = vmul.f32 %v16464_v7, %v6770_v9  ;;  %v6176_v28 = vadd.f32 %v21485_v41, %v18406_v52  ;;  %v6487_v21 = vadd.f32 %v21487_v8, %v18403_v55  ;;  %v21488_v7 = vld [vmem:[#allocation44_spill] sm:$0xff] }
0x12f3   : > { %v16468_v34 = vpop.eup %16467  ;;  %v6726_v24 = vmul.f32 %v16466_v59, %v6472_v5  ;;  %16485 = vrcp.f32 %v6568_v63  ;;  %v7162_v8 = vld [vmem:[#allocation11 + $0x258] sm:$0xff] }
0x12f4   : > { %v16470_v62 = vpop.eup %16469  ;;  %v19856_v58 = vadd.f32 %v6802_v56, %v6786_v47  ;;  %v6787_v19 = vmul.f32 %v16468_v34, %v6771_v39  ;;  %16487 = vrcp.f32 %v6679_v31  ;;  %v21489_v56 = vld [vmem:[#allocation48_spill] sm:$0xff] }
0x12f5   : > { %v16472_v25 = vpop.eup %16471  ;;  %v6742_v54 = vadd.f32 %v6726_v24, %v6166_v57  ;;  %v6773_v48 = vsub.f32 1.0, %v16470_v62  ;;  %v6805_v0 = vmul.f32 %v16470_v62, %v21484_v17  ;;  %v6181_v59 = vadd.f32 %v21489_v56, %v18406_v52  ;;  %v21491_v62 = vld [vmem:[#allocation45_spill] sm:$0xff] }
0x12f6   : > { %v16474_v51 = vpop.eup %16473  ;;  %v6569_v26 = vadd.f32 1.0, %v16472_v25  ;;  %13043 = vmatprep.mubr.f32.mxu0 %v19856_v58  ;;  %v19862_v2 = vadd.f32 %v6803_v50, %v6787_v19 }
0x12f7   : > { %v16476_v18 = vpop.eup %16475  ;;  %16489 = vtanh.f32 %v6742_v54  ;;  %v6680_v16 = vadd.f32 1.0, %v16474_v51 }
0x12f8   : > { %v16478_v46 = vpop.eup %16477  ;;  %v6727_v30 = vmul.f32 %v16476_v18, %v6477_v15  ;;  %16491 = vrcp.f32 %v6569_v26  ;;  %13044 = vmatmul.mubr.f32.gmra.mrb[232].mxu0 %v19862_v2  ;;  %v21493_v18 = vld [vmem:[#allocation47_spill] sm:$0xff] }
0x12f9   : > { %v6788_v29 = vmul.f32 %v16478_v46, %v6772_v6  ;;  %v16480_v10 = vpop.eup %16479 }
0x12fa   : > { %v6743_v45 = vadd.f32 %v6727_v30, %v6171_v4  ;;  %v6774_v37 = vsub.f32 1.0, %v16480_v10  ;;  %v6806_v5 = vmul.f32 %v16480_v10, %v21488_v7  ;;  %v7164_v7 = vld [vmem:[#allocation11 + $0x268] sm:$0xff] }
0x12fb   : > { %v16482_v11 = vpop.eup %16481  ;;  %v19868_v1 = vadd.f32 %v6804_v14, %v6788_v29  ;;  %v21495_v14 = vld [vmem:[#allocation43_spill] sm:$0xff] }
0x12fc   : > { %v16484_v36 = vpop.eup %16483  ;;  %16493 = vtanh.f32 %v6743_v45  ;;  %v6789_v42 = vmul.f32 %v16482_v11, %v6773_v48  ;;  %v7151_v48 = vld [vmem:[#allocation11 + $0x200] sm:$0xff]  ;;  %v7152_v11 = vld [vmem:[#allocation11 + $0x208] sm:$0xff] }
0x12fd   : > { %v16486_v32 = vpop.eup %16485  ;;  %13046 = vmatprep.mubr.f32.mxu0 %v19868_v1  ;;  %16495 = vrcp.f32 %v6680_v16  ;;  %v6681_v13 = vadd.f32 1.0, %v16484_v36  ;;  %v16871_v16 = vld [vmem:[%s17876_s22] sm:$0xff]  ;;  %v7153_v36 = vld [vmem:[#allocation11 + $0x210] sm:$0xff] }
0x12fe   : > { %v6728_v35 = vmul.f32 %v16486_v32, %v6482_v49  ;;  %v19876_v27 = vadd.f32 %v6805_v0, %v6789_v42  ;;  %v16488_v20 = vpop.eup %16487  ;;  %v14586_v49 = vpack.c.bf16 %v7152_v11, %v7151_v48  ;;  %v7154_v42 = vld [vmem:[#allocation11 + $0x218] sm:$0xff]  ;;  %v7155_v0 = vld [vmem:[#allocation11 + $0x220] sm:$0xff]  ;;  %v7156_v32 = vld [vmem:[#allocation11 + $0x228] sm:$0xff] }
0x12ff   : > { %v6775_v34 = vsub.f32 1.0, %v16488_v20  ;;  %v6807_v19 = vmul.f32 %v16488_v20, %v21491_v62  ;;  %v14590_v17 = vpack.c.bf16 %v7154_v42, %v7153_v36  ;;  %v14594_v41 = vpack.c.bf16 %v7156_v32, %v7155_v0  ;;  %v7159_v20 = vld [vmem:[#allocation11 + $0x240] sm:$0xff] }
0x1300   : > { %21486 = vst [vmem:[#allocation42_spill] sm:$0xff] %v19876_v27  ;;  %v6744_v60 = vadd.f32 %v6728_v35, %v6176_v28  ;;  %13047 = vmatmul.mubr.f32.gmra.mrb[234].mxu0 %v19876_v27  ;;  %14587 = vmatprep.subr.bf16.mxu1 %v14586_v49  ;;  %v7157_v28 = vld [vmem:[#allocation11 + $0x230] sm:$0xff]  ;;  %v7158_v35 = vld [vmem:[#allocation11 + $0x238] sm:$0xff] }
0x1301   : > { %v16490_v33 = vpop.eup %16489  ;;  %14589 = vmatpush3.bf16.msra.mxu1 %v14586_v49 }
0x1302   : > { %v16492_v63 = vpop.eup %16491  ;;  %16497 = vtanh.f32 %v6744_v60  ;;  %v6790_v9 = vmul.f32 %v16490_v33, %v6774_v37  ;;  %14591 = vmatprep.subr.bf16.mxu1 %v14590_v17  ;;  %v7160_v60 = vld [vmem:[#allocation11 + $0x248] sm:$0xff]  ;;  %v7161_v33 = vld [vmem:[#allocation11 + $0x250] sm:$0xff] }
0x1303   : > { %v6729_v31 = vmul.f32 %v16492_v63, %v6487_v21  ;;  %16499 = vrcp.f32 %v6681_v13  ;;  %v14598_v13 = vpack.c.bf16 %v7158_v35, %v7157_v28  ;;  %v14602_v37 = vpack.c.bf16 %v7160_v60, %v7159_v20  ;;  %v19900_v21 = vld [vmem:[#allocation20 + $0x5] ss:$0 sm:$0xff] }
0x1304   : > { %v19884_v47 = vadd.f32 %v6806_v5, %v6790_v9  ;;  %v14606_v63 = vpack.c.bf16 %v7162_v8, %v7161_v33  ;;  %v7163_v9 = vld [vmem:[#allocation11 + $0x260] sm:$0xff] }
0x1305   : > { %v6745_v39 = vadd.f32 %v6729_v31, %v6181_v59  ;;  %14593 = vmatpush3.bf16.msra.mxu1 %v14590_v17 }
0x1306   : > { %21490 = vst [vmem:[#allocation97_spill] sm:$0xff] %v19884_v47  ;;  %v16494_v57 = vpop.eup %16493  ;;  %13049 = vmatprep.mubr.f32.mxu0 %v19884_v47  ;;  %14595 = vmatprep.subr.bf16.mxu1 %v14594_v41 }
0x1307   : > { %16501 = vtanh.f32 %v6745_v39  ;;  %v6791_v24 = vmul.f32 %v16494_v57, %v6775_v34  ;;  %v16496_v50 = vpop.eup %16495  ;;  %v14610_v39 = vpack.c.bf16 %v7164_v7, %v7163_v9  ;;  %v7165_v57 = vld [vmem:[#allocation11 + $0x270] sm:$0xff] }
0x1308   : > { %v6776_v54 = vsub.f32 1.0, %v16496_v50  ;;  %v6808_v6 = vmul.f32 %v16496_v50, %v21493_v18 }
0x1309   : > { %v19888_v25 = vadd.f32 %v6807_v19, %v6791_v24  ;;  %14597 = vmatpush3.bf16.msra.mxu1 %v14594_v41  ;;  %v7166_v24 = vld [vmem:[#allocation11 + $0x278] sm:$0xff] }
0x130a   : > { %14599 = vmatprep.subr.bf16.mxu1 %v14598_v13  ;;  %v14614_v50 = vpack.c.bf16 %v7166_v24, %v7165_v57 }
0x130b   : > { %21492 = vst [vmem:[#allocation46_spill] sm:$0xff] %v19888_v25  ;;  %13050 = vmatmul.mubr.f32.gmra.mrb[236].mxu0 %v19888_v25 }
0x130c   : > { %v16498_v51 = vpop.eup %16497 }
0x130d   : > { %v16500_v15 = vpop.eup %16499  ;;  %v6792_v26 = vmul.f32 %v16498_v51, %v6776_v54  ;;  %14601 = vmatpush3.bf16.msra.mxu1 %v14598_v13 }
0x130e   : > { %v6777_v4 = vsub.f32 1.0, %v16500_v15  ;;  %v6809_v10 = vmul.f32 %v16500_v15, %v21495_v14  ;;  %14603 = vmatprep.subr.bf16.mxu1 %v14602_v37 }
0x130f   : > { %v19892_v46 = vadd.f32 %v6808_v6, %v6792_v26 }
0x1311   : > { %21494 = vst [vmem:[#allocation44_spill] sm:$0xff] %v19892_v46  ;;  %v16502_v30 = vpop.eup %16501  ;;  %13052 = vmatprep.mubr.f32.mxu0 %v19892_v46  ;;  %14605 = vmatpush3.bf16.msra.mxu1 %v14602_v37 }
0x1312   : > { %v6793_v29 = vmul.f32 %v16502_v30, %v6777_v4  ;;  %14607 = vmatprep.subr.bf16.mxu1 %v14606_v63  ;;  %v21497_v30 = vld [vmem:[#allocation51_spill] sm:$0xff] }
0x1314   : > { %v19896_v45 = vadd.f32 %v6809_v10, %v6793_v29 }
0x1315   : > { %14609 = vmatpush3.bf16.msra.mxu1 %v14606_v63 }
0x1316   : > { %21496 = vst [vmem:[#allocation48_spill] sm:$0xff] %v19896_v45  ;;  %13053 = vmatmul.mubr.f32.gmra.mrb[238].mxu0 %v19896_v45  ;;  %14611 = vmatprep.subr.bf16.mxu1 %v14610_v39 }
0x1317   : > { %13087 = vmatprep.mubr.f32.mxu0 %v16871_v16 }
0x1319   : > { %14613 = vmatpush3.bf16.msra.mxu1 %v14610_v39 }
0x131a   : > { %14615 = vmatprep.subr.bf16.mxu1 %v14614_v50 }
0x131d   : > { %14617 = vmatpush3.bf16.msra.mxu1 %v14614_v50 }
0x131e   : > { %14651 = vmatprep.subr.bf16.mxu1 %v21497_v30 }
0x13a4   : > { %v13033_v5 = vpop.f32.mrb[224].mxu0 }
0x13a5   : > { %v6916_v56 = vadd.f32 %v13033_v5, %v19900_v21  ;;  %v6910_v59 = vpop.f32.mrb[225].mxu0 }
0x13a6   : > { %v6911_v31 = vadd.f32 %v6910_v59, %v19900_v21 }
0x13a7   : > { %v6990_v34 = vmax.f32 %v6916_v56, 0.0 }
0x13a8   : > { %v6989_v62 = vmax.f32 %v6911_v31, 0.0 }
0x13aa   : > { %v14554_v19 = vpack.c.bf16 %v6990_v34, %v6989_v62 }
0x13ac   : > { %v13036_v54 = vpop.f32.mrb[226].mxu0  ;;  %14555 = vmatprep.subr.bf16.mxu0 %v14554_v19 }
0x13ad   : > { %v6926_v51 = vadd.f32 %v13036_v54, %v19900_v21  ;;  %v6920_v15 = vpop.f32.mrb[227].mxu0  ;;  %14557 = vmatpush3.bf16.msra.mxu0 %v14554_v19 }
0x13ae   : > { %v6921_v26 = vadd.f32 %v6920_v15, %v19900_v21 }
0x13af   : > { %v6992_v18 = vmax.f32 %v6926_v51, 0.0 }
0x13b0   : > { %v6991_v6 = vmax.f32 %v6921_v26, 0.0 }
0x13b2   : > { %v14558_v4 = vpack.c.bf16 %v6992_v18, %v6991_v6 }
0x13b4   : > { %14559 = vmatprep.subr.bf16.mxu0 %v14558_v4 }
0x13b5   : > { %v13039_v29 = vpop.f32.mrb[228].mxu0  ;;  %14561 = vmatpush3.bf16.msra.mxu0 %v14558_v4 }
0x13b6   : > { %v6936_v14 = vadd.f32 %v13039_v29, %v19900_v21  ;;  %v6930_v10 = vpop.f32.mrb[229].mxu0  ;;  %v21498_v29 = vld [vmem:[#allocation49_spill] sm:$0xff] }
0x13b7   : > { %v6931_v16 = vadd.f32 %v6930_v10, %v19900_v21  ;;  %v16873_v10 = vld [vmem:[%s17876_s22 + $0x10] sm:$0xff] }
0x13b8   : > { %v6994_v48 = vmax.f32 %v6936_v14, 0.0  ;;  %v16872_v14 = vld [vmem:[%s17876_s22 + $0x8] sm:$0xff] }
0x13b9   : > { %v6993_v11 = vmax.f32 %v6931_v16, 0.0  ;;  %v21499_v16 = vld [vmem:[#allocation50_spill] sm:$0xff] }
0x13bb   : > { %v14562_v36 = vpack.c.bf16 %v6994_v48, %v6993_v11  ;;  %v21500_v48 = vld [vmem:[#allocation52_spill] sm:$0xff]  ;;  %v16875_v11 = vld [vmem:[%s17876_s22 + $0x20] sm:$0xff] }
0x13bd   : > { %14563 = vmatprep.subr.bf16.mxu0 %v14562_v36 }
0x13be   : > { %14565 = vmatpush3.bf16.msra.mxu0 %v14562_v36  ;;  %v21501_v36 = vld [vmem:[#allocation53_spill] sm:$0xff] }
0x13bf   : > { %v13042_v49 = vpop.f32.mrb[230].mxu0 }
0x13c0   : > { %v6946_v42 = vadd.f32 %v13042_v49, %v19900_v21  ;;  %v6940_v17 = vpop.f32.mrb[231].mxu0  ;;  %v21502_v49 = vld [vmem:[#allocation54_spill] sm:$0xff] }
0x13c1   : > { %v6941_v0 = vadd.f32 %v6940_v17, %v19900_v21  ;;  %v16877_v17 = vld [vmem:[%s17876_s22 + $0x30] sm:$0xff] }
0x13c2   : > { %v6996_v32 = vmax.f32 %v6946_v42, 0.0  ;;  %v16876_v42 = vld [vmem:[%s17876_s22 + $0x28] sm:$0xff] }
0x13c3   : > { %v6995_v41 = vmax.f32 %v6941_v0, 0.0  ;;  %v21503_v0 = vld [vmem:[#allocation55_spill] sm:$0xff] }
0x13c5   : > { %v14566_v28 = vpack.c.bf16 %v6996_v32, %v6995_v41  ;;  %v21504_v32 = vld [vmem:[#allocation56_spill] sm:$0xff] }
0x13c6   : > { %v16878_v41 = vld [vmem:[%s17876_s22 + $0x38] sm:$0xff] }
0x13c7   : > { %14567 = vmatprep.subr.bf16.mxu0 %v14566_v28 }
0x13c8   : > { %14569 = vmatpush3.bf16.msra.mxu0 %v14566_v28  ;;  %v16879_v28 = vld [vmem:[%s17876_s22 + $0x40] sm:$0xff] }
0x13cb   : > { %v13045_v35 = vpop.f32.mrb[232].mxu0 }
0x13cc   : > { %v6956_v13 = vadd.f32 %v13045_v35, %v19900_v21  ;;  %v6950_v20 = vpop.f32.mrb[233].mxu0  ;;  %v21505_v35 = vld [vmem:[#allocation57_spill] sm:$0xff] }
0x13cd   : > { %v6951_v60 = vadd.f32 %v6950_v20, %v19900_v21  ;;  %v16880_v20 = vld [vmem:[%s17876_s22 + $0x48] sm:$0xff] }
0x13ce   : > { %v6998_v37 = vmax.f32 %v6956_v13, 0.0  ;;  %v21506_v13 = vld [vmem:[#allocation58_spill] sm:$0xff] }
0x13cf   : > { %v6997_v33 = vmax.f32 %v6951_v60, 0.0  ;;  %v16881_v60 = vld [vmem:[%s17876_s22 + $0x50] sm:$0xff] }
0x13d1   : > { %v14570_v8 = vpack.c.bf16 %v6998_v37, %v6997_v33  ;;  %v21507_v37 = vld [vmem:[#allocation59_spill] sm:$0xff]  ;;  %v21508_v33 = vld [vmem:[#allocation60_spill] sm:$0xff] }
0x13d3   : > { %v13048_v63 = vpop.f32.mrb[234].mxu0  ;;  %14571 = vmatprep.subr.bf16.mxu0 %v14570_v8 }
0x13d4   : > { %v6966_v9 = vadd.f32 %v13048_v63, %v19900_v21  ;;  %v6960_v7 = vpop.f32.mrb[235].mxu0  ;;  %14573 = vmatpush3.bf16.msra.mxu0 %v14570_v8  ;;  %v16882_v8 = vld [vmem:[%s17876_s22 + $0x58] sm:$0xff]  ;;  %v16883_v63 = vld [vmem:[%s17876_s22 + $0x60] sm:$0xff] }
0x13d5   : > { %v6961_v5 = vadd.f32 %v6960_v7, %v19900_v21  ;;  %v21510_v7 = vld [vmem:[#allocation62_spill] sm:$0xff] }
0x13d6   : > { %v7000_v56 = vmax.f32 %v6966_v9, 0.0  ;;  %v21509_v9 = vld [vmem:[#allocation61_spill] sm:$0xff] }
0x13d7   : > { %v6999_v59 = vmax.f32 %v6961_v5, 0.0  ;;  %v16884_v5 = vld [vmem:[%s17876_s22 + $0x68] sm:$0xff] }
0x13d9   : > { %v14574_v31 = vpack.c.bf16 %v7000_v56, %v6999_v59  ;;  %v16885_v56 = vld [vmem:[%s17876_s22 + $0x70] sm:$0xff] }
0x13da   : > { %v21511_v59 = vld [vmem:[#allocation63_spill] sm:$0xff] }
0x13db   : > { %14575 = vmatprep.subr.bf16.mxu0 %v14574_v31 }
0x13dc   : > { %14577 = vmatpush3.bf16.msra.mxu0 %v14574_v31  ;;  %v21512_v31 = vld [vmem:[#allocation70_spill] sm:$0xff] }
0x13de   : > { %v13051_v39 = vpop.f32.mrb[236].mxu0 }
0x13df   : > { %v6976_v34 = vadd.f32 %v13051_v39, %v19900_v21  ;;  %v6970_v57 = vpop.f32.mrb[237].mxu0  ;;  %v16886_v39 = vld [vmem:[%s17876_s22 + $0x78] sm:$0xff] }
0x13e0   : > { %v6971_v24 = vadd.f32 %v6970_v57, %v19900_v21  ;;  %v21514_v57 = vmov 0.0  }
0x13e1   : > { %v7002_v62 = vmax.f32 %v6976_v34, 0.0  ;;  %v21513_v34 = vld [vmem:[#allocation71_spill] sm:$0xff] }
0x13e2   : > { %v7001_v19 = vmax.f32 %v6971_v24, 0.0  ;;  %v21515_v24 = vld [vmem:[#allocation74_spill] sm:$0xff] }
0x13e4   : > { %v14578_v50 = vpack.c.bf16 %v7002_v62, %v7001_v19 }
0x13e6   : > { %14579 = vmatprep.subr.bf16.mxu0 %v14578_v50 }
0x13e7   : > { %14581 = vmatpush3.bf16.msra.mxu0 %v14578_v50 }
0x13e9   : > { %v13054_v54 = vpop.f32.mrb[238].mxu0 }
0x13ea   : > { %v6986_v51 = vadd.f32 %v13054_v54, %v19900_v21  ;;  %v6980_v15 = vpop.f32.mrb[239].mxu0 }
0x13eb   : > { %v6981_v26 = vadd.f32 %v6980_v15, %v19900_v21  ;;  %v16874_v21 = vld [vmem:[%s17876_s22 + $0x18] sm:$0xff] }
0x13ec   : > { %v7004_v18 = vmax.f32 %v6986_v51, 0.0  ;;  %v21516_v51 = vld [vmem:[#allocation64_spill] sm:$0xff] }
0x13ed   : > { %v7003_v6 = vmax.f32 %v6981_v26, 0.0 }
0x13ef   : > { %v14582_v4 = vpack.c.bf16 %v7004_v18, %v7003_v6  ;;  %v21517_v18 = vld [vmem:[#allocation65_spill] sm:$0xff] }
0x13f1   : > { %14583 = vmatprep.subr.bf16.mxu0 %v14582_v4 }
0x13f2   : > { %14585 = vmatpush3.bf16.msra.mxu0 %v14582_v4 }
0x13f3   : > { %14619 = vmatprep.subr.bf16.mxu0 %v21498_v29 }
0x13f5   : > { %13088 = vmatmul.mubr.f32.vlgmr.msra.gmra.mrb[240].mxu0 %v16872_v14  ;;  %v21518_v14 = vld [vmem:[#allocation66_spill] sm:$0xff] }
0x13f6   : > { %13090 = vmatprep.mubr.f32.mxu0 %v16873_v10  ;;  %14621 = vmatpush1.bf16.msra.mxu0 %v21499_v16 }
0x13f7   : > { %14623 = vmatprep.subr.bf16.mxu0 %v21500_v48 }
0x13f9   : > { %13091 = vmatmul.mubr.f32.gmra.mrb[242].mxu0 %v16874_v21 }
0x13fa   : > { %13093 = vmatprep.mubr.f32.mxu0 %v16875_v11  ;;  %14625 = vmatpush1.bf16.msra.mxu0 %v21501_v36  ;;  %v21519_v11 = vld [vmem:[#allocation67_spill] sm:$0xff] }
0x13fb   : > { %14627 = vmatprep.subr.bf16.mxu0 %v21502_v49 }
0x13fd   : > { %13094 = vmatmul.mubr.f32.gmra.mrb[244].mxu0 %v16876_v42 }
0x13fe   : > { %13096 = vmatprep.mubr.f32.mxu0 %v16877_v17  ;;  %14629 = vmatpush1.bf16.msra.mxu0 %v21503_v0 }
0x13ff   : > { %14631 = vmatprep.subr.bf16.mxu0 %v21504_v32 }
0x1401   : > { %13097 = vmatmul.mubr.f32.gmra.mrb[246].mxu0 %v16878_v41  ;;  %v21520_v41 = vld [vmem:[#allocation68_spill] sm:$0xff] }
0x1402   : > { %13099 = vmatprep.mubr.f32.mxu0 %v16879_v28  ;;  %14633 = vmatpush1.bf16.msra.mxu0 %v21505_v35 }
0x1403   : > { %14635 = vmatprep.subr.bf16.mxu0 %v21506_v13 }
0x1405   : > { %13100 = vmatmul.mubr.f32.gmra.mrb[248].mxu0 %v16880_v20 }
0x1406   : > { %13102 = vmatprep.mubr.f32.mxu0 %v16881_v60  ;;  %14637 = vmatpush1.bf16.msra.mxu0 %v21507_v37  ;;  %v21521_v60 = vld [vmem:[#allocation69_spill] sm:$0xff] }
0x1407   : > { %14639 = vmatprep.subr.bf16.mxu0 %v21508_v33 }
0x1409   : > { %13103 = vmatmul.mubr.f32.gmra.mrb[250].mxu0 %v16882_v8 }
0x140a   : > { %13105 = vmatprep.mubr.f32.mxu0 %v16883_v63  ;;  %14641 = vmatpush1.bf16.msra.mxu0 %v21509_v9 }
0x140b   : > { %14643 = vmatprep.subr.bf16.mxu0 %v21510_v7 }
0x140d   : > { %13106 = vmatmul.mubr.f32.gmra.mrb[252].mxu0 %v16884_v5  ;;  %v21522_v5 = vld [vmem:[#allocation72_spill] sm:$0xff] }
0x140e   : > { %13108 = vmatprep.mubr.f32.mxu0 %v16885_v56  ;;  %14645 = vmatpush1.bf16.msra.mxu0 %v21511_v59  ;;  %v21523_v56 = vld [vmem:[#allocation73_spill] sm:$0xff] }
0x140f   : > { %14647 = vmatprep.subr.bf16.mxu0 %v21512_v31 }
0x1411   : > { %13109 = vmatmul.mubr.f32.gmra.mrb[254].mxu0 %v16886_v39  ;;  %v19968_v39 = vld [vmem:[#allocation20 + $0x1b] ss:$0 sm:$0xff] }
0x1412   : > { %14649 = vmatpush1.bf16.msra.mxu0 %v21513_v34  ;;  %7393 = vmatprep.mubr.f32.mxu0 %v21514_v57 }
0x1413   : > { %14683 = vmatprep.subr.bf16.mxu0 %v21515_v24 }
0x14c8   : > { %v13089_v62 = vpop.f32.mrb[240].mxu0 }
0x14c9   : > { %v7071_v19 = vpop.f32.mrb[241].mxu0 }
0x14ca   : > { %13143 = vmatprep.mubr.f32.mxu1 %v7071_v19 }
0x14cb   : > { %13144 = vmatmul.mubr.f32.vlgmr.msra.gmra.mrb[240].mxu1 %v13089_v62 }
0x14cc   : > { %v13092_v50 = vpop.f32.mrb[242].mxu0  ;;  %14653 = vmatpush3.bf16.msra.mxu1 %v21497_v30 }
0x14cd   : > { %v7081_v54 = vpop.f32.mrb[243].mxu0  ;;  %14655 = vmatprep.subr.bf16.mxu1 %v21516_v51 }
0x14ce   : > { %13146 = vmatprep.mubr.f32.mxu1 %v7081_v54 }
0x14cf   : > { %13147 = vmatmul.mubr.f32.gmra.mrb[242].mxu1 %v13092_v50 }
0x14d0   : > { %v13095_v15 = vpop.f32.mrb[244].mxu0  ;;  %14657 = vmatpush3.bf16.msra.mxu1 %v21516_v51 }
0x14d1   : > { %v7091_v26 = vpop.f32.mrb[245].mxu0  ;;  %14659 = vmatprep.subr.bf16.mxu1 %v21517_v18 }
0x14d2   : > { %13149 = vmatprep.mubr.f32.mxu1 %v7091_v26 }
0x14d3   : > { %13150 = vmatmul.mubr.f32.gmra.mrb[244].mxu1 %v13095_v15 }
0x14d4   : > { %v13098_v6 = vpop.f32.mrb[246].mxu0  ;;  %14661 = vmatpush3.bf16.msra.mxu1 %v21517_v18 }
0x14d5   : > { %v7101_v4 = vpop.f32.mrb[247].mxu0  ;;  %14663 = vmatprep.subr.bf16.mxu1 %v21518_v14 }
0x14d6   : > { %13152 = vmatprep.mubr.f32.mxu1 %v7101_v4 }
0x14d7   : > { %13153 = vmatmul.mubr.f32.gmra.mrb[246].mxu1 %v13098_v6 }
0x14d8   : > { %v13101_v10 = vpop.f32.mrb[248].mxu0  ;;  %14665 = vmatpush3.bf16.msra.mxu1 %v21518_v14 }
0x14d9   : > { %v7111_v21 = vpop.f32.mrb[249].mxu0  ;;  %14667 = vmatprep.subr.bf16.mxu1 %v21519_v11 }
0x14da   : > { %13155 = vmatprep.mubr.f32.mxu1 %v7111_v21 }
0x14db   : > { %13156 = vmatmul.mubr.f32.gmra.mrb[248].mxu1 %v13101_v10 }
0x14dc   : > { %v13104_v42 = vpop.f32.mrb[250].mxu0  ;;  %14669 = vmatpush3.bf16.msra.mxu1 %v21519_v11 }
0x14dd   : > { %v7121_v17 = vpop.f32.mrb[251].mxu0  ;;  %14671 = vmatprep.subr.bf16.mxu1 %v21520_v41 }
0x14de   : > { %13158 = vmatprep.mubr.f32.mxu1 %v7121_v17 }
0x14df   : > { %13159 = vmatmul.mubr.f32.gmra.mrb[250].mxu1 %v13104_v42 }
0x14e0   : > { %v13107_v28 = vpop.f32.mrb[252].mxu0  ;;  %14673 = vmatpush3.bf16.msra.mxu1 %v21520_v41 }
0x14e1   : > { %v7131_v20 = vpop.f32.mrb[253].mxu0  ;;  %14675 = vmatprep.subr.bf16.mxu1 %v21521_v60 }
0x14e2   : > { %13161 = vmatprep.mubr.f32.mxu1 %v7131_v20  ;;  %v21524_v20 = vld [vmem:[#allocation75_spill] sm:$0xff] }
0x14e3   : > { %13162 = vmatmul.mubr.f32.gmra.mrb[252].mxu1 %v13107_v28 }
0x14e4   : > { %v13110_v8 = vpop.f32.mrb[254].mxu0  ;;  %14677 = vmatpush3.bf16.msra.mxu1 %v21521_v60  ;;  %v21541_v60 = vld [vmem:[#allocation91_spill] sm:$0xff] }
0x14e5   : > { %v7141_v63 = vpop.f32.mrb[255].mxu0  ;;  %14679 = vmatprep.subr.bf16.mxu1 %v21522_v5 }
0x14e6   : > { %13164 = vmatprep.mubr.f32.mxu1 %v7141_v63 }
0x14e7   : > { %13165 = vmatmul.mubr.f32.gmra.mrb[254].mxu1 %v13110_v8 }
0x14e8   : > { %14681 = vmatpush3.bf16.msra.mxu1 %v21522_v5  ;;  %v21538_v5 = vld [vmem:[#allocation88_spill] sm:$0xff] }
0x14e9   : > { %14715 = vmatprep.subr.bf16.mxu1 %v21523_v56 }
0x159e   : > { %v13145_v62 = vpop.f32.mrb[240].mxu1 }
0x159f   : > { %v7240_v19 = vadd.f32 %v13145_v62, %v19968_v39  ;;  %v7234_v50 = vpop.f32.mrb[241].mxu1  ;;  %v21525_v62 = vld [vmem:[#allocation76_spill] sm:$0xff] }
0x15a0   : > { %v7235_v54 = vadd.f32 %v7234_v50, %v19968_v39 }
0x15a1   : > { %v7314_v6 = vmax.f32 %v7240_v19, 0.0  ;;  %v21526_v19 = vld [vmem:[#allocation77_spill] sm:$0xff] }
0x15a2   : > { %v7313_v15 = vmax.f32 %v7235_v54, 0.0  ;;  %v13148_v26 = vpop.f32.mrb[242].mxu1 }
0x15a3   : > { %v7250_v4 = vadd.f32 %v13148_v26, %v19968_v39  ;;  %v7244_v10 = vpop.f32.mrb[243].mxu1 }
0x15a4   : > { %v7245_v21 = vadd.f32 %v7244_v10, %v19968_v39  ;;  %7394 = vmatmul.mubr.f32.vlgmr.msra.gmra.mrb[0].mxu0 %v7313_v15  ;;  %13199 = vmatprep.mubr.f32.mxu1 %v7313_v15 }
0x15a5   : > { %v7316_v42 = vmax.f32 %v7250_v4, 0.0  ;;  %13200 = vmatmul.mubr.f32.vlgmr.msra.gmra.mrb[0].mxu1 %v7314_v6  ;;  %7399 = vmatprep.mubr.f32.mxu0 %v21514_v57  ;;  %v21527_v4 = vld [vmem:[#allocation78_spill] sm:$0xff] }
0x15a6   : > { %v7315_v17 = vmax.f32 %v7245_v21, 0.0  ;;  %v13151_v28 = vpop.f32.mrb[244].mxu1  ;;  %14717 = vmatpush3.bf16.msra.mxu1 %v21523_v56  ;;  %14685 = vmatpush1.bf16.msra.mxu0 %v21524_v20  ;;  %v21535_v56 = vld [vmem:[#allocation85_spill] sm:$0xff] }
0x15a7   : > { %v7260_v8 = vadd.f32 %v13151_v28, %v19968_v39  ;;  %v7254_v63 = vpop.f32.mrb[245].mxu1  ;;  %14719 = vmatprep.subr.bf16.mxu1 %v21525_v62  ;;  %14687 = vmatprep.subr.bf16.mxu0 %v21526_v19  ;;  %v21528_v28 = vld [vmem:[#allocation79_spill] sm:$0xff]  ;;  %v21529_v19 = vld [vmem:[#allocation80_spill] sm:$0xff] }
0x15a8   : > { %v7255_v50 = vadd.f32 %v7254_v63, %v19968_v39  ;;  %7400 = vmatmul.mubr.f32.gmra.mrb[2].mxu0 %v7314_v6  ;;  %13202 = vmatprep.mubr.f32.mxu1 %v7315_v17 }
0x15a9   : > { %v7318_v54 = vmax.f32 %v7260_v8, 0.0  ;;  %13203 = vmatmul.mubr.f32.gmra.mrb[2].mxu1 %v7316_v42  ;;  %7405 = vmatprep.mubr.f32.mxu0 %v21514_v57 }
0x15aa   : > { %v7317_v15 = vmax.f32 %v7255_v50, 0.0  ;;  %v13154_v26 = vpop.f32.mrb[246].mxu1  ;;  %14721 = vmatpush3.bf16.msra.mxu1 %v21525_v62  ;;  %14689 = vmatpush1.bf16.msra.mxu0 %v21527_v4 }
0x15ab   : > { %v19985_v10 = vadd.f32 %v13154_v26, %v19968_v39  ;;  %v7264_v21 = vpop.f32.mrb[247].mxu1  ;;  %14723 = vmatprep.subr.bf16.mxu1 %v21528_v28  ;;  %14691 = vmatprep.subr.bf16.mxu0 %v21529_v19  ;;  %v21530_v26 = vld [vmem:[#allocation81_spill] sm:$0xff]  ;;  %v21531_v19 = vld [vmem:[#allocation82_spill] sm:$0xff] }
0x15ac   : > { %v7265_v6 = vadd.f32 %v7264_v21, %v19968_v39  ;;  %7406 = vmatmul.mubr.f32.gmra.mrb[4].mxu0 %v7315_v17  ;;  %13205 = vmatprep.mubr.f32.mxu1 %v7317_v15  ;;  %v21532_v21 = vld [vmem:[#allocation83_spill] sm:$0xff] }
0x15ad   : > { %13206 = vmatmul.mubr.f32.gmra.mrb[4].mxu1 %v7318_v54  ;;  %7411 = vmatprep.mubr.f32.mxu0 %v21514_v57 }
0x15ae   : > { %v7319_v63 = vmax.f32 %v7265_v6, 0.0  ;;  %v13157_v50 = vpop.f32.mrb[248].mxu1  ;;  %14725 = vmatpush3.bf16.msra.mxu1 %v21528_v28  ;;  %14693 = vmatpush1.bf16.msra.mxu0 %v21530_v26  ;;  %v21533_v6 = vmax.f32 %v19985_v10, 0.0 }
0x15af   : > { %v19995_v4 = vadd.f32 %v13157_v50, %v19968_v39  ;;  %v7274_v62 = vpop.f32.mrb[249].mxu1  ;;  %14727 = vmatprep.subr.bf16.mxu1 %v21531_v19  ;;  %14695 = vmatprep.subr.bf16.mxu0 %v21532_v21  ;;  %v21534_v50 = vld [vmem:[#allocation84_spill] sm:$0xff] }
0x15b0   : > { %v7275_v17 = vadd.f32 %v7274_v62, %v19968_v39  ;;  %7412 = vmatmul.mubr.f32.gmra.mrb[6].mxu0 %v7316_v42  ;;  %13208 = vmatprep.mubr.f32.mxu1 %v7319_v63  ;;  %v21536_v42 = vld [vmem:[#allocation86_spill] sm:$0xff] }
0x15b1   : > { %v7322_v8 = vmax.f32 %v19995_v4, 0.0  ;;  %13209 = vmatmul.mubr.f32.gmra.mrb[6].mxu1 %v21533_v6  ;;  %7417 = vmatprep.mubr.f32.mxu0 %v21514_v57 }
0x15b2   : > { %v7321_v26 = vmax.f32 %v7275_v17, 0.0  ;;  %v13160_v28 = vpop.f32.mrb[250].mxu1  ;;  %14729 = vmatpush3.bf16.msra.mxu1 %v21531_v19  ;;  %14697 = vmatpush1.bf16.msra.mxu0 %v21534_v50  ;;  %v21537_v50 = vld [vmem:[#allocation87_spill] sm:$0xff] }
0x15b3   : > { %v7290_v20 = vadd.f32 %v13160_v28, %v19968_v39  ;;  %v7284_v21 = vpop.f32.mrb[251].mxu1  ;;  %14731 = vmatprep.subr.bf16.mxu1 %v21535_v56  ;;  %14699 = vmatprep.subr.bf16.mxu0 %v21536_v42  ;;  %v21539_v42 = vld [vmem:[#allocation89_spill] sm:$0xff] }
0x15b4   : > { %v7285_v62 = vadd.f32 %v7284_v21, %v19968_v39  ;;  %7418 = vmatmul.mubr.f32.gmra.mrb[8].mxu0 %v7317_v15  ;;  %13211 = vmatprep.mubr.f32.mxu1 %v7321_v26 }
0x15b5   : > { %v7324_v4 = vmax.f32 %v7290_v20, 0.0  ;;  %13212 = vmatmul.mubr.f32.gmra.mrb[8].mxu1 %v7322_v8  ;;  %7423 = vmatprep.mubr.f32.mxu0 %v21514_v57 }
0x15b6   : > { %v7323_v17 = vmax.f32 %v7285_v62, 0.0  ;;  %v13163_v6 = vpop.f32.mrb[252].mxu1  ;;  %14733 = vmatpush3.bf16.msra.mxu1 %v21535_v56  ;;  %14701 = vmatpush1.bf16.msra.mxu0 %v21537_v50  ;;  %v21540_v50 = vld [vmem:[#allocation90_spill] sm:$0xff] }
0x15b7   : > { %v7300_v28 = vadd.f32 %v13163_v6, %v19968_v39  ;;  %v7294_v19 = vpop.f32.mrb[253].mxu1  ;;  %14735 = vmatprep.subr.bf16.mxu1 %v21538_v5  ;;  %14703 = vmatprep.subr.bf16.mxu0 %v21539_v42  ;;  %v21542_v42 = vld [vmem:[#allocation92_spill] sm:$0xff] }
0x15b8   : > { %v7295_v15 = vadd.f32 %v7294_v19, %v19968_v39  ;;  %7424 = vmatmul.mubr.f32.gmra.mrb[10].mxu0 %v7318_v54  ;;  %13214 = vmatprep.mubr.f32.mxu1 %v7323_v17 }
0x15b9   : > { %v7326_v20 = vmax.f32 %v7300_v28, 0.0  ;;  %13215 = vmatmul.mubr.f32.gmra.mrb[10].mxu1 %v7324_v4  ;;  %7429 = vmatprep.mubr.f32.mxu0 %v21514_v57 }
0x15ba   : > { %v7325_v21 = vmax.f32 %v7295_v15, 0.0  ;;  %v13166_v62 = vpop.f32.mrb[254].mxu1  ;;  %14737 = vmatpush3.bf16.msra.mxu1 %v21538_v5  ;;  %14705 = vmatpush1.bf16.msra.mxu0 %v21540_v50  ;;  %v21543_v15 = vld [vmem:[#allocation93_spill] sm:$0xff]  ;;  %v21544_v50 = vld [vmem:[#allocation94_spill] sm:$0xff]  ;;  %v21546_v5 = vmax.f32 %v19985_v10, 0.0 }
0x15bb   : > { %v7310_v6 = vadd.f32 %v13166_v62, %v19968_v39  ;;  %v7304_v56 = vpop.f32.mrb[255].mxu1  ;;  %14739 = vmatprep.subr.bf16.mxu1 %v21541_v60  ;;  %14707 = vmatprep.subr.bf16.mxu0 %v21542_v42  ;;  %v21545_v62 = vld [vmem:[#allocation95_spill] sm:$0xff] }
0x15bc   : > { %v7305_v19 = vadd.f32 %v7304_v56, %v19968_v39  ;;  %7430 = vmatmul.mubr.f32.gmra.mrb[12].mxu0 %v7319_v63  ;;  %13217 = vmatprep.mubr.f32.mxu1 %v7325_v21  ;;  %v21547_v56 = vld [vmem:[#allocation96_spill] sm:$0xff]  ;;  %v8279_v39 = vld [vmem:[#allocation10 + $0x288] sm:$0xff] }
0x15bd   : > { %v7328_v54 = vmax.f32 %v7310_v6, 0.0  ;;  %13218 = vmatmul.mubr.f32.gmra.mrb[12].mxu1 %v7326_v20  ;;  %7435 = vmatprep.mubr.f32.mxu0 %v21514_v57  ;;  %v8281_v63 = vld [vmem:[#allocation10 + $0x298] sm:$0xff] }
0x15be   : > { %v7327_v28 = vmax.f32 %v7305_v19, 0.0  ;;  %14741 = vmatpush3.bf16.msra.mxu1 %v21541_v60  ;;  %14709 = vmatpush1.bf16.msra.mxu0 %v21543_v15  ;;  %v8285_v6 = vld [vmem:[#allocation10 + $0x2b8] sm:$0xff] }
0x15bf   : > { %14743 = vmatprep.subr.bf16.mxu1 %v21544_v50  ;;  %14711 = vmatprep.subr.bf16.mxu0 %v21545_v62 }
0x15c0   : > { %7436 = vmatmul.mubr.f32.gmra.mrb[14].mxu0 %v21546_v5  ;;  %13220 = vmatprep.mubr.f32.mxu1 %v7327_v28  ;;  %v8278_v5 = vld [vmem:[#allocation10 + $0x280] sm:$0xff] }
0x15c1   : > { %13221 = vmatmul.mubr.f32.gmra.mrb[14].mxu1 %v7328_v54  ;;  %7441 = vmatprep.mubr.f32.mxu0 %v21514_v57  ;;  %v14746_v10 = vpack.c.bf16 %v8279_v39, %v8278_v5  ;;  %v8288_v39 = vld [vmem:[#allocation10 + $0x2d0] sm:$0xff] }
0x15c2   : > { %14745 = vmatpush3.bf16.msra.mxu1 %v21544_v50  ;;  %13255 = vmatprep.mubr.f32.mxu1 %v19774_v23 }
0x15c3   : > { %14713 = vmatpush1.bf16.msra.mxu0 %v21547_v56  ;;  %14747 = vmatprep.subr.bf16.mxu1 %v14746_v10 }
0x15c4   : > { %7442 = vmatmul.mubr.f32.gmra.mrb[16].mxu0 %v7321_v26 }
0x15c5   : > { %13256 = vmatmul.mubr.f32.vlgmr.msra.gmra.mrb[16].mxu1 %v19783_v40  ;;  %7447 = vmatprep.mubr.f32.mxu0 %v21514_v57 }
0x15c6   : > { %13258 = vmatprep.mubr.f32.mxu1 %v19791_v38  ;;  %14749 = vmatpush3.bf16.msra.mxu1 %v14746_v10  ;;  %v8289_v10 = vld [vmem:[#allocation10 + $0x2d8] sm:$0xff] }
0x15c8   : > { %7448 = vmatmul.mubr.f32.gmra.mrb[18].mxu0 %v7322_v8  ;;  %v8280_v8 = vld [vmem:[#allocation10 + $0x290] sm:$0xff] }
0x15c9   : > { %13259 = vmatmul.mubr.f32.gmra.mrb[18].mxu1 %v19802_v61  ;;  %7453 = vmatprep.mubr.f32.mxu0 %v21514_v57  ;;  %v14750_v26 = vpack.c.bf16 %v8281_v63, %v8280_v8  ;;  %v14766_v8 = vpack.c.bf16 %v8289_v10, %v8288_v39  ;;  %v8290_v63 = vld [vmem:[#allocation10 + $0x2e0] sm:$0xff] }
0x15ca   : > { %13261 = vmatprep.mubr.f32.mxu1 %v19812_v22 }
0x15cb   : > { %14751 = vmatprep.subr.bf16.mxu1 %v14750_v26 }
0x15cc   : > { %7454 = vmatmul.mubr.f32.gmra.mrb[20].mxu0 %v7323_v17  ;;  %14753 = vmatpush3.bf16.msra.mxu1 %v14750_v26  ;;  %v8283_v17 = vld [vmem:[#allocation10 + $0x2a8] sm:$0xff] }
0x15cd   : > { %13262 = vmatmul.mubr.f32.gmra.mrb[20].mxu1 %v19818_v44  ;;  %7459 = vmatprep.mubr.f32.mxu0 %v21514_v57  ;;  %v8291_v26 = vld [vmem:[#allocation10 + $0x2e8] sm:$0xff] }
0x15ce   : > { %13264 = vmatprep.mubr.f32.mxu1 %v19832_v53 }
0x15d0   : > { %7460 = vmatmul.mubr.f32.gmra.mrb[22].mxu0 %v7324_v4  ;;  %v8282_v4 = vld [vmem:[#allocation10 + $0x2a0] sm:$0xff] }
0x15d1   : > { %13265 = vmatmul.mubr.f32.gmra.mrb[22].mxu1 %v19844_v43  ;;  %7465 = vmatprep.mubr.f32.mxu0 %v21514_v57 }
0x15d2   : > { %13267 = vmatprep.mubr.f32.mxu1 %v19856_v58 }
0x15d4   : > { %7466 = vmatmul.mubr.f32.gmra.mrb[24].mxu0 %v7325_v21  ;;  %v8284_v21 = vld [vmem:[#allocation10 + $0x2b0] sm:$0xff] }
0x15d5   : > { %13268 = vmatmul.mubr.f32.gmra.mrb[24].mxu1 %v19862_v2  ;;  %7471 = vmatprep.mubr.f32.mxu0 %v21514_v57  ;;  %v14758_v19 = vpack.c.bf16 %v8285_v6, %v8284_v21 }
0x15d6   : > { %13270 = vmatprep.mubr.f32.mxu1 %v19868_v1 }
0x15d8   : > { %7472 = vmatmul.mubr.f32.gmra.mrb[26].mxu0 %v7326_v20  ;;  %v14754_v20 = vpack.c.bf16 %v8283_v17, %v8282_v4  ;;  %v14770_v4 = vpack.c.bf16 %v8291_v26, %v8290_v63  ;;  %v8292_v17 = vld [vmem:[#allocation10 + $0x2f0] sm:$0xff] }
0x15d9   : > { %13271 = vmatmul.mubr.f32.gmra.mrb[26].mxu1 %v19876_v27  ;;  %7477 = vmatprep.mubr.f32.mxu0 %v21514_v57 }
0x15da   : > { %13273 = vmatprep.mubr.f32.mxu1 %v19884_v47  ;;  %14755 = vmatprep.subr.bf16.mxu1 %v14754_v20 }
0x15db   : > { %14757 = vmatpush3.bf16.msra.mxu1 %v14754_v20  ;;  %v8293_v20 = vld [vmem:[#allocation10 + $0x2f8] sm:$0xff] }
0x15dc   : > { %7478 = vmatmul.mubr.f32.gmra.mrb[28].mxu0 %v7327_v28  ;;  %14759 = vmatprep.subr.bf16.mxu1 %v14758_v19  ;;  %v8287_v28 = vld [vmem:[#allocation10 + $0x2c8] sm:$0xff]  ;;  %v14774_v21 = vpack.c.bf16 %v8293_v20, %v8292_v17 }
0x15dd   : > { %13274 = vmatmul.mubr.f32.gmra.mrb[28].mxu1 %v19888_v25  ;;  %7483 = vmatprep.mubr.f32.mxu0 %v21514_v57 }
0x15de   : > { %13276 = vmatprep.mubr.f32.mxu1 %v19892_v46 }
0x15df   : > { %14761 = vmatpush3.bf16.msra.mxu1 %v14758_v19 }
0x15e0   : > { %7484 = vmatmul.mubr.f32.gmra.mrb[30].mxu0 %v7328_v54  ;;  %v8286_v54 = vld [vmem:[#allocation10 + $0x2c0] sm:$0xff] }
0x15e1   : > { %13277 = vmatmul.mubr.f32.gmra.mrb[30].mxu1 %v19896_v45  ;;  %7699 = vmatprep.mubr.f32.mxu0 %v21514_v57  ;;  %v14762_v5 = vpack.c.bf16 %v8287_v28, %v8286_v54 }
0x15e3   : > { %14763 = vmatprep.subr.bf16.mxu1 %v14762_v5 }
0x15e4   : > { %7700 = vmatmul.mubr.f32.vlgmr.msra.gmra.mrb[0].mxu0 %v19774_v23  ;;  %14765 = vmatpush3.bf16.msra.mxu1 %v14762_v5 }
0x15e5   : > { %7705 = vmatprep.mubr.f32.mxu0 %v21514_v57  ;;  %14767 = vmatprep.subr.bf16.mxu1 %v14766_v8 }
0x15e8   : > { %7706 = vmatmul.mubr.f32.gmra.mrb[2].mxu0 %v19783_v40  ;;  %14769 = vmatpush3.bf16.msra.mxu1 %v14766_v8 }
0x15e9   : > { %7711 = vmatprep.mubr.f32.mxu0 %v21514_v57  ;;  %14771 = vmatprep.subr.bf16.mxu1 %v14770_v4 }
0x15ec   : > { %7712 = vmatmul.mubr.f32.gmra.mrb[4].mxu0 %v19791_v38  ;;  %14773 = vmatpush3.bf16.msra.mxu1 %v14770_v4 }
0x15ed   : > { %7717 = vmatprep.mubr.f32.mxu0 %v21514_v57  ;;  %14775 = vmatprep.subr.bf16.mxu1 %v14774_v21 }
0x15f0   : > { %7718 = vmatmul.mubr.f32.gmra.mrb[6].mxu0 %v19802_v61  ;;  %14777 = vmatpush3.bf16.msra.mxu1 %v14774_v21 }
0x15f1   : > { %7723 = vmatprep.mubr.f32.mxu0 %v21514_v57 }
0x15f4   : > { %7724 = vmatmul.mubr.f32.gmra.mrb[8].mxu0 %v19812_v22 }
0x15f5   : > { %7729 = vmatprep.mubr.f32.mxu0 %v21514_v57 }
0x15f8   : > { %7730 = vmatmul.mubr.f32.gmra.mrb[10].mxu0 %v19818_v44 }
0x15f9   : > { %7735 = vmatprep.mubr.f32.mxu0 %v21514_v57 }
0x15fc   : > { %7736 = vmatmul.mubr.f32.gmra.mrb[12].mxu0 %v19832_v53 }
0x15fd   : > { %7741 = vmatprep.mubr.f32.mxu0 %v21514_v57 }
0x1600   : > { %7742 = vmatmul.mubr.f32.gmra.mrb[14].mxu0 %v19844_v43 }
0x1601   : > { %7747 = vmatprep.mubr.f32.mxu0 %v21514_v57 }
0x1604   : > { %7748 = vmatmul.mubr.f32.gmra.mrb[16].mxu0 %v19856_v58 }
0x1605   : > { %7753 = vmatprep.mubr.f32.mxu0 %v21514_v57 }
0x1608   : > { %7754 = vmatmul.mubr.f32.gmra.mrb[18].mxu0 %v19862_v2 }
0x1609   : > { %7759 = vmatprep.mubr.f32.mxu0 %v21514_v57 }
0x160c   : > { %7760 = vmatmul.mubr.f32.gmra.mrb[20].mxu0 %v19868_v1 }
0x160d   : > { %7765 = vmatprep.mubr.f32.mxu0 %v21514_v57 }
0x1610   : > { %7766 = vmatmul.mubr.f32.gmra.mrb[22].mxu0 %v19876_v27 }
0x1611   : > { %7771 = vmatprep.mubr.f32.mxu0 %v21514_v57 }
0x1614   : > { %7772 = vmatmul.mubr.f32.gmra.mrb[24].mxu0 %v19884_v47 }
0x1615   : > { %7777 = vmatprep.mubr.f32.mxu0 %v21514_v57 }
0x1618   : > { %7778 = vmatmul.mubr.f32.gmra.mrb[26].mxu0 %v19888_v25 }
0x1619   : > { %7783 = vmatprep.mubr.f32.mxu0 %v21514_v57 }
0x161c   : > { %7784 = vmatmul.mubr.f32.gmra.mrb[28].mxu0 %v19892_v46 }
0x161d   : > { %7789 = vmatprep.mubr.f32.mxu0 %v21514_v57 }
0x1620   : > { %7790 = vmatmul.mubr.f32.gmra.mrb[30].mxu0 %v19896_v45 }
0x1678   : > { %v20089_v6 = vpop.f32.mrb[0].mxu1 }
0x1679   : > { %v20091_v19 = vpop.f32.mrb[1].mxu1 }
0x167c   : > { %v20093_v54 = vpop.f32.mrb[2].mxu1 }
0x167d   : > { %v20095_v28 = vpop.f32.mrb[3].mxu1 }
0x1680   : > { %v20097_v5 = vpop.f32.mrb[4].mxu1 }
0x1681   : > { %v20099_v39 = vpop.f32.mrb[5].mxu1 }
0x1684   : > { %v20101_v10 = vpop.f32.mrb[6].mxu1 }
0x1685   : > { %v20103_v8 = vpop.f32.mrb[7].mxu1 }
0x1688   : > { %v20105_v63 = vpop.f32.mrb[8].mxu1 }
0x1689   : > { %v20107_v26 = vpop.f32.mrb[9].mxu1 }
0x168c   : > { %v20109_v4 = vpop.f32.mrb[10].mxu1 }
0x168d   : > { %v20111_v17 = vpop.f32.mrb[11].mxu1 }
0x1690   : > { %v20113_v20 = vpop.f32.mrb[12].mxu1 }
0x1691   : > { %v20115_v21 = vpop.f32.mrb[13].mxu1 }
0x1694   : > { %v20117_v56 = vpop.f32.mrb[14].mxu1 }
0x1695   : > { %21548 = vst [vmem:[#allocation45_spill] sm:$0xff] %v20117_v56  ;;  %v20119_v62 = vpop.f32.mrb[15].mxu1 }
0x1696   : > { %21549 = vst [vmem:[#allocation47_spill] sm:$0xff] %v20119_v62 }
0x1698   : > { %v20121_v50 = vpop.f32.mrb[16].mxu1 }
0x1699   : > { %v20123_v15 = vpop.f32.mrb[17].mxu1 }
0x169c   : > { %v20125_v42 = vpop.f32.mrb[18].mxu1 }
0x169d   : > { %v20127_v60 = vpop.f32.mrb[19].mxu1 }
0x16a0   : > { %v20129_v41 = vpop.f32.mrb[20].mxu1 }
0x16a1   : > { %v20131_v11 = vpop.f32.mrb[21].mxu1 }
0x16a4   : > { %v20133_v14 = vpop.f32.mrb[22].mxu1 }
0x16a5   : > { %v20135_v18 = vpop.f32.mrb[23].mxu1 }
0x16a8   : > { %v20137_v51 = vpop.f32.mrb[24].mxu1 }
0x16a9   : > { %v20139_v24 = vpop.f32.mrb[25].mxu1 }
0x16ac   : > { %v20141_v57 = vpop.f32.mrb[26].mxu1 }
0x16ad   : > { %v20143_v34 = vpop.f32.mrb[27].mxu1 }
0x16b0   : > { %v20145_v31 = vpop.f32.mrb[28].mxu1 }
0x16b1   : > { %v20147_v59 = vpop.f32.mrb[29].mxu1 }
0x16b4   : > { %v20149_v7 = vpop.f32.mrb[30].mxu1 }
0x16b5   : > { %21550 = vst [vmem:[#allocation43_spill] sm:$0xff] %v20149_v7  ;;  %v20151_v9 = vpop.f32.mrb[31].mxu1 }
0x16b7   : > { %v7701_v33 = vpop.f32.mrb[0].mxu0 }
0x16b8   : > { %v15379_v37 = vadd.f32 %v18383_v12, %v7701_v33  ;;  %v7703_v13 = vpop.f32.mrb[1].mxu0 }
0x16b9   : > { %v15381_v35 = vadd.f32 %v18387_v3, %v7703_v13 }
0x16ba   : > { %v10737_v32 = vmul.f32 -1.442695, %v15379_v37 }
0x16bb   : > { %v7707_v0 = vpop.f32.mrb[2].mxu0  ;;  %v10753_v48 = vmul.f32 -1.442695, %v15381_v35 }
0x16bc   : > { %16503 = vpow2.f32 %v10737_v32  ;;  %v15383_v49 = vadd.f32 %v18383_v12, %v7707_v0  ;;  %v7709_v36 = vpop.f32.mrb[3].mxu0 }
0x16bd   : > { %v15385_v29 = vadd.f32 %v18387_v3, %v7709_v36 }
0x16be   : > { %v10738_v16 = vmul.f32 -1.442695, %v15383_v49 }
0x16bf   : > { %v7713_v30 = vpop.f32.mrb[4].mxu0  ;;  %v10754_v25 = vmul.f32 -1.442695, %v15385_v29 }
0x16c0   : > { %16505 = vpow2.f32 %v10738_v16  ;;  %v15387_v45 = vadd.f32 %v18383_v12, %v7713_v30  ;;  %v7715_v46 = vpop.f32.mrb[5].mxu0 }
0x16c1   : > { %16507 = vpow2.f32 %v10753_v48  ;;  %v15389_v33 = vadd.f32 %v18387_v3, %v7715_v46 }
0x16c2   : > { %v10739_v13 = vmul.f32 -1.442695, %v15387_v45 }
0x16c3   : > { %v10755_v37 = vmul.f32 -1.442695, %v15389_v33  ;;  %v7719_v56 = vpop.f32.mrb[6].mxu0 }
0x16c4   : > { %16509 = vpow2.f32 %v10739_v13  ;;  %v15391_v0 = vadd.f32 %v18383_v12, %v7719_v56  ;;  %v7721_v32 = vpop.f32.mrb[7].mxu0 }
0x16c5   : > { %v15393_v49 = vadd.f32 %v18387_v3, %v7721_v32  ;;  %16511 = vpow2.f32 %v10754_v25 }
0x16c6   : > { %v16504_v35 = vpop.eup %16503  ;;  %v10740_v36 = vmul.f32 -1.442695, %v15391_v0  ;;  %16513 = vpow2.f32 %v10755_v37 }
0x16c7   : > { %v8005_v16 = vadd.f32 1.0, %v16504_v35  ;;  %v10756_v30 = vmul.f32 -1.442695, %v15393_v49  ;;  %v7725_v47 = vpop.f32.mrb[8].mxu0 }
0x16c8   : > { %16515 = vpow2.f32 %v10740_v36  ;;  %v15395_v46 = vadd.f32 %v18383_v12, %v7725_v47  ;;  %v7727_v29 = vpop.f32.mrb[9].mxu0 }
0x16c9   : > { %16517 = vrcp.f32 %v8005_v16  ;;  %v15397_v45 = vadd.f32 %v18387_v3, %v7727_v29 }
0x16ca   : > { %v16506_v48 = vpop.eup %16505  ;;  %v10741_v33 = vmul.f32 -1.442695, %v15395_v46  ;;  %16519 = vpow2.f32 %v10756_v30 }
0x16cb   : > { %v16508_v56 = vpop.eup %16507  ;;  %v8006_v13 = vadd.f32 1.0, %v16506_v48  ;;  %v10757_v32 = vmul.f32 -1.442695, %v15397_v45  ;;  %v7731_v7 = vpop.f32.mrb[10].mxu0 }
0x16cc   : > { %16521 = vpow2.f32 %v10741_v33  ;;  %v15399_v25 = vadd.f32 %v18383_v12, %v7731_v7  ;;  %v7733_v37 = vpop.f32.mrb[11].mxu0  ;;  %v8117_v47 = vadd.f32 1.0, %v16508_v56 }
0x16cd   : > { %16523 = vrcp.f32 %v8006_v13  ;;  %v15401_v0 = vadd.f32 %v18387_v3, %v7733_v37  ;;  %v7863_v13 = vadd.f32 %v20123_v15, %v18403_v55 }
0x16ce   : > { %v16510_v49 = vpop.eup %16509  ;;  %v10742_v35 = vmul.f32 -1.442695, %v15399_v25  ;;  %16525 = vpow2.f32 %v10757_v32 }
0x16cf   : > { %v8007_v36 = vadd.f32 1.0, %v16510_v49  ;;  %v10758_v16 = vmul.f32 -1.442695, %v15401_v0  ;;  %v7737_v29 = vpop.f32.mrb[12].mxu0  ;;  %v16512_v46 = vpop.eup %16511 }
0x16d0   : > { %16527 = vpow2.f32 %v10742_v35  ;;  %v15403_v30 = vadd.f32 %v18383_v12, %v7737_v29  ;;  %v7739_v45 = vpop.f32.mrb[13].mxu0  ;;  %v16514_v48 = vpop.eup %16513  ;;  %v8118_v37 = vadd.f32 1.0, %v16512_v46  ;;  %v7557_v35 = vadd.f32 %v20091_v19, %v18406_v52 }
0x16d1   : > { %16529 = vrcp.f32 %v8007_v36  ;;  %v15405_v7 = vadd.f32 %v18387_v3, %v7739_v45  ;;  %v8119_v27 = vadd.f32 1.0, %v16514_v48 }
0x16d2   : > { %v16516_v33 = vpop.eup %16515  ;;  %16531 = vrcp.f32 %v8117_v47  ;;  %v10743_v56 = vmul.f32 -1.442695, %v15403_v30  ;;  %v7868_v47 = vadd.f32 %v20121_v50, %v18403_v55  ;;  %v7873_v50 = vadd.f32 %v20127_v60, %v18403_v55 }
0x16d3   : > { %v16518_v25 = vpop.eup %16517  ;;  %v8008_v32 = vadd.f32 1.0, %v16516_v33  ;;  %16533 = vpow2.f32 %v10758_v16  ;;  %v10759_v0 = vmul.f32 -1.442695, %v15405_v7  ;;  %v7743_v49 = vpop.f32.mrb[14].mxu0 }
0x16d4   : > { %v8165_v29 = vmul.f32 %v16518_v25, %v7863_v13  ;;  %16535 = vpow2.f32 %v10743_v56  ;;  %v15407_v36 = vadd.f32 %v18383_v12, %v7743_v49  ;;  %v7745_v45 = vpop.f32.mrb[15].mxu0  ;;  %v16520_v62 = vpop.eup %16519  ;;  %v7562_v13 = vadd.f32 %v20089_v6, %v18406_v52 }
0x16d5   : > { %16537 = vrcp.f32 %v8008_v32  ;;  %v15409_v19 = vadd.f32 %v18387_v3, %v7745_v45  ;;  %v8120_v32 = vadd.f32 1.0, %v16520_v62  ;;  %v7567_v6 = vadd.f32 %v20095_v28, %v18406_v52 }
0x16d6   : > { %v16522_v15 = vpop.eup %16521  ;;  %v8181_v46 = vadd.f32 %v8165_v29, %v7557_v35  ;;  %16539 = vpow2.f32 %v10759_v0  ;;  %v10744_v7 = vmul.f32 -1.442695, %v15407_v36  ;;  %v7572_v62 = vadd.f32 %v20093_v54, %v18406_v52 }
0x16d7   : > { %v16524_v16 = vpop.eup %16523  ;;  %16541 = vrcp.f32 %v8118_v37  ;;  %v8009_v30 = vadd.f32 1.0, %v16522_v15  ;;  %v7749_v33 = vpop.f32.mrb[16].mxu0  ;;  %v10760_v29 = vmul.f32 -1.442695, %v15409_v19 }
0x16d8   : > { %16543 = vtanh.f32 %v8181_v46  ;;  %v8166_v56 = vmul.f32 %v16524_v16, %v7868_v47  ;;  %v7751_v48 = vpop.f32.mrb[17].mxu0  ;;  %v16526_v25 = vpop.eup %16525  ;;  %v15411_v46 = vadd.f32 %v18383_v12, %v7749_v33  ;;  %v7888_v33 = vadd.f32 %v20129_v41, %v18403_v55 }
0x16d9   : > { %16545 = vrcp.f32 %v8119_v27  ;;  %v8121_v60 = vadd.f32 1.0, %v16526_v25  ;;  %v7883_v25 = vadd.f32 %v20131_v11, %v18403_v55 }
0x16da   : > { %v16528_v49 = vpop.eup %16527  ;;  %v8182_v0 = vadd.f32 %v8166_v56, %v7562_v13  ;;  %16547 = vrcp.f32 %v8009_v30  ;;  %v7577_v30 = vadd.f32 %v20099_v39, %v18406_v52 }
0x16db   : > { %v16530_v37 = vpop.eup %16529  ;;  %v8010_v35 = vadd.f32 1.0, %v16528_v49  ;;  %16549 = vpow2.f32 %v10744_v7  ;;  %v7755_v36 = vpop.f32.mrb[18].mxu0  ;;  %v7878_v7 = vadd.f32 %v20125_v42, %v18403_v55 }
0x16dc   : > { %v16532_v45 = vpop.eup %16531  ;;  %16551 = vtanh.f32 %v8182_v0  ;;  %v8167_v15 = vmul.f32 %v16530_v37, %v7873_v50  ;;  %v7757_v47 = vpop.f32.mrb[19].mxu0  ;;  %v15415_v49 = vadd.f32 %v18383_v12, %v7755_v36  ;;  %v10745_v0 = vmul.f32 -1.442695, %v15411_v46 }
0x16dd   : > { %v16534_v27 = vpop.eup %16533  ;;  %16553 = vrcp.f32 %v8120_v32  ;;  %v15413_v37 = vadd.f32 %v18387_v3, %v7751_v48  ;;  %v15417_v48 = vadd.f32 %v18387_v3, %v7757_v47 }
0x16de   : > { %v16536_v16 = vpop.eup %16535  ;;  %v8183_v19 = vadd.f32 %v8167_v15, %v7567_v6  ;;  %16555 = vrcp.f32 %v8010_v35  ;;  %v8122_v13 = vadd.f32 1.0, %v16534_v27  ;;  %v8213_v35 = vsub.f32 1.0, %v16532_v45 }
0x16df   : > { %v16538_v28 = vpop.eup %16537  ;;  %v8011_v56 = vadd.f32 1.0, %v16536_v16  ;;  %16557 = vpow2.f32 %v10760_v29  ;;  %v7761_v54 = vpop.f32.mrb[20].mxu0  ;;  %v10746_v41 = vmul.f32 -1.442695, %v15415_v49 }
0x16e0   : > { %v16540_v32 = vpop.eup %16539  ;;  %16559 = vtanh.f32 %v8183_v19  ;;  %v8168_v39 = vmul.f32 %v16538_v28, %v7878_v7  ;;  %v7763_v50 = vpop.f32.mrb[21].mxu0  ;;  %v15419_v15 = vadd.f32 %v18383_v12, %v7761_v54  ;;  %v8245_v7 = vmul.f32 %v16532_v45, %v19774_v23 }
0x16e1   : > { %v16542_v42 = vpop.eup %16541  ;;  %16561 = vrcp.f32 %v8121_v60  ;;  %v8123_v36 = vadd.f32 1.0, %v16540_v32  ;;  %v10761_v32 = vmul.f32 -1.442695, %v15413_v37  ;;  %v15421_v23 = vadd.f32 %v18387_v3, %v7763_v50 }
0x16e2   : > { %v16544_v29 = vpop.eup %16543  ;;  %v8184_v6 = vadd.f32 %v8168_v39, %v7572_v62  ;;  %16563 = vrcp.f32 %v8011_v56  ;;  %v8214_v28 = vsub.f32 1.0, %v16542_v42  ;;  %v8246_v60 = vmul.f32 %v16542_v42, %v19783_v40 }
0x16e3   : > { %v16546_v27 = vpop.eup %16545  ;;  %16565 = vrcp.f32 %v8122_v13  ;;  %v7767_v16 = vpop.f32.mrb[22].mxu0  ;;  %v8229_v11 = vmul.f32 %v16544_v29, %v8213_v35  ;;  %v10747_v39 = vmul.f32 -1.442695, %v15419_v15  ;;  %v7582_v42 = vadd.f32 %v20097_v5, %v18406_v52 }
0x16e4   : > { %v16548_v19 = vpop.eup %16547  ;;  %16567 = vtanh.f32 %v8184_v6  ;;  %v7769_v46 = vpop.f32.mrb[23].mxu0  ;;  %v15423_v40 = vadd.f32 %v18383_v12, %v7767_v16  ;;  %v10762_v37 = vmul.f32 -1.442695, %v15417_v48  ;;  %v8215_v15 = vsub.f32 1.0, %v16546_v27 }
0x16e5   : > { %v16550_v62 = vpop.eup %16549  ;;  %v8169_v56 = vmul.f32 %v16548_v19, %v7883_v25  ;;  %16569 = vpow2.f32 %v10745_v0  ;;  %v20198_v54 = vadd.f32 %v8245_v7, %v8229_v11  ;;  %v7893_v0 = vadd.f32 %v20135_v18, %v18403_v55 }
0x16e6   : > { %v16552_v13 = vpop.eup %16551  ;;  %16571 = vrcp.f32 %v8123_v36  ;;  %v8012_v49 = vadd.f32 1.0, %v16550_v62  ;;  %v10763_v16 = vmul.f32 -1.442695, %v15421_v23  ;;  %v15425_v11 = vadd.f32 %v18387_v3, %v7769_v46 }
0x16e7   : > { %v16554_v45 = vpop.eup %16553  ;;  %v8230_v35 = vmul.f32 %v16552_v13, %v8214_v28  ;;  %v8185_v29 = vadd.f32 %v8169_v56, %v7577_v30  ;;  %16573 = vpow2.f32 %v10746_v41  ;;  %v7773_v47 = vpop.f32.mrb[24].mxu0  ;;  %13311 = vmatprep.mubr.f32.mxu1 %v20198_v54  ;;  %v8247_v7 = vmul.f32 %v16546_v27, %v19791_v38 }
0x16e8   : > { %v16556_v25 = vpop.eup %16555  ;;  %16575 = vrcp.f32 %v8012_v49  ;;  %v7775_v6 = vpop.f32.mrb[25].mxu0  ;;  %v10748_v18 = vmul.f32 -1.442695, %v15423_v40  ;;  %v8216_v62 = vsub.f32 1.0, %v16554_v45  ;;  %v15427_v38 = vadd.f32 %v18383_v12, %v7773_v47 }
0x16e9   : > { %v16558_v50 = vpop.eup %16557  ;;  %v20207_v36 = vadd.f32 %v8246_v60, %v8230_v35  ;;  %16577 = vtanh.f32 %v8185_v29  ;;  %v8170_v30 = vmul.f32 %v16556_v25, %v7888_v33  ;;  %v7587_v33 = vadd.f32 %v20103_v8, %v18406_v52 }
0x16ea   : > { %v16560_v41 = vpop.eup %16559  ;;  %16579 = vpow2.f32 %v10761_v32  ;;  %v8124_v56 = vadd.f32 1.0, %v16558_v50  ;;  %v10764_v29 = vmul.f32 -1.442695, %v15425_v11  ;;  %v15429_v47 = vadd.f32 %v18387_v3, %v7775_v6 }
0x16eb   : > { %v16562_v5 = vpop.eup %16561  ;;  %v8186_v19 = vadd.f32 %v8170_v30, %v7582_v42  ;;  %16581 = vpow2.f32 %v10747_v39  ;;  %v7779_v28 = vpop.f32.mrb[26].mxu0  ;;  %13312 = vmatmul.mubr.f32.vlgmr.msra.gmra.mrb[32].mxu1 %v20207_v36  ;;  %v8231_v48 = vmul.f32 %v16560_v41, %v8215_v15  ;;  %v8248_v39 = vmul.f32 %v16554_v45, %v19802_v61 }
0x16ec   : > { %v16564_v60 = vpop.eup %16563  ;;  %16583 = vpow2.f32 %v10762_v37  ;;  %v7781_v32 = vpop.f32.mrb[27].mxu0  ;;  %v7898_v61 = vadd.f32 %v20133_v14, %v18403_v55  ;;  %v10749_v45 = vmul.f32 -1.442695, %v15427_v38  ;;  %v15431_v41 = vadd.f32 %v18383_v12, %v7779_v28 }
0x16ed   : > { %v16566_v13 = vpop.eup %16565  ;;  %16585 = vtanh.f32 %v8186_v19  ;;  %v8171_v46 = vmul.f32 %v16564_v60, %v7893_v0  ;;  %v20215_v27 = vadd.f32 %v8247_v7, %v8231_v48  ;;  %v7592_v6 = vadd.f32 %v20101_v10, %v18406_v52 }
0x16ee   : > { %v16568_v49 = vpop.eup %16567  ;;  %16587 = vpow2.f32 %v10763_v16  ;;  %v8217_v16 = vsub.f32 1.0, %v16562_v5  ;;  %v8218_v28 = vsub.f32 1.0, %v16566_v13  ;;  %v10750_v10 = vmul.f32 -1.442695, %v15431_v41 }
0x16ef   : > { %v16570_v23 = vpop.eup %16569  ;;  %v8187_v35 = vadd.f32 %v8171_v46, %v7587_v33  ;;  %16589 = vpow2.f32 %v10748_v18  ;;  %v7785_v8 = vpop.f32.mrb[28].mxu0  ;;  %13314 = vmatprep.mubr.f32.mxu1 %v20215_v27  ;;  %v8232_v40 = vmul.f32 %v16568_v49, %v8216_v62  ;;  %v10765_v18 = vmul.f32 -1.442695, %v15429_v47 }
0x16f0   : > { %v20219_v25 = vpop.eup %16571  ;;  %16591 = vrcp.f32 %v8124_v56  ;;  %v8013_v42 = vadd.f32 1.0, %v16570_v23  ;;  %v20222_v0 = vpop.f32.mrb[29].mxu0  ;;  %v8249_v33 = vmul.f32 %v16562_v5, %v19812_v22  ;;  %v15433_v49 = vadd.f32 %v18387_v3, %v7781_v32 }
0x16f1   : > { %v16574_v37 = vpop.eup %16573  ;;  %16593 = vtanh.f32 %v8187_v35  ;;  %v20226_v50 = vadd.f32 %v8248_v39, %v8232_v40  ;;  %v8250_v5 = vmul.f32 %v16566_v13, %v19818_v44  ;;  %v7903_v41 = vadd.f32 %v20139_v24, %v18403_v55 }
0x16f2   : > { %v16576_v30 = vpop.eup %16575  ;;  %16595 = vrcp.f32 %v8013_v42  ;;  %v8014_v15 = vadd.f32 1.0, %v16574_v37  ;;  %v8219_v37 = vsub.f32 1.0, %v20219_v25 }
0x16f3   : > { %v16578_v11 = vpop.eup %16577  ;;  %v8172_v7 = vmul.f32 %v16576_v30, %v7898_v61  ;;  %16597 = vpow2.f32 %v10764_v29  ;;  %v7791_v19 = vpop.f32.mrb[30].mxu0  ;;  %13315 = vmatmul.mubr.f32.gmra.mrb[34].mxu1 %v20226_v50  ;;  %v15435_v29 = vadd.f32 %v18383_v12, %v7785_v8  ;;  %v7597_v8 = vadd.f32 %v20107_v26, %v18406_v52 }
0x16f4   : > { %v16580_v14 = vpop.eup %16579  ;;  %16599 = vrcp.f32 %v8014_v15  ;;  %v20232_v48 = vpop.f32.mrb[31].mxu0  ;;  %v8233_v60 = vmul.f32 %v16578_v11, %v8217_v16  ;;  %v15439_v26 = vadd.f32 %v18383_v12, %v7791_v19 }
0x16f5   : > { %v16582_v62 = vpop.eup %16581  ;;  %v8188_v56 = vadd.f32 %v8172_v7, %v7592_v6  ;;  %16601 = vpow2.f32 %v10749_v45  ;;  %v8125_v35 = vadd.f32 1.0, %v16580_v14  ;;  %v10766_v45 = vmul.f32 -1.442695, %v15433_v49 }
0x16f6   : > { %v16584_v46 = vpop.eup %16583  ;;  %v8015_v38 = vadd.f32 1.0, %v16582_v62  ;;  %v20236_v39 = vadd.f32 %v8249_v33, %v8233_v60  ;;  %v10751_v44 = vmul.f32 -1.442695, %v15435_v29  ;;  %v8251_v6 = vmul.f32 %v20219_v25, %v19832_v53 }
0x16f7   : > { %v16586_v23 = vpop.eup %16585  ;;  %16603 = vtanh.f32 %v8188_v56  ;;  %v8126_v47 = vadd.f32 1.0, %v16584_v46  ;;  %v7908_v14 = vadd.f32 %v20137_v51, %v18403_v55  ;;  %v15437_v60 = vadd.f32 %v18387_v3, %v20222_v0 }
0x16f8   : > { %v16588_v40 = vpop.eup %16587  ;;  %16605 = vpow2.f32 %v10765_v18  ;;  %13317 = vmatprep.mubr.f32.mxu1 %v20236_v39  ;;  %v8234_v22 = vmul.f32 %v16586_v23, %v8218_v28  ;;  %v7602_v28 = vadd.f32 %v20105_v63, %v18406_v52 }
0x16f9   : > { %v16590_v42 = vpop.eup %16589  ;;  %16607 = vrcp.f32 %v8015_v38  ;;  %v8127_v16 = vadd.f32 1.0, %v16588_v40  ;;  %v7913_v38 = vadd.f32 %v20143_v34, %v18403_v55  ;;  %v10767_v23 = vmul.f32 -1.442695, %v15437_v60 }
0x16fa   : > { %v16592_v32 = vpop.eup %16591  ;;  %v8016_v61 = vadd.f32 1.0, %v16590_v42  ;;  %16609 = vpow2.f32 %v10750_v10  ;;  %v20242_v30 = vadd.f32 %v8250_v5, %v8234_v22  ;;  %v10752_v10 = vmul.f32 -1.442695, %v15439_v26 }
0x16fb   : > { %v16594_v15 = vpop.eup %16593  ;;  %16611 = vrcp.f32 %v8125_v35  ;;  %v8220_v56 = vsub.f32 1.0, %v16592_v32  ;;  %v8252_v35 = vmul.f32 %v16592_v32, %v19844_v43  ;;  %v7607_v40 = vadd.f32 %v20111_v17, %v18406_v52 }
0x16fc   : > { %v16596_v13 = vpop.eup %16595  ;;  %16613 = vrcp.f32 %v8016_v61  ;;  %13318 = vmatmul.mubr.f32.gmra.mrb[36].mxu1 %v20242_v30  ;;  %v8235_v11 = vmul.f32 %v16594_v15, %v8219_v37  ;;  %v15441_v34 = vadd.f32 %v18387_v3, %v20232_v48  ;;  %v7918_v37 = vadd.f32 %v20141_v57, %v18403_v55 }
0x16fd   : > { %v16598_v7 = vpop.eup %16597  ;;  %v8173_v18 = vmul.f32 %v16596_v13, %v7903_v41  ;;  %16615 = vrcp.f32 %v8126_v47  ;;  %v7612_v15 = vadd.f32 %v20109_v4, %v18406_v52 }
0x16fe   : > { %v16600_v24 = vpop.eup %16599  ;;  %16617 = vpow2.f32 %v10766_v45  ;;  %v20256_v33 = vadd.f32 %v8251_v6, %v8235_v11  ;;  %v8128_v51 = vadd.f32 1.0, %v16598_v7  ;;  %v10768_v41 = vmul.f32 -1.442695, %v15441_v34 }
0x16ff   : > { %v16602_v62 = vpop.eup %16601  ;;  %v8189_v53 = vadd.f32 %v8173_v18, %v7597_v8  ;;  %v8174_v25 = vmul.f32 %v16600_v24, %v7908_v14  ;;  %16619 = vpow2.f32 %v10751_v44  ;;  %v7923_v7 = vadd.f32 %v20147_v59, %v18403_v55 }
0x1700   : > { %16621 = vrcp.f32 %v8127_v16  ;;  %v8017_v46 = vadd.f32 1.0, %v16602_v62  ;;  %13320 = vmatprep.mubr.f32.mxu1 %v20256_v33  ;;  %v7617_v62 = vadd.f32 %v20115_v21, %v18406_v52 }
0x1701   : > { %v16604_v19 = vpop.eup %16603  ;;  %16623 = vtanh.f32 %v8189_v53  ;;  %v8190_v0 = vadd.f32 %v8174_v25, %v7602_v28 }
0x1702   : > { %v16606_v49 = vpop.eup %16605  ;;  %16625 = vrcp.f32 %v8017_v46  ;;  %v8236_v63 = vmul.f32 %v16604_v19, %v8220_v56  ;;  %v7928_v19 = vadd.f32 %v20145_v31, %v18403_v55 }
0x1703   : > { %v16608_v29 = vpop.eup %16607  ;;  %16627 = vtanh.f32 %v8190_v0  ;;  %v8129_v45 = vadd.f32 1.0, %v16606_v49 }
0x1704   : > { %v16610_v22 = vpop.eup %16609  ;;  %v8175_v5 = vmul.f32 %v16608_v29, %v7913_v38  ;;  %16629 = vrcp.f32 %v8128_v51  ;;  %v20268_v42 = vadd.f32 %v8252_v35, %v8236_v63 }
0x1705   : > { %v16612_v47 = vpop.eup %16611  ;;  %v8018_v61 = vadd.f32 1.0, %v16610_v22  ;;  %16631 = vpow2.f32 %v10752_v10 }
0x1706   : > { %v16614_v43 = vpop.eup %16613  ;;  %v8191_v32 = vadd.f32 %v8175_v5, %v7607_v40  ;;  %16633 = vpow2.f32 %v10767_v23  ;;  %13321 = vmatmul.mubr.f32.gmra.mrb[38].mxu1 %v20268_v42  ;;  %v8221_v11 = vsub.f32 1.0, %v16612_v47  ;;  %v8253_v14 = vmul.f32 %v16612_v47, %v19856_v58 }
0x1707   : > { %v16616_v17 = vpop.eup %16615  ;;  %v8176_v8 = vmul.f32 %v16614_v43, %v7918_v37  ;;  %16635 = vrcp.f32 %v8018_v61  ;;  %v7622_v23 = vadd.f32 %v20113_v20, %v18406_v52  ;;  %v7933_v37 = vadd.f32 %v20151_v9, %v18403_v55  ;;  %v21551_v61 = vld [vmem:[#allocation42_spill] sm:$0xff] }
0x1708   : > { %v16618_v48 = vpop.eup %16617  ;;  %16637 = vtanh.f32 %v8191_v32  ;;  %v8222_v4 = vsub.f32 1.0, %v16616_v17  ;;  %v8254_v59 = vmul.f32 %v16616_v17, %v19862_v2 }
0x1709   : > { %v16620_v44 = vpop.eup %16619  ;;  %v8192_v13 = vadd.f32 %v8176_v8, %v7612_v15  ;;  %16639 = vrcp.f32 %v8129_v45  ;;  %v8130_v26 = vadd.f32 1.0, %v16618_v48 }
0x170a   : > { %v16622_v57 = vpop.eup %16621  ;;  %v8019_v16 = vadd.f32 1.0, %v16620_v44 }
0x170b   : > { %v16624_v6 = vpop.eup %16623  ;;  %16641 = vtanh.f32 %v8192_v13  ;;  %v8223_v10 = vsub.f32 1.0, %v16622_v57  ;;  %v8255_v31 = vmul.f32 %v16622_v57, %v19868_v1  ;;  %v21552_v1 = vld [vmem:[#allocation47_spill] sm:$0xff] }
0x170c   : > { %v16626_v18 = vpop.eup %16625  ;;  %16643 = vpow2.f32 %v10768_v41  ;;  %v8237_v24 = vmul.f32 %v16624_v6, %v8221_v11  ;;  %v7627_v45 = vadd.f32 %v21552_v1, %v18406_v52  ;;  %v21554_v13 = vld [vmem:[#allocation43_spill] sm:$0xff]  ;;  %v21555_v6 = vld [vmem:[#allocation97_spill] sm:$0xff] }
0x170d   : > { %v16628_v60 = vpop.eup %16627  ;;  %v8177_v28 = vmul.f32 %v16626_v18, %v7923_v7  ;;  %16645 = vrcp.f32 %v8019_v16  ;;  %v7938_v57 = vadd.f32 %v21554_v13, %v18403_v55  ;;  %v8613_v13 = vld [vmem:[#allocation11 + $0x2d8] sm:$0xff] }
0x170e   : > { %v16630_v53 = vpop.eup %16629  ;;  %v20280_v25 = vadd.f32 %v8253_v14, %v8237_v24  ;;  %v8238_v56 = vmul.f32 %v16628_v60, %v8222_v4  ;;  %16647 = vrcp.f32 %v8130_v26  ;;  %v21556_v14 = vld [vmem:[#allocation45_spill] sm:$0xff] }
0x170f   : > { %v16632_v51 = vpop.eup %16631  ;;  %v8193_v46 = vadd.f32 %v8177_v28, %v7617_v62  ;;  %v8224_v29 = vsub.f32 1.0, %v16630_v53  ;;  %v8256_v43 = vmul.f32 %v16630_v53, %v21551_v61  ;;  %v7632_v18 = vadd.f32 %v21556_v14, %v18406_v52  ;;  %v21558_v53 = vld [vmem:[#allocation46_spill] sm:$0xff] }
0x1710   : > { %v16634_v58 = vpop.eup %16633  ;;  %v8020_v38 = vadd.f32 1.0, %v16632_v51  ;;  %13323 = vmatprep.mubr.f32.mxu1 %v20280_v25  ;;  %v20286_v0 = vadd.f32 %v8254_v59, %v8238_v56 }
0x1711   : > { %v16636_v21 = vpop.eup %16635  ;;  %16649 = vtanh.f32 %v8193_v46  ;;  %v8131_v22 = vadd.f32 1.0, %v16634_v58 }
0x1712   : > { %v16638_v49 = vpop.eup %16637  ;;  %v8178_v2 = vmul.f32 %v16636_v21, %v7928_v19  ;;  %16651 = vrcp.f32 %v8020_v38  ;;  %13324 = vmatmul.mubr.f32.gmra.mrb[40].mxu1 %v20286_v0  ;;  %v21560_v21 = vld [vmem:[#allocation44_spill] sm:$0xff] }
0x1713   : > { %v8239_v63 = vmul.f32 %v16638_v49, %v8223_v10  ;;  %v16640_v35 = vpop.eup %16639 }
0x1714   : > { %v8194_v40 = vadd.f32 %v8178_v2, %v7622_v23  ;;  %v8225_v9 = vsub.f32 1.0, %v16640_v35  ;;  %v8257_v7 = vmul.f32 %v16640_v35, %v21555_v6  ;;  %v8615_v6 = vld [vmem:[#allocation11 + $0x2e8] sm:$0xff] }
0x1715   : > { %v16642_v5 = vpop.eup %16641  ;;  %v20292_v34 = vadd.f32 %v8255_v31, %v8239_v63  ;;  %v21562_v31 = vld [vmem:[#allocation48_spill] sm:$0xff] }
0x1716   : > { %v16644_v47 = vpop.eup %16643  ;;  %16653 = vtanh.f32 %v8194_v40  ;;  %v8240_v20 = vmul.f32 %v16642_v5, %v8224_v29  ;;  %v16887_v40 = vld [vmem:[%s17876_s22] sm:$0xff]  ;;  %v8603_v5 = vld [vmem:[#allocation11 + $0x288] sm:$0xff] }
0x1717   : > { %v16646_v32 = vpop.eup %16645  ;;  %13326 = vmatprep.mubr.f32.mxu1 %v20292_v34  ;;  %16655 = vrcp.f32 %v8131_v22  ;;  %v8132_v8 = vadd.f32 1.0, %v16644_v47  ;;  %v8602_v22 = vld [vmem:[#allocation11 + $0x280] sm:$0xff]  ;;  %v8604_v47 = vld [vmem:[#allocation11 + $0x290] sm:$0xff] }
0x1718   : > { %v8179_v17 = vmul.f32 %v16646_v32, %v7933_v37  ;;  %v20300_v15 = vadd.f32 %v8256_v43, %v8240_v20  ;;  %v16648_v48 = vpop.eup %16647  ;;  %v14810_v37 = vpack.c.bf16 %v8603_v5, %v8602_v22  ;;  %v8605_v20 = vld [vmem:[#allocation11 + $0x298] sm:$0xff]  ;;  %v8606_v43 = vld [vmem:[#allocation11 + $0x2a0] sm:$0xff]  ;;  %v8607_v32 = vld [vmem:[#allocation11 + $0x2a8] sm:$0xff] }
0x1719   : > { %v8226_v24 = vsub.f32 1.0, %v16648_v48  ;;  %v8258_v56 = vmul.f32 %v16648_v48, %v21558_v53  ;;  %v14814_v61 = vpack.c.bf16 %v8605_v20, %v8604_v47  ;;  %v14818_v1 = vpack.c.bf16 %v8607_v32, %v8606_v43  ;;  %v8610_v48 = vld [vmem:[#allocation11 + $0x2c0] sm:$0xff] }
0x171a   : > { %21553 = vst [vmem:[#allocation42_spill] sm:$0xff] %v20300_v15  ;;  %v8195_v41 = vadd.f32 %v8179_v17, %v7627_v45  ;;  %13327 = vmatmul.mubr.f32.gmra.mrb[42].mxu1 %v20300_v15  ;;  %14811 = vmatprep.subr.bf16.mxu0 %v14810_v37  ;;  %v8608_v45 = vld [vmem:[#allocation11 + $0x2b0] sm:$0xff]  ;;  %v8609_v17 = vld [vmem:[#allocation11 + $0x2b8] sm:$0xff] }
0x171b   : > { %v16650_v44 = vpop.eup %16649  ;;  %14813 = vmatpush3.bf16.msra.mxu0 %v14810_v37 }
0x171c   : > { %v16652_v16 = vpop.eup %16651  ;;  %16657 = vtanh.f32 %v8195_v41  ;;  %v8241_v11 = vmul.f32 %v16650_v44, %v8225_v9  ;;  %14815 = vmatprep.subr.bf16.mxu0 %v14814_v61  ;;  %v8611_v41 = vld [vmem:[#allocation11 + $0x2c8] sm:$0xff]  ;;  %v8612_v44 = vld [vmem:[#allocation11 + $0x2d0] sm:$0xff] }
0x171d   : > { %v8180_v4 = vmul.f32 %v16652_v16, %v7938_v57  ;;  %16659 = vrcp.f32 %v8132_v8  ;;  %v14822_v8 = vpack.c.bf16 %v8609_v17, %v8608_v45  ;;  %v14826_v9 = vpack.c.bf16 %v8611_v41, %v8610_v48  ;;  %v20324_v57 = vld [vmem:[#allocation20 + $0x6] ss:$0 sm:$0xff] }
0x171e   : > { %v20308_v26 = vadd.f32 %v8257_v7, %v8241_v11  ;;  %v14830_v16 = vpack.c.bf16 %v8613_v13, %v8612_v44  ;;  %v8614_v11 = vld [vmem:[#allocation11 + $0x2e0] sm:$0xff] }
0x171f   : > { %v8196_v60 = vadd.f32 %v8180_v4, %v7632_v18  ;;  %14817 = vmatpush3.bf16.msra.mxu0 %v14814_v61 }
0x1720   : > { %21557 = vst [vmem:[#allocation47_spill] sm:$0xff] %v20308_v26  ;;  %v16654_v62 = vpop.eup %16653  ;;  %13329 = vmatprep.mubr.f32.mxu1 %v20308_v26  ;;  %14819 = vmatprep.subr.bf16.mxu0 %v14818_v1 }
0x1721   : > { %16661 = vtanh.f32 %v8196_v60  ;;  %v8242_v28 = vmul.f32 %v16654_v62, %v8226_v24  ;;  %v16656_v59 = vpop.eup %16655  ;;  %v14834_v24 = vpack.c.bf16 %v8615_v6, %v8614_v11  ;;  %v8616_v62 = vld [vmem:[#allocation11 + $0x2f0] sm:$0xff] }
0x1722   : > { %v8227_v46 = vsub.f32 1.0, %v16656_v59  ;;  %v8259_v10 = vmul.f32 %v16656_v59, %v21560_v21 }
0x1723   : > { %v20312_v51 = vadd.f32 %v8258_v56, %v8242_v28  ;;  %14821 = vmatpush3.bf16.msra.mxu0 %v14818_v1  ;;  %v8617_v28 = vld [vmem:[#allocation11 + $0x2f8] sm:$0xff] }
0x1724   : > { %14823 = vmatprep.subr.bf16.mxu0 %v14822_v8  ;;  %v14838_v59 = vpack.c.bf16 %v8617_v28, %v8616_v62 }
0x1725   : > { %21559 = vst [vmem:[#allocation43_spill] sm:$0xff] %v20312_v51  ;;  %13330 = vmatmul.mubr.f32.gmra.mrb[44].mxu1 %v20312_v51 }
0x1726   : > { %v16658_v58 = vpop.eup %16657 }
0x1727   : > { %v16660_v19 = vpop.eup %16659  ;;  %v8243_v38 = vmul.f32 %v16658_v58, %v8227_v46  ;;  %14825 = vmatpush3.bf16.msra.mxu0 %v14822_v8 }
0x1728   : > { %v8228_v23 = vsub.f32 1.0, %v16660_v19  ;;  %v8260_v35 = vmul.f32 %v16660_v19, %v21562_v31  ;;  %14827 = vmatprep.subr.bf16.mxu0 %v14826_v9 }
0x1729   : > { %v20316_v49 = vadd.f32 %v8259_v10, %v8243_v38 }
0x172b   : > { %21561 = vst [vmem:[#allocation97_spill] sm:$0xff] %v20316_v49  ;;  %v16662_v2 = vpop.eup %16661  ;;  %13332 = vmatprep.mubr.f32.mxu1 %v20316_v49  ;;  %14829 = vmatpush3.bf16.msra.mxu0 %v14826_v9 }
0x172c   : > { %v8244_v63 = vmul.f32 %v16662_v2, %v8228_v23  ;;  %14831 = vmatprep.subr.bf16.mxu0 %v14830_v16  ;;  %v21564_v2 = vld [vmem:[#allocation51_spill] sm:$0xff] }
0x172e   : > { %v20320_v29 = vadd.f32 %v8260_v35, %v8244_v63 }
0x172f   : > { %14833 = vmatpush3.bf16.msra.mxu0 %v14830_v16 }
0x1730   : > { %21563 = vst [vmem:[#allocation45_spill] sm:$0xff] %v20320_v29  ;;  %13333 = vmatmul.mubr.f32.gmra.mrb[46].mxu1 %v20320_v29  ;;  %14835 = vmatprep.subr.bf16.mxu0 %v14834_v24 }
0x1731   : > { %13367 = vmatprep.mubr.f32.mxu1 %v16887_v40 }
0x1733   : > { %14837 = vmatpush3.bf16.msra.mxu0 %v14834_v24 }
0x1734   : > { %14839 = vmatprep.subr.bf16.mxu0 %v14838_v59 }
0x1737   : > { %14841 = vmatpush3.bf16.msra.mxu0 %v14838_v59 }
0x1738   : > { %14875 = vmatprep.subr.bf16.mxu0 %v21564_v2 }
0x17be   : > { %v13313_v7 = vpop.f32.mrb[32].mxu1 }
0x17bf   : > { %v8367_v14 = vadd.f32 %v13313_v7, %v20324_v57  ;;  %v8361_v18 = vpop.f32.mrb[33].mxu1 }
0x17c0   : > { %v8362_v4 = vadd.f32 %v8361_v18, %v20324_v57 }
0x17c1   : > { %v8441_v60 = vmax.f32 %v8367_v14, 0.0 }
0x17c2   : > { %v8440_v53 = vmax.f32 %v8362_v4, 0.0 }
0x17c4   : > { %v14778_v56 = vpack.c.bf16 %v8441_v60, %v8440_v53 }
0x17c6   : > { %v13316_v46 = vpop.f32.mrb[34].mxu1  ;;  %14779 = vmatprep.subr.bf16.mxu1 %v14778_v56 }
0x17c7   : > { %v8377_v58 = vadd.f32 %v13316_v46, %v20324_v57  ;;  %v8371_v19 = vpop.f32.mrb[35].mxu1  ;;  %14781 = vmatpush3.bf16.msra.mxu1 %v14778_v56 }
0x17c8   : > { %v8372_v38 = vadd.f32 %v8371_v19, %v20324_v57 }
0x17c9   : > { %v8443_v21 = vmax.f32 %v8377_v58, 0.0 }
0x17ca   : > { %v8442_v10 = vmax.f32 %v8372_v38, 0.0 }
0x17cc   : > { %v14782_v23 = vpack.c.bf16 %v8443_v21, %v8442_v10 }
0x17ce   : > { %14783 = vmatprep.subr.bf16.mxu1 %v14782_v23 }
0x17cf   : > { %v13319_v63 = vpop.f32.mrb[36].mxu1  ;;  %14785 = vmatpush3.bf16.msra.mxu1 %v14782_v23 }
0x17d0   : > { %v8387_v31 = vadd.f32 %v13319_v63, %v20324_v57  ;;  %v8381_v35 = vpop.f32.mrb[37].mxu1  ;;  %v21565_v63 = vld [vmem:[#allocation49_spill] sm:$0xff] }
0x17d1   : > { %v8382_v40 = vadd.f32 %v8381_v35, %v20324_v57  ;;  %v16889_v35 = vld [vmem:[%s17876_s22 + $0x10] sm:$0xff] }
0x17d2   : > { %v8445_v22 = vmax.f32 %v8387_v31, 0.0  ;;  %v16888_v31 = vld [vmem:[%s17876_s22 + $0x8] sm:$0xff] }
0x17d3   : > { %v8444_v5 = vmax.f32 %v8382_v40, 0.0  ;;  %v21566_v40 = vld [vmem:[#allocation50_spill] sm:$0xff] }
0x17d5   : > { %v14786_v47 = vpack.c.bf16 %v8445_v22, %v8444_v5  ;;  %v21567_v22 = vld [vmem:[#allocation52_spill] sm:$0xff]  ;;  %v16891_v5 = vld [vmem:[%s17876_s22 + $0x20] sm:$0xff] }
0x17d7   : > { %14787 = vmatprep.subr.bf16.mxu1 %v14786_v47 }
0x17d8   : > { %14789 = vmatpush3.bf16.msra.mxu1 %v14786_v47  ;;  %v21568_v47 = vld [vmem:[#allocation53_spill] sm:$0xff] }
0x17d9   : > { %v13322_v37 = vpop.f32.mrb[38].mxu1 }
0x17da   : > { %v8397_v20 = vadd.f32 %v13322_v37, %v20324_v57  ;;  %v8391_v61 = vpop.f32.mrb[39].mxu1  ;;  %v21569_v37 = vld [vmem:[#allocation54_spill] sm:$0xff] }
0x17db   : > { %v8392_v43 = vadd.f32 %v8391_v61, %v20324_v57  ;;  %v16893_v61 = vld [vmem:[%s17876_s22 + $0x30] sm:$0xff] }
0x17dc   : > { %v8447_v32 = vmax.f32 %v8397_v20, 0.0  ;;  %v16892_v20 = vld [vmem:[%s17876_s22 + $0x28] sm:$0xff] }
0x17dd   : > { %v8446_v1 = vmax.f32 %v8392_v43, 0.0  ;;  %v21570_v43 = vld [vmem:[#allocation55_spill] sm:$0xff] }
0x17df   : > { %v14790_v45 = vpack.c.bf16 %v8447_v32, %v8446_v1  ;;  %v21571_v32 = vld [vmem:[#allocation56_spill] sm:$0xff] }
0x17e0   : > { %v16894_v1 = vld [vmem:[%s17876_s22 + $0x38] sm:$0xff] }
0x17e1   : > { %14791 = vmatprep.subr.bf16.mxu1 %v14790_v45 }
0x17e2   : > { %14793 = vmatpush3.bf16.msra.mxu1 %v14790_v45  ;;  %v16895_v45 = vld [vmem:[%s17876_s22 + $0x40] sm:$0xff] }
0x17e5   : > { %v13325_v17 = vpop.f32.mrb[40].mxu1 }
0x17e6   : > { %v8407_v8 = vadd.f32 %v13325_v17, %v20324_v57  ;;  %v8401_v48 = vpop.f32.mrb[41].mxu1  ;;  %v21572_v17 = vld [vmem:[#allocation57_spill] sm:$0xff] }
0x17e7   : > { %v8402_v41 = vadd.f32 %v8401_v48, %v20324_v57  ;;  %v16896_v48 = vld [vmem:[%s17876_s22 + $0x48] sm:$0xff] }
0x17e8   : > { %v8449_v9 = vmax.f32 %v8407_v8, 0.0  ;;  %v21573_v8 = vld [vmem:[#allocation58_spill] sm:$0xff] }
0x17e9   : > { %v8448_v44 = vmax.f32 %v8402_v41, 0.0  ;;  %v16897_v41 = vld [vmem:[%s17876_s22 + $0x50] sm:$0xff] }
0x17eb   : > { %v14794_v13 = vpack.c.bf16 %v8449_v9, %v8448_v44  ;;  %v21574_v9 = vld [vmem:[#allocation59_spill] sm:$0xff]  ;;  %v21575_v44 = vld [vmem:[#allocation60_spill] sm:$0xff] }
0x17ed   : > { %v13328_v16 = vpop.f32.mrb[42].mxu1  ;;  %14795 = vmatprep.subr.bf16.mxu1 %v14794_v13 }
0x17ee   : > { %v8417_v11 = vadd.f32 %v13328_v16, %v20324_v57  ;;  %v8411_v6 = vpop.f32.mrb[43].mxu1  ;;  %14797 = vmatpush3.bf16.msra.mxu1 %v14794_v13  ;;  %v16898_v13 = vld [vmem:[%s17876_s22 + $0x58] sm:$0xff]  ;;  %v16899_v16 = vld [vmem:[%s17876_s22 + $0x60] sm:$0xff] }
0x17ef   : > { %v8412_v7 = vadd.f32 %v8411_v6, %v20324_v57  ;;  %v21577_v6 = vld [vmem:[#allocation62_spill] sm:$0xff] }
0x17f0   : > { %v8451_v14 = vmax.f32 %v8417_v11, 0.0  ;;  %v21576_v11 = vld [vmem:[#allocation61_spill] sm:$0xff] }
0x17f1   : > { %v8450_v18 = vmax.f32 %v8412_v7, 0.0  ;;  %v16900_v7 = vld [vmem:[%s17876_s22 + $0x68] sm:$0xff] }
0x17f3   : > { %v14798_v4 = vpack.c.bf16 %v8451_v14, %v8450_v18  ;;  %v16901_v14 = vld [vmem:[%s17876_s22 + $0x70] sm:$0xff] }
0x17f4   : > { %v21578_v18 = vld [vmem:[#allocation63_spill] sm:$0xff] }
0x17f5   : > { %14799 = vmatprep.subr.bf16.mxu1 %v14798_v4 }
0x17f6   : > { %14801 = vmatpush3.bf16.msra.mxu1 %v14798_v4  ;;  %v21579_v4 = vld [vmem:[#allocation70_spill] sm:$0xff] }
0x17f8   : > { %v13331_v24 = vpop.f32.mrb[44].mxu1 }
0x17f9   : > { %v8427_v60 = vadd.f32 %v13331_v24, %v20324_v57  ;;  %v8421_v62 = vpop.f32.mrb[45].mxu1  ;;  %v16902_v24 = vld [vmem:[%s17876_s22 + $0x78] sm:$0xff] }
0x17fa   : > { %v8422_v28 = vadd.f32 %v8421_v62, %v20324_v57  ;;  %v21581_v62 = vmov 0.0  }
0x17fb   : > { %v8453_v53 = vmax.f32 %v8427_v60, 0.0  ;;  %v21580_v60 = vld [vmem:[#allocation71_spill] sm:$0xff] }
0x17fc   : > { %v8452_v56 = vmax.f32 %v8422_v28, 0.0  ;;  %v21582_v28 = vld [vmem:[#allocation74_spill] sm:$0xff] }
0x17fe   : > { %v14802_v59 = vpack.c.bf16 %v8453_v53, %v8452_v56 }
0x1800   : > { %14803 = vmatprep.subr.bf16.mxu1 %v14802_v59 }
0x1801   : > { %14805 = vmatpush3.bf16.msra.mxu1 %v14802_v59 }
0x1803   : > { %v13334_v46 = vpop.f32.mrb[46].mxu1 }
0x1804   : > { %v8437_v58 = vadd.f32 %v13334_v46, %v20324_v57  ;;  %v8431_v19 = vpop.f32.mrb[47].mxu1 }
0x1805   : > { %v8432_v38 = vadd.f32 %v8431_v19, %v20324_v57  ;;  %v16890_v57 = vld [vmem:[%s17876_s22 + $0x18] sm:$0xff] }
0x1806   : > { %v8455_v21 = vmax.f32 %v8437_v58, 0.0  ;;  %v21583_v58 = vld [vmem:[#allocation64_spill] sm:$0xff] }
0x1807   : > { %v8454_v10 = vmax.f32 %v8432_v38, 0.0 }
0x1809   : > { %v14806_v23 = vpack.c.bf16 %v8455_v21, %v8454_v10  ;;  %v21584_v21 = vld [vmem:[#allocation65_spill] sm:$0xff] }
0x180b   : > { %14807 = vmatprep.subr.bf16.mxu1 %v14806_v23 }
0x180c   : > { %14809 = vmatpush3.bf16.msra.mxu1 %v14806_v23 }
0x180d   : > { %14843 = vmatprep.subr.bf16.mxu1 %v21565_v63  ;;  %v21585_v63 = vld [vmem:[#allocation66_spill] sm:$0xff] }
0x180f   : > { %13368 = vmatmul.mubr.f32.vlgmr.msra.gmra.mrb[48].mxu1 %v16888_v31 }
0x1810   : > { %13370 = vmatprep.mubr.f32.mxu1 %v16889_v35  ;;  %14845 = vmatpush1.bf16.msra.mxu1 %v21566_v40  ;;  %v21586_v35 = vld [vmem:[#allocation67_spill] sm:$0xff] }
0x1811   : > { %14847 = vmatprep.subr.bf16.mxu1 %v21567_v22 }
0x1813   : > { %13371 = vmatmul.mubr.f32.gmra.mrb[50].mxu1 %v16890_v57  ;;  %v21587_v57 = vld [vmem:[#allocation68_spill] sm:$0xff] }
0x1814   : > { %13373 = vmatprep.mubr.f32.mxu1 %v16891_v5  ;;  %14849 = vmatpush1.bf16.msra.mxu1 %v21568_v47 }
0x1815   : > { %14851 = vmatprep.subr.bf16.mxu1 %v21569_v37  ;;  %v21588_v37 = vld [vmem:[#allocation69_spill] sm:$0xff] }
0x1817   : > { %13374 = vmatmul.mubr.f32.gmra.mrb[52].mxu1 %v16892_v20 }
0x1818   : > { %13376 = vmatprep.mubr.f32.mxu1 %v16893_v61  ;;  %14853 = vmatpush1.bf16.msra.mxu1 %v21570_v43  ;;  %v21589_v43 = vld [vmem:[#allocation72_spill] sm:$0xff] }
0x1819   : > { %14855 = vmatprep.subr.bf16.mxu1 %v21571_v32  ;;  %v21590_v32 = vld [vmem:[#allocation73_spill] sm:$0xff] }
0x181b   : > { %13377 = vmatmul.mubr.f32.gmra.mrb[54].mxu1 %v16894_v1  ;;  %v20392_v1 = vld [vmem:[#allocation20 + $0x1c] ss:$0 sm:$0xff] }
0x181c   : > { %13379 = vmatprep.mubr.f32.mxu1 %v16895_v45  ;;  %14857 = vmatpush1.bf16.msra.mxu1 %v21572_v17 }
0x181d   : > { %14859 = vmatprep.subr.bf16.mxu1 %v21573_v8 }
0x181f   : > { %13380 = vmatmul.mubr.f32.gmra.mrb[56].mxu1 %v16896_v48 }
0x1820   : > { %13382 = vmatprep.mubr.f32.mxu1 %v16897_v41  ;;  %14861 = vmatpush1.bf16.msra.mxu1 %v21574_v9 }
0x1821   : > { %14863 = vmatprep.subr.bf16.mxu1 %v21575_v44 }
0x1823   : > { %13383 = vmatmul.mubr.f32.gmra.mrb[58].mxu1 %v16898_v13 }
0x1824   : > { %13385 = vmatprep.mubr.f32.mxu1 %v16899_v16  ;;  %14865 = vmatpush1.bf16.msra.mxu1 %v21576_v11 }
0x1825   : > { %14867 = vmatprep.subr.bf16.mxu1 %v21577_v6 }
0x1827   : > { %13386 = vmatmul.mubr.f32.gmra.mrb[60].mxu1 %v16900_v7 }
0x1828   : > { %13388 = vmatprep.mubr.f32.mxu1 %v16901_v14  ;;  %14869 = vmatpush1.bf16.msra.mxu1 %v21578_v18  ;;  %v21591_v18 = vld [vmem:[#allocation75_spill] sm:$0xff] }
0x1829   : > { %14871 = vmatprep.subr.bf16.mxu1 %v21579_v4 }
0x182b   : > { %13389 = vmatmul.mubr.f32.gmra.mrb[62].mxu1 %v16902_v24 }
0x182c   : > { %14873 = vmatpush1.bf16.msra.mxu1 %v21580_v60  ;;  %8844 = vmatprep.mubr.f32.mxu1 %v21581_v62  ;;  %v21592_v60 = vld [vmem:[#allocation76_spill] sm:$0xff] }
0x182d   : > { %14907 = vmatprep.subr.bf16.mxu1 %v21582_v28  ;;  %v21593_v28 = vld [vmem:[#allocation77_spill] sm:$0xff] }
0x18e2   : > { %v13369_v53 = vpop.f32.mrb[48].mxu1 }
0x18e3   : > { %v8522_v56 = vpop.f32.mrb[49].mxu1 }
0x18e4   : > { %13423 = vmatprep.mubr.f32.mxu0 %v8522_v56 }
0x18e5   : > { %13424 = vmatmul.mubr.f32.vlgmr.msra.gmra.mrb[32].mxu0 %v13369_v53 }
0x18e6   : > { %v13372_v59 = vpop.f32.mrb[50].mxu1  ;;  %14877 = vmatpush3.bf16.msra.mxu0 %v21564_v2 }
0x18e7   : > { %v8532_v46 = vpop.f32.mrb[51].mxu1  ;;  %14879 = vmatprep.subr.bf16.mxu0 %v21583_v58 }
0x18e8   : > { %13426 = vmatprep.mubr.f32.mxu0 %v8532_v46 }
0x18e9   : > { %13427 = vmatmul.mubr.f32.gmra.mrb[34].mxu0 %v13372_v59 }
0x18ea   : > { %v13375_v19 = vpop.f32.mrb[52].mxu1  ;;  %14881 = vmatpush3.bf16.msra.mxu0 %v21583_v58  ;;  %v21594_v58 = vld [vmem:[#allocation78_spill] sm:$0xff] }
0x18eb   : > { %v8542_v38 = vpop.f32.mrb[53].mxu1  ;;  %14883 = vmatprep.subr.bf16.mxu0 %v21584_v21 }
0x18ec   : > { %13429 = vmatprep.mubr.f32.mxu0 %v8542_v38 }
0x18ed   : > { %13430 = vmatmul.mubr.f32.gmra.mrb[36].mxu0 %v13375_v19 }
0x18ee   : > { %v13378_v10 = vpop.f32.mrb[54].mxu1  ;;  %14885 = vmatpush3.bf16.msra.mxu0 %v21584_v21  ;;  %v21595_v21 = vld [vmem:[#allocation79_spill] sm:$0xff] }
0x18ef   : > { %v8552_v23 = vpop.f32.mrb[55].mxu1  ;;  %14887 = vmatprep.subr.bf16.mxu0 %v21585_v63 }
0x18f0   : > { %13432 = vmatprep.mubr.f32.mxu0 %v8552_v23 }
0x18f1   : > { %13433 = vmatmul.mubr.f32.gmra.mrb[38].mxu0 %v13378_v10  ;;  %v21596_v10 = vld [vmem:[#allocation80_spill] sm:$0xff] }
0x18f2   : > { %v13381_v2 = vpop.f32.mrb[56].mxu1  ;;  %14889 = vmatpush3.bf16.msra.mxu0 %v21585_v63 }
0x18f3   : > { %v8562_v31 = vpop.f32.mrb[57].mxu1  ;;  %14891 = vmatprep.subr.bf16.mxu0 %v21586_v35 }
0x18f4   : > { %13435 = vmatprep.mubr.f32.mxu0 %v8562_v31 }
0x18f5   : > { %13436 = vmatmul.mubr.f32.gmra.mrb[40].mxu0 %v13381_v2 }
0x18f6   : > { %v13384_v40 = vpop.f32.mrb[58].mxu1  ;;  %14893 = vmatpush3.bf16.msra.mxu0 %v21586_v35  ;;  %v21597_v35 = vld [vmem:[#allocation81_spill] sm:$0xff] }
0x18f7   : > { %v8572_v22 = vpop.f32.mrb[59].mxu1  ;;  %14895 = vmatprep.subr.bf16.mxu0 %v21587_v57 }
0x18f8   : > { %13438 = vmatprep.mubr.f32.mxu0 %v8572_v22 }
0x18f9   : > { %13439 = vmatmul.mubr.f32.gmra.mrb[42].mxu0 %v13384_v40 }
0x18fa   : > { %v13387_v5 = vpop.f32.mrb[60].mxu1  ;;  %14897 = vmatpush3.bf16.msra.mxu0 %v21587_v57  ;;  %v21598_v57 = vld [vmem:[#allocation82_spill] sm:$0xff] }
0x18fb   : > { %v8582_v47 = vpop.f32.mrb[61].mxu1  ;;  %14899 = vmatprep.subr.bf16.mxu0 %v21588_v37 }
0x18fc   : > { %13441 = vmatprep.mubr.f32.mxu0 %v8582_v47 }
0x18fd   : > { %13442 = vmatmul.mubr.f32.gmra.mrb[44].mxu0 %v13387_v5  ;;  %v21599_v5 = vld [vmem:[#allocation83_spill] sm:$0xff] }
0x18fe   : > { %v13390_v20 = vpop.f32.mrb[62].mxu1  ;;  %14901 = vmatpush3.bf16.msra.mxu0 %v21588_v37 }
0x18ff   : > { %v8592_v61 = vpop.f32.mrb[63].mxu1  ;;  %14903 = vmatprep.subr.bf16.mxu0 %v21589_v43 }
0x1900   : > { %13444 = vmatprep.mubr.f32.mxu0 %v8592_v61 }
0x1901   : > { %13445 = vmatmul.mubr.f32.gmra.mrb[46].mxu0 %v13390_v20 }
0x1902   : > { %14905 = vmatpush3.bf16.msra.mxu0 %v21589_v43  ;;  %v21600_v43 = vld [vmem:[#allocation84_spill] sm:$0xff] }
0x1903   : > { %14939 = vmatprep.subr.bf16.mxu0 %v21590_v32 }
0x19b8   : > { %v13425_v45 = vpop.f32.mrb[32].mxu0 }
0x19b9   : > { %v8691_v17 = vadd.f32 %v13425_v45, %v20392_v1  ;;  %v8685_v8 = vpop.f32.mrb[33].mxu0 }
0x19ba   : > { %v8686_v48 = vadd.f32 %v8685_v8, %v20392_v1  ;;  %v21602_v8 = vld [vmem:[#allocation86_spill] sm:$0xff] }
0x19bb   : > { %v8765_v44 = vmax.f32 %v8691_v17, 0.0  ;;  %v21601_v17 = vld [vmem:[#allocation85_spill] sm:$0xff] }
0x19bc   : > { %v8764_v41 = vmax.f32 %v8686_v48, 0.0  ;;  %v13428_v9 = vpop.f32.mrb[34].mxu0 }
0x19bd   : > { %v8701_v13 = vadd.f32 %v13428_v9, %v20392_v1  ;;  %v8695_v16 = vpop.f32.mrb[35].mxu0 }
0x19be   : > { %v8696_v11 = vadd.f32 %v8695_v16, %v20392_v1  ;;  %8845 = vmatmul.mubr.f32.vlgmr.msra.gmra.mrb[64].mxu1 %v8764_v41  ;;  %13479 = vmatprep.mubr.f32.mxu0 %v8764_v41 }
0x19bf   : > { %v8767_v6 = vmax.f32 %v8701_v13, 0.0  ;;  %13480 = vmatmul.mubr.f32.vlgmr.msra.gmra.mrb[48].mxu0 %v8765_v44  ;;  %8850 = vmatprep.mubr.f32.mxu1 %v21581_v62  ;;  %v21603_v13 = vld [vmem:[#allocation87_spill] sm:$0xff] }
0x19c0   : > { %v8766_v7 = vmax.f32 %v8696_v11, 0.0  ;;  %v13431_v14 = vpop.f32.mrb[36].mxu0  ;;  %14941 = vmatpush3.bf16.msra.mxu0 %v21590_v32  ;;  %14909 = vmatpush1.bf16.msra.mxu1 %v21591_v18 }
0x19c1   : > { %v8711_v4 = vadd.f32 %v13431_v14, %v20392_v1  ;;  %v8705_v24 = vpop.f32.mrb[37].mxu0  ;;  %14943 = vmatprep.subr.bf16.mxu0 %v21592_v60  ;;  %14911 = vmatprep.subr.bf16.mxu1 %v21593_v28 }
0x19c2   : > { %v8706_v53 = vadd.f32 %v8705_v24, %v20392_v1  ;;  %8851 = vmatmul.mubr.f32.gmra.mrb[66].mxu1 %v8765_v44  ;;  %13482 = vmatprep.mubr.f32.mxu0 %v8766_v7 }
0x19c3   : > { %v8769_v56 = vmax.f32 %v8711_v4, 0.0  ;;  %13483 = vmatmul.mubr.f32.gmra.mrb[50].mxu0 %v8767_v6  ;;  %8856 = vmatprep.mubr.f32.mxu1 %v21581_v62 }
0x19c4   : > { %v8768_v59 = vmax.f32 %v8706_v53, 0.0  ;;  %v13434_v46 = vpop.f32.mrb[38].mxu0  ;;  %14945 = vmatpush3.bf16.msra.mxu0 %v21592_v60  ;;  %14913 = vmatpush1.bf16.msra.mxu1 %v21594_v58  ;;  %v21606_v60 = vld [vmem:[#allocation90_spill] sm:$0xff] }
0x19c5   : > { %v20409_v19 = vadd.f32 %v13434_v46, %v20392_v1  ;;  %v8715_v38 = vpop.f32.mrb[39].mxu0  ;;  %14947 = vmatprep.subr.bf16.mxu0 %v21595_v21  ;;  %14915 = vmatprep.subr.bf16.mxu1 %v21596_v10  ;;  %v21608_v46 = vld [vmem:[#allocation92_spill] sm:$0xff]  ;;  %v21610_v10 = vld [vmem:[#allocation94_spill] sm:$0xff] }
0x19c6   : > { %v8716_v23 = vadd.f32 %v8715_v38, %v20392_v1  ;;  %8857 = vmatmul.mubr.f32.gmra.mrb[68].mxu1 %v8766_v7  ;;  %13485 = vmatprep.mubr.f32.mxu0 %v8768_v59  ;;  %v21605_v7 = vld [vmem:[#allocation89_spill] sm:$0xff] }
0x19c7   : > { %v8771_v63 = vmax.f32 %v20409_v19, 0.0  ;;  %13486 = vmatmul.mubr.f32.gmra.mrb[52].mxu0 %v8769_v56  ;;  %8862 = vmatprep.mubr.f32.mxu1 %v21581_v62  ;;  %v9729_v19 = vld [vmem:[#allocation16 + $0x8] sm:$0xff] }
0x19c8   : > { %v8770_v2 = vmax.f32 %v8716_v23, 0.0  ;;  %v13437_v31 = vpop.f32.mrb[40].mxu0  ;;  %14949 = vmatpush3.bf16.msra.mxu0 %v21595_v21  ;;  %14917 = vmatpush1.bf16.msra.mxu1 %v21597_v35  ;;  %v21609_v21 = vld [vmem:[#allocation93_spill] sm:$0xff]  ;;  %v21611_v23 = vld [vmem:[#allocation95_spill] sm:$0xff] }
0x19c9   : > { %v20419_v40 = vadd.f32 %v13437_v31, %v20392_v1  ;;  %v8725_v22 = vpop.f32.mrb[41].mxu0  ;;  %14951 = vmatprep.subr.bf16.mxu0 %v21598_v57  ;;  %14919 = vmatprep.subr.bf16.mxu1 %v21599_v5  ;;  %v9728_v31 = vld [vmem:[#allocation16] sm:$0xff]  ;;  %v9730_v35 = vld [vmem:[#allocation16 + $0x10] sm:$0xff] }
0x19ca   : > { %v8726_v47 = vadd.f32 %v8725_v22, %v20392_v1  ;;  %8863 = vmatmul.mubr.f32.gmra.mrb[70].mxu1 %v8767_v6  ;;  %13488 = vmatprep.mubr.f32.mxu0 %v8770_v2  ;;  %v21604_v6 = vld [vmem:[#allocation88_spill] sm:$0xff]  ;;  %v9733_v22 = vld [vmem:[#allocation16 + $0x28] sm:$0xff] }
0x19cb   : > { %v8773_v37 = vmax.f32 %v20419_v40, 0.0  ;;  %13489 = vmatmul.mubr.f32.gmra.mrb[54].mxu0 %v8771_v63  ;;  %8868 = vmatprep.mubr.f32.mxu1 %v21581_v62  ;;  %v14972_v40 = vpack.c.bf16 %v9730_v35, %v9728_v31  ;;  %v9758_v31 = vld [vmem:[#allocation16 + $0xf0] sm:$0xff] }
0x19cc   : > { %v8772_v20 = vmax.f32 %v8726_v47, 0.0  ;;  %v13440_v61 = vpop.f32.mrb[42].mxu0  ;;  %14953 = vmatpush3.bf16.msra.mxu0 %v21598_v57  ;;  %14921 = vmatpush1.bf16.msra.mxu1 %v21600_v43  ;;  %v9735_v57 = vld [vmem:[#allocation16 + $0x38] sm:$0xff]  ;;  %v9732_v47 = vld [vmem:[#allocation16 + $0x20] sm:$0xff] }
0x19cd   : > { %v8741_v32 = vadd.f32 %v13440_v61, %v20392_v1  ;;  %v8735_v45 = vpop.f32.mrb[43].mxu0  ;;  %14955 = vmatprep.subr.bf16.mxu0 %v21601_v17  ;;  %14923 = vmatprep.subr.bf16.mxu1 %v21602_v8  ;;  %v14974_v5 = vpack.c.bf16 %v9735_v57, %v9733_v22  ;;  %v9737_v61 = vld [vmem:[#allocation16 + $0x48] sm:$0xff]  ;;  %v9739_v43 = vld [vmem:[#allocation16 + $0x58] sm:$0xff]  ;;  %v21143_v57 = vmov 0.0|0.0  }
0x19ce   : > { %v8736_v48 = vadd.f32 %v8735_v45, %v20392_v1  ;;  %8869 = vmatmul.mubr.f32.gmra.mrb[72].mxu1 %v8768_v59  ;;  %13491 = vmatprep.mubr.f32.mxu0 %v8772_v20  ;;  %v21607_v59 = vld [vmem:[#allocation91_spill] sm:$0xff]  ;;  %v9736_v45 = vld [vmem:[#allocation16 + $0x40] sm:$0xff] }
0x19cf   : > { %v8775_v41 = vmax.f32 %v8741_v32, 0.0  ;;  %13492 = vmatmul.mubr.f32.gmra.mrb[56].mxu0 %v8773_v37  ;;  %8874 = vmatprep.mubr.f32.mxu1 %v21581_v62  ;;  %v14978_v32 = vpack.c.bf16 %v9739_v43, %v9737_v61 }
0x19d0   : > { %v8774_v9 = vmax.f32 %v8736_v48, 0.0  ;;  %v13443_v44 = vpop.f32.mrb[44].mxu0  ;;  %14957 = vmatpush3.bf16.msra.mxu0 %v21601_v17  ;;  %14925 = vmatpush1.bf16.msra.mxu1 %v21603_v13  ;;  %v9738_v17 = vld [vmem:[#allocation16 + $0x50] sm:$0xff]  ;;  %v9741_v48 = vld [vmem:[#allocation16 + $0x68] sm:$0xff] }
0x19d1   : > { %v8751_v16 = vadd.f32 %v13443_v44, %v20392_v1  ;;  %v8745_v11 = vpop.f32.mrb[45].mxu0  ;;  %14959 = vmatprep.subr.bf16.mxu0 %v21604_v6  ;;  %14927 = vmatprep.subr.bf16.mxu1 %v21605_v7  ;;  %v14980_v8 = vpack.c.bf16 %v9738_v17, %v9736_v45  ;;  %v9740_v44 = vld [vmem:[#allocation16 + $0x60] sm:$0xff]  ;;  %v9742_v13 = vld [vmem:[#allocation16 + $0x70] sm:$0xff] }
0x19d2   : > { %v8746_v14 = vadd.f32 %v8745_v11, %v20392_v1  ;;  %8875 = vmatmul.mubr.f32.gmra.mrb[74].mxu1 %v8769_v56  ;;  %13494 = vmatprep.mubr.f32.mxu0 %v8774_v9  ;;  %v9745_v11 = vld [vmem:[#allocation16 + $0x88] sm:$0xff] }
0x19d3   : > { %v8777_v18 = vmax.f32 %v8751_v16, 0.0  ;;  %13495 = vmatmul.mubr.f32.gmra.mrb[58].mxu0 %v8775_v41  ;;  %8880 = vmatprep.mubr.f32.mxu1 %v21581_v62  ;;  %v14984_v16 = vpack.c.bf16 %v9742_v13, %v9740_v44 }
0x19d4   : > { %v8776_v4 = vmax.f32 %v8746_v14, 0.0  ;;  %v13446_v24 = vpop.f32.mrb[46].mxu0  ;;  %14961 = vmatpush3.bf16.msra.mxu0 %v21604_v6  ;;  %14929 = vmatpush1.bf16.msra.mxu1 %v21606_v60  ;;  %v9747_v6 = vld [vmem:[#allocation16 + $0x98] sm:$0xff]  ;;  %v9744_v14 = vld [vmem:[#allocation16 + $0x80] sm:$0xff] }
0x19d5   : > { %v8761_v28 = vadd.f32 %v13446_v24, %v20392_v1  ;;  %v8755_v53 = vpop.f32.mrb[47].mxu0  ;;  %14963 = vmatprep.subr.bf16.mxu0 %v21607_v59  ;;  %14931 = vmatprep.subr.bf16.mxu1 %v21608_v46  ;;  %v14986_v7 = vpack.c.bf16 %v9747_v6, %v9745_v11  ;;  %v9749_v24 = vld [vmem:[#allocation16 + $0xa8] sm:$0xff]  ;;  %v9751_v60 = vld [vmem:[#allocation16 + $0xb8] sm:$0xff] }
0x19d6   : > { %v8756_v56 = vadd.f32 %v8755_v53, %v20392_v1  ;;  %8881 = vmatmul.mubr.f32.gmra.mrb[76].mxu1 %v8770_v2  ;;  %13497 = vmatprep.mubr.f32.mxu0 %v8776_v4  ;;  %v21612_v1 = vld [vmem:[#allocation96_spill] sm:$0xff]  ;;  %v9748_v53 = vld [vmem:[#allocation16 + $0xa0] sm:$0xff] }
0x19d7   : > { %v8779_v58 = vmax.f32 %v8761_v28, 0.0  ;;  %13498 = vmatmul.mubr.f32.gmra.mrb[60].mxu0 %v8777_v18  ;;  %8886 = vmatprep.mubr.f32.mxu1 %v21581_v62  ;;  %v14990_v28 = vpack.c.bf16 %v9751_v60, %v9749_v24 }
0x19d8   : > { %v8778_v38 = vmax.f32 %v8756_v56, 0.0  ;;  %14965 = vmatpush3.bf16.msra.mxu0 %v21607_v59  ;;  %14933 = vmatpush1.bf16.msra.mxu1 %v21609_v21  ;;  %v9750_v59 = vld [vmem:[#allocation16 + $0xb0] sm:$0xff]  ;;  %v9753_v56 = vld [vmem:[#allocation16 + $0xc8] sm:$0xff]  ;;  %v9752_v21 = vld [vmem:[#allocation16 + $0xc0] sm:$0xff] }
0x19d9   : > { %14967 = vmatprep.subr.bf16.mxu0 %v21610_v10  ;;  %14935 = vmatprep.subr.bf16.mxu1 %v21611_v23  ;;  %v14992_v46 = vpack.c.bf16 %v9750_v59, %v9748_v53 }
0x19da   : > { %8887 = vmatmul.mubr.f32.gmra.mrb[78].mxu1 %v8771_v63  ;;  %13500 = vmatprep.mubr.f32.mxu0 %v8778_v38  ;;  %v9731_v63 = vld [vmem:[#allocation16 + $0x18] sm:$0xff] }
0x19db   : > { %13501 = vmatmul.mubr.f32.gmra.mrb[62].mxu0 %v8779_v58  ;;  %8892 = vmatprep.mubr.f32.mxu1 %v21581_v62  ;;  %v14970_v2 = vpack.c.bf16 %v9731_v63, %v9729_v19  ;;  %v9759_v19 = vld [vmem:[#allocation16 + $0xf8] sm:$0xff] }
0x19dc   : > { %14969 = vmatpush3.bf16.msra.mxu0 %v21610_v10  ;;  %13535 = vmatprep.mubr.f32.mxu0 %v20198_v54  ;;  %v9754_v10 = vld [vmem:[#allocation16 + $0xd0] sm:$0xff] }
0x19dd   : > { %14937 = vmatpush1.bf16.msra.mxu1 %v21612_v1  ;;  %14971 = vmatprep.subr.bf16.mxu0 %v14970_v2  ;;  %v14996_v23 = vpack.c.bf16 %v9754_v10, %v9752_v21  ;;  %v9757_v1 = vld [vmem:[#allocation16 + $0xe8] sm:$0xff]  ;;  %v9756_v2 = vld [vmem:[#allocation16 + $0xe0] sm:$0xff]  ;;  %v17390_v21 = vmov 0  }
0x19de   : > { %8893 = vmatmul.mubr.f32.gmra.mrb[80].mxu1 %v8772_v20  ;;  %v14998_v63 = vpack.c.bf16 %v9759_v19, %v9757_v1  ;;  %v15000_v35 = vpack.c.bf16 %v9758_v31, %v9756_v2  ;;  %15002 = vmatprep.subr.bf16.mxu1 %v21143_v57 }
0x19df   : > { %13536 = vmatmul.mubr.f32.vlgmr.msra.gmra.mrb[64].mxu0 %v20207_v36  ;;  %8898 = vmatprep.mubr.f32.mxu1 %v21581_v62 }
0x19e0   : > { %13538 = vmatprep.mubr.f32.mxu0 %v20215_v27  ;;  %14973 = vmatpush1.bf16.msra.mxu0 %v14972_v40 }
0x19e1   : > { %14975 = vmatprep.subr.bf16.mxu0 %v14974_v5  ;;  %15862 = vset.pattern.permute.xlu0 %v17390_v21 }
0x19e2   : > { %8899 = vmatmul.mubr.f32.gmra.mrb[82].mxu1 %v8773_v37  ;;  %v9734_v37 = vld [vmem:[#allocation16 + $0x30] sm:$0xff] }
0x19e3   : > { %13539 = vmatmul.mubr.f32.gmra.mrb[66].mxu0 %v20226_v50  ;;  %8904 = vmatprep.mubr.f32.mxu1 %v21581_v62  ;;  %v14976_v20 = vpack.c.bf16 %v9734_v37, %v9732_v47 }
0x19e4   : > { %13541 = vmatprep.mubr.f32.mxu0 %v20236_v39 }
0x19e5   : > { %14977 = vmatpush1.bf16.msra.mxu0 %v14976_v20 }
0x19e6   : > { %8905 = vmatmul.mubr.f32.gmra.mrb[84].mxu1 %v8774_v9  ;;  %14979 = vmatprep.subr.bf16.mxu0 %v14978_v32 }
0x19e7   : > { %13542 = vmatmul.mubr.f32.gmra.mrb[68].mxu0 %v20242_v30  ;;  %8910 = vmatprep.mubr.f32.mxu1 %v21581_v62 }
0x19e8   : > { %13544 = vmatprep.mubr.f32.mxu0 %v20256_v33 }
0x19e9   : > { %14981 = vmatpush1.bf16.msra.mxu0 %v14980_v8 }
0x19ea   : > { %8911 = vmatmul.mubr.f32.gmra.mrb[86].mxu1 %v8775_v41  ;;  %v9743_v41 = vld [vmem:[#allocation16 + $0x78] sm:$0xff] }
0x19eb   : > { %13545 = vmatmul.mubr.f32.gmra.mrb[70].mxu0 %v20268_v42  ;;  %8916 = vmatprep.mubr.f32.mxu1 %v21581_v62  ;;  %v14982_v9 = vpack.c.bf16 %v9743_v41, %v9741_v48 }
0x19ec   : > { %13547 = vmatprep.mubr.f32.mxu0 %v20280_v25 }
0x19ed   : > { %14983 = vmatprep.subr.bf16.mxu0 %v14982_v9 }
0x19ee   : > { %8917 = vmatmul.mubr.f32.gmra.mrb[88].mxu1 %v8776_v4  ;;  %14985 = vmatpush1.bf16.msra.mxu0 %v14984_v16 }
0x19ef   : > { %13548 = vmatmul.mubr.f32.gmra.mrb[72].mxu0 %v20286_v0  ;;  %8922 = vmatprep.mubr.f32.mxu1 %v21581_v62 }
0x19f0   : > { %13550 = vmatprep.mubr.f32.mxu0 %v20292_v34  ;;  %14987 = vmatprep.subr.bf16.mxu0 %v14986_v7 }
0x19f2   : > { %8923 = vmatmul.mubr.f32.gmra.mrb[90].mxu1 %v8777_v18  ;;  %v9746_v18 = vld [vmem:[#allocation16 + $0x90] sm:$0xff] }
0x19f3   : > { %13551 = vmatmul.mubr.f32.gmra.mrb[74].mxu0 %v20300_v15  ;;  %8928 = vmatprep.mubr.f32.mxu1 %v21581_v62  ;;  %v14988_v4 = vpack.c.bf16 %v9746_v18, %v9744_v14 }
0x19f4   : > { %13553 = vmatprep.mubr.f32.mxu0 %v20308_v26 }
0x19f5   : > { %14989 = vmatpush1.bf16.msra.mxu0 %v14988_v4 }
0x19f6   : > { %8929 = vmatmul.mubr.f32.gmra.mrb[92].mxu1 %v8778_v38  ;;  %14991 = vmatprep.subr.bf16.mxu0 %v14990_v28 }
0x19f7   : > { %13554 = vmatmul.mubr.f32.gmra.mrb[76].mxu0 %v20312_v51  ;;  %8934 = vmatprep.mubr.f32.mxu1 %v21581_v62 }
0x19f8   : > { %13556 = vmatprep.mubr.f32.mxu0 %v20316_v49 }
0x19f9   : > { %14993 = vmatpush1.bf16.msra.mxu0 %v14992_v46 }
0x19fa   : > { %8935 = vmatmul.mubr.f32.gmra.mrb[94].mxu1 %v8779_v58  ;;  %v9755_v58 = vld [vmem:[#allocation16 + $0xd8] sm:$0xff] }
0x19fb   : > { %13557 = vmatmul.mubr.f32.gmra.mrb[78].mxu0 %v20320_v29  ;;  %9150 = vmatprep.mubr.f32.mxu1 %v21581_v62  ;;  %v14994_v38 = vpack.c.bf16 %v9755_v58, %v9753_v56 }
0x19fc   : > { %9835 = vmatprep.mubr.f32.mxu0 %v21581_v62 }
0x19fd   : > { %14995 = vmatprep.subr.bf16.mxu0 %v14994_v38  ;;  %v9965_v38 = vld [vmem:[%s17885_s18 + $0x8] sm:$0xff] }
0x19fe   : > { %9151 = vmatmul.mubr.f32.vlgmr.msra.gmra.mrb[64].mxu1 %v20198_v54  ;;  %14997 = vmatpush1.bf16.msra.mxu0 %v14996_v23 }
0x19ff   : > { %9156 = vmatprep.mubr.f32.mxu1 %v21581_v62  ;;  %14999 = vmatprep.subr.bf16.mxu0 %v14998_v63 }
0x1a00   : > { %10038 = vperm.xlu0 %15862, %v9965_v38  }
0x1a02   : > { %9157 = vmatmul.mubr.f32.gmra.mrb[66].mxu1 %v20207_v36  ;;  %15001 = vmatpush1.bf16.msra.mxu0 %v15000_v35 }
0x1a03   : > { %9162 = vmatprep.mubr.f32.mxu1 %v21581_v62 }
0x1a06   : > { %9163 = vmatmul.mubr.f32.gmra.mrb[68].mxu1 %v20215_v27 }
0x1a07   : > { %9168 = vmatprep.mubr.f32.mxu1 %v21581_v62 }
0x1a0a   : > { %9169 = vmatmul.mubr.f32.gmra.mrb[70].mxu1 %v20226_v50 }
0x1a0b   : > { %9174 = vmatprep.mubr.f32.mxu1 %v21581_v62 }
0x1a0e   : > { %9175 = vmatmul.mubr.f32.gmra.mrb[72].mxu1 %v20236_v39 }
0x1a0f   : > { %9180 = vmatprep.mubr.f32.mxu1 %v21581_v62 }
0x1a12   : > { %9181 = vmatmul.mubr.f32.gmra.mrb[74].mxu1 %v20242_v30 }
0x1a13   : > { %9186 = vmatprep.mubr.f32.mxu1 %v21581_v62 }
0x1a16   : > { %9187 = vmatmul.mubr.f32.gmra.mrb[76].mxu1 %v20256_v33 }
0x1a17   : > { %9192 = vmatprep.mubr.f32.mxu1 %v21581_v62 }
0x1a1a   : > { %9193 = vmatmul.mubr.f32.gmra.mrb[78].mxu1 %v20268_v42 }
0x1a1b   : > { %9198 = vmatprep.mubr.f32.mxu1 %v21581_v62 }
0x1a1e   : > { %9199 = vmatmul.mubr.f32.gmra.mrb[80].mxu1 %v20280_v25 }
0x1a1f   : > { %9204 = vmatprep.mubr.f32.mxu1 %v21581_v62 }
0x1a22   : > { %9205 = vmatmul.mubr.f32.gmra.mrb[82].mxu1 %v20286_v0 }
0x1a23   : > { %9210 = vmatprep.mubr.f32.mxu1 %v21581_v62 }
0x1a26   : > { %9211 = vmatmul.mubr.f32.gmra.mrb[84].mxu1 %v20292_v34 }
0x1a27   : > { %9216 = vmatprep.mubr.f32.mxu1 %v21581_v62 }
0x1a2a   : > { %9217 = vmatmul.mubr.f32.gmra.mrb[86].mxu1 %v20300_v15 }
0x1a2b   : > { %9222 = vmatprep.mubr.f32.mxu1 %v21581_v62 }
0x1a2e   : > { %9223 = vmatmul.mubr.f32.gmra.mrb[88].mxu1 %v20308_v26 }
0x1a2f   : > { %9228 = vmatprep.mubr.f32.mxu1 %v21581_v62 }
0x1a32   : > { %9229 = vmatmul.mubr.f32.gmra.mrb[90].mxu1 %v20312_v51 }
0x1a33   : > { %9234 = vmatprep.mubr.f32.mxu1 %v21581_v62 }
0x1a36   : > { %9235 = vmatmul.mubr.f32.gmra.mrb[92].mxu1 %v20316_v49 }
0x1a37   : > { %9240 = vmatprep.mubr.f32.mxu1 %v21581_v62 }
0x1a3a   : > { %9241 = vmatmul.mubr.f32.gmra.mrb[94].mxu1 %v20320_v29 }
0x1a3b   : > { %13591 = vmatprep.mubr.msk.f32.mxu1 %vm17389_vm0, %v21581_v62 }
0x1a92   : > { %v20514_v40 = vpop.f32.mrb[48].mxu0 }
0x1a93   : > { %v20516_v22 = vpop.f32.mrb[49].mxu0 }
0x1a96   : > { %v20519_v5 = vpop.f32.mrb[50].mxu0 }
0x1a97   : > { %v20521_v47 = vpop.f32.mrb[51].mxu0 }
0x1a9a   : > { %v20523_v37 = vpop.f32.mrb[52].mxu0 }
0x1a9b   : > { %v20525_v20 = vpop.f32.mrb[53].mxu0 }
0x1a9e   : > { %v20527_v61 = vpop.f32.mrb[54].mxu0 }
0x1a9f   : > { %v20529_v43 = vpop.f32.mrb[55].mxu0 }
0x1aa2   : > { %v20531_v32 = vpop.f32.mrb[56].mxu0 }
0x1aa3   : > { %v20533_v45 = vpop.f32.mrb[57].mxu0 }
0x1aa6   : > { %v20535_v17 = vpop.f32.mrb[58].mxu0 }
0x1aa7   : > { %v20537_v8 = vpop.f32.mrb[59].mxu0 }
0x1aaa   : > { %v20539_v48 = vpop.f32.mrb[60].mxu0 }
0x1aab   : > { %v20541_v41 = vpop.f32.mrb[61].mxu0 }
0x1aae   : > { %v20543_v9 = vpop.f32.mrb[62].mxu0 }
0x1aaf   : > { %21613 = vst [vmem:[#allocation46_spill] sm:$0xff] %v20543_v9  ;;  %v20545_v44 = vpop.f32.mrb[63].mxu0 }
0x1ab0   : > { %21614 = vst [vmem:[#allocation44_spill] sm:$0xff] %v20545_v44 }
0x1ab2   : > { %v20547_v13 = vpop.f32.mrb[64].mxu0 }
0x1ab3   : > { %v20549_v16 = vpop.f32.mrb[65].mxu0 }
0x1ab6   : > { %v20551_v11 = vpop.f32.mrb[66].mxu0 }
0x1ab7   : > { %v20553_v6 = vpop.f32.mrb[67].mxu0 }
0x1aba   : > { %v20555_v7 = vpop.f32.mrb[68].mxu0 }
0x1abb   : > { %v20557_v14 = vpop.f32.mrb[69].mxu0 }
0x1abe   : > { %v20559_v18 = vpop.f32.mrb[70].mxu0 }
0x1abf   : > { %v20561_v4 = vpop.f32.mrb[71].mxu0 }
0x1ac2   : > { %v20563_v24 = vpop.f32.mrb[72].mxu0 }
0x1ac3   : > { %v20565_v60 = vpop.f32.mrb[73].mxu0 }
0x1ac6   : > { %v20567_v28 = vpop.f32.mrb[74].mxu0 }
0x1ac7   : > { %v20569_v53 = vpop.f32.mrb[75].mxu0 }
0x1aca   : > { %v20571_v59 = vpop.f32.mrb[76].mxu0 }
0x1acb   : > { %v20573_v46 = vpop.f32.mrb[77].mxu0 }
0x1ace   : > { %v20576_v56 = vpop.f32.mrb[78].mxu0 }
0x1acf   : > { %21615 = vst [vmem:[#allocation48_spill] sm:$0xff] %v20576_v56  ;;  %v20578_v58 = vpop.f32.mrb[79].mxu0 }
0x1ad0   : > { %21616 = vst [vmem:[#allocation51_spill] sm:$0xff] %v20578_v58 }
0x1ad1   : > { %v9152_v10 = vpop.f32.mrb[64].mxu1 }
0x1ad2   : > { %v15443_v23 = vadd.f32 %v18383_v12, %v9152_v10  ;;  %v9154_v1 = vpop.f32.mrb[65].mxu1 }
0x1ad3   : > { %v15445_v19 = vadd.f32 %v18387_v3, %v9154_v1 }
0x1ad4   : > { %v10769_v63 = vmul.f32 -1.442695, %v15443_v23 }
0x1ad5   : > { %v9158_v2 = vpop.f32.mrb[66].mxu1  ;;  %v10785_v57 = vmul.f32 -1.442695, %v15445_v19 }
0x1ad6   : > { %16663 = vpow2.f32 %v10769_v63  ;;  %v15447_v31 = vadd.f32 %v18383_v12, %v9158_v2  ;;  %v9160_v35 = vpop.f32.mrb[67].mxu1 }
0x1ad7   : > { %v15449_v49 = vadd.f32 %v18387_v3, %v9160_v35 }
0x1ad8   : > { %v10770_v29 = vmul.f32 -1.442695, %v15447_v31 }
0x1ad9   : > { %v9164_v51 = vpop.f32.mrb[68].mxu1  ;;  %v10786_v9 = vmul.f32 -1.442695, %v15449_v49 }
0x1ada   : > { %16665 = vpow2.f32 %v10770_v29  ;;  %v15451_v21 = vadd.f32 %v18383_v12, %v9164_v51  ;;  %v9166_v38 = vpop.f32.mrb[69].mxu1 }
0x1adb   : > { %16667 = vpow2.f32 %v10785_v57  ;;  %v15453_v10 = vadd.f32 %v18387_v3, %v9166_v38 }
0x1adc   : > { %v10771_v1 = vmul.f32 -1.442695, %v15451_v21 }
0x1add   : > { %v10787_v23 = vmul.f32 -1.442695, %v15453_v10  ;;  %v9170_v26 = vpop.f32.mrb[70].mxu1 }
0x1ade   : > { %16669 = vpow2.f32 %v10771_v1  ;;  %v15455_v63 = vadd.f32 %v18383_v12, %v9170_v26  ;;  %v9172_v2 = vpop.f32.mrb[71].mxu1 }
0x1adf   : > { %v15457_v19 = vadd.f32 %v18387_v3, %v9172_v2  ;;  %16671 = vpow2.f32 %v10786_v9 }
0x1ae0   : > { %v16664_v31 = vpop.eup %16663  ;;  %v10772_v35 = vmul.f32 -1.442695, %v15455_v63  ;;  %16673 = vpow2.f32 %v10787_v23 }
0x1ae1   : > { %v9456_v29 = vadd.f32 1.0, %v16664_v31  ;;  %v10788_v51 = vmul.f32 -1.442695, %v15457_v19  ;;  %v9176_v56 = vpop.f32.mrb[72].mxu1 }
0x1ae2   : > { %16675 = vpow2.f32 %v10772_v35  ;;  %v15459_v57 = vadd.f32 %v18383_v12, %v9176_v56  ;;  %v9178_v49 = vpop.f32.mrb[73].mxu1 }
0x1ae3   : > { %16677 = vrcp.f32 %v9456_v29  ;;  %v15461_v21 = vadd.f32 %v18387_v3, %v9178_v49 }
0x1ae4   : > { %v16666_v38 = vpop.eup %16665  ;;  %v10773_v10 = vmul.f32 -1.442695, %v15459_v57  ;;  %16679 = vpow2.f32 %v10788_v51 }
0x1ae5   : > { %v16668_v26 = vpop.eup %16667  ;;  %v9457_v1 = vadd.f32 1.0, %v16666_v38  ;;  %v10789_v2 = vmul.f32 -1.442695, %v15461_v21  ;;  %v9182_v44 = vpop.f32.mrb[74].mxu1 }
0x1ae6   : > { %16681 = vpow2.f32 %v10773_v10  ;;  %v15463_v9 = vadd.f32 %v18383_v12, %v9182_v44  ;;  %v9184_v23 = vpop.f32.mrb[75].mxu1  ;;  %v9568_v56 = vadd.f32 1.0, %v16668_v26 }
0x1ae7   : > { %16683 = vrcp.f32 %v9457_v1  ;;  %v15465_v63 = vadd.f32 %v18387_v3, %v9184_v23  ;;  %v9314_v1 = vadd.f32 %v20549_v16, %v18403_v55 }
0x1ae8   : > { %v16670_v19 = vpop.eup %16669  ;;  %v10774_v31 = vmul.f32 -1.442695, %v15463_v9  ;;  %16685 = vpow2.f32 %v10789_v2 }
0x1ae9   : > { %v9458_v35 = vadd.f32 1.0, %v16670_v19  ;;  %v10790_v29 = vmul.f32 -1.442695, %v15465_v63  ;;  %v9188_v49 = vpop.f32.mrb[76].mxu1  ;;  %v16672_v57 = vpop.eup %16671 }
0x1aea   : > { %16687 = vpow2.f32 %v10774_v31  ;;  %v15467_v51 = vadd.f32 %v18383_v12, %v9188_v49  ;;  %v9190_v21 = vpop.f32.mrb[77].mxu1  ;;  %v16674_v38 = vpop.eup %16673  ;;  %v9569_v23 = vadd.f32 1.0, %v16672_v57  ;;  %v9008_v31 = vadd.f32 %v20516_v22, %v18406_v52 }
0x1aeb   : > { %16689 = vrcp.f32 %v9458_v35  ;;  %v15469_v44 = vadd.f32 %v18387_v3, %v9190_v21  ;;  %v9570_v58 = vadd.f32 1.0, %v16674_v38 }
0x1aec   : > { %v16676_v10 = vpop.eup %16675  ;;  %16691 = vrcp.f32 %v9568_v56  ;;  %v10775_v26 = vmul.f32 -1.442695, %v15467_v51  ;;  %v9319_v56 = vadd.f32 %v20547_v13, %v18403_v55  ;;  %v9324_v13 = vadd.f32 %v20553_v6, %v18403_v55 }
0x1aed   : > { %v16678_v9 = vpop.eup %16677  ;;  %v9459_v2 = vadd.f32 1.0, %v16676_v10  ;;  %16693 = vpow2.f32 %v10790_v29  ;;  %v10791_v63 = vmul.f32 -1.442695, %v15469_v44  ;;  %v9194_v19 = vpop.f32.mrb[78].mxu1 }
0x1aee   : > { %v9616_v49 = vmul.f32 %v16678_v9, %v9314_v1  ;;  %16695 = vpow2.f32 %v10775_v26  ;;  %v15471_v35 = vadd.f32 %v18383_v12, %v9194_v19  ;;  %v9196_v21 = vpop.f32.mrb[79].mxu1  ;;  %v16680_v15 = vpop.eup %16679  ;;  %v9013_v1 = vadd.f32 %v20514_v40, %v18406_v52 }
0x1aef   : > { %16697 = vrcp.f32 %v9459_v2  ;;  %v15473_v22 = vadd.f32 %v18387_v3, %v9196_v21  ;;  %v9571_v2 = vadd.f32 1.0, %v16680_v15  ;;  %v9018_v40 = vadd.f32 %v20521_v47, %v18406_v52 }
0x1af0   : > { %v16682_v16 = vpop.eup %16681  ;;  %v9632_v57 = vadd.f32 %v9616_v49, %v9008_v31  ;;  %16699 = vpow2.f32 %v10791_v63  ;;  %v10776_v44 = vmul.f32 -1.442695, %v15471_v35  ;;  %v9023_v15 = vadd.f32 %v20519_v5, %v18406_v52 }
0x1af1   : > { %v16684_v29 = vpop.eup %16683  ;;  %16701 = vrcp.f32 %v9569_v23  ;;  %v9460_v51 = vadd.f32 1.0, %v16682_v16  ;;  %v9200_v10 = vpop.f32.mrb[80].mxu1  ;;  %v10792_v49 = vmul.f32 -1.442695, %v15473_v22 }
0x1af2   : > { %16703 = vtanh.f32 %v9632_v57  ;;  %v9617_v26 = vmul.f32 %v16684_v29, %v9319_v56  ;;  %v9202_v38 = vpop.f32.mrb[81].mxu1  ;;  %v16686_v9 = vpop.eup %16685  ;;  %v15475_v57 = vadd.f32 %v18383_v12, %v9200_v10  ;;  %v9339_v10 = vadd.f32 %v20555_v7, %v18403_v55 }
0x1af3   : > { %16705 = vrcp.f32 %v9570_v58  ;;  %v9572_v6 = vadd.f32 1.0, %v16686_v9  ;;  %v9334_v9 = vadd.f32 %v20557_v14, %v18403_v55 }
0x1af4   : > { %v16688_v19 = vpop.eup %16687  ;;  %v9633_v63 = vadd.f32 %v9617_v26, %v9013_v1  ;;  %16707 = vrcp.f32 %v9460_v51  ;;  %v9028_v51 = vadd.f32 %v20525_v20, %v18406_v52 }
0x1af5   : > { %v16690_v23 = vpop.eup %16689  ;;  %v9461_v31 = vadd.f32 1.0, %v16688_v19  ;;  %16709 = vpow2.f32 %v10776_v44  ;;  %v9206_v35 = vpop.f32.mrb[82].mxu1  ;;  %v9329_v44 = vadd.f32 %v20551_v11, %v18403_v55 }
0x1af6   : > { %v16692_v21 = vpop.eup %16691  ;;  %16711 = vtanh.f32 %v9633_v63  ;;  %v9618_v16 = vmul.f32 %v16690_v23, %v9324_v13  ;;  %v9208_v56 = vpop.f32.mrb[83].mxu1  ;;  %v15479_v19 = vadd.f32 %v18383_v12, %v9206_v35  ;;  %v10777_v23 = vmul.f32 -1.442695, %v15475_v57 }
0x1af7   : > { %v16694_v58 = vpop.eup %16693  ;;  %16713 = vrcp.f32 %v9571_v2  ;;  %v9664_v63 = vsub.f32 1.0, %v16692_v21 }
0x1af8   : > { %v16696_v29 = vpop.eup %16695  ;;  %v9634_v22 = vadd.f32 %v9618_v16, %v9018_v40  ;;  %16715 = vrcp.f32 %v9461_v31  ;;  %v9573_v1 = vadd.f32 1.0, %v16694_v58  ;;  %v15477_v31 = vadd.f32 %v18387_v3, %v9202_v38 }
0x1af9   : > { %v16698_v47 = vpop.eup %16697  ;;  %v9462_v26 = vadd.f32 1.0, %v16696_v29  ;;  %16717 = vpow2.f32 %v10792_v49  ;;  %v9212_v5 = vpop.f32.mrb[84].mxu1  ;;  %v9696_v29 = vmul.f32 %v16692_v21, %v20198_v54  ;;  %v10778_v14 = vmul.f32 -1.442695, %v15479_v19 }
0x1afa   : > { %v16700_v2 = vpop.eup %16699  ;;  %16719 = vtanh.f32 %v9634_v22  ;;  %v9619_v20 = vmul.f32 %v16698_v47, %v9329_v44  ;;  %v9214_v13 = vpop.f32.mrb[85].mxu1  ;;  %v15483_v16 = vadd.f32 %v18383_v12, %v9212_v5  ;;  %v10793_v5 = vmul.f32 -1.442695, %v15477_v31 }
0x1afb   : > { %v16702_v11 = vpop.eup %16701  ;;  %16721 = vrcp.f32 %v9572_v6  ;;  %v9574_v35 = vadd.f32 1.0, %v16700_v2  ;;  %v15481_v6 = vadd.f32 %v18387_v3, %v9208_v56  ;;  %v15485_v21 = vadd.f32 %v18387_v3, %v9214_v13 }
0x1afc   : > { %v16704_v49 = vpop.eup %16703  ;;  %v9635_v40 = vadd.f32 %v9619_v20, %v9023_v15  ;;  %16723 = vrcp.f32 %v9462_v26  ;;  %v9665_v47 = vsub.f32 1.0, %v16702_v11  ;;  %v9697_v38 = vmul.f32 %v16702_v11, %v20207_v36 }
0x1afd   : > { %v16706_v58 = vpop.eup %16705  ;;  %v9680_v7 = vmul.f32 %v16704_v49, %v9664_v63  ;;  %16725 = vrcp.f32 %v9573_v1  ;;  %v9218_v44 = vpop.f32.mrb[86].mxu1  ;;  %v10779_v54 = vmul.f32 -1.442695, %v15483_v16  ;;  %v9038_v11 = vadd.f32 %v20529_v43, %v18406_v52 }
0x1afe   : > { %v16708_v22 = vpop.eup %16707  ;;  %16727 = vtanh.f32 %v9635_v40  ;;  %v9220_v57 = vpop.f32.mrb[87].mxu1  ;;  %v15487_v49 = vadd.f32 %v18383_v12, %v9218_v44 }
0x1aff   : > { %v16710_v15 = vpop.eup %16709  ;;  %v9712_v26 = vadd.f32 %v9696_v29, %v9680_v7  ;;  %v9620_v2 = vmul.f32 %v16708_v22, %v9334_v9  ;;  %16729 = vpow2.f32 %v10777_v23  ;;  %v9033_v9 = vadd.f32 %v20523_v37, %v18406_v52 }
0x1b00   : > { %v16712_v20 = vpop.eup %16711  ;;  %16731 = vrcp.f32 %v9574_v35  ;;  %v9463_v63 = vadd.f32 1.0, %v16710_v15  ;;  %v10794_v23 = vmul.f32 -1.442695, %v15481_v6  ;;  %v9666_v29 = vsub.f32 1.0, %v16706_v58 }
0x1b01   : > { %v16714_v1 = vpop.eup %16713  ;;  %v9636_v19 = vadd.f32 %v9620_v2, %v9028_v51  ;;  %16733 = vpow2.f32 %v10778_v14  ;;  %v9224_v56 = vpop.f32.mrb[88].mxu1  ;;  %9836 = vmatmul.mubr.f32.vlgmr.msra.gmra.mrb[80].mxu0 %v9712_v26  ;;  %v9681_v40 = vmul.f32 %v16712_v20, %v9665_v47  ;;  %v9344_v51 = vadd.f32 %v20561_v4, %v18403_v55 }
0x1b02   : > { %v16716_v36 = vpop.eup %16715  ;;  %16735 = vrcp.f32 %v9463_v63  ;;  %v9226_v31 = vpop.f32.mrb[89].mxu1  ;;  %9841 = vmatprep.mubr.f32.mxu0 %v21581_v62  ;;  %v10795_v14 = vmul.f32 -1.442695, %v15485_v21  ;;  %v15489_v37 = vadd.f32 %v18387_v3, %v9220_v57  ;;  %v10780_v22 = vmul.f32 -1.442695, %v15487_v49 }
0x1b03   : > { %v16718_v13 = vpop.eup %16717  ;;  %16737 = vtanh.f32 %v9636_v19  ;;  %v9621_v35 = vmul.f32 %v16716_v36, %v9339_v10  ;;  %v9713_v16 = vadd.f32 %v9697_v38, %v9681_v40  ;;  %v9698_v38 = vmul.f32 %v16706_v58, %v20215_v27 }
0x1b04   : > { %v16720_v7 = vpop.eup %16719  ;;  %16739 = vpow2.f32 %v10793_v5  ;;  %v9575_v2 = vadd.f32 1.0, %v16718_v13  ;;  %v9667_v20 = vsub.f32 1.0, %v16714_v1  ;;  %v15491_v63 = vadd.f32 %v18383_v12, %v9224_v56 }
0x1b05   : > { %v16722_v44 = vpop.eup %16721  ;;  %v9637_v43 = vadd.f32 %v9621_v35, %v9033_v9  ;;  %16741 = vpow2.f32 %v10779_v54  ;;  %v9230_v47 = vpop.f32.mrb[90].mxu1  ;;  %9842 = vmatmul.mubr.f32.gmra.mrb[82].mxu0 %v9713_v16  ;;  %v15003_v6 = vpack.c.bf16 %v9713_v16, %v9712_v26  ;;  %v9682_v10 = vmul.f32 %v16720_v7, %v9666_v29 }
0x1b06   : > { %v16724_v15 = vpop.eup %16723  ;;  %16743 = vpow2.f32 %v10794_v23  ;;  %v9232_v4 = vpop.f32.mrb[91].mxu1  ;;  %9847 = vmatprep.mubr.f32.mxu0 %v21581_v62  ;;  %v9699_v21 = vmul.f32 %v16714_v1, %v20226_v50  ;;  %v21617_v19 = vmov 0.0|0.0   ;;  %v10796_v36 = vmul.f32 -1.442695, %v15489_v37 }
0x1b07   : > { %v20638_v5 = vpop.eup %16725  ;;  %16745 = vtanh.f32 %v9637_v43  ;;  %v9622_v57 = vmul.f32 %v16724_v15, %v9344_v51  ;;  %15004 = vmatpush3.bf16.msra.mxu1 %v15003_v6  ;;  %v9714_v26 = vadd.f32 %v9698_v38, %v9682_v10  ;;  %v15493_v56 = vadd.f32 %v18387_v3, %v9226_v31 }
0x1b08   : > { %v16728_v54 = vpop.eup %16727  ;;  %16747 = vpow2.f32 %v10795_v14  ;;  %15005 = vmatprep.subr.bf16.mxu1 %v21617_v19  ;;  %v9349_v50 = vadd.f32 %v20559_v18, %v18403_v55  ;;  %v10781_v1 = vmul.f32 -1.442695, %v15491_v63  ;;  %v9668_v16 = vsub.f32 1.0, %v16722_v44 }
0x1b09   : > { %v16730_v49 = vpop.eup %16729  ;;  %v9638_v40 = vadd.f32 %v9622_v57, %v9038_v11  ;;  %16749 = vpow2.f32 %v10780_v22  ;;  %v9236_v27 = vpop.f32.mrb[92].mxu1  ;;  %v9683_v58 = vmul.f32 %v16728_v54, %v9667_v20  ;;  %9848 = vmatmul.mubr.f32.gmra.mrb[84].mxu0 %v9714_v26  ;;  %v15495_v29 = vadd.f32 %v18383_v12, %v9230_v47 }
0x1b0a   : > { %v20643_v9 = vpop.eup %16731  ;;  %16751 = vrcp.f32 %v9575_v2  ;;  %v9464_v23 = vadd.f32 1.0, %v16730_v49  ;;  %v20646_v13 = vpop.f32.mrb[93].mxu1  ;;  %9853 = vmatprep.mubr.f32.mxu0 %v21581_v62  ;;  %v9043_v31 = vadd.f32 %v20527_v61, %v18406_v52  ;;  %v10797_v6 = vmul.f32 -1.442695, %v15493_v56 }
0x1b0b   : > { %v16734_v51 = vpop.eup %16733  ;;  %16753 = vtanh.f32 %v9638_v40  ;;  %v9715_v11 = vadd.f32 %v9699_v21, %v9683_v58  ;;  %v9700_v10 = vmul.f32 %v16722_v44, %v20236_v39  ;;  %v9669_v47 = vsub.f32 1.0, %v20638_v5 }
0x1b0c   : > { %v16736_v35 = vpop.eup %16735  ;;  %16755 = vrcp.f32 %v9464_v23  ;;  %v9465_v7 = vadd.f32 1.0, %v16734_v51  ;;  %v10782_v63 = vmul.f32 -1.442695, %v15495_v29  ;;  %v15497_v54 = vadd.f32 %v18387_v3, %v9232_v4 }
0x1b0d   : > { %v16738_v14 = vpop.eup %16737  ;;  %v9623_v37 = vmul.f32 %v16736_v35, %v9349_v50  ;;  %16757 = vpow2.f32 %v10796_v36  ;;  %v9242_v43 = vpop.f32.mrb[94].mxu1  ;;  %v15006_v22 = vpack.c.bf16 %v9715_v11, %v9714_v26  ;;  %9854 = vmatmul.mubr.f32.gmra.mrb[86].mxu0 %v9715_v11  ;;  %v15499_v39 = vadd.f32 %v18383_v12, %v9236_v27 }
0x1b0e   : > { %v16740_v18 = vpop.eup %16739  ;;  %16759 = vrcp.f32 %v9465_v7  ;;  %v20654_v15 = vpop.f32.mrb[95].mxu1  ;;  %v9684_v2 = vmul.f32 %v16738_v14, %v9668_v16  ;;  %9859 = vmatprep.mubr.f32.mxu0 %v21581_v62  ;;  %v9701_v36 = vmul.f32 %v20638_v5, %v20242_v30  ;;  %v9048_v23 = vadd.f32 %v20533_v45, %v18406_v52 }
0x1b0f   : > { %v16742_v38 = vpop.eup %16741  ;;  %v9639_v20 = vadd.f32 %v9623_v37, %v9043_v31  ;;  %16761 = vpow2.f32 %v10781_v1  ;;  %15007 = vmatpush3.bf16.msra.mxu1 %v15006_v22  ;;  %v9576_v49 = vadd.f32 1.0, %v16740_v18  ;;  %v9670_v4 = vsub.f32 1.0, %v20643_v9 }
0x1b10   : > { %v16744_v61 = vpop.eup %16743  ;;  %v9466_v57 = vadd.f32 1.0, %v16742_v38  ;;  %v9716_v26 = vadd.f32 %v9700_v10, %v9684_v2  ;;  %15008 = vmatprep.subr.bf16.mxu1 %v21617_v19  ;;  %v10798_v27 = vmul.f32 -1.442695, %v15497_v54  ;;  %v9354_v35 = vadd.f32 %v20565_v60, %v18403_v55 }
0x1b11   : > { %v16746_v21 = vpop.eup %16745  ;;  %16763 = vtanh.f32 %v9639_v20  ;;  %v9577_v56 = vadd.f32 1.0, %v16744_v61  ;;  %v10783_v30 = vmul.f32 -1.442695, %v15499_v39  ;;  %v9702_v45 = vmul.f32 %v20643_v9, %v20256_v33 }
0x1b12   : > { %v16748_v44 = vpop.eup %16747  ;;  %16765 = vpow2.f32 %v10797_v6  ;;  %9860 = vmatmul.mubr.f32.gmra.mrb[88].mxu0 %v9716_v26  ;;  %v9685_v40 = vmul.f32 %v16746_v21, %v9669_v47  ;;  %v9359_v31 = vadd.f32 %v20563_v24, %v18403_v55  ;;  %v15503_v22 = vadd.f32 %v18383_v12, %v9242_v43 }
0x1b13   : > { %v16750_v58 = vpop.eup %16749  ;;  %16767 = vrcp.f32 %v9466_v57  ;;  %9865 = vmatprep.mubr.f32.mxu0 %v21581_v62  ;;  %v9578_v16 = vadd.f32 1.0, %v16748_v44  ;;  %v15501_v33 = vadd.f32 %v18387_v3, %v20646_v13  ;;  %v9053_v6 = vadd.f32 %v20531_v32, %v18406_v52 }
0x1b14   : > { %v16752_v51 = vpop.eup %16751  ;;  %v9467_v50 = vadd.f32 1.0, %v16750_v58  ;;  %16769 = vpow2.f32 %v10782_v63  ;;  %v9717_v1 = vadd.f32 %v9701_v36, %v9685_v40  ;;  %v9364_v13 = vadd.f32 %v20569_v53, %v18403_v55 }
0x1b15   : > { %v16754_v11 = vpop.eup %16753  ;;  %16771 = vrcp.f32 %v9576_v49  ;;  %v9671_v24 = vsub.f32 1.0, %v16752_v51  ;;  %v10784_v20 = vmul.f32 -1.442695, %v15503_v22  ;;  %v10799_v61 = vmul.f32 -1.442695, %v15501_v33 }
0x1b16   : > { %v16756_v5 = vpop.eup %16755  ;;  %16773 = vrcp.f32 %v9467_v50  ;;  %9866 = vmatmul.mubr.f32.gmra.mrb[90].mxu0 %v9717_v1  ;;  %v15009_v7 = vpack.c.bf16 %v9717_v1, %v9716_v26  ;;  %v9686_v29 = vmul.f32 %v16754_v11, %v9670_v4  ;;  %v9703_v63 = vmul.f32 %v16752_v51, %v20268_v42 }
0x1b17   : > { %v16758_v14 = vpop.eup %16757  ;;  %v9624_v37 = vmul.f32 %v16756_v5, %v9354_v35  ;;  %16775 = vrcp.f32 %v9577_v56  ;;  %9871 = vmatprep.mubr.f32.mxu0 %v21581_v62  ;;  %v9058_v26 = vadd.f32 %v20537_v8, %v18406_v52  ;;  %v15505_v53 = vadd.f32 %v18387_v3, %v20654_v15 }
0x1b18   : > { %v16760_v60 = vpop.eup %16759  ;;  %16777 = vpow2.f32 %v10798_v27  ;;  %15010 = vmatpush3.bf16.msra.mxu1 %v15009_v7  ;;  %v9718_v9 = vadd.f32 %v9702_v45, %v9686_v29  ;;  %v9579_v12 = vadd.f32 1.0, %v16758_v14  ;;  %v9369_v40 = vadd.f32 %v20567_v28, %v18403_v55 }
0x1b19   : > { %v16762_v18 = vpop.eup %16761  ;;  %v9640_v2 = vadd.f32 %v9624_v37, %v9048_v23  ;;  %v9625_v10 = vmul.f32 %v16760_v60, %v9359_v31  ;;  %16779 = vpow2.f32 %v10783_v30  ;;  %15011 = vmatprep.subr.bf16.mxu1 %v21617_v19  ;;  %v9063_v56 = vadd.f32 %v20535_v17, %v18406_v52 }
0x1b1a   : > { %16781 = vrcp.f32 %v9578_v16  ;;  %v9468_v43 = vadd.f32 1.0, %v16762_v18  ;;  %9872 = vmatmul.mubr.f32.gmra.mrb[92].mxu0 %v9718_v9  ;;  %v10800_v15 = vmul.f32 -1.442695, %v15505_v53  ;;  %v9374_v17 = vadd.f32 %v20573_v46, %v18403_v55  ;;  %v21620_v53 = vld [vmem:[#allocation44_spill] sm:$0xff] }
0x1b1b   : > { %v16764_v38 = vpop.eup %16763  ;;  %16783 = vtanh.f32 %v9640_v2  ;;  %v9641_v47 = vadd.f32 %v9625_v10, %v9053_v6  ;;  %9877 = vmatprep.mubr.f32.mxu0 %v21581_v62  ;;  %v9068_v14 = vadd.f32 %v20541_v41, %v18406_v52 }
0x1b1c   : > { %v16766_v32 = vpop.eup %16765  ;;  %16785 = vrcp.f32 %v9468_v43  ;;  %v9687_v57 = vmul.f32 %v16764_v38, %v9671_v24 }
0x1b1d   : > { %v16768_v54 = vpop.eup %16767  ;;  %16787 = vtanh.f32 %v9641_v47  ;;  %v9580_v23 = vadd.f32 1.0, %v16766_v32 }
0x1b1e   : > { %v16770_v21 = vpop.eup %16769  ;;  %v9626_v49 = vmul.f32 %v16768_v54, %v9364_v13  ;;  %16789 = vrcp.f32 %v9579_v12  ;;  %v9719_v39 = vadd.f32 %v9703_v63, %v9687_v57  ;;  %v9073_v12 = vadd.f32 %v20539_v48, %v18406_v52  ;;  %v21618_v48 = vld [vmem:[#allocation51_spill] sm:$0xff] }
0x1b1f   : > { %v16772_v44 = vpop.eup %16771  ;;  %v9469_v36 = vadd.f32 1.0, %v16770_v21  ;;  %16791 = vpow2.f32 %v10784_v20  ;;  %v9384_v54 = vadd.f32 %v21618_v48, %v18403_v55  ;;  %v21619_v21 = vld [vmem:[#allocation42_spill] sm:$0xff] }
0x1b20   : > { %v16774_v58 = vpop.eup %16773  ;;  %v9642_v42 = vadd.f32 %v9626_v49, %v9058_v26  ;;  %16793 = vpow2.f32 %v10799_v61  ;;  %9878 = vmatmul.mubr.f32.gmra.mrb[94].mxu0 %v9719_v39  ;;  %v15012_v8 = vpack.c.bf16 %v9719_v39, %v9718_v9  ;;  %v9672_v1 = vsub.f32 1.0, %v16772_v44 }
0x1b21   : > { %v16776_v4 = vpop.eup %16775  ;;  %v9627_v51 = vmul.f32 %v16774_v58, %v9369_v40  ;;  %16795 = vrcp.f32 %v9469_v36  ;;  %9883 = vmatprep.mubr.f32.mxu0 %v21581_v62  ;;  %v9704_v30 = vmul.f32 %v16772_v44, %v20280_v25  ;;  %v9379_v25 = vadd.f32 %v20571_v59, %v18403_v55 }
0x1b22   : > { %v16778_v3 = vpop.eup %16777  ;;  %16797 = vtanh.f32 %v9642_v42  ;;  %15013 = vmatpush3.bf16.msra.mxu1 %v15012_v8  ;;  %v9673_v5 = vsub.f32 1.0, %v16776_v4  ;;  %v9705_v33 = vmul.f32 %v16776_v4, %v20286_v0  ;;  %v9078_v39 = vadd.f32 %v21620_v53, %v18406_v52 }
0x1b23   : > { %v16780_v28 = vpop.eup %16779  ;;  %v9643_v50 = vadd.f32 %v9627_v51, %v9063_v56  ;;  %15014 = vmatprep.subr.bf16.mxu1 %v21617_v19  ;;  %16799 = vrcp.f32 %v9580_v23  ;;  %v9581_v16 = vadd.f32 1.0, %v16778_v3  ;;  %v21621_v56 = vld [vmem:[#allocation48_spill] sm:$0xff] }
0x1b24   : > { %v16782_v27 = vpop.eup %16781  ;;  %v9470_v11 = vadd.f32 1.0, %v16780_v28  ;;  %v9389_v51 = vadd.f32 %v21621_v56, %v18403_v55  ;;  %v21622_v28 = vld [vmem:[#allocation47_spill] sm:$0xff]  ;;  %v10063_v56 = vld [vmem:[#allocation17 + $0xa8] sm:$0xff] }
0x1b25   : > { %v16784_v35 = vpop.eup %16783  ;;  %16801 = vtanh.f32 %v9643_v50  ;;  %v9674_v24 = vsub.f32 1.0, %v16782_v27  ;;  %v9706_v13 = vmul.f32 %v16782_v27, %v20292_v34  ;;  %v21623_v27 = vld [vmem:[#allocation46_spill] sm:$0xff] }
0x1b26   : > { %v16786_v45 = vpop.eup %16785  ;;  %16803 = vpow2.f32 %v10800_v15  ;;  %v9688_v7 = vmul.f32 %v16784_v35, %v9672_v1  ;;  %v9083_v1 = vadd.f32 %v21623_v27, %v18406_v52  ;;  %v10067_v27 = vld [vmem:[#allocation17 + $0xc8] sm:$0xff] }
0x1b27   : > { %v16788_v29 = vpop.eup %16787  ;;  %v9628_v31 = vmul.f32 %v16786_v45, %v9374_v17  ;;  %16805 = vrcp.f32 %v9470_v11 }
0x1b28   : > { %v16790_v37 = vpop.eup %16789  ;;  %v9720_v22 = vadd.f32 %v9704_v30, %v9688_v7  ;;  %v9689_v60 = vmul.f32 %v16788_v29, %v9673_v5  ;;  %16807 = vrcp.f32 %v9581_v16  ;;  %v21624_v5 = vld [vmem:[#allocation43_spill] sm:$0xff] }
0x1b29   : > { %v16792_v46 = vpop.eup %16791  ;;  %v9644_v9 = vadd.f32 %v9628_v31, %v9068_v14  ;;  %v9675_v47 = vsub.f32 1.0, %v16790_v37  ;;  %v9707_v34 = vmul.f32 %v16790_v37, %v21619_v21 }
0x1b2a   : > { %v16794_v18 = vpop.eup %16793  ;;  %v9471_v6 = vadd.f32 1.0, %v16792_v46  ;;  %9884 = vmatmul.mubr.f32.gmra.mrb[96].mxu0 %v9720_v22  ;;  %v9721_v2 = vadd.f32 %v9705_v33, %v9689_v60  ;;  %v21625_v60 = vld [vmem:[#allocation97_spill] sm:$0xff] }
0x1b2b   : > { %v16796_v10 = vpop.eup %16795  ;;  %16809 = vtanh.f32 %v9644_v9  ;;  %9889 = vmatprep.mubr.f32.mxu0 %v21581_v62  ;;  %v9582_v32 = vadd.f32 1.0, %v16794_v18 }
0x1b2c   : > { %v16798_v41 = vpop.eup %16797  ;;  %v9629_v0 = vmul.f32 %v16796_v10, %v9379_v25  ;;  %16811 = vrcp.f32 %v9471_v6  ;;  %v15015_v43 = vpack.c.bf16 %v9721_v2, %v9720_v22  ;;  %v21626_v6 = vld [vmem:[#allocation45_spill] sm:$0xff] }
0x1b2d   : > { %v9690_v38 = vmul.f32 %v16798_v41, %v9674_v24  ;;  %v16800_v59 = vpop.eup %16799  ;;  %v9964_v41 = vld [vmem:[%s17885_s18] sm:$0xff] }
0x1b2e   : > { %v9645_v20 = vadd.f32 %v9629_v0, %v9073_v12  ;;  %9890 = vmatmul.mubr.f32.gmra.mrb[98].mxu0 %v9721_v2  ;;  %15016 = vmatpush3.bf16.msra.mxu1 %v15015_v43  ;;  %v9676_v42 = vsub.f32 1.0, %v16800_v59  ;;  %v9708_v50 = vmul.f32 %v16800_v59, %v21622_v28  ;;  %v10043_v12 = vld [vmem:[#allocation17 + $0x8] sm:$0xff]  ;;  %v10045_v0 = vld [vmem:[#allocation17 + $0x18] sm:$0xff]  ;;  %v10042_v43 = vld [vmem:[#allocation17] sm:$0xff] }
0x1b2f   : > { %v16802_v61 = vpop.eup %16801  ;;  %9895 = vmatprep.mubr.f32.mxu0 %v21581_v62  ;;  %v9722_v57 = vadd.f32 %v9706_v13, %v9690_v38  ;;  %15017 = vmatprep.subr.bf16.mxu1 %v21617_v19  ;;  %v10044_v38 = vld [vmem:[#allocation17 + $0x10] sm:$0xff]  ;;  %v10047_v59 = vld [vmem:[#allocation17 + $0x28] sm:$0xff] }
0x1b30   : > { %v16804_v63 = vpop.eup %16803  ;;  %16813 = vtanh.f32 %v9645_v20  ;;  %v9691_v26 = vmul.f32 %v16802_v61, %v9675_v47  ;;  %v15028_v13 = vpack.c.bf16 %v10044_v38, %v10042_v43  ;;  %v10049_v47 = vld [vmem:[#allocation17 + $0x38] sm:$0xff]  ;;  %v10048_v61 = vld [vmem:[#allocation17 + $0x30] sm:$0xff] }
0x1b31   : > { %v16806_v49 = vpop.eup %16805  ;;  %16815 = vrcp.f32 %v9582_v32  ;;  %v9583_v36 = vadd.f32 1.0, %v16804_v63  ;;  %v15030_v20 = vpack.c.bf16 %v10049_v47, %v10047_v59  ;;  %v10046_v32 = vld [vmem:[#allocation17 + $0x20] sm:$0xff]  ;;  %v10053_v63 = vld [vmem:[#allocation17 + $0x58] sm:$0xff]  ;;  %v10064_v28 = vld [vmem:[#allocation17 + $0xb0] sm:$0xff] }
0x1b32   : > { %v9630_v44 = vmul.f32 %v16806_v49, %v9384_v54  ;;  %9896 = vmatmul.mubr.f32.gmra.mrb[100].mxu0 %v9722_v57  ;;  %v9723_v40 = vadd.f32 %v9707_v34, %v9691_v26  ;;  %v16808_v58 = vpop.eup %16807  ;;  %v10050_v54 = vld [vmem:[#allocation17 + $0x40] sm:$0xff]  ;;  %v10052_v26 = vld [vmem:[#allocation17 + $0x50] sm:$0xff]  ;;  %v10055_v34 = vld [vmem:[#allocation17 + $0x68] sm:$0xff] }
0x1b33   : > { %9901 = vmatprep.mubr.f32.mxu0 %v21581_v62  ;;  %v9677_v17 = vsub.f32 1.0, %v16808_v58  ;;  %v9709_v16 = vmul.f32 %v16808_v58, %v21624_v5  ;;  %v15036_v21 = vpack.c.bf16 %v10052_v26, %v10050_v54  ;;  %v10057_v49 = vld [vmem:[#allocation17 + $0x78] sm:$0xff]  ;;  %v10172_v59 = vld [vmem:[#allocation19 + $0x70] sm:$0xff]  ;;  %v10175_v47 = vld [vmem:[#allocation19 + $0x88] sm:$0xff] }
0x1b34   : > { %v9646_v23 = vadd.f32 %v9630_v44, %v9078_v39  ;;  %v15018_v8 = vpack.c.bf16 %v9723_v40, %v9722_v57  ;;  %v15032_v57 = vpack.c.bf16 %v10048_v61, %v10046_v32  ;;  %v15038_v53 = vpack.c.bf16 %v10057_v49, %v10055_v34  ;;  %v10054_v39 = vld [vmem:[#allocation17 + $0x60] sm:$0xff]  ;;  %v10056_v44 = vld [vmem:[#allocation17 + $0x70] sm:$0xff]  ;;  %v10061_v58 = vld [vmem:[#allocation17 + $0x98] sm:$0xff] }
0x1b35   : > { %v16810_v4 = vpop.eup %16809  ;;  %v10180_v34 = vld [vmem:[#allocation19 + $0xb0] sm:$0xff]  ;;  %v10183_v49 = vld [vmem:[#allocation19 + $0xc8] sm:$0xff] }
0x1b36   : > { %v16812_v3 = vpop.eup %16811  ;;  %16817 = vtanh.f32 %v9646_v23  ;;  %9902 = vmatmul.mubr.f32.gmra.mrb[102].mxu0 %v9723_v40  ;;  %15019 = vmatpush3.bf16.msra.mxu1 %v15018_v8  ;;  %v9692_v15 = vmul.f32 %v16810_v4, %v9676_v42  ;;  %v15040_v40 = vpack.c.bf16 %v10056_v44, %v10054_v39  ;;  %v10058_v23 = vld [vmem:[#allocation17 + $0x80] sm:$0xff]  ;;  %v10060_v8 = vld [vmem:[#allocation17 + $0x90] sm:$0xff] }
0x1b37   : > { %v9631_v11 = vmul.f32 %v16812_v3, %v9389_v51  ;;  %16819 = vrcp.f32 %v9583_v36  ;;  %9907 = vmatprep.mubr.f32.mxu0 %v21581_v62  ;;  %15020 = vmatprep.subr.bf16.mxu1 %v21617_v19  ;;  %v10059_v36 = vld [vmem:[#allocation17 + $0x88] sm:$0xff]  ;;  %v15044_v4 = vpack.c.bf16 %v10060_v8, %v10058_v23  ;;  %v10065_v51 = vld [vmem:[#allocation17 + $0xb8] sm:$0xff] }
0x1b38   : > { %v9724_v35 = vadd.f32 %v9708_v50, %v9692_v15  ;;  %v15042_v42 = vpack.c.bf16 %v10061_v58, %v10059_v36  ;;  %v15046_v3 = vpack.c.bf16 %v10065_v51, %v10063_v56  ;;  %v10062_v15 = vld [vmem:[#allocation17 + $0xa0] sm:$0xff]  ;;  %v10184_v36 = vld [vmem:[#allocation19 + $0xd0] sm:$0xff]  ;;  %v10187_v58 = vld [vmem:[#allocation19 + $0xe8] sm:$0xff] }
0x1b39   : > { %v9647_v30 = vadd.f32 %v9631_v11, %v9083_v1  ;;  %v15048_v50 = vpack.c.bf16 %v10064_v28, %v10062_v15  ;;  %v10069_v1 = vld [vmem:[#allocation17 + $0xd8] sm:$0xff]  ;;  %v10188_v56 = vld [vmem:[#allocation19 + $0xf0] sm:$0xff]  ;;  %v10191_v51 = vld [vmem:[#allocation19 + $0x108] sm:$0xff] }
0x1b3a   : > { %v16814_v55 = vpop.eup %16813  ;;  %9908 = vmatmul.mubr.f32.gmra.mrb[104].mxu0 %v9724_v35  ;;  %v15050_v11 = vpack.c.bf16 %v10069_v1, %v10067_v27  ;;  %v10192_v27 = vld [vmem:[#allocation19 + $0x110] sm:$0xff]  ;;  %v10195_v1 = vld [vmem:[#allocation19 + $0x128] sm:$0xff] }
0x1b3b   : > { %16821 = vtanh.f32 %v9647_v30  ;;  %9913 = vmatprep.mubr.f32.mxu0 %v21581_v62  ;;  %v9693_v45 = vmul.f32 %v16814_v55, %v9677_v17  ;;  %v16816_v7 = vpop.eup %16815  ;;  %v10068_v17 = vld [vmem:[#allocation17 + $0xd0] sm:$0xff]  ;;  %v10071_v55 = vld [vmem:[#allocation17 + $0xe8] sm:$0xff] }
0x1b3c   : > { %v9678_v52 = vsub.f32 1.0, %v16816_v7  ;;  %v9710_v33 = vmul.f32 %v16816_v7, %v21625_v60  ;;  %v10072_v7 = vld [vmem:[#allocation17 + $0xf0] sm:$0xff]  ;;  %v10163_v60 = vld [vmem:[#allocation19 + $0x28] sm:$0xff] }
0x1b3d   : > { %v9725_v29 = vadd.f32 %v9709_v16, %v9693_v45  ;;  %v10073_v45 = vld [vmem:[#allocation17 + $0xf8] sm:$0xff]  ;;  %v10070_v16 = vld [vmem:[#allocation17 + $0xe0] sm:$0xff] }
0x1b3e   : > { %v15054_v5 = vpack.c.bf16 %v10073_v45, %v10071_v55  ;;  %v10196_v55 = vld [vmem:[#allocation19 + $0x130] sm:$0xff]  ;;  %v10199_v45 = vld [vmem:[#allocation19 + $0x148] sm:$0xff] }
0x1b3f   : > { %9914 = vmatmul.mubr.f32.gmra.mrb[106].mxu0 %v9725_v29  ;;  %v15021_v14 = vpack.c.bf16 %v9725_v29, %v9724_v35  ;;  %v10066_v35 = vld [vmem:[#allocation17 + $0xc0] sm:$0xff]  ;;  %v15056_v29 = vpack.c.bf16 %v10072_v7, %v10070_v16 }
0x1b40   : > { %v16818_v31 = vpop.eup %16817  ;;  %9919 = vmatprep.mubr.f32.mxu0 %v21581_v62  ;;  %v15052_v30 = vpack.c.bf16 %v10068_v17, %v10066_v35 }
0x1b41   : > { %v16820_v37 = vpop.eup %16819  ;;  %15022 = vmatpush3.bf16.msra.mxu1 %v15021_v14  ;;  %v9694_v22 = vmul.f32 %v16818_v31, %v9678_v52  ;;  %v10159_v52 = vld [vmem:[#allocation19 + $0x8] sm:$0xff]  ;;  %v10161_v14 = vld [vmem:[#allocation19 + $0x18] sm:$0xff]  ;;  %v10158_v31 = vld [vmem:[#allocation19] sm:$0xff] }
0x1b42   : > { %15023 = vmatprep.subr.bf16.mxu1 %v21617_v19  ;;  %v9679_v9 = vsub.f32 1.0, %v16820_v37  ;;  %v9711_v2 = vmul.f32 %v16820_v37, %v21626_v6  ;;  %v15026_v19 = vpack.c.bf16 %v10045_v0, %v10043_v12  ;;  %v15058_v37 = vpack.c.bf16 %v10161_v14, %v10159_v52  ;;  %v10167_v6 = vld [vmem:[#allocation19 + $0x48] sm:$0xff]  ;;  %v10168_v12 = vld [vmem:[#allocation19 + $0x50] sm:$0xff] }
0x1b43   : > { %v9726_v46 = vadd.f32 %v9710_v33, %v9694_v22  ;;  %v10160_v22 = vld [vmem:[#allocation19 + $0x10] sm:$0xff]  ;;  %v10165_v33 = vld [vmem:[#allocation19 + $0x38] sm:$0xff]  ;;  %v10171_v0 = vld [vmem:[#allocation19 + $0x68] sm:$0xff] }
0x1b44   : > { %15027 = vmatprep.subr.bf16.mxu0 %v15026_v19  ;;  %v10173_v19 = vld [vmem:[#allocation19 + $0x78] sm:$0xff]  ;;  %v10200_v52 = vld [vmem:[#allocation19 + $0x150] sm:$0xff]  ;;  %v10203_v14 = vld [vmem:[#allocation19 + $0x168] sm:$0xff] }
0x1b45   : > { %v16822_v18 = vpop.eup %16821  ;;  %9920 = vmatmul.mubr.f32.gmra.mrb[108].mxu0 %v9726_v46  ;;  %v15070_v38 = vpack.c.bf16 %v10173_v19, %v10171_v0  ;;  %v10208_v0 = vld [vmem:[#allocation19 + $0x190] sm:$0xff]  ;;  %v10211_v19 = vld [vmem:[#allocation19 + $0x1a8] sm:$0xff] }
0x1b46   : > { %9925 = vmatprep.mubr.f32.mxu0 %v21581_v62  ;;  %v9695_v25 = vmul.f32 %v16822_v18, %v9679_v9  ;;  %15029 = vmatpush1.bf16.msra.mxu0 %v15028_v13  ;;  %v15062_v9 = vpack.c.bf16 %v10165_v33, %v10163_v60  ;;  %v10162_v18 = vld [vmem:[#allocation19 + $0x20] sm:$0xff] }
0x1b47   : > { %15031 = vmatprep.subr.bf16.mxu0 %v15030_v20  ;;  %v10170_v13 = vld [vmem:[#allocation19 + $0x60] sm:$0xff]  ;;  %v10177_v20 = vld [vmem:[#allocation19 + $0x98] sm:$0xff] }
0x1b48   : > { %v9727_v10 = vadd.f32 %v9711_v2, %v9695_v25  ;;  %v10164_v25 = vld [vmem:[#allocation19 + $0x30] sm:$0xff]  ;;  %v10169_v2 = vld [vmem:[#allocation19 + $0x58] sm:$0xff]  ;;  %v15072_v32 = vpack.c.bf16 %v10172_v59, %v10170_v13  ;;  %v15074_v61 = vpack.c.bf16 %v10177_v20, %v10175_v47  ;;  %v10202_v33 = vld [vmem:[#allocation19 + $0x160] sm:$0xff] }
0x1b4a   : > { %9926 = vmatmul.mubr.f32.gmra.mrb[110].mxu0 %v9727_v10  ;;  %v15024_v24 = vpack.c.bf16 %v9727_v10, %v9726_v46  ;;  %v15060_v46 = vpack.c.bf16 %v10160_v22, %v10158_v31  ;;  %v15064_v10 = vpack.c.bf16 %v10164_v25, %v10162_v18  ;;  %v10205_v31 = vld [vmem:[#allocation19 + $0x178] sm:$0xff]  ;;  %v21627_v25 = vld [vmem:[#allocation98_spill] sm:$0xff] }
0x1b4b   : > { %10149 = vmatprep.mubr.f32.mxu0 %v21581_v62  ;;  %15033 = vmatpush1.bf16.msra.mxu0 %v15032_v57  ;;  %v10051_v62 = vld [vmem:[#allocation17 + $0x48] sm:$0xff]  ;;  %v10174_v57 = vld [vmem:[#allocation19 + $0x80] sm:$0xff]  ;;  %v15102_v60 = vpack.c.bf16 %v10205_v31, %v10203_v14  ;;  %v10209_v18 = vld [vmem:[#allocation19 + $0x198] sm:$0xff] }
0x1b4c   : > { %15025 = vmatpush3.bf16.msra.mxu1 %v15024_v24  ;;  %v15034_v48 = vpack.c.bf16 %v10053_v63, %v10051_v62  ;;  %v15066_v24 = vpack.c.bf16 %v10169_v2, %v10167_v6  ;;  %v10176_v62 = vld [vmem:[#allocation19 + $0x90] sm:$0xff]  ;;  %v10179_v63 = vld [vmem:[#allocation19 + $0xa8] sm:$0xff]  ;;  %v682_v22 = vld [vmem:[#allocation20 + $0x1f] ss:$8 sm:$0x3] }
0x1b4d   : > { %15059 = vmatprep.subr.bf16.mxu1 %v15058_v37  ;;  %v15076_v54 = vpack.c.bf16 %v10176_v62, %v10174_v57  ;;  %v20733_v6 = vrot.slane %v682_v22, %v21627_v25  ;;  %v10212_v57 = vld [vmem:[#allocation19 + $0x1b0] sm:$0xff]  ;;  %v10215_v62 = vld [vmem:[#allocation19 + $0x1c8] sm:$0xff] }
0x1b4e   : > { %15035 = vmatprep.subr.bf16.mxu0 %v15034_v48  ;;  %v10181_v48 = vld [vmem:[#allocation19 + $0xb8] sm:$0xff] }
0x1b4f   : > { %13592 = vmatmul.mubr.f32.vlgmr.msra.gmra.mrb[96].mxu1 %v9964_v41  ;;  %15037 = vmatpush1.bf16.msra.mxu0 %v15036_v21  ;;  %v10166_v41 = vld [vmem:[#allocation19 + $0x40] sm:$0xff]  ;;  %v15078_v26 = vpack.c.bf16 %v10181_v48, %v10179_v63  ;;  %v10217_v63 = vld [vmem:[#allocation19 + $0x1d8] sm:$0xff] }
0x1b50   : > { %15039 = vmatprep.subr.bf16.mxu0 %v15038_v53  ;;  %15061 = vmatpush1.bf16.msra.mxu1 %v15060_v46  ;;  %v15068_v43 = vpack.c.bf16 %v10168_v12, %v10166_v41  ;;  %v10178_v21 = vld [vmem:[#allocation19 + $0xa0] sm:$0xff]  ;;  %v10185_v53 = vld [vmem:[#allocation19 + $0xd8] sm:$0xff]  ;;  %v10204_v46 = vld [vmem:[#allocation19 + $0x170] sm:$0xff] }
0x1b51   : > { %15063 = vmatprep.subr.bf16.mxu1 %v15062_v9  ;;  %v15080_v39 = vpack.c.bf16 %v10180_v34, %v10178_v21  ;;  %v15082_v44 = vpack.c.bf16 %v10185_v53, %v10183_v49  ;;  %v10207_v9 = vld [vmem:[#allocation19 + $0x188] sm:$0xff]  ;;  %v15104_v2 = vpack.c.bf16 %v10204_v46, %v10202_v33  ;;  %v10206_v12 = vld [vmem:[#allocation19 + $0x180] sm:$0xff]  ;;  %v15114_v49 = vpack.c.bf16 %v10217_v63, %v10215_v62 }
0x1b52   : > { %v15106_v41 = vpack.c.bf16 %v10209_v18, %v10207_v9  ;;  %v15108_v47 = vpack.c.bf16 %v10208_v0, %v10206_v12 }
0x1b53   : > { %15041 = vmatpush1.bf16.msra.mxu0 %v15040_v40  ;;  %v10182_v40 = vld [vmem:[#allocation19 + $0xc0] sm:$0xff] }
0x1b54   : > { %15043 = vmatprep.subr.bf16.mxu0 %v15042_v42  ;;  %15065 = vmatpush1.bf16.msra.mxu1 %v15064_v10  ;;  %v10189_v42 = vld [vmem:[#allocation19 + $0xf8] sm:$0xff]  ;;  %v15084_v23 = vpack.c.bf16 %v10184_v36, %v10182_v40  ;;  %v21628_v10 = vld [vmem:[#allocation99_spill] sm:$0xff] }
0x1b55   : > { %15067 = vmatprep.subr.bf16.mxu1 %v15066_v24  ;;  %v15086_v8 = vpack.c.bf16 %v10189_v42, %v10187_v58  ;;  %v20736_v24 = vrot.slane %v682_v22, %v21628_v10 }
0x1b57   : > { %15045 = vmatpush1.bf16.msra.mxu0 %v15044_v4  ;;  %v10186_v4 = vld [vmem:[#allocation19 + $0xe0] sm:$0xff] }
0x1b58   : > { %15047 = vmatprep.subr.bf16.mxu0 %v15046_v3  ;;  %15069 = vmatpush1.bf16.msra.mxu1 %v15068_v43  ;;  %v10193_v3 = vld [vmem:[#allocation19 + $0x118] sm:$0xff]  ;;  %v15088_v15 = vpack.c.bf16 %v10188_v56, %v10186_v4 }
0x1b59   : > { %15071 = vmatprep.subr.bf16.mxu1 %v15070_v38  ;;  %v15090_v28 = vpack.c.bf16 %v10193_v3, %v10191_v51  ;;  %v10213_v43 = vld [vmem:[#allocation19 + $0x1b8] sm:$0xff] }
0x1b5b   : > { %15049 = vmatpush1.bf16.msra.mxu0 %v15048_v50  ;;  %v10190_v50 = vld [vmem:[#allocation19 + $0x100] sm:$0xff] }
0x1b5c   : > { %15051 = vmatprep.subr.bf16.mxu0 %v15050_v11  ;;  %15073 = vmatpush1.bf16.msra.mxu1 %v15072_v32  ;;  %v10197_v11 = vld [vmem:[#allocation19 + $0x138] sm:$0xff]  ;;  %v15092_v35 = vpack.c.bf16 %v10192_v27, %v10190_v50  ;;  %v15110_v32 = vpack.c.bf16 %v10213_v43, %v10211_v19 }
0x1b5d   : > { %15075 = vmatprep.subr.bf16.mxu1 %v15074_v61  ;;  %v15094_v17 = vpack.c.bf16 %v10197_v11, %v10195_v1  ;;  %v10210_v61 = vld [vmem:[#allocation19 + $0x1a0] sm:$0xff] }
0x1b5e   : > { %v15112_v21 = vpack.c.bf16 %v10212_v57, %v10210_v61 }
0x1b5f   : > { %15053 = vmatpush1.bf16.msra.mxu0 %v15052_v30  ;;  %v10194_v30 = vld [vmem:[#allocation19 + $0x120] sm:$0xff] }
0x1b60   : > { %15055 = vmatprep.subr.bf16.mxu0 %v15054_v5  ;;  %15077 = vmatpush1.bf16.msra.mxu1 %v15076_v54  ;;  %v10201_v5 = vld [vmem:[#allocation19 + $0x158] sm:$0xff]  ;;  %v15096_v16 = vpack.c.bf16 %v10196_v55, %v10194_v30 }
0x1b61   : > { %15079 = vmatprep.subr.bf16.mxu1 %v15078_v26  ;;  %v15098_v7 = vpack.c.bf16 %v10201_v5, %v10199_v45 }
0x1b63   : > { %15057 = vmatpush1.bf16.msra.mxu0 %v15056_v29  ;;  %v10198_v29 = vld [vmem:[#allocation19 + $0x140] sm:$0xff] }
0x1b64   : > { %15081 = vmatpush1.bf16.msra.mxu1 %v15080_v39  ;;  %v15100_v37 = vpack.c.bf16 %v10200_v52, %v10198_v29 }
0x1b65   : > { %15083 = vmatprep.subr.bf16.mxu1 %v15082_v44 }
0x1b68   : > { %15085 = vmatpush1.bf16.msra.mxu1 %v15084_v23 }
0x1b69   : > { %15087 = vmatprep.subr.bf16.mxu1 %v15086_v8 }
0x1b6c   : > { %15089 = vmatpush1.bf16.msra.mxu1 %v15088_v15 }
0x1b6d   : > { %15091 = vmatprep.subr.bf16.mxu1 %v15090_v28 }
0x1b70   : > { %15093 = vmatpush1.bf16.msra.mxu1 %v15092_v35 }
0x1b71   : > { %15095 = vmatprep.subr.bf16.mxu1 %v15094_v17 }
0x1b74   : > { %15097 = vmatpush1.bf16.msra.mxu1 %v15096_v16 }
0x1b75   : > { %15099 = vmatprep.subr.bf16.mxu1 %v15098_v7 }
0x1b78   : > { %15101 = vmatpush1.bf16.msra.mxu1 %v15100_v37 }
0x1b79   : > { %15103 = vmatprep.subr.bf16.mxu1 %v15102_v60 }
0x1b7c   : > { %15105 = vmatpush1.bf16.msra.mxu1 %v15104_v2 }
0x1b7d   : > { %15107 = vmatprep.subr.bf16.mxu1 %v15106_v41 }
0x1b80   : > { %15109 = vmatpush1.bf16.msra.mxu1 %v15108_v47 }
0x1b81   : > { %15111 = vmatprep.subr.bf16.mxu1 %v15110_v32 }
0x1b84   : > { %15113 = vmatpush1.bf16.msra.mxu1 %v15112_v21 }
0x1b85   : > { %15115 = vmatprep.subr.bf16.mxu1 %v15114_v49 }
0x1bd4   : > { %v9837_v38 = vpop.f32.mrb[80].mxu0 }
0x1bd5   : > { %v9838_v13 = vadd.f32 %v9837_v38, %v20733_v6  ;;  %v9839_v59 = vpop.f32.mrb[81].mxu0 }
0x1bd6   : > { %v9840_v20 = vadd.f32 %v9839_v59, %v20736_v24 }
0x1bd7   : > { %9932 = vst [vmem:[%s20740_s29] sm:$0xff] %v9838_v13 }
0x1bd8   : > { %9933 = vst [vmem:[%s20740_s29 + $0x8] sm:$0xff] %v9840_v20  ;;  %v9843_v48 = vpop.f32.mrb[82].mxu0 }
0x1bd9   : > { %v9844_v54 = vadd.f32 %v9843_v48, %v20733_v6  ;;  %v9845_v26 = vpop.f32.mrb[83].mxu0 }
0x1bda   : > { %v9846_v34 = vadd.f32 %v9845_v26, %v20736_v24  ;;  %v10039_v26 = vpop.permute.xlu0 %10038 }
0x1bdb   : > { %9934 = vst [vmem:[%s20740_s29 + $0x10] sm:$0xff] %v9844_v54 }
0x1bdc   : > { %9935 = vst [vmem:[%s20740_s29 + $0x18] sm:$0xff] %v9846_v34  ;;  %v9849_v53 = vpop.f32.mrb[84].mxu0 }
0x1bdd   : > { %v9850_v39 = vadd.f32 %v9849_v53, %v20733_v6  ;;  %v9851_v44 = vpop.f32.mrb[85].mxu0  ;;  %v10214_v53 = vld [vmem:[#allocation19 + $0x1c0] sm:$0xff] }
0x1bde   : > { %v9852_v40 = vadd.f32 %v9851_v44, %v20736_v24 }
0x1bdf   : > { %9936 = vst [vmem:[%s20740_s29 + $0x20] sm:$0xff] %v9850_v39  ;;  %v10216_v39 = vld [vmem:[#allocation19 + $0x1d0] sm:$0xff] }
0x1be0   : > { %9937 = vst [vmem:[%s20740_s29 + $0x28] sm:$0xff] %v9852_v40  ;;  %v9855_v36 = vpop.f32.mrb[86].mxu0  ;;  %v15116_v44 = vpack.c.bf16 %v10216_v39, %v10214_v53  ;;  %v10219_v40 = vld [vmem:[#allocation19 + $0x1e8] sm:$0xff] }
0x1be1   : > { %v9856_v58 = vadd.f32 %v9855_v36, %v20733_v6  ;;  %v9857_v42 = vpop.f32.mrb[87].mxu0  ;;  %v10221_v36 = vld [vmem:[#allocation19 + $0x1f8] sm:$0xff] }
0x1be2   : > { %v9858_v23 = vadd.f32 %v9857_v42, %v20736_v24  ;;  %15117 = vmatpush1.bf16.msra.mxu1 %v15116_v44  ;;  %v10218_v42 = vld [vmem:[#allocation19 + $0x1e0] sm:$0xff] }
0x1be3   : > { %9938 = vst [vmem:[%s20740_s29 + $0x30] sm:$0xff] %v9856_v58  ;;  %v15118_v58 = vpack.c.bf16 %v10221_v36, %v10219_v40 }
0x1be4   : > { %9939 = vst [vmem:[%s20740_s29 + $0x38] sm:$0xff] %v9858_v23 }
0x1be5   : > { %v9861_v8 = vpop.f32.mrb[88].mxu0  ;;  %15119 = vmatprep.subr.bf16.mxu1 %v15118_v58 }
0x1be6   : > { %v9862_v4 = vadd.f32 %v9861_v8, %v20733_v6  ;;  %v9863_v56 = vpop.f32.mrb[89].mxu0 }
0x1be7   : > { %v9864_v51 = vadd.f32 %v9863_v56, %v20736_v24 }
0x1be8   : > { %9940 = vst [vmem:[%s20740_s29 + $0x40] sm:$0xff] %v9862_v4 }
0x1be9   : > { %9941 = vst [vmem:[%s20740_s29 + $0x48] sm:$0xff] %v9864_v51  ;;  %v9867_v3 = vpop.f32.mrb[90].mxu0 }
0x1bea   : > { %v9868_v15 = vadd.f32 %v9867_v3, %v20733_v6  ;;  %v9869_v28 = vpop.f32.mrb[91].mxu0 }
0x1beb   : > { %v9870_v50 = vadd.f32 %v9869_v28, %v20736_v24 }
0x1bec   : > { %9942 = vst [vmem:[%s20740_s29 + $0x50] sm:$0xff] %v9868_v15 }
0x1bed   : > { %9943 = vst [vmem:[%s20740_s29 + $0x58] sm:$0xff] %v9870_v50  ;;  %v9873_v27 = vpop.f32.mrb[92].mxu0 }
0x1bee   : > { %v9874_v1 = vadd.f32 %v9873_v27, %v20733_v6  ;;  %v9875_v11 = vpop.f32.mrb[93].mxu0 }
0x1bef   : > { %v9876_v35 = vadd.f32 %v9875_v11, %v20736_v24 }
0x1bf0   : > { %9944 = vst [vmem:[%s20740_s29 + $0x60] sm:$0xff] %v9874_v1 }
0x1bf1   : > { %9945 = vst [vmem:[%s20740_s29 + $0x68] sm:$0xff] %v9876_v35 }
0x1bf3   : > { %v9879_v17 = vpop.f32.mrb[94].mxu0 }
0x1bf4   : > { %v9880_v30 = vadd.f32 %v9879_v17, %v20733_v6  ;;  %v9881_v55 = vpop.f32.mrb[95].mxu0 }
0x1bf5   : > { %v9882_v45 = vadd.f32 %v9881_v55, %v20736_v24 }
0x1bf6   : > { %9946 = vst [vmem:[%s20740_s29 + $0x70] sm:$0xff] %v9880_v30 }
0x1bf7   : > { %9947 = vst [vmem:[%s20740_s29 + $0x78] sm:$0xff] %v9882_v45 }
0x1bfd   : > { %v9885_v5 = vpop.f32.mrb[96].mxu0 }
0x1bfe   : > { %v9886_v16 = vadd.f32 %v9885_v5, %v20733_v6  ;;  %v9887_v7 = vpop.f32.mrb[97].mxu0 }
0x1bff   : > { %v9888_v29 = vadd.f32 %v9887_v7, %v20736_v24 }
0x1c00   : > { %9948 = vst [vmem:[%s20740_s29 + $0x80] sm:$0xff] %v9886_v16 }
0x1c01   : > { %9949 = vst [vmem:[%s20740_s29 + $0x88] sm:$0xff] %v9888_v29  ;;  %v9891_v52 = vpop.f32.mrb[98].mxu0 }
0x1c02   : > { %v9892_v14 = vadd.f32 %v9891_v52, %v20733_v6  ;;  %v9893_v31 = vpop.f32.mrb[99].mxu0 }
0x1c03   : > { %v9894_v37 = vadd.f32 %v9893_v31, %v20736_v24 }
0x1c04   : > { %9950 = vst [vmem:[%s20740_s29 + $0x90] sm:$0xff] %v9892_v14 }
0x1c05   : > { %9951 = vst [vmem:[%s20740_s29 + $0x98] sm:$0xff] %v9894_v37  ;;  %v9897_v22 = vpop.f32.mrb[100].mxu0 }
0x1c06   : > { %v9898_v60 = vadd.f32 %v9897_v22, %v20733_v6  ;;  %v9899_v33 = vpop.f32.mrb[101].mxu0 }
0x1c07   : > { %v9900_v46 = vadd.f32 %v9899_v33, %v20736_v24 }
0x1c08   : > { %9952 = vst [vmem:[%s20740_s29 + $0xa0] sm:$0xff] %v9898_v60 }
0x1c09   : > { %9953 = vst [vmem:[%s20740_s29 + $0xa8] sm:$0xff] %v9900_v46  ;;  %v9903_v9 = vpop.f32.mrb[102].mxu0 }
0x1c0a   : > { %v9904_v18 = vadd.f32 %v9903_v9, %v20733_v6  ;;  %v9905_v2 = vpop.f32.mrb[103].mxu0 }
0x1c0b   : > { %v9906_v41 = vadd.f32 %v9905_v2, %v20736_v24 }
0x1c0c   : > { %9954 = vst [vmem:[%s20740_s29 + $0xb0] sm:$0xff] %v9904_v18 }
0x1c0d   : > { %9955 = vst [vmem:[%s20740_s29 + $0xb8] sm:$0xff] %v9906_v41  ;;  %v9909_v12 = vpop.f32.mrb[104].mxu0 }
0x1c0e   : > { %v9910_v0 = vadd.f32 %v9909_v12, %v20733_v6  ;;  %v9911_v19 = vpop.f32.mrb[105].mxu0 }
0x1c0f   : > { %v9912_v43 = vadd.f32 %v9911_v19, %v20736_v24 }
0x1c10   : > { %9956 = vst [vmem:[%s20740_s29 + $0xc0] sm:$0xff] %v9910_v0 }
0x1c11   : > { %9957 = vst [vmem:[%s20740_s29 + $0xc8] sm:$0xff] %v9912_v43 }
0x1c12   : > { %v9915_v38 = vpop.f32.mrb[106].mxu0 }
0x1c13   : > { %v9916_v13 = vadd.f32 %v9915_v38, %v20733_v6  ;;  %v9917_v59 = vpop.f32.mrb[107].mxu0 }
0x1c14   : > { %v9918_v47 = vadd.f32 %v9917_v59, %v20736_v24 }
0x1c15   : > { %9958 = vst [vmem:[%s20740_s29 + $0xd0] sm:$0xff] %v9916_v13 }
0x1c16   : > { %9959 = vst [vmem:[%s20740_s29 + $0xd8] sm:$0xff] %v9918_v47 }
0x1c18   : > { %v9921_v20 = vpop.f32.mrb[108].mxu0 }
0x1c19   : > { %v9922_v32 = vadd.f32 %v9921_v20, %v20733_v6  ;;  %v9923_v61 = vpop.f32.mrb[109].mxu0 }
0x1c1a   : > { %v9924_v57 = vadd.f32 %v9923_v61, %v20736_v24 }
0x1c1b   : > { %9960 = vst [vmem:[%s20740_s29 + $0xe0] sm:$0xff] %v9922_v32 }
0x1c1c   : > { %9961 = vst [vmem:[%s20740_s29 + $0xe8] sm:$0xff] %v9924_v57 }
0x1c1d   : > { %v9927_v62 = vpop.f32.mrb[110].mxu0 }
0x1c1e   : > { %v9928_v63 = vadd.f32 %v9927_v62, %v20733_v6  ;;  %v9929_v48 = vpop.f32.mrb[111].mxu0  ;;  %v10220_v6 = vld [vmem:[#allocation19 + $0x1f0] sm:$0xff] }
0x1c1f   : > { %v9930_v54 = vadd.f32 %v9929_v48, %v20736_v24  ;;  %v15120_v23 = vpack.c.bf16 %v10220_v6, %v10218_v42  ;;  %v684_v24 = vld [vmem:[#allocation20 + $0x30] ss:$8 sm:$0x3] }
0x1c20   : > { %9962 = vst [vmem:[%s20740_s29 + $0xf0] sm:$0xff] %v9928_v63  ;;  %v10078_v8 = vrot.slane %v684_v24, %v21627_v25  ;;  %v10082_v4 = vrot.slane %v684_v24, %v21628_v10 }
0x1c21   : > { %9963 = vst [vmem:[%s20740_s29 + $0xf8] sm:$0xff] %v9930_v54  ;;  %15121 = vmatpush1.bf16.msra.mxu1 %v15120_v23 }
0x1c22   : > { %v10032_v21 = vpop.f32.mrb[96].mxu1 }
0x1c23   : > { %v10041_v34 = vmul.f32 %v10039_v26, %v10032_v21  ;;  %v13593_v49 = vpop.f32.mrb[97].mxu1 }
0x1c25   : > { %10150 = vmatmul.mubr.f32.vlgmr.msra.gmra.mrb[112].mxu0 %v10041_v34 }
0x1cf8   : > { %v10151_v56 = vpop.f32.mrb[112].mxu0 }
0x1cf9   : > { %v10152_v51 = vadd.f32 %v10151_v56, %v10078_v8  ;;  %v10153_v3 = vpop.f32.mrb[113].mxu0 }
0x1cfa   : > { %v10154_v15 = vadd.f32 %v10153_v3, %v10082_v4 }
0x1cfb   : > { %v10156_v50 = vmax.f32 %v10152_v51, 0.0 }
0x1cfc   : > { %v10157_v28 = vmax.f32 %v10154_v15, 0.0 }
0x1cfe   : > { %10297 = vmatprep.mubr.f32.mxu1 %v10157_v28 }
0x1cff   : > { %10298 = vmatmul.mubr.f32.vlgmr.msra.gmra.mrb[98].mxu1 %v10156_v50 }
0x1d00   : > { %17258 = shalt.err (!%p17255_p0)
}
0x1d01   : > { %s17259_s24 = scalar_lea.hbm %s20810_s17, 4096  ;;  %s17263_s9 = scalar_lea.hbm %s21630_s5, 8192 }
0x1d02   : > { %p17260_p5 = scmp.ne.s32.totalorder %s20810_s17, %s17259_s24  ;;  %p17264_p2 = scmp.lt.u32.totalorder %s20810_s17, %s21630_s5 }
0x1d03   : > { %p17265_p4 = scmp.lt.u32.totalorder %s17263_s9, %s17259_s24  ;;  %p17267_p7 = scmp.lt.u32.totalorder %s17259_s24, %s20810_s17 }
0x1d04   : > { %p17261_p8 = pnand %p17260_p5, %p21631_p9 }
0x1d05   : > { %p17266_p10 = por %p17265_p4, %p17264_p2 }
0x1d06   : > { %p17262_p1 = pneg %p17261_p8 }
0x1d07   : > { %p17268_p13 = por %p17267_p7, %p17266_p10 }
0x1d09   : > { %p17269_p6 = pnand %p17268_p13, %p17262_p1 }
0x1d0b   : > { %17272 = shalt.err (!%p17269_p6)
}
0x1d0c   : > { %s17392_s18 = smov 256   ;;  %s17393_s30 = smov 16   ;;  %v686_v27 = vld [vmem:[#allocation20 + $0x31] ss:$8 sm:$0x3] }
0x1d0d   : > { %15740 = dma.vmem_to_hbm [thread:$0]  (%p21631_p9), %s20813_s21, 4096, %s20810_s17, %s10307_s23, %s17392_s18, %s17392_s18, %s17393_s30   ;;  %v10226_v1 = vrot.slane %v686_v27, %v21627_v25  ;;  %v10230_v11 = vrot.slane %v686_v27, %v21628_v10 }
0x1d0e   : > { %s10813_s29 = sshll.u32 %s21203_s19, 8  ;;  %s675_s1 = scalar_lea.vmem [#allocation23], %s10597_s14 }
0x1d0f   : > { %s10342_s7 = sshll.u32 %s675_s1, 4  ;;  %s21632_s4 = sld [smem:[#allocation110_spill]]  ;;  %s20849_s7 = int_to_ptr.vmem [resolvable:$true] %s10342_s7 }
0x1d10   : > { %s10312_s19 = scalar_lea.sflag [#allocation24], %s17865_s2  ;;  %s17273_s17 = scalar_lea.vmem %s20849_s7, 256 }
0x1d11   : > { %p17274_p11 = scmp.ne.s32.totalorder %s20849_s7, %s17273_s17  ;;  %s17394_s14 = smov [#allocation23]  }
0x1d12   : > { %s17277_s21 = sshll.u32 %s17394_s14, 4  ;;  %s17278_s21 = int_to_ptr.vmem [resolvable:$false] %s17277_s21 }
0x1d13   : > { %p17275_p3 = pnand %p17274_p11, %p21631_p9  ;;  %s17279_s23 = scalar_lea.vmem %s17278_s21, 512 }
0x1d14   : > { %p17280_p0 = scmp.lt.s32.totalorder %s20849_s7, %s17278_s21  ;;  %p17281_p5 = scmp.lt.s32.totalorder %s17279_s23, %s17273_s17 }
0x1d15   : > { %s20847_s20 = scalar_lea.hbm %s21632_s4, %s10813_s29  ;;  %p17276_p12 = pneg %p17275_p3 }
0x1d16   : > { %p17282_p8 = por %p17281_p5, %p17280_p0 }
0x1d18   : > { %p17283_p1 = pnand %p17282_p8, %p17276_p12 }
0x1dd2   : > { %v10299_v35 = vpop.f32.mrb[98].mxu1 }
0x1dd3   : > { %v10300_v17 = vadd.f32 %v10299_v35, %v10226_v1  ;;  %v10301_v30 = vpop.f32.mrb[99].mxu1 }
0x1dd4   : > { %v10302_v55 = vadd.f32 %v10301_v30, %v10230_v11 }
0x1dd5   : > { %10304 = vst [vmem:[%s675_s1] sm:$0xff] %v10300_v17 }
0x1dd6   : > { %10305 = vst [vmem:[%s675_s1 + $0x8] sm:$0xff] %v10302_v55 }
0x1dd7   : > { %17286 = shalt.err (!%p17283_p1)
}
0x1dd8   : > { %s17287_s2 = scalar_lea.hbm %s20847_s20, 256  ;;  %s17291_s27 = scalar_lea.hbm %s21632_s4, 512 }
0x1dd9   : > { %p17288_p2 = scmp.ne.s32.totalorder %s20847_s20, %s17287_s2  ;;  %p17292_p7 = scmp.lt.u32.totalorder %s20847_s20, %s21632_s4 }
0x1dda   : > { %p17293_p13 = scmp.lt.u32.totalorder %s17291_s27, %s17287_s2  ;;  %p17295_p11 = scmp.lt.u32.totalorder %s17287_s2, %s20847_s20 }
0x1ddb   : > { %p17289_p4 = pnand %p17288_p2, %p21631_p9 }
0x1ddc   : > { %p17294_p6 = por %p17293_p13, %p17292_p7 }
0x1ddd   : > { %p17290_p10 = pneg %p17289_p4 }
0x1dde   : > { %p17296_p3 = por %p17295_p11, %p17294_p6 }
0x1de0   : > { %p17297_p12 = pnand %p17296_p3, %p17290_p10 }
0x1de2   : > { %17300 = shalt.err (!%p17297_p12)
}
0x1de3   : > { %15741 = dma.vmem_to_hbm [thread:$0]  (%p21631_p9), %s20849_s7, 256, %s20847_s20, %s10312_s19  }
0x1de4 PF: > { %s21633_s15 = sld [smem:[#allocation34_spill]]  ;;  %s21634_s22 = sld [smem:[#allocation41_spill]] }
0x1de5   : > { %p21636_p5 = scmp.ge.s32.totalorder %s17367_s28, 2 }
0x1dea   : > { %s10354_s18 = sand.u32 1, %s21633_s15   ;;  %p21635_p0 = scmp.ne.s32.totalorder %s21634_s22, 0 }
0x1deb   : > { %s10355_s30 = scalar_lea.sflag [#allocation4], %s10354_s18 }
0x1dec   : > { %p15783_p8 = pnand %p21636_p5, %p21635_p0 }
0x1dee   : > { %17346 = dma.done.wait (!%p15783_p8), %s10355_s30, 4096  }
0x1def   : > { %17348 = vsyncadd (!%p15783_p8), %s10355_s30, 4294963200  ;;  %s10364_s29 = scalar_lea.sflag [#allocation24], %s10354_s18 }
0x1df0   : > { %17350 = dma.done.wait (!%p15783_p8), %s10364_s29, 256  }
0x1df1   : > { %17352 = vsyncadd (!%p15783_p8), %s10364_s29, 4294967040  ;;  %s21637_s28 = sld [smem:[#allocation38_spill]]  ;;  %s21638_s3 = sld [smem:[#allocation35_spill]] }
0x1df2   : > { %s21639_s27 = sld [smem:[#allocation39_spill]]  ;;  %s21640_s25 = smov %s17359_s26 }
0x1df7   : > { %p38_p9 = scmp.ge.s32.totalorder %s21637_s28, 4   ;;  %s21641_s26 = smov %s21638_s3 }
0x1df9   :  { %40 = sbr.rel (!%p38_p9) target bundleno = 26 (0x1a), region = 205 }
0x1e00   :  { %10369 = vsyncpa [#allocation3], 1 }
0x1e01   :  { %10371 = vsyncpa [#allocation3 + $0x1], 1 }
0x1e02   :  { %10372 = vsyncpa [#allocation6], 1 }
0x1e03   :  { %10374 = vsyncpa [#allocation6 + $0x1], 1 }
0x1e04   :  { %10375 = vsyncpa [#allocation9], 1 }
0x1e05   :  { %10376 = vsyncpa [#allocation12], 1 }
0x1e06   :  { %10377 = vsyncpa [#allocation15], 1 }
0x1e07   :  { %10378 = vsyncpa [#allocation18], 1 }
0x1e08   :  { %10379 = vsyncpa [#allocation21], 1 }
0x1e09   :  { %10380 = vsyncpa [#allocation4], 1 }
0x1e0a   :  { %10382 = vsyncpa [#allocation4 + $0x1], 1 }
0x1e0b   :  { %10383 = vsyncpa [#allocation24], 1 }
0x1e0c   :  { %10385 = vsyncpa [#allocation24 + $0x1], 1 }

</bundles_post_ra>
